<compile_context>
chip_gen: v5e
topology: v5e:2x2
jax: 0.10.0
libtpu: 0.0.40
codegen_flags: <defaults>
</compile_context>

<pallas_src>
import jax
import jax.numpy as jnp
import numpy as np
from jax.experimental import pallas as pl
from jax.experimental.pallas import tpu as pltpu

H, W = 13, 14            # (H-6)*(W-6)*32 = 7*8*32 = 1792, as the Linear layer requires
WP = W + 2               # 16: padded width (conv1 "same" padding) = lane-group count
RH = H + 2               # 15: padded height
BT = 16                  # batch elements per grid step (multiple of 8)
R1, R2, R3, R4 = 13, 11, 9, 7   # valid image rows after conv1..conv4


def _actor_kernel(a0_ref, w1_ref, b1_ref, w2_ref, b2_ref, w3_ref, b3_ref,
                  w4_ref, b4_ref, wl_ref, bl_ref, out_ref):
    def conv(x, w_ref, b_ref, rows_out):
        m = rows_out * BT
        acc = jnp.dot(x[0:m, :], w_ref[0], preferred_element_type=jnp.float32)
        acc = acc + jnp.dot(x[BT:BT + m, :], w_ref[1],
                            preferred_element_type=jnp.float32)
        acc = acc + jnp.dot(x[2 * BT:2 * BT + m, :], w_ref[2],
                            preferred_element_type=jnp.float32)
        return jnp.maximum(acc + b_ref[...], 0.0)          # bias + ReLU (lane-dense)

    a0 = a0_ref[0]                       # (15*BT, 16*4)  padded input, rows = i*BT + b
    a1 = conv(a0, w1_ref, b1_ref, R1)    # (13*BT, 16*4)
    a2 = conv(a1, w2_ref, b2_ref, R2)    # (11*BT, 16*8)
    a3 = conv(a2, w3_ref, b3_ref, R3)    # ( 9*BT, 16*16)
    a4 = conv(a3, w4_ref, b4_ref, R4)    # ( 7*BT, 16*32)

    y = jnp.zeros((BT, 12), jnp.float32)
    for i in range(R4):                  # 7 aligned (BT,512)@(512,12) matmuls
        y = y + jnp.dot(a4[i * BT:(i + 1) * BT, :], wl_ref[i],
                        preferred_element_type=jnp.float32)
    out_ref[0] = jnp.tanh(y + bl_ref[...])                  # (BT, 12)


@jax.jit
def actor_forward_pallas(x_nchw, params):
    w1, b1, w2, b2, w3, b3, w4, b4, wl, bl = params
    B = x_nchw.shape[0]
    assert x_nchw.shape == (B, 4, H, W)

    # ---- input: NCHW -> NHWC, conv1 "same" pad, rows = i*BT + b, lanes = j*4 + c
    x = jnp.transpose(x_nchw, (0, 2, 3, 1)).astype(jnp.float32)      # (B,13,14,4)
    x = jnp.pad(x, ((0, 0), (1, 1), (1, 1), (0, 0)))                 # (B,15,16,4)
    nb = -(-B // BT)
    Bp = nb * BT
    x = jnp.pad(x, ((0, Bp - B), (0, 0), (0, 0), (0, 0)))
    x = x.reshape(nb, BT, RH, WP * 4)
    x = jnp.transpose(x, (0, 2, 1, 3)).reshape(nb, RH * BT, WP * 4)  # (nb, 240, 64)

    # ---- conv weights: banded (col,chan)-fused matrices, one per kernel row ki
    def band(w):                                 # (Cout, Cin, 3, 3) -> (3, 16*Cin, 16*Cout)
        cout, cin = w.shape[0], w.shape[1]
        rows = []
        for ki in range(3):
            m = jnp.zeros((WP * cin, WP * cout), jnp.float32)
            for kj in range(3):
                m = m + jnp.kron(jnp.eye(WP, k=-kj, dtype=jnp.float32),
                                 w[:, :, ki, kj].T)
            rows.append(m)
        return jnp.stack(rows)

    def lane_bias(b):                            # (C,) -> (1, 16*C), lane = j*C + c
        return jnp.tile(b, (WP,)).reshape(1, WP * b.shape[0])

    w1b, w2b, w3b, w4b = band(w1), band(w2), band(w3), band(w4)
    b1l, b2l, b3l, b4l = lane_bias(b1), lane_bias(b2), lane_bias(b3), lane_bias(b4)

    # ---- linear: (12,1792) keyed by c*56+i*8+j -> (7, 16*32, 12), zeros at j >= 8
    wlr = jnp.transpose(wl.reshape(12, 32, 7, 8), (2, 3, 1, 0))      # (7, 8, 32, 12)
    wlr = jnp.pad(wlr, ((0, 0), (0, WP - 8), (0, 0), (0, 0)))        # (7, 16, 32, 12)
    wlr = wlr.reshape(R4, WP * 32, 12)
    blr = bl.reshape(1, 12)

    def full_spec(a):
        n = a.ndim
        return pl.BlockSpec(a.shape, lambda g, _n=n: (0,) * _n)

    out = pl.pallas_call(
        _actor_kernel,
        out_shape=jax.ShapeDtypeStruct((nb, BT, 12), jnp.float32),
        grid_spec=pltpu.PrefetchScalarGridSpec(
            num_scalar_prefetch=0,
            grid=(nb,),
            in_specs=[pl.BlockSpec((1, RH * BT, WP * 4), lambda g: (g, 0, 0)),
                      full_spec(w1b), full_spec(b1l),
                      full_spec(w2b), full_spec(b2l),
                      full_spec(w3b), full_spec(b3l),
                      full_spec(w4b), full_spec(b4l),
                      full_spec(wlr), full_spec(blr)],
            out_specs=pl.BlockSpec((1, BT, 12), lambda g: (g, 0, 0)),
        ),
        compiler_params=pltpu.CompilerParams(
            dimension_semantics=("parallel",)),
    )(x, w1b, b1l, w2b, b2l, w3b, b3l, w4b, b4l, wlr, blr)

    return out.reshape(Bp, 12)[:B].reshape(B, 3, 4)


def init_params(key):
    keys = jax.random.split(key, 10)

    def conv_init(kw, kb, cout, cin, k=3):
        fan_in = cin * k * k
        bound = 1.0 / np.sqrt(fan_in)
        w = jax.random.uniform(kw, (cout, cin, k, k), jnp.float32, -bound, bound)
        b = jax.random.uniform(kb, (cout,), jnp.float32, -bound, bound)
        return w, b

    w1, b1 = conv_init(keys[0], keys[1], 4, 4)
    w2, b2 = conv_init(keys[2], keys[3], 8, 4)
    w3, b3 = conv_init(keys[4], keys[5], 16, 8)
    w4, b4 = conv_init(keys[6], keys[7], 32, 16)
    bound = 1.0 / np.sqrt(1792.0)
    wl = jax.random.uniform(keys[8], (12, 1792), jnp.float32, -bound, bound)
    bl = jax.random.uniform(keys[9], (12,), jnp.float32, -bound, bound)
    return (w1, b1, w2, b2, w3, b3, w4, b4, wl, bl)


def ref_forward(x, params):
    """Pure-JAX reference matching the PyTorch module semantics."""
    w1, b1, w2, b2, w3, b3, w4, b4, wl, bl = params

    def conv(x, w, b, pad):
        y = jax.lax.conv_general_dilated(
            x, w, window_strides=(1, 1), padding=[(pad, pad), (pad, pad)],
            dimension_numbers=('NCHW', 'OIHW', 'NCHW'),
            precision=jax.lax.Precision.HIGHEST)
        return jax.nn.relu(y + b[None, :, None, None])

    x = conv(x, w1, b1, 1)
    x = conv(x, w2, b2, 0)
    x = conv(x, w3, b3, 0)
    x = conv(x, w4, b4, 0)
    B = x.shape[0]
    flat = x.reshape(B, 1792)
    y = jnp.tanh(jnp.dot(flat, wl.T, precision=jax.lax.Precision.HIGHEST) + bl)
    return y.reshape(B, 3, 4)


if __name__ == "__main__":
    key = jax.random.PRNGKey(0)
    kx, kp = jax.random.split(key)
    params = init_params(kp)

    # primary small-shape test (B < BT exercises batch padding)
    x = jax.random.normal(kx, (2, 4, H, W), jnp.float32)
    out = jax.block_until_ready(actor_forward_pallas(x, params))
    ref = jax.block_until_ready(ref_forward(x, params))
    assert out.shape == (2, 3, 4)
    np.testing.assert_allclose(np.asarray(out), np.asarray(ref), atol=1e-3, rtol=1e-3)

    # multi-grid-step test (B > BT exercises the batched / multi-block path)
    x2 = jax.random.normal(jax.random.fold_in(kx, 1), (20, 4, H, W), jnp.float32)
    out2 = jax.block_until_ready(actor_forward_pallas(x2, params))
    ref2 = jax.block_until_ready(ref_forward(x2, params))
    np.testing.assert_allclose(np.asarray(out2), np.asarray(ref2), atol=1e-3, rtol=1e-3)

    print("KERNEL_OK")
</pallas_src>

<mosaic_0001>
module attributes {stable_mosaic.version = 11 : i64} {
  func.func @_actor_kernel(%arg0: i32, %arg1: memref<1x240x64xf32, #tpu.memory_space<vmem>>, %arg2: memref<3x64x64xf32, #tpu.memory_space<vmem>>, %arg3: memref<1x64xf32, #tpu.memory_space<vmem>>, %arg4: memref<3x64x128xf32, #tpu.memory_space<vmem>>, %arg5: memref<1x128xf32, #tpu.memory_space<vmem>>, %arg6: memref<3x128x256xf32, #tpu.memory_space<vmem>>, %arg7: memref<1x256xf32, #tpu.memory_space<vmem>>, %arg8: memref<3x256x512xf32, #tpu.memory_space<vmem>>, %arg9: memref<1x512xf32, #tpu.memory_space<vmem>>, %arg10: memref<7x512x12xf32, #tpu.memory_space<vmem>>, %arg11: memref<1x12xf32, #tpu.memory_space<vmem>>, %arg12: memref<1x16x12xf32, #tpu.memory_space<vmem>>) attributes {dimension_semantics = [#tpu.dimension_semantics<parallel>], iteration_bounds = array<i64: 1>, scalar_prefetch = 0 : i64, scratch_operands = 0 : i64, tpu.core_type = #tpu.core_type<tc>, window_params = [{transform_indices = @transform_0, window_bounds = array<i64: 1, 240, 64>}, {pipeline_mode = #tpu.pipeline_mode<synchronous>, transform_indices = @transform_1, window_bounds = array<i64: 3, 64, 64>}, {pipeline_mode = #tpu.pipeline_mode<synchronous>, transform_indices = @transform_2, window_bounds = array<i64: 1, 64>}, {pipeline_mode = #tpu.pipeline_mode<synchronous>, transform_indices = @transform_3, window_bounds = array<i64: 3, 64, 128>}, {pipeline_mode = #tpu.pipeline_mode<synchronous>, transform_indices = @transform_4, window_bounds = array<i64: 1, 128>}, {pipeline_mode = #tpu.pipeline_mode<synchronous>, transform_indices = @transform_5, window_bounds = array<i64: 3, 128, 256>}, {pipeline_mode = #tpu.pipeline_mode<synchronous>, transform_indices = @transform_6, window_bounds = array<i64: 1, 256>}, {pipeline_mode = #tpu.pipeline_mode<synchronous>, transform_indices = @transform_7, window_bounds = array<i64: 3, 256, 512>}, {pipeline_mode = #tpu.pipeline_mode<synchronous>, transform_indices = @transform_8, window_bounds = array<i64: 1, 512>}, {pipeline_mode = #tpu.pipeline_mode<synchronous>, transform_indices = @transform_9, window_bounds = array<i64: 7, 512, 12>}, {pipeline_mode = #tpu.pipeline_mode<synchronous>, transform_indices = @transform_10, window_bounds = array<i64: 1, 12>}, {transform_indices = @transform_11, window_bounds = array<i64: 1, 16, 12>}]} {
    %c0 = arith.constant 0 : index
    %c0_0 = arith.constant 0 : index
    %c0_1 = arith.constant 0 : index
    %0 = vector.load %arg1[%c0, %c0_0, %c0_1] : memref<1x240x64xf32, #tpu.memory_space<vmem>>, vector<1x240x64xf32>
    %1 = vector.shape_cast %0 : vector<1x240x64xf32> to vector<240x64xf32>
    %2 = vector.extract_strided_slice %1 {offsets = [0, 0], sizes = [208, 64], strides = [1, 1]} : vector<240x64xf32> to vector<208x64xf32>
    %c0_2 = arith.constant 0 : index
    %c0_3 = arith.constant 0 : index
    %c0_4 = arith.constant 0 : index
    %3 = vector.load %arg2[%c0_2, %c0_3, %c0_4] : memref<3x64x64xf32, #tpu.memory_space<vmem>>, vector<1x64x64xf32>
    %4 = vector.shape_cast %3 : vector<1x64x64xf32> to vector<64x64xf32>
    %cst = arith.constant dense<0.000000e+00> : vector<208x64xf32>
    %5 = tpu.matmul %2, %4, %cst {dimension_numbers = #tpu.dot_dimension_numbers<[1], [0], [0], [1], [0, 0, 1, 1], [], []>} : vector<208x64xf32>, vector<64x64xf32>, vector<208x64xf32> -> vector<208x64xf32>
    %6 = vector.extract_strided_slice %1 {offsets = [16, 0], sizes = [208, 64], strides = [1, 1]} : vector<240x64xf32> to vector<208x64xf32>
    %c1 = arith.constant 1 : index
    %c0_5 = arith.constant 0 : index
    %c0_6 = arith.constant 0 : index
    %7 = vector.load %arg2[%c1, %c0_5, %c0_6] : memref<3x64x64xf32, #tpu.memory_space<vmem>>, vector<1x64x64xf32>
    %8 = vector.shape_cast %7 : vector<1x64x64xf32> to vector<64x64xf32>
    %cst_7 = arith.constant dense<0.000000e+00> : vector<208x64xf32>
    %9 = tpu.matmul %6, %8, %cst_7 {dimension_numbers = #tpu.dot_dimension_numbers<[1], [0], [0], [1], [0, 0, 1, 1], [], []>} : vector<208x64xf32>, vector<64x64xf32>, vector<208x64xf32> -> vector<208x64xf32>
    %10 = arith.addf %5, %9 : vector<208x64xf32>
    %11 = vector.extract_strided_slice %1 {offsets = [32, 0], sizes = [208, 64], strides = [1, 1]} : vector<240x64xf32> to vector<208x64xf32>
    %c2 = arith.constant 2 : index
    %c0_8 = arith.constant 0 : index
    %c0_9 = arith.constant 0 : index
    %12 = vector.load %arg2[%c2, %c0_8, %c0_9] : memref<3x64x64xf32, #tpu.memory_space<vmem>>, vector<1x64x64xf32>
    %13 = vector.shape_cast %12 : vector<1x64x64xf32> to vector<64x64xf32>
    %cst_10 = arith.constant dense<0.000000e+00> : vector<208x64xf32>
    %14 = tpu.matmul %11, %13, %cst_10 {dimension_numbers = #tpu.dot_dimension_numbers<[1], [0], [0], [1], [0, 0, 1, 1], [], []>} : vector<208x64xf32>, vector<64x64xf32>, vector<208x64xf32> -> vector<208x64xf32>
    %15 = arith.addf %10, %14 : vector<208x64xf32>
    %c0_11 = arith.constant 0 : index
    %c0_12 = arith.constant 0 : index
    %16 = vector.load %arg3[%c0_11, %c0_12] : memref<1x64xf32, #tpu.memory_space<vmem>>, vector<1x64xf32>
    %17 = vector.broadcast %16 : vector<1x64xf32> to vector<208x64xf32>
    %18 = arith.addf %15, %17 : vector<208x64xf32>
    %cst_13 = arith.constant 0.000000e+00 : f32
    %19 = vector.broadcast %cst_13 : f32 to vector<208x64xf32>
    %20 = arith.maximumf %18, %19 : vector<208x64xf32>
    %21 = vector.extract_strided_slice %20 {offsets = [0, 0], sizes = [176, 64], strides = [1, 1]} : vector<208x64xf32> to vector<176x64xf32>
    %c0_14 = arith.constant 0 : index
    %c0_15 = arith.constant 0 : index
    %c0_16 = arith.constant 0 : index
    %22 = vector.load %arg4[%c0_14, %c0_15, %c0_16] : memref<3x64x128xf32, #tpu.memory_space<vmem>>, vector<1x64x128xf32>
    %23 = vector.shape_cast %22 : vector<1x64x128xf32> to vector<64x128xf32>
    %cst_17 = arith.constant dense<0.000000e+00> : vector<176x128xf32>
    %24 = tpu.matmul %21, %23, %cst_17 {dimension_numbers = #tpu.dot_dimension_numbers<[1], [0], [0], [1], [0, 0, 1, 1], [], []>} : vector<176x64xf32>, vector<64x128xf32>, vector<176x128xf32> -> vector<176x128xf32>
    %25 = vector.extract_strided_slice %20 {offsets = [16, 0], sizes = [176, 64], strides = [1, 1]} : vector<208x64xf32> to vector<176x64xf32>
    %c1_18 = arith.constant 1 : index
    %c0_19 = arith.constant 0 : index
    %c0_20 = arith.constant 0 : index
    %26 = vector.load %arg4[%c1_18, %c0_19, %c0_20] : memref<3x64x128xf32, #tpu.memory_space<vmem>>, vector<1x64x128xf32>
    %27 = vector.shape_cast %26 : vector<1x64x128xf32> to vector<64x128xf32>
    %cst_21 = arith.constant dense<0.000000e+00> : vector<176x128xf32>
    %28 = tpu.matmul %25, %27, %cst_21 {dimension_numbers = #tpu.dot_dimension_numbers<[1], [0], [0], [1], [0, 0, 1, 1], [], []>} : vector<176x64xf32>, vector<64x128xf32>, vector<176x128xf32> -> vector<176x128xf32>
    %29 = arith.addf %24, %28 : vector<176x128xf32>
    %30 = vector.extract_strided_slice %20 {offsets = [32, 0], sizes = [176, 64], strides = [1, 1]} : vector<208x64xf32> to vector<176x64xf32>
    %c2_22 = arith.constant 2 : index
    %c0_23 = arith.constant 0 : index
    %c0_24 = arith.constant 0 : index
    %31 = vector.load %arg4[%c2_22, %c0_23, %c0_24] : memref<3x64x128xf32, #tpu.memory_space<vmem>>, vector<1x64x128xf32>
    %32 = vector.shape_cast %31 : vector<1x64x128xf32> to vector<64x128xf32>
    %cst_25 = arith.constant dense<0.000000e+00> : vector<176x128xf32>
    %33 = tpu.matmul %30, %32, %cst_25 {dimension_numbers = #tpu.dot_dimension_numbers<[1], [0], [0], [1], [0, 0, 1, 1], [], []>} : vector<176x64xf32>, vector<64x128xf32>, vector<176x128xf32> -> vector<176x128xf32>
    %34 = arith.addf %29, %33 : vector<176x128xf32>
    %c0_26 = arith.constant 0 : index
    %c0_27 = arith.constant 0 : index
    %35 = vector.load %arg5[%c0_26, %c0_27] : memref<1x128xf32, #tpu.memory_space<vmem>>, vector<1x128xf32>
    %36 = vector.broadcast %35 : vector<1x128xf32> to vector<176x128xf32>
    %37 = arith.addf %34, %36 : vector<176x128xf32>
    %cst_28 = arith.constant 0.000000e+00 : f32
    %38 = vector.broadcast %cst_28 : f32 to vector<176x128xf32>
    %39 = arith.maximumf %37, %38 : vector<176x128xf32>
    %40 = vector.extract_strided_slice %39 {offsets = [0, 0], sizes = [144, 128], strides = [1, 1]} : vector<176x128xf32> to vector<144x128xf32>
    %c0_29 = arith.constant 0 : index
    %c0_30 = arith.constant 0 : index
    %c0_31 = arith.constant 0 : index
    %41 = vector.load %arg6[%c0_29, %c0_30, %c0_31] : memref<3x128x256xf32, #tpu.memory_space<vmem>>, vector<1x128x256xf32>
    %42 = vector.shape_cast %41 : vector<1x128x256xf32> to vector<128x256xf32>
    %cst_32 = arith.constant dense<0.000000e+00> : vector<144x256xf32>
    %43 = tpu.matmul %40, %42, %cst_32 {dimension_numbers = #tpu.dot_dimension_numbers<[1], [0], [0], [1], [0, 0, 1, 1], [], []>} : vector<144x128xf32>, vector<128x256xf32>, vector<144x256xf32> -> vector<144x256xf32>
    %44 = vector.extract_strided_slice %39 {offsets = [16, 0], sizes = [144, 128], strides = [1, 1]} : vector<176x128xf32> to vector<144x128xf32>
    %c1_33 = arith.constant 1 : index
    %c0_34 = arith.constant 0 : index
    %c0_35 = arith.constant 0 : index
    %45 = vector.load %arg6[%c1_33, %c0_34, %c0_35] : memref<3x128x256xf32, #tpu.memory_space<vmem>>, vector<1x128x256xf32>
    %46 = vector.shape_cast %45 : vector<1x128x256xf32> to vector<128x256xf32>
    %cst_36 = arith.constant dense<0.000000e+00> : vector<144x256xf32>
    %47 = tpu.matmul %44, %46, %cst_36 {dimension_numbers = #tpu.dot_dimension_numbers<[1], [0], [0], [1], [0, 0, 1, 1], [], []>} : vector<144x128xf32>, vector<128x256xf32>, vector<144x256xf32> -> vector<144x256xf32>
    %48 = arith.addf %43, %47 : vector<144x256xf32>
    %49 = vector.extract_strided_slice %39 {offsets = [32, 0], sizes = [144, 128], strides = [1, 1]} : vector<176x128xf32> to vector<144x128xf32>
    %c2_37 = arith.constant 2 : index
    %c0_38 = arith.constant 0 : index
    %c0_39 = arith.constant 0 : index
    %50 = vector.load %arg6[%c2_37, %c0_38, %c0_39] : memref<3x128x256xf32, #tpu.memory_space<vmem>>, vector<1x128x256xf32>
    %51 = vector.shape_cast %50 : vector<1x128x256xf32> to vector<128x256xf32>
    %cst_40 = arith.constant dense<0.000000e+00> : vector<144x256xf32>
    %52 = tpu.matmul %49, %51, %cst_40 {dimension_numbers = #tpu.dot_dimension_numbers<[1], [0], [0], [1], [0, 0, 1, 1], [], []>} : vector<144x128xf32>, vector<128x256xf32>, vector<144x256xf32> -> vector<144x256xf32>
    %53 = arith.addf %48, %52 : vector<144x256xf32>
    %c0_41 = arith.constant 0 : index
    %c0_42 = arith.constant 0 : index
    %54 = vector.load %arg7[%c0_41, %c0_42] : memref<1x256xf32, #tpu.memory_space<vmem>>, vector<1x256xf32>
    %55 = vector.broadcast %54 : vector<1x256xf32> to vector<144x256xf32>
    %56 = arith.addf %53, %55 : vector<144x256xf32>
    %cst_43 = arith.constant 0.000000e+00 : f32
    %57 = vector.broadcast %cst_43 : f32 to vector<144x256xf32>
    %58 = arith.maximumf %56, %57 : vector<144x256xf32>
    %59 = vector.extract_strided_slice %58 {offsets = [0, 0], sizes = [112, 256], strides = [1, 1]} : vector<144x256xf32> to vector<112x256xf32>
    %c0_44 = arith.constant 0 : index
    %c0_45 = arith.constant 0 : index
    %c0_46 = arith.constant 0 : index
    %60 = vector.load %arg8[%c0_44, %c0_45, %c0_46] : memref<3x256x512xf32, #tpu.memory_space<vmem>>, vector<1x256x512xf32>
    %61 = vector.shape_cast %60 : vector<1x256x512xf32> to vector<256x512xf32>
    %cst_47 = arith.constant dense<0.000000e+00> : vector<112x512xf32>
    %62 = tpu.matmul %59, %61, %cst_47 {dimension_numbers = #tpu.dot_dimension_numbers<[1], [0], [0], [1], [0, 0, 1, 1], [], []>} : vector<112x256xf32>, vector<256x512xf32>, vector<112x512xf32> -> vector<112x512xf32>
    %63 = vector.extract_strided_slice %58 {offsets = [16, 0], sizes = [112, 256], strides = [1, 1]} : vector<144x256xf32> to vector<112x256xf32>
    %c1_48 = arith.constant 1 : index
    %c0_49 = arith.constant 0 : index
    %c0_50 = arith.constant 0 : index
    %64 = vector.load %arg8[%c1_48, %c0_49, %c0_50] : memref<3x256x512xf32, #tpu.memory_space<vmem>>, vector<1x256x512xf32>
    %65 = vector.shape_cast %64 : vector<1x256x512xf32> to vector<256x512xf32>
    %cst_51 = arith.constant dense<0.000000e+00> : vector<112x512xf32>
    %66 = tpu.matmul %63, %65, %cst_51 {dimension_numbers = #tpu.dot_dimension_numbers<[1], [0], [0], [1], [0, 0, 1, 1], [], []>} : vector<112x256xf32>, vector<256x512xf32>, vector<112x512xf32> -> vector<112x512xf32>
    %67 = arith.addf %62, %66 : vector<112x512xf32>
    %68 = vector.extract_strided_slice %58 {offsets = [32, 0], sizes = [112, 256], strides = [1, 1]} : vector<144x256xf32> to vector<112x256xf32>
    %c2_52 = arith.constant 2 : index
    %c0_53 = arith.constant 0 : index
    %c0_54 = arith.constant 0 : index
    %69 = vector.load %arg8[%c2_52, %c0_53, %c0_54] : memref<3x256x512xf32, #tpu.memory_space<vmem>>, vector<1x256x512xf32>
    %70 = vector.shape_cast %69 : vector<1x256x512xf32> to vector<256x512xf32>
    %cst_55 = arith.constant dense<0.000000e+00> : vector<112x512xf32>
    %71 = tpu.matmul %68, %70, %cst_55 {dimension_numbers = #tpu.dot_dimension_numbers<[1], [0], [0], [1], [0, 0, 1, 1], [], []>} : vector<112x256xf32>, vector<256x512xf32>, vector<112x512xf32> -> vector<112x512xf32>
    %72 = arith.addf %67, %71 : vector<112x512xf32>
    %c0_56 = arith.constant 0 : index
    %c0_57 = arith.constant 0 : index
    %73 = vector.load %arg9[%c0_56, %c0_57] : memref<1x512xf32, #tpu.memory_space<vmem>>, vector<1x512xf32>
    %74 = vector.broadcast %73 : vector<1x512xf32> to vector<112x512xf32>
    %75 = arith.addf %72, %74 : vector<112x512xf32>
    %cst_58 = arith.constant 0.000000e+00 : f32
    %76 = vector.broadcast %cst_58 : f32 to vector<112x512xf32>
    %77 = arith.maximumf %75, %76 : vector<112x512xf32>
    %cst_59 = arith.constant 0.000000e+00 : f32
    %78 = vector.broadcast %cst_59 : f32 to vector<16x12xf32>
    %79 = vector.extract_strided_slice %77 {offsets = [0, 0], sizes = [16, 512], strides = [1, 1]} : vector<112x512xf32> to vector<16x512xf32>
    %c0_60 = arith.constant 0 : index
    %c0_61 = arith.constant 0 : index
    %c0_62 = arith.constant 0 : index
    %80 = vector.load %arg10[%c0_60, %c0_61, %c0_62] : memref<7x512x12xf32, #tpu.memory_space<vmem>>, vector<1x512x12xf32>
    %81 = vector.shape_cast %80 : vector<1x512x12xf32> to vector<512x12xf32>
    %cst_63 = arith.constant dense<0.000000e+00> : vector<16x12xf32>
    %82 = tpu.matmul %79, %81, %cst_63 {dimension_numbers = #tpu.dot_dimension_numbers<[1], [0], [0], [1], [0, 0, 1, 1], [], []>} : vector<16x512xf32>, vector<512x12xf32>, vector<16x12xf32> -> vector<16x12xf32>
    %83 = arith.addf %78, %82 : vector<16x12xf32>
    %84 = vector.extract_strided_slice %77 {offsets = [16, 0], sizes = [16, 512], strides = [1, 1]} : vector<112x512xf32> to vector<16x512xf32>
    %c1_64 = arith.constant 1 : index
    %c0_65 = arith.constant 0 : index
    %c0_66 = arith.constant 0 : index
    %85 = vector.load %arg10[%c1_64, %c0_65, %c0_66] : memref<7x512x12xf32, #tpu.memory_space<vmem>>, vector<1x512x12xf32>
    %86 = vector.shape_cast %85 : vector<1x512x12xf32> to vector<512x12xf32>
    %cst_67 = arith.constant dense<0.000000e+00> : vector<16x12xf32>
    %87 = tpu.matmul %84, %86, %cst_67 {dimension_numbers = #tpu.dot_dimension_numbers<[1], [0], [0], [1], [0, 0, 1, 1], [], []>} : vector<16x512xf32>, vector<512x12xf32>, vector<16x12xf32> -> vector<16x12xf32>
    %88 = arith.addf %83, %87 : vector<16x12xf32>
    %89 = vector.extract_strided_slice %77 {offsets = [32, 0], sizes = [16, 512], strides = [1, 1]} : vector<112x512xf32> to vector<16x512xf32>
    %c2_68 = arith.constant 2 : index
    %c0_69 = arith.constant 0 : index
    %c0_70 = arith.constant 0 : index
    %90 = vector.load %arg10[%c2_68, %c0_69, %c0_70] : memref<7x512x12xf32, #tpu.memory_space<vmem>>, vector<1x512x12xf32>
    %91 = vector.shape_cast %90 : vector<1x512x12xf32> to vector<512x12xf32>
    %cst_71 = arith.constant dense<0.000000e+00> : vector<16x12xf32>
    %92 = tpu.matmul %89, %91, %cst_71 {dimension_numbers = #tpu.dot_dimension_numbers<[1], [0], [0], [1], [0, 0, 1, 1], [], []>} : vector<16x512xf32>, vector<512x12xf32>, vector<16x12xf32> -> vector<16x12xf32>
    %93 = arith.addf %88, %92 : vector<16x12xf32>
    %94 = vector.extract_strided_slice %77 {offsets = [48, 0], sizes = [16, 512], strides = [1, 1]} : vector<112x512xf32> to vector<16x512xf32>
    %c3 = arith.constant 3 : index
    %c0_72 = arith.constant 0 : index
    %c0_73 = arith.constant 0 : index
    %95 = vector.load %arg10[%c3, %c0_72, %c0_73] : memref<7x512x12xf32, #tpu.memory_space<vmem>>, vector<1x512x12xf32>
    %96 = vector.shape_cast %95 : vector<1x512x12xf32> to vector<512x12xf32>
    %cst_74 = arith.constant dense<0.000000e+00> : vector<16x12xf32>
    %97 = tpu.matmul %94, %96, %cst_74 {dimension_numbers = #tpu.dot_dimension_numbers<[1], [0], [0], [1], [0, 0, 1, 1], [], []>} : vector<16x512xf32>, vector<512x12xf32>, vector<16x12xf32> -> vector<16x12xf32>
    %98 = arith.addf %93, %97 : vector<16x12xf32>
    %99 = vector.extract_strided_slice %77 {offsets = [64, 0], sizes = [16, 512], strides = [1, 1]} : vector<112x512xf32> to vector<16x512xf32>
    %c4 = arith.constant 4 : index
    %c0_75 = arith.constant 0 : index
    %c0_76 = arith.constant 0 : index
    %100 = vector.load %arg10[%c4, %c0_75, %c0_76] : memref<7x512x12xf32, #tpu.memory_space<vmem>>, vector<1x512x12xf32>
    %101 = vector.shape_cast %100 : vector<1x512x12xf32> to vector<512x12xf32>
    %cst_77 = arith.constant dense<0.000000e+00> : vector<16x12xf32>
    %102 = tpu.matmul %99, %101, %cst_77 {dimension_numbers = #tpu.dot_dimension_numbers<[1], [0], [0], [1], [0, 0, 1, 1], [], []>} : vector<16x512xf32>, vector<512x12xf32>, vector<16x12xf32> -> vector<16x12xf32>
    %103 = arith.addf %98, %102 : vector<16x12xf32>
    %104 = vector.extract_strided_slice %77 {offsets = [80, 0], sizes = [16, 512], strides = [1, 1]} : vector<112x512xf32> to vector<16x512xf32>
    %c5 = arith.constant 5 : index
    %c0_78 = arith.constant 0 : index
    %c0_79 = arith.constant 0 : index
    %105 = vector.load %arg10[%c5, %c0_78, %c0_79] : memref<7x512x12xf32, #tpu.memory_space<vmem>>, vector<1x512x12xf32>
    %106 = vector.shape_cast %105 : vector<1x512x12xf32> to vector<512x12xf32>
    %cst_80 = arith.constant dense<0.000000e+00> : vector<16x12xf32>
    %107 = tpu.matmul %104, %106, %cst_80 {dimension_numbers = #tpu.dot_dimension_numbers<[1], [0], [0], [1], [0, 0, 1, 1], [], []>} : vector<16x512xf32>, vector<512x12xf32>, vector<16x12xf32> -> vector<16x12xf32>
    %108 = arith.addf %103, %107 : vector<16x12xf32>
    %109 = vector.extract_strided_slice %77 {offsets = [96, 0], sizes = [16, 512], strides = [1, 1]} : vector<112x512xf32> to vector<16x512xf32>
    %c6 = arith.constant 6 : index
    %c0_81 = arith.constant 0 : index
    %c0_82 = arith.constant 0 : index
    %110 = vector.load %arg10[%c6, %c0_81, %c0_82] : memref<7x512x12xf32, #tpu.memory_space<vmem>>, vector<1x512x12xf32>
    %111 = vector.shape_cast %110 : vector<1x512x12xf32> to vector<512x12xf32>
    %cst_83 = arith.constant dense<0.000000e+00> : vector<16x12xf32>
    %112 = tpu.matmul %109, %111, %cst_83 {dimension_numbers = #tpu.dot_dimension_numbers<[1], [0], [0], [1], [0, 0, 1, 1], [], []>} : vector<16x512xf32>, vector<512x12xf32>, vector<16x12xf32> -> vector<16x12xf32>
    %113 = arith.addf %108, %112 : vector<16x12xf32>
    %c0_84 = arith.constant 0 : index
    %c0_85 = arith.constant 0 : index
    %114 = vector.load %arg11[%c0_84, %c0_85] : memref<1x12xf32, #tpu.memory_space<vmem>>, vector<1x12xf32>
    %115 = vector.broadcast %114 : vector<1x12xf32> to vector<16x12xf32>
    %116 = arith.addf %113, %115 : vector<16x12xf32>
    %117 = math.tanh %116 : vector<16x12xf32>
    %c0_86 = arith.constant 0 : index
    %c0_87 = arith.constant 0 : index
    %c0_88 = arith.constant 0 : index
    %118 = vector.load %arg12[%c0_86, %c0_87, %c0_88] : memref<1x16x12xf32, #tpu.memory_space<vmem>>, vector<1x16x12xf32>
    %119 = vector.shape_cast %118 : vector<1x16x12xf32> to vector<16x12xf32>
    %120 = vector.shape_cast %117 : vector<16x12xf32> to vector<1x16x12xf32>
    tpu.vector_store %arg12[%c0_86, %c0_87, %c0_88], %120 {strides = array<i32>} : memref<1x16x12xf32, #tpu.memory_space<vmem>>, vector<1x16x12xf32>,
    return
  }
  func.func @transform_0(%arg0: i32) -> (i32, i32, i32) {
    %c0_i32 = arith.constant 0 : i32
    %c0_i32_0 = arith.constant 0 : i32
    %c0_i32_1 = arith.constant 0 : i32
    return %arg0, %c0_i32, %c0_i32_0 : i32, i32, i32
  }
  func.func @transform_1(%arg0: i32) -> (i32, i32, i32) {
    %c0_i32 = arith.constant 0 : i32
    %c0_i32_0 = arith.constant 0 : i32
    %c0_i32_1 = arith.constant 0 : i32
    %c0_i32_2 = arith.constant 0 : i32
    return %c0_i32, %c0_i32_0, %c0_i32_1 : i32, i32, i32
  }
  func.func @transform_2(%arg0: i32) -> (i32, i32) {
    %c0_i32 = arith.constant 0 : i32
    %c0_i32_0 = arith.constant 0 : i32
    %c0_i32_1 = arith.constant 0 : i32
    return %c0_i32, %c0_i32_0 : i32, i32
  }
  func.func @transform_3(%arg0: i32) -> (i32, i32, i32) {
    %c0_i32 = arith.constant 0 : i32
    %c0_i32_0 = arith.constant 0 : i32
    %c0_i32_1 = arith.constant 0 : i32
    %c0_i32_2 = arith.constant 0 : i32
    return %c0_i32, %c0_i32_0, %c0_i32_1 : i32, i32, i32
  }
  func.func @transform_4(%arg0: i32) -> (i32, i32) {
    %c0_i32 = arith.constant 0 : i32
    %c0_i32_0 = arith.constant 0 : i32
    %c0_i32_1 = arith.constant 0 : i32
    return %c0_i32, %c0_i32_0 : i32, i32
  }
  func.func @transform_5(%arg0: i32) -> (i32, i32, i32) {
    %c0_i32 = arith.constant 0 : i32
    %c0_i32_0 = arith.constant 0 : i32
    %c0_i32_1 = arith.constant 0 : i32
    %c0_i32_2 = arith.constant 0 : i32
    return %c0_i32, %c0_i32_0, %c0_i32_1 : i32, i32, i32
  }
  func.func @transform_6(%arg0: i32) -> (i32, i32) {
    %c0_i32 = arith.constant 0 : i32
    %c0_i32_0 = arith.constant 0 : i32
    %c0_i32_1 = arith.constant 0 : i32
    return %c0_i32, %c0_i32_0 : i32, i32
  }
  func.func @transform_7(%arg0: i32) -> (i32, i32, i32) {
    %c0_i32 = arith.constant 0 : i32
    %c0_i32_0 = arith.constant 0 : i32
    %c0_i32_1 = arith.constant 0 : i32
    %c0_i32_2 = arith.constant 0 : i32
    return %c0_i32, %c0_i32_0, %c0_i32_1 : i32, i32, i32
  }
  func.func @transform_8(%arg0: i32) -> (i32, i32) {
    %c0_i32 = arith.constant 0 : i32
    %c0_i32_0 = arith.constant 0 : i32
    %c0_i32_1 = arith.constant 0 : i32
    return %c0_i32, %c0_i32_0 : i32, i32
  }
  func.func @transform_9(%arg0: i32) -> (i32, i32, i32) {
    %c0_i32 = arith.constant 0 : i32
    %c0_i32_0 = arith.constant 0 : i32
    %c0_i32_1 = arith.constant 0 : i32
    %c0_i32_2 = arith.constant 0 : i32
    return %c0_i32, %c0_i32_0, %c0_i32_1 : i32, i32, i32
  }
  func.func @transform_10(%arg0: i32) -> (i32, i32) {
    %c0_i32 = arith.constant 0 : i32
    %c0_i32_0 = arith.constant 0 : i32
    %c0_i32_1 = arith.constant 0 : i32
    return %c0_i32, %c0_i32_0 : i32, i32
  }
  func.func @transform_11(%arg0: i32) -> (i32, i32, i32) {
    %c0_i32 = arith.constant 0 : i32
    %c0_i32_0 = arith.constant 0 : i32
    %c0_i32_1 = arith.constant 0 : i32
    return %arg0, %c0_i32, %c0_i32_0 : i32, i32, i32
  }
}

</mosaic_0001>

<bundles_post_ra>
// kernel: tile.38
= control target key start
LH: loop header
LB: loop body
LE: loop exit
PB: predicated region body
PF: predicated region fallthrough
CT: control target
= control target key end

     0   :  { %s28_s0 = inlined_call_operand.vmem [shape: f32[32], index: 0, kind: input, shape index: {}]   ;;  %s29_s1 = inlined_call_operand.vmem [shape: f32[16,32], index: 1, kind: output, shape index: {}]  }
   0x1   :  { %v4_v0 = vld [vmem:[%s28_s0] ss:$0 sm:$0xff] }
   0x2   :  { %5 = vst [vmem:[%s29_s1] sm:$0xff] %v4_v0 }
   0x3   :  { %8 = vst [vmem:[%s29_s1 + $0x8] sm:$0xff] %v4_v0 }

// kernel: tile.39
= control target key start
LH: loop header
LB: loop body
LE: loop exit
PB: predicated region body
PF: predicated region fallthrough
CT: control target
= control target key end

     0   :  { %s56_s8 = smov 96   ;;  %s57_s11 = smov 32   ;;  %vm3_vm0 = vcmask 261120   ;;  %vm9_vm1 = vcmask 1048320   ;;  %vm15_vm2 = vcmask 785920   ;;  %vm21_vm3 = vcmask 523520   ;;  %s93_s0 = inlined_call_operand.vmem [shape: f32[16,32], index: 0, kind: input, shape index: {}]   ;;  %s94_s1 = inlined_call_operand.vmem [shape: f32[1,512], index: 1, kind: output, shape index: {}]  }
   0x1   :  { %v47_v0 = vld [vmem:[%s93_s0 + $0x3] ss:$4 sm:$0xf]   ;;  %v49_v1 = vld [vmem:[%s93_s0 + $0x1] ss:$4 sm:$0xf]  }
   0x2   :  { %7 = vrot.lane.b32.xlu0 %v47_v0, %s56_s8  ;;  %19 = vrot.lane.b32.xlu1 %v49_v1, %s57_s11  ;;  %v48_v2 = vld [vmem:[%s93_s0 + $0x2] ss:$4 sm:$0xf]   ;;  %s58_s14 = smov 64  }
   0x3   :  { %v2_v3 = vld [vmem:[%s93_s0] ss:$4 sm:$0xf]  }
   0x4   :  { %4 = vst.msk [vmem:[#allocation0] ss:$8 sm:$0xf] %vm3_vm0, %v2_v3  }
   0xa   :  { %13 = vrot.lane.b32.xlu0 %v48_v2, %s58_s14 }
  0x74   :  { %v8_v4 = vpop.permute.xlu0 %7   ;;  %v20_v5 = vpop.permute.xlu1 %19  }
  0x75   :  { %10 = vst.msk [vmem:[#allocation0] ss:$8 sm:$0xf] %vm9_vm1, %v8_v4  }
  0x7c   :  { %v14_v6 = vpop.permute.xlu0 %13  }
  0x7d   :  { %16 = vst.msk [vmem:[#allocation0] ss:$8 sm:$0xf] %vm15_vm2, %v14_v6  }
  0x7e   :  { %22 = vst.msk [vmem:[#allocation0] ss:$8 sm:$0xf] %vm21_vm3, %v20_v5  }
  0x85   :  { %v25_v7 = vld [vmem:[#allocation0] sm:$0x1]  ;;  %v30_v8 = vld [vmem:[#allocation0 + $0x8] sm:$0x1]  ;;  %v36_v9 = vld [vmem:[#allocation0 + $0x10] sm:$0x1] }
  0x86   :  { %28 = vst [vmem:[%s94_s1] sm:$0x1] %v25_v7  ;;  %v42_v10 = vld [vmem:[#allocation0 + $0x18] sm:$0x1] }
  0x87   :  { %50 = vst [vmem:[%s94_s1 + $0x1] sm:$0x1] %v30_v8 }
  0x88   :  { %51 = vst [vmem:[%s94_s1 + $0x2] sm:$0x1] %v36_v9 }
  0x89   :  { %52 = vst [vmem:[%s94_s1 + $0x3] sm:$0x1] %v42_v10 }

// kernel: tile.33
= control target key start
LH: loop header
LB: loop body
LE: loop exit
PB: predicated region body
PF: predicated region fallthrough
CT: control target
= control target key end

     0   :  { %s28_s0 = inlined_call_operand.vmem [shape: f32[16], index: 0, kind: input, shape index: {}]   ;;  %s29_s1 = inlined_call_operand.vmem [shape: f32[16,16], index: 1, kind: output, shape index: {}]  }
   0x1   :  { %v4_v0 = vld [vmem:[%s28_s0] ss:$0 sm:$0xff] }
   0x2   :  { %5 = vst [vmem:[%s29_s1] sm:$0xff] %v4_v0 }
   0x3   :  { %8 = vst [vmem:[%s29_s1 + $0x8] sm:$0xff] %v4_v0 }

// kernel: tile.34
= control target key start
LH: loop header
LB: loop body
LE: loop exit
PB: predicated region body
PF: predicated region fallthrough
CT: control target
= control target key end

     0   :  { %s7_s6 = smov 3  ;;  %s21_s9 = smov 3  ;;  %vm4_vm0 = vcmask 130048   ;;  %vm11_vm1 = vcmask 1048448   ;;  %vm18_vm2 = vcmask 917248   ;;  %vm25_vm3 = vcmask 786048   ;;  %s129_s0 = inlined_call_operand.vmem [shape: f32[16,16], index: 0, kind: input, shape index: {}]   ;;  %s130_s1 = inlined_call_operand.vmem [shape: f32[1,256], index: 1, kind: output, shape index: {}]  }
   0x1   :  { %v67_v0 = vld [vmem:[%s129_s0 + $0x7] ss:$8 sm:%s7_s6]   ;;  %s82_s10 = smov 112   ;;  %v69_v1 = vld [vmem:[%s129_s0 + $0x5] ss:$8 sm:%s21_s9]   ;;  %s83_s13 = smov 80  }
   0x2   :  { %9 = vrot.lane.b32.xlu0 %v67_v0, %s82_s10  ;;  %23 = vrot.lane.b32.xlu1 %v69_v1, %s83_s13  ;;  %s14_s14 = smov 3  ;;  %s28_s15 = smov 3  ;;  %vm32_vm4 = vcmask 654848   ;;  %vm39_vm5 = vcmask 523648   ;;  %vm46_vm6 = vcmask 392448   ;;  %vm53_vm7 = vcmask 261248  }
   0x3   :  { %s35_s16 = smov 3  ;;  %v68_v3 = vld [vmem:[%s129_s0 + $0x6] ss:$8 sm:%s14_s14]   ;;  %s84_s21 = smov 48   ;;  %v70_v4 = vld [vmem:[%s129_s0 + $0x4] ss:$8 sm:%s28_s15]  }
   0x4   :  { %v71_v2 = vld [vmem:[%s129_s0 + $0x3] ss:$8 sm:%s35_s16]   ;;  %s42_s24 = smov 3  ;;  %s85_s25 = smov 96  }
   0x5   :  { %37 = vrot.lane.b32.xlu2 %v71_v2, %s84_s21  ;;  %s86_s26 = smov 64   ;;  %s49_s27 = smov 3  ;;  %v72_v5 = vld [vmem:[%s129_s0 + $0x2] ss:$8 sm:%s42_s24]  }
   0x6   :  { %v73_v6 = vld [vmem:[%s129_s0 + $0x1] ss:$8 sm:%s49_s27]   ;;  %s87_s3 = smov 32   ;;  %s88_s4 = smov 16  }
   0x7   :  { %s2_s5 = smov 3 }
   0x8   :  { %v3_v7 = vld [vmem:[%s129_s0] ss:$8 sm:%s2_s5]  }
   0x9   :  { %5 = vst.msk [vmem:[#allocation0] ss:$8 sm:$0x3] %vm4_vm0, %v3_v7  }
   0xa   :  { %16 = vrot.lane.b32.xlu0 %v68_v3, %s85_s25  ;;  %30 = vrot.lane.b32.xlu1 %v70_v4, %s86_s26 }
   0xd   :  { %44 = vrot.lane.b32.xlu2 %v72_v5, %s87_s3 }
  0x12   :  { %51 = vrot.lane.b32.xlu0 %v73_v6, %s88_s4 }
  0x5f   :  { %v38_v8 = vpop.permute.xlu2 %37  }
  0x67   :  { %v45_v9 = vpop.permute.xlu2 %44  }
  0x74   :  { %v10_v10 = vpop.permute.xlu0 %9   ;;  %v24_v11 = vpop.permute.xlu1 %23  }
  0x75   :  { %12 = vst.msk [vmem:[#allocation0] ss:$8 sm:$0x3] %vm11_vm1, %v10_v10  }
  0x7c   :  { %v17_v12 = vpop.permute.xlu0 %16   ;;  %v31_v13 = vpop.permute.xlu1 %30  }
  0x7d   :  { %19 = vst.msk [vmem:[#allocation0] ss:$8 sm:$0x3] %vm18_vm2, %v17_v12  }
  0x7e   :  { %26 = vst.msk [vmem:[#allocation0] ss:$8 sm:$0x3] %vm25_vm3, %v24_v11  }
  0x7f   :  { %33 = vst.msk [vmem:[#allocation0] ss:$8 sm:$0x3] %vm32_vm4, %v31_v13  }
  0x80   :  { %40 = vst.msk [vmem:[#allocation0] ss:$8 sm:$0x3] %vm39_vm5, %v38_v8  }
  0x81   :  { %47 = vst.msk [vmem:[#allocation0] ss:$8 sm:$0x3] %vm46_vm6, %v45_v9  }
  0x84   :  { %v52_v14 = vpop.permute.xlu0 %51  }
  0x85   :  { %54 = vst.msk [vmem:[#allocation0] ss:$8 sm:$0x3] %vm53_vm7, %v52_v14  }
  0x8c   :  { %v57_v15 = vld [vmem:[#allocation0] sm:$0x1]  ;;  %v62_v16 = vld [vmem:[#allocation0 + $0x8] sm:$0x1] }
  0x8d   :  { %60 = vst [vmem:[%s130_s1] sm:$0x1] %v57_v15 }
  0x8e   :  { %74 = vst [vmem:[%s130_s1 + $0x1] sm:$0x1] %v62_v16 }

// kernel: tile.23
= control target key start
LH: loop header
LB: loop body
LE: loop exit
PB: predicated region body
PF: predicated region fallthrough
CT: control target
= control target key end

     0   :  { %s28_s0 = inlined_call_operand.vmem [shape: f32[4], index: 0, kind: input, shape index: {}]   ;;  %s29_s1 = inlined_call_operand.vmem [shape: f32[16,4], index: 1, kind: output, shape index: {}]  }
   0x1   :  { %v4_v0 = vld [vmem:[%s28_s0] ss:$0 sm:$0xff] }
   0x2   :  { %5 = vst [vmem:[%s29_s1] sm:$0xff] %v4_v0 }
   0x3   :  { %8 = vst [vmem:[%s29_s1 + $0x8] sm:$0xff] %v4_v0 }

// kernel: tile.24
= control target key start
LH: loop header
LB: loop body
LE: loop exit
PB: predicated region body
PF: predicated region fallthrough
CT: control target
= control target key end

     0   :  { %s131_s10 = smov 60   ;;  %s132_s11 = smov 52   ;;  %vm3_vm0 = vcmask 31744   ;;  %vm9_vm1 = vcmask 523744   ;;  %vm15_vm2 = vcmask 490944   ;;  %vm21_vm3 = vcmask 458144   ;;  %s207_s0 = inlined_call_operand.vmem [shape: f32[16,4], index: 0, kind: input, shape index: {}]   ;;  %s208_s1 = inlined_call_operand.vmem [shape: f32[1,64], index: 1, kind: output, shape index: {}]  }
   0x1   :  { %v101_v0 = vld [vmem:[%s207_s0 + $0xf] sm:$0x1]   ;;  %v103_v1 = vld [vmem:[%s207_s0 + $0xd] sm:$0x1]   ;;  %v105_v2 = vld [vmem:[%s207_s0 + $0xb] sm:$0x1]  }
   0x2   :  { %7 = vrot.lane.b32.xlu0 %v101_v0, %s131_s10  ;;  %19 = vrot.lane.b32.xlu1 %v103_v1, %s132_s11  ;;  %s133_s14 = smov 44   ;;  %v102_v3 = vld [vmem:[%s207_s0 + $0xe] sm:$0x1]   ;;  %v104_v4 = vld [vmem:[%s207_s0 + $0xc] sm:$0x1]   ;;  %s134_s19 = smov 56  }
   0x3   :  { %31 = vrot.lane.b32.xlu2 %v105_v2, %s133_s14  ;;  %s135_s20 = smov 48   ;;  %v106_v5 = vld [vmem:[%s207_s0 + $0xa] sm:$0x1]   ;;  %s136_s23 = smov 40   ;;  %v107_v6 = vld [vmem:[%s207_s0 + $0x9] sm:$0x1]  }
   0x4   :  { %v108_v7 = vld [vmem:[%s207_s0 + $0x8] sm:$0x1]   ;;  %s137_s28 = smov 36   ;;  %s138_s29 = smov 32   ;;  %v109_v8 = vld [vmem:[%s207_s0 + $0x7] sm:$0x1]  }
   0x5   :  { %s139_s3 = smov 28   ;;  %v110_v9 = vld [vmem:[%s207_s0 + $0x6] sm:$0x1]   ;;  %v111_v10 = vld [vmem:[%s207_s0 + $0x5] sm:$0x1]   ;;  %s140_s8 = smov 24  }
   0x6   :  { %s141_s9 = smov 20   ;;  %v112_v11 = vld [vmem:[%s207_s0 + $0x4] sm:$0x1]   ;;  %s142_s12 = smov 16   ;;  %v113_v12 = vld [vmem:[%s207_s0 + $0x3] sm:$0x1]  }
   0x7   :  { %v114_v13 = vld [vmem:[%s207_s0 + $0x2] sm:$0x1]   ;;  %s143_s17 = smov 12   ;;  %s144_s18 = smov 8   ;;  %v115_v14 = vld [vmem:[%s207_s0 + $0x1] sm:$0x1]  }
   0x8   :  { %s145_s21 = smov 4   ;;  %v2_v15 = vld [vmem:[%s207_s0] sm:$0x1]   ;;  %vm27_vm4 = vcmask 425344   ;;  %vm33_vm5 = vcmask 392544   ;;  %vm39_vm6 = vcmask 359744  }
   0x9   :  { %4 = vst.msk [vmem:[#allocation0] sm:$0x1] %vm3_vm0, %v2_v15   ;;  %vm45_vm7 = vcmask 326944   ;;  %vm51_vm8 = vcmask 294144   ;;  %vm57_vm9 = vcmask 261344   ;;  %vm63_vm10 = vcmask 228544  }
   0xa   :  { %13 = vrot.lane.b32.xlu0 %v102_v3, %s134_s19  ;;  %25 = vrot.lane.b32.xlu1 %v104_v4, %s135_s20  ;;  %vm69_vm11 = vcmask 195744   ;;  %vm75_vm12 = vcmask 162944   ;;  %vm81_vm13 = vcmask 130144   ;;  %vm87_vm14 = vcmask 97344  }
   0xb   :  { %37 = vrot.lane.b32.xlu2 %v106_v5, %s136_s23  ;;  %vm93_vm15 = vcmask 64544  }
  0x12   :  { %43 = vrot.lane.b32.xlu0 %v107_v6, %s137_s28  ;;  %49 = vrot.lane.b32.xlu1 %v108_v7, %s138_s29 }
  0x13   :  { %55 = vrot.lane.b32.xlu2 %v109_v8, %s139_s3 }
  0x1a   :  { %61 = vrot.lane.b32.xlu0 %v110_v9, %s140_s8  ;;  %67 = vrot.lane.b32.xlu1 %v111_v10, %s141_s9 }
  0x1b   :  { %73 = vrot.lane.b32.xlu2 %v112_v11, %s142_s12 }
  0x22   :  { %79 = vrot.lane.b32.xlu0 %v113_v12, %s143_s17  ;;  %85 = vrot.lane.b32.xlu1 %v114_v13, %s144_s18 }
  0x23   :  { %91 = vrot.lane.b32.xlu2 %v115_v14, %s145_s21 }
  0x5d   :  { %v32_v16 = vpop.permute.xlu2 %31  }
  0x65   :  { %v38_v17 = vpop.permute.xlu2 %37  }
  0x6d   :  { %v56_v18 = vpop.permute.xlu2 %55  }
  0x74   :  { %v8_v19 = vpop.permute.xlu0 %7   ;;  %v20_v20 = vpop.permute.xlu1 %19  }
  0x75   :  { %10 = vst.msk [vmem:[#allocation0] sm:$0x1] %vm9_vm1, %v8_v19   ;;  %v74_v21 = vpop.permute.xlu2 %73  }
  0x7c   :  { %v14_v22 = vpop.permute.xlu0 %13   ;;  %v26_v23 = vpop.permute.xlu1 %25  }
  0x7d   :  { %16 = vst.msk [vmem:[#allocation0] sm:$0x1] %vm15_vm2, %v14_v22   ;;  %v92_v24 = vpop.permute.xlu2 %91  }
  0x7e   :  { %22 = vst.msk [vmem:[#allocation0] sm:$0x1] %vm21_vm3, %v20_v20  }
  0x7f   :  { %28 = vst.msk [vmem:[#allocation0] sm:$0x1] %vm27_vm4, %v26_v23  }
  0x80   :  { %34 = vst.msk [vmem:[#allocation0] sm:$0x1] %vm33_vm5, %v32_v16  }
  0x81   :  { %40 = vst.msk [vmem:[#allocation0] sm:$0x1] %vm39_vm6, %v38_v17  }
  0x84   :  { %v44_v25 = vpop.permute.xlu0 %43   ;;  %v50_v26 = vpop.permute.xlu1 %49  }
  0x85   :  { %46 = vst.msk [vmem:[#allocation0] sm:$0x1] %vm45_vm7, %v44_v25  }
  0x86   :  { %52 = vst.msk [vmem:[#allocation0] sm:$0x1] %vm51_vm8, %v50_v26  }
  0x87   :  { %58 = vst.msk [vmem:[#allocation0] sm:$0x1] %vm57_vm9, %v56_v18  }
  0x8c   :  { %v62_v27 = vpop.permute.xlu0 %61   ;;  %v68_v28 = vpop.permute.xlu1 %67  }
  0x8d   :  { %64 = vst.msk [vmem:[#allocation0] sm:$0x1] %vm63_vm10, %v62_v27  }
  0x8e   :  { %70 = vst.msk [vmem:[#allocation0] sm:$0x1] %vm69_vm11, %v68_v28  }
  0x8f   :  { %76 = vst.msk [vmem:[#allocation0] sm:$0x1] %vm75_vm12, %v74_v21  }
  0x94   :  { %v80_v29 = vpop.permute.xlu0 %79   ;;  %v86_v30 = vpop.permute.xlu1 %85  }
  0x95   :  { %82 = vst.msk [vmem:[#allocation0] sm:$0x1] %vm81_vm13, %v80_v29  }
  0x96   :  { %88 = vst.msk [vmem:[#allocation0] sm:$0x1] %vm87_vm14, %v86_v30  }
  0x97   :  { %94 = vst.msk [vmem:[#allocation0] sm:$0x1] %vm93_vm15, %v92_v24  }
  0x9e   :  { %v97_v31 = vld [vmem:[#allocation0] sm:$0x1] }
  0x9f   :  { %100 = vst [vmem:[%s208_s1] sm:$0x1] %v97_v31 }

// kernel: tile.28
= control target key start
LH: loop header
LB: loop body
LE: loop exit
PB: predicated region body
PF: predicated region fallthrough
CT: control target
= control target key end

     0   :  { %s28_s0 = inlined_call_operand.vmem [shape: f32[8], index: 0, kind: input, shape index: {}]   ;;  %s29_s1 = inlined_call_operand.vmem [shape: f32[16,8], index: 1, kind: output, shape index: {}]  }
   0x1   :  { %v4_v0 = vld [vmem:[%s28_s0] ss:$0 sm:$0xff] }
   0x2   :  { %5 = vst [vmem:[%s29_s1] sm:$0xff] %v4_v0 }
   0x3   :  { %8 = vst [vmem:[%s29_s1 + $0x8] sm:$0xff] %v4_v0 }

// kernel: tile.29
= control target key start
LH: loop header
LB: loop body
LE: loop exit
PB: predicated region body
PF: predicated region fallthrough
CT: control target
= control target key end

     0   :  { %s131_s10 = smov 120   ;;  %s132_s11 = smov 104   ;;  %vm3_vm0 = vcmask 64512   ;;  %vm9_vm1 = vcmask 1048512   ;;  %vm15_vm2 = vcmask 982912   ;;  %vm21_vm3 = vcmask 917312   ;;  %s207_s0 = inlined_call_operand.vmem [shape: f32[16,8], index: 0, kind: input, shape index: {}]   ;;  %s208_s1 = inlined_call_operand.vmem [shape: f32[1,128], index: 1, kind: output, shape index: {}]  }
   0x1   :  { %v101_v0 = vld [vmem:[%s207_s0 + $0xf] sm:$0x1]   ;;  %v103_v1 = vld [vmem:[%s207_s0 + $0xd] sm:$0x1]   ;;  %v105_v2 = vld [vmem:[%s207_s0 + $0xb] sm:$0x1]  }
   0x2   :  { %7 = vrot.lane.b32.xlu0 %v101_v0, %s131_s10  ;;  %19 = vrot.lane.b32.xlu1 %v103_v1, %s132_s11  ;;  %s133_s14 = smov 88   ;;  %v102_v3 = vld [vmem:[%s207_s0 + $0xe] sm:$0x1]   ;;  %v104_v4 = vld [vmem:[%s207_s0 + $0xc] sm:$0x1]   ;;  %s134_s19 = smov 112  }
   0x3   :  { %31 = vrot.lane.b32.xlu2 %v105_v2, %s133_s14  ;;  %s135_s20 = smov 96   ;;  %v106_v5 = vld [vmem:[%s207_s0 + $0xa] sm:$0x1]   ;;  %s136_s23 = smov 80   ;;  %v107_v6 = vld [vmem:[%s207_s0 + $0x9] sm:$0x1]  }
   0x4   :  { %v108_v7 = vld [vmem:[%s207_s0 + $0x8] sm:$0x1]   ;;  %s137_s28 = smov 72   ;;  %s138_s29 = smov 64   ;;  %v109_v8 = vld [vmem:[%s207_s0 + $0x7] sm:$0x1]  }
   0x5   :  { %s139_s3 = smov 56   ;;  %v110_v9 = vld [vmem:[%s207_s0 + $0x6] sm:$0x1]   ;;  %v111_v10 = vld [vmem:[%s207_s0 + $0x5] sm:$0x1]   ;;  %s140_s8 = smov 48  }
   0x6   :  { %s141_s9 = smov 40   ;;  %v112_v11 = vld [vmem:[%s207_s0 + $0x4] sm:$0x1]   ;;  %s142_s12 = smov 32   ;;  %v113_v12 = vld [vmem:[%s207_s0 + $0x3] sm:$0x1]  }
   0x7   :  { %v114_v13 = vld [vmem:[%s207_s0 + $0x2] sm:$0x1]   ;;  %s143_s17 = smov 24   ;;  %s144_s18 = smov 16   ;;  %v115_v14 = vld [vmem:[%s207_s0 + $0x1] sm:$0x1]  }
   0x8   :  { %s145_s21 = smov 8   ;;  %v2_v15 = vld [vmem:[%s207_s0] sm:$0x1]   ;;  %vm27_vm4 = vcmask 851712   ;;  %vm33_vm5 = vcmask 786112   ;;  %vm39_vm6 = vcmask 720512  }
   0x9   :  { %4 = vst.msk [vmem:[#allocation0] sm:$0x1] %vm3_vm0, %v2_v15   ;;  %vm45_vm7 = vcmask 654912   ;;  %vm51_vm8 = vcmask 589312   ;;  %vm57_vm9 = vcmask 523712   ;;  %vm63_vm10 = vcmask 458112  }
   0xa   :  { %13 = vrot.lane.b32.xlu0 %v102_v3, %s134_s19  ;;  %25 = vrot.lane.b32.xlu1 %v104_v4, %s135_s20  ;;  %vm69_vm11 = vcmask 392512   ;;  %vm75_vm12 = vcmask 326912   ;;  %vm81_vm13 = vcmask 261312   ;;  %vm87_vm14 = vcmask 195712  }
   0xb   :  { %37 = vrot.lane.b32.xlu2 %v106_v5, %s136_s23  ;;  %vm93_vm15 = vcmask 130112  }
  0x12   :  { %43 = vrot.lane.b32.xlu0 %v107_v6, %s137_s28  ;;  %49 = vrot.lane.b32.xlu1 %v108_v7, %s138_s29 }
  0x13   :  { %55 = vrot.lane.b32.xlu2 %v109_v8, %s139_s3 }
  0x1a   :  { %61 = vrot.lane.b32.xlu0 %v110_v9, %s140_s8  ;;  %67 = vrot.lane.b32.xlu1 %v111_v10, %s141_s9 }
  0x1b   :  { %73 = vrot.lane.b32.xlu2 %v112_v11, %s142_s12 }
  0x22   :  { %79 = vrot.lane.b32.xlu0 %v113_v12, %s143_s17  ;;  %85 = vrot.lane.b32.xlu1 %v114_v13, %s144_s18 }
  0x23   :  { %91 = vrot.lane.b32.xlu2 %v115_v14, %s145_s21 }
  0x5d   :  { %v32_v16 = vpop.permute.xlu2 %31  }
  0x65   :  { %v38_v17 = vpop.permute.xlu2 %37  }
  0x6d   :  { %v56_v18 = vpop.permute.xlu2 %55  }
  0x74   :  { %v8_v19 = vpop.permute.xlu0 %7   ;;  %v20_v20 = vpop.permute.xlu1 %19  }
  0x75   :  { %10 = vst.msk [vmem:[#allocation0] sm:$0x1] %vm9_vm1, %v8_v19   ;;  %v74_v21 = vpop.permute.xlu2 %73  }
  0x7c   :  { %v14_v22 = vpop.permute.xlu0 %13   ;;  %v26_v23 = vpop.permute.xlu1 %25  }
  0x7d   :  { %16 = vst.msk [vmem:[#allocation0] sm:$0x1] %vm15_vm2, %v14_v22   ;;  %v92_v24 = vpop.permute.xlu2 %91  }
  0x7e   :  { %22 = vst.msk [vmem:[#allocation0] sm:$0x1] %vm21_vm3, %v20_v20  }
  0x7f   :  { %28 = vst.msk [vmem:[#allocation0] sm:$0x1] %vm27_vm4, %v26_v23  }
  0x80   :  { %34 = vst.msk [vmem:[#allocation0] sm:$0x1] %vm33_vm5, %v32_v16  }
  0x81   :  { %40 = vst.msk [vmem:[#allocation0] sm:$0x1] %vm39_vm6, %v38_v17  }
  0x84   :  { %v44_v25 = vpop.permute.xlu0 %43   ;;  %v50_v26 = vpop.permute.xlu1 %49  }
  0x85   :  { %46 = vst.msk [vmem:[#allocation0] sm:$0x1] %vm45_vm7, %v44_v25  }
  0x86   :  { %52 = vst.msk [vmem:[#allocation0] sm:$0x1] %vm51_vm8, %v50_v26  }
  0x87   :  { %58 = vst.msk [vmem:[#allocation0] sm:$0x1] %vm57_vm9, %v56_v18  }
  0x8c   :  { %v62_v27 = vpop.permute.xlu0 %61   ;;  %v68_v28 = vpop.permute.xlu1 %67  }
  0x8d   :  { %64 = vst.msk [vmem:[#allocation0] sm:$0x1] %vm63_vm10, %v62_v27  }
  0x8e   :  { %70 = vst.msk [vmem:[#allocation0] sm:$0x1] %vm69_vm11, %v68_v28  }
  0x8f   :  { %76 = vst.msk [vmem:[#allocation0] sm:$0x1] %vm75_vm12, %v74_v21  }
  0x94   :  { %v80_v29 = vpop.permute.xlu0 %79   ;;  %v86_v30 = vpop.permute.xlu1 %85  }
  0x95   :  { %82 = vst.msk [vmem:[#allocation0] sm:$0x1] %vm81_vm13, %v80_v29  }
  0x96   :  { %88 = vst.msk [vmem:[#allocation0] sm:$0x1] %vm87_vm14, %v86_v30  }
  0x97   :  { %94 = vst.msk [vmem:[#allocation0] sm:$0x1] %vm93_vm15, %v92_v24  }
  0x9e   :  { %v97_v31 = vld [vmem:[#allocation0] sm:$0x1] }
  0x9f   :  { %100 = vst [vmem:[%s208_s1] sm:$0x1] %v97_v31 }

// kernel: actor_forward_pallas.1
= control target key start
LH: loop header
LB: loop body
LE: loop exit
PB: predicated region body
PF: predicated region fallthrough
CT: control target
= control target key end

     0   :  { %vm85_vm0 = vcmask 523264   ;;  %vm4709_vm1 = vcmask 97280   ;;  %s10627_s1 = inlined_call_operand.vmem [shape: f32[3,64,64], index: 1, kind: input, shape index: {}]   ;;  %s10628_s0 = inlined_call_operand.vmem [shape: f32[1,240,64], index: 0, kind: input, shape index: {}]   ;;  %s10629_s2 = inlined_call_operand.vmem [shape: f32[1,64], index: 2, kind: input, shape index: {}]   ;;  %s10630_s3 = inlined_call_operand.vmem [shape: f32[3,64,128], index: 3, kind: input, shape index: {}]   ;;  %s10631_s5 = inlined_call_operand.vmem [shape: f32[3,128,256], index: 5, kind: input, shape index: {}]   ;;  %s10632_s4 = inlined_call_operand.vmem [shape: f32[1,128], index: 4, kind: input, shape index: {}]   ;;  %s10633_s7 = inlined_call_operand.vmem [shape: f32[3,256,512], index: 7, kind: input, shape index: {}]   ;;  %s10634_s6 = inlined_call_operand.vmem [shape: f32[1,256], index: 6, kind: input, shape index: {}]   ;;  %s10635_s9 = inlined_call_operand.vmem [shape: f32[7,512,12], index: 9, kind: input, shape index: {}]   ;;  %s10636_s8 = inlined_call_operand.vmem [shape: f32[1,512], index: 8, kind: input, shape index: {}]   ;;  %s10637_s10 = inlined_call_operand.vmem [shape: f32[1,12], index: 10, kind: input, shape index: {}]   ;;  %s10638_s11 = inlined_call_operand.vmem [shape: f32[1,16,12], index: 11, kind: output, shape index: {}]  }
   0x1   :  { %v4723_v0 = vld [vmem:[%s10627_s1 + $0x78] sm:$0xff]  ;;  %v4722_v1 = vld [vmem:[%s10627_s1 + $0x70] sm:$0xff]  ;;  %v4721_v2 = vld [vmem:[%s10627_s1 + $0x68] sm:$0xff] }
   0x2   :  { %5596 = vmatpush.msra.mxu1 %v4723_v0  ;;  %5597 = vmatpush.msra.mxu2 %v4723_v0  ;;  %v4720_v3 = vld [vmem:[%s10627_s1 + $0x60] sm:$0xff]  ;;  %v4719_v4 = vld [vmem:[%s10627_s1 + $0x58] sm:$0xff]  ;;  %v4718_v5 = vld [vmem:[%s10627_s1 + $0x50] sm:$0xff] }
   0x3   :  { %172 = vmatpush.msra.mxu0 %v4723_v0  ;;  %v4717_v6 = vld [vmem:[%s10627_s1 + $0x48] sm:$0xff]  ;;  %v4716_v7 = vld [vmem:[%s10627_s1 + $0x40] sm:$0xff]  ;;  %v4783_v9 = vld [vmem:[%s10627_s1 + $0xb8] sm:$0xff] }
   0x4   :  { %5598 = vmatpush.msra.mxu1 %v4722_v1  ;;  %5599 = vmatpush.msra.mxu2 %v4722_v1  ;;  %v5706_v8 = vld [vmem:[%s10628_s0 + $0xc8] sm:$0xff]  ;;  %v40_v10 = vld [vmem:[%s10628_s0 + $0x10] sm:$0xff]  ;;  %v75_v11 = vld [vmem:[%s10627_s1 + $0x38] sm:$0xff] }
   0x5   :  { %173 = vmatpush.msra.mxu0 %v4722_v1  ;;  %v5720_v12 = vld [vmem:[%s10628_s0 + $0xd8] sm:$0xff]  ;;  %v4782_v13 = vld [vmem:[%s10627_s1 + $0xb0] sm:$0xff]  ;;  %v4781_v15 = vld [vmem:[%s10627_s1 + $0xa8] sm:$0xff] }
   0x6   :  { %5600 = vmatpush.msra.mxu1 %v4721_v2  ;;  %5601 = vmatpush.msra.mxu2 %v4721_v2  ;;  %v74_v14 = vld [vmem:[%s10627_s1 + $0x30] sm:$0xff]  ;;  %v73_v16 = vld [vmem:[%s10627_s1 + $0x28] sm:$0xff]  ;;  %v4780_v17 = vld [vmem:[%s10627_s1 + $0xa0] sm:$0xff] }
   0x7   :  { %174 = vmatpush.msra.mxu0 %v4721_v2  ;;  %v72_v18 = vld [vmem:[%s10627_s1 + $0x20] sm:$0xff]  ;;  %v5748_v19 = vld [vmem:[%s10628_s0 + $0xd0] sm:$0xff]  ;;  %v4779_v20 = vld [vmem:[%s10627_s1 + $0x98] sm:$0xff] }
   0x8   :  { %5602 = vmatpush.msra.mxu1 %v4720_v3  ;;  %5603 = vmatpush.msra.mxu2 %v4720_v3  ;;  %v41_v21 = vld [vmem:[%s10628_s0 + $0x18] sm:$0xff]  ;;  %v4778_v23 = vld [vmem:[%s10627_s1 + $0x90] sm:$0xff]  ;;  %v4777_v25 = vld [vmem:[%s10627_s1 + $0x88] sm:$0xff] }
   0x9   :  { %175 = vmatpush.msra.mxu0 %v4720_v3  ;;  %v71_v22 = vld [vmem:[%s10627_s1 + $0x18] sm:$0xff]  ;;  %v70_v24 = vld [vmem:[%s10627_s1 + $0x10] sm:$0xff]  ;;  %v69_v26 = vld [vmem:[%s10627_s1 + $0x8] sm:$0xff] }
   0xa   :  { %5604 = vmatpush.msra.mxu1 %v4719_v4  ;;  %5605 = vmatpush.msra.mxu2 %v4719_v4  ;;  %v4776_v27 = vld [vmem:[%s10627_s1 + $0x80] sm:$0xff]  ;;  %v43_v31 = vld [vmem:[%s10628_s0 + $0x28] sm:$0xff]  ;;  %v44_v33 = vld [vmem:[%s10628_s0 + $0x30] sm:$0xff] }
   0xb   :  { %176 = vmatpush.msra.mxu0 %v4719_v4  ;;  %v68_v28 = vld [vmem:[%s10627_s1] sm:$0xff]  ;;  %v39_v32 = vld [vmem:[%s10628_s0 + $0x8] sm:$0xff]  ;;  %v45_v34 = vld [vmem:[%s10628_s0 + $0x38] sm:$0xff] }
   0xc   :  { %5606 = vmatpush.msra.mxu1 %v4718_v5  ;;  %5607 = vmatpush.msra.mxu2 %v4718_v5  ;;  %v42_v29 = vld [vmem:[%s10628_s0 + $0x20] sm:$0xff]  ;;  %v47_v36 = vld [vmem:[%s10628_s0 + $0x48] sm:$0xff]  ;;  %v48_v37 = vld [vmem:[%s10628_s0 + $0x50] sm:$0xff] }
   0xd   :  { %177 = vmatpush.msra.mxu0 %v4718_v5  ;;  %v38_v30 = vld [vmem:[%s10628_s0] sm:$0xff]  ;;  %v49_v38 = vld [vmem:[%s10628_s0 + $0x58] sm:$0xff]  ;;  %v51_v40 = vld [vmem:[%s10628_s0 + $0x68] sm:$0xff] }
   0xe   :  { %5608 = vmatpush.msra.mxu1 %v4717_v6  ;;  %5609 = vmatpush.msra.mxu2 %v4717_v6  ;;  %v46_v35 = vld [vmem:[%s10628_s0 + $0x40] sm:$0xff]  ;;  %v52_v41 = vld [vmem:[%s10628_s0 + $0x70] sm:$0xff]  ;;  %v53_v42 = vld [vmem:[%s10628_s0 + $0x78] sm:$0xff] }
   0xf   :  { %178 = vmatpush.msra.mxu0 %v4717_v6  ;;  %v50_v39 = vld [vmem:[%s10628_s0 + $0x60] sm:$0xff]  ;;  %v5867_v44 = vld [vmem:[%s10628_s0 + $0x88] sm:$0xff]  ;;  %v4817_v45 = vld [vmem:[%s10630_s3 + $0x78] sm:$0xff] }
  0x10   :  { %5610 = vmatpush.msra.mxu1 %v4716_v7  ;;  %5611 = vmatpush.msra.mxu2 %v4716_v7  ;;  %v54_v43 = vld [vmem:[%s10628_s0 + $0x80] sm:$0xff]  ;;  %v4816_v46 = vld [vmem:[%s10630_s3 + $0x70] sm:$0xff]  ;;  %v4815_v50 = vld [vmem:[%s10630_s3 + $0x68] sm:$0xff] }
  0x11   :  { %179 = vmatpush.msra.mxu0 %v4716_v7  ;;  %4747 = vmatmul.msk.f32.vlgmr.msra.gmra.mxu1 %vm85_vm0, %v5706_v8  ;;  %v5885_v48 = vld [vmem:[%s10628_s0 + $0x90] sm:$0xff]  ;;  %v4814_v51 = vld [vmem:[%s10630_s3 + $0x60] sm:$0xff]  ;;  %v4813_v52 = vld [vmem:[%s10630_s3 + $0x58] sm:$0xff] }
  0x12   :  { %383 = vmatpush.msrb.mxu2 %v4783_v9  ;;  %4724 = vmatmul.msk.f32.vlgmr.msra.gmra.mxu0 %vm85_vm0, %v40_v10  ;;  %v4812_v53 = vld [vmem:[%s10630_s3 + $0x50] sm:$0xff]  ;;  %v5907_v54 = vld [vmem:[%s10628_s0 + $0x98] sm:$0xff]  ;;  %v4811_v56 = vld [vmem:[%s10630_s3 + $0x48] sm:$0xff] }
  0x13   :  { %273 = vmatpush.msrb.mxu1 %v75_v11  ;;  %4749 = vmatmul.msk.f32.vlgmr.msra.gmra.mxu2 %vm85_vm0, %v5720_v12  ;;  %v4810_v58 = vld [vmem:[%s10630_s3 + $0x40] sm:$0xff]  ;;  %v4869_v60 = vld [vmem:[%s10630_s3 + $0xb8] sm:$0xff]  ;;  %v4868_v61 = vld [vmem:[%s10630_s3 + $0xb0] sm:$0xff] }
  0x14   :  { %384 = vmatpush.msrb.mxu2 %v4782_v13  ;;  %643 = vmatpush.msra.mxu3 %v4817_v45  ;;  %v58_v62 = vld [vmem:[%s10628_s0 + $0xa0] sm:$0xff]  ;;  %v4867_v0 = vld [vmem:[%s10630_s3 + $0xa8] sm:$0xff]  ;;  %v4865_v4 = vld [vmem:[%s10630_s3 + $0x98] sm:$0xff] }
  0x15   :  { %274 = vmatpush.msrb.mxu1 %v74_v14  ;;  %830 = vmatpush.msrb.mxu0 %v4869_v60  ;;  %v4866_v3 = vld [vmem:[%s10630_s3 + $0xa0] sm:$0xff]  ;;  %v4864_v7 = vld [vmem:[%s10630_s3 + $0x90] sm:$0xff]  ;;  %v59_v9 = vld [vmem:[%s10628_s0 + $0xa8] sm:$0xff] }
  0x16   :  { %385 = vmatpush.msrb.mxu2 %v4781_v15  ;;  %644 = vmatpush.msra.mxu3 %v4816_v46  ;;  %v4863_v11 = vld [vmem:[%s10630_s3 + $0x88] sm:$0xff]  ;;  %v4862_v15 = vld [vmem:[%s10630_s3 + $0x80] sm:$0xff] }
  0x17   :  { %275 = vmatpush.msrb.mxu1 %v73_v16  ;;  %831 = vmatpush.msrb.mxu0 %v4868_v61  ;;  %v559_v61 = vld [vmem:[%s10630_s3 + $0x38] sm:$0xff] }
  0x18   :  { %386 = vmatpush.msrb.mxu2 %v4780_v17  ;;  %645 = vmatpush.msra.mxu3 %v4815_v50 }
  0x19   :  { %276 = vmatpush.msrb.mxu1 %v72_v18  ;;  %832 = vmatpush.msrb.mxu0 %v4867_v0  ;;  %v60_v18 = vld [vmem:[%s10628_s0 + $0xb0] sm:$0xff] }
  0x1a   :  { %4748 = vmatmul.msk.f32.gmra.mxu1 %vm85_vm0, %v5748_v19  ;;  %387 = vmatpush.msrb.mxu2 %v4779_v20 }
  0x1b   :  { %4725 = vmatmul.msk.f32.gmra.mxu0 %vm85_vm0, %v41_v21  ;;  %277 = vmatpush.msrb.mxu1 %v71_v22 }
  0x1c   :  { %388 = vmatpush.msrb.mxu2 %v4778_v23  ;;  %646 = vmatpush.msra.mxu3 %v4814_v51 }
  0x1d   :  { %278 = vmatpush.msrb.mxu1 %v70_v24  ;;  %833 = vmatpush.msrb.mxu0 %v4866_v3  ;;  %v5975_v24 = vld [vmem:[%s10629_s2] ss:$0 sm:$0xff] }
  0x1e   :  { %389 = vmatpush.msrb.mxu2 %v4777_v25  ;;  %647 = vmatpush.msra.mxu3 %v4813_v52 }
  0x1f   :  { %279 = vmatpush.msrb.mxu1 %v69_v26  ;;  %834 = vmatpush.msrb.mxu0 %v4865_v4  ;;  %v61_v26 = vld [vmem:[%s10628_s0 + $0xb8] sm:$0xff] }
  0x20   :  { %390 = vmatpush.msrb.mxu2 %v4776_v27  ;;  %648 = vmatpush.msra.mxu3 %v4812_v53 }
  0x21   :  { %280 = vmatpush.msrb.mxu1 %v68_v28  ;;  %4784 = vmatmul.msk.f32.vlgmr.msrb.gmra.mxu2 %vm85_vm0, %v42_v29 }
  0x22   :  { %4750 = vmatmul.msk.f32.vlgmr.msrb.gmra.mxu1 %vm85_vm0, %v38_v30  ;;  %649 = vmatpush.msra.mxu3 %v4811_v56 }
  0x23   :  { %4726 = vmatmul.msk.f32.gmra.mxu0 %vm85_vm0, %v42_v29 }
  0x24   :  { %650 = vmatpush.msra.mxu3 %v4810_v58  ;;  %835 = vmatpush.msrb.mxu0 %v4864_v7 }
  0x26   :  { %836 = vmatpush.msrb.mxu0 %v4863_v11  ;;  %732 = vmatpush.msrb.mxu3 %v559_v61  ;;  %v67_v11 = vld [vmem:[%s10628_s0 + $0xe8] sm:$0xff] }
  0x28   :  { %837 = vmatpush.msrb.mxu0 %v4862_v15 }
  0x29   :  { %4785 = vmatmul.msk.f32.gmra.mxu2 %vm85_vm0, %v43_v31 }
  0x2a   :  { %4751 = vmatmul.msk.f32.gmra.mxu1 %vm85_vm0, %v39_v32 }
  0x2b   :  { %4727 = vmatmul.msk.f32.gmra.mxu0 %vm85_vm0, %v43_v31 }
  0x31   :  { %4786 = vmatmul.msk.f32.gmra.mxu2 %vm85_vm0, %v44_v33 }
  0x32   :  { %4752 = vmatmul.msk.f32.gmra.mxu1 %vm85_vm0, %v40_v10 }
  0x33   :  { %4728 = vmatmul.msk.f32.gmra.mxu0 %vm85_vm0, %v44_v33 }
  0x39   :  { %4787 = vmatmul.msk.f32.gmra.mxu2 %vm85_vm0, %v45_v34 }
  0x3a   :  { %4753 = vmatmul.msk.f32.gmra.mxu1 %vm85_vm0, %v41_v21 }
  0x3b   :  { %4729 = vmatmul.msk.f32.gmra.mxu0 %vm85_vm0, %v45_v34 }
  0x41   :  { %4788 = vmatmul.msk.f32.gmra.mxu2 %vm85_vm0, %v46_v35 }
  0x42   :  { %4754 = vmatmul.msk.f32.gmra.mxu1 %vm85_vm0, %v42_v29 }
  0x43   :  { %4730 = vmatmul.msk.f32.gmra.mxu0 %vm85_vm0, %v46_v35 }
  0x49   :  { %4789 = vmatmul.msk.f32.gmra.mxu2 %vm85_vm0, %v47_v36 }
  0x4a   :  { %4755 = vmatmul.msk.f32.gmra.mxu1 %vm85_vm0, %v43_v31 }
  0x4b   :  { %4731 = vmatmul.msk.f32.gmra.mxu0 %vm85_vm0, %v47_v36 }
  0x51   :  { %4790 = vmatmul.msk.f32.gmra.mxu2 %vm85_vm0, %v48_v37 }
  0x52   :  { %4756 = vmatmul.msk.f32.gmra.mxu1 %vm85_vm0, %v44_v33 }
  0x53   :  { %4732 = vmatmul.msk.f32.gmra.mxu0 %vm85_vm0, %v48_v37 }
  0x59   :  { %4791 = vmatmul.msk.f32.gmra.mxu2 %vm85_vm0, %v49_v38 }
  0x5a   :  { %4757 = vmatmul.msk.f32.gmra.mxu1 %vm85_vm0, %v45_v34  ;;  %v62_v34 = vld [vmem:[%s10628_s0 + $0xc0] sm:$0xff] }
  0x5b   :  { %4733 = vmatmul.msk.f32.gmra.mxu0 %vm85_vm0, %v49_v38 }
  0x61   :  { %4792 = vmatmul.msk.f32.gmra.mxu2 %vm85_vm0, %v50_v39 }
  0x62   :  { %4758 = vmatmul.msk.f32.gmra.mxu1 %vm85_vm0, %v46_v35 }
  0x63   :  { %4734 = vmatmul.msk.f32.gmra.mxu0 %vm85_vm0, %v50_v39 }
  0x69   :  { %4793 = vmatmul.msk.f32.gmra.mxu2 %vm85_vm0, %v51_v40 }
  0x6a   :  { %4759 = vmatmul.msk.f32.gmra.mxu1 %vm85_vm0, %v47_v36 }
  0x6b   :  { %4735 = vmatmul.msk.f32.gmra.mxu0 %vm85_vm0, %v51_v40 }
  0x71   :  { %4794 = vmatmul.msk.f32.gmra.mxu2 %vm85_vm0, %v52_v41 }
  0x72   :  { %4760 = vmatmul.msk.f32.gmra.mxu1 %vm85_vm0, %v48_v37 }
  0x73   :  { %4736 = vmatmul.msk.f32.gmra.mxu0 %vm85_vm0, %v52_v41 }
  0x79   :  { %4795 = vmatmul.msk.f32.gmra.mxu2 %vm85_vm0, %v53_v42 }
  0x7a   :  { %4761 = vmatmul.msk.f32.gmra.mxu1 %vm85_vm0, %v49_v38 }
  0x7b   :  { %4737 = vmatmul.msk.f32.gmra.mxu0 %vm85_vm0, %v53_v42 }
  0x81   :  { %4796 = vmatmul.msk.f32.gmra.mxu2 %vm85_vm0, %v54_v43 }
  0x82   :  { %4762 = vmatmul.msk.f32.gmra.mxu1 %vm85_vm0, %v50_v39 }
  0x83   :  { %4738 = vmatmul.msk.f32.gmra.mxu0 %vm85_vm0, %v54_v43 }
  0x89   :  { %4797 = vmatmul.msk.f32.gmra.mxu2 %vm85_vm0, %v5867_v44 }
  0x8a   :  { %4763 = vmatmul.msk.f32.gmra.mxu1 %vm85_vm0, %v51_v40 }
  0x8b   :  { %4739 = vmatmul.msk.f32.gmra.mxu0 %vm85_vm0, %v5867_v44 }
  0x8e   :  { %v5880_v47 = vpop.f32.mrf.mxu1 }
  0x8f   :  { %v181_v49 = vpop.f32.mrf.mxu0 }
  0x91   :  { %4798 = vmatmul.msk.f32.gmra.mxu2 %vm85_vm0, %v5885_v48 }
  0x92   :  { %4764 = vmatmul.msk.f32.gmra.mxu1 %vm85_vm0, %v52_v41 }
  0x93   :  { %4740 = vmatmul.msk.f32.gmra.mxu0 %vm85_vm0, %v5885_v48 }
  0x96   :  { %v5920_v59 = vpop.f32.mrf.mxu2 }
  0x97   :  { %v5909_v55 = vpop.f32.mrf.mxu1 }
  0x98   :  { %v184_v57 = vpop.f32.mrf.mxu0 }
  0x99   :  { %4799 = vmatmul.msk.f32.gmra.mxu2 %vm85_vm0, %v5907_v54 }
  0x9a   :  { %4765 = vmatmul.msk.f32.gmra.mxu1 %vm85_vm0, %v53_v42 }
  0x9b   :  { %4741 = vmatmul.msk.f32.gmra.mxu0 %vm85_vm0, %v5907_v54 }
  0x9f   :  { %v282_v63 = vpop.f32.mrf.mxu1 }
  0xa0   :  { %v187_v1 = vpop.f32.mrf.mxu0  ;;  %v283_v2 = vadd.f32 %v282_v63, %v181_v49 }
  0xa1   :  { %4800 = vmatmul.msk.f32.gmra.mxu2 %vm85_vm0, %v58_v62 }
  0xa2   :  { %4766 = vmatmul.msk.f32.gmra.mxu1 %vm85_vm0, %v54_v43 }
  0xa3   :  { %4742 = vmatmul.msk.f32.gmra.mxu0 %vm85_vm0, %v58_v62 }
  0xa4   :  { %v392_v5 = vpop.f32.mrf.mxu2 }
  0xa5   :  { %v5945_v6 = vadd.f32 %v392_v5, %v283_v2  ;;  %v66_v2 = vld [vmem:[%s10628_s0 + $0xe0] sm:$0xff] }
  0xa7   :  { %v285_v10 = vpop.f32.mrf.mxu1 }
  0xa8   :  { %v190_v13 = vpop.f32.mrf.mxu0  ;;  %v286_v14 = vadd.f32 %v285_v10, %v184_v57 }
  0xa9   :  { %4801 = vmatmul.msk.f32.gmra.mxu2 %vm85_vm0, %v59_v9 }
  0xaa   :  { %4767 = vmatmul.msk.f32.gmra.mxu1 %vm85_vm0, %v5867_v44 }
  0xab   :  { %4743 = vmatmul.msk.f32.gmra.mxu0 %vm85_vm0, %v59_v9 }
  0xac   :  { %v395_v16 = vpop.f32.mrf.mxu2 }
  0xad   :  { %v5963_v17 = vadd.f32 %v395_v16, %v286_v14 }
  0xaf   :  { %v288_v20 = vpop.f32.mrf.mxu1 }
  0xb0   :  { %v193_v21 = vpop.f32.mrf.mxu0  ;;  %v289_v22 = vadd.f32 %v288_v20, %v187_v1 }
  0xb1   :  { %4802 = vmatmul.msk.f32.gmra.mxu2 %vm85_vm0, %v60_v18 }
  0xb2   :  { %4768 = vmatmul.msk.f32.gmra.mxu1 %vm85_vm0, %v5885_v48 }
  0xb3   :  { %4744 = vmatmul.msk.f32.gmra.mxu0 %vm85_vm0, %v60_v18 }
  0xb4   :  { %v398_v23 = vpop.f32.mrf.mxu2 }
  0xb5   :  { %v472_v25 = vadd.f32 %v398_v23, %v289_v22 }
  0xb7   :  { %v5981_v27 = vadd.f32 %v5975_v24, %v472_v25  ;;  %v291_v28 = vpop.f32.mrf.mxu1  ;;  %v558_v25 = vld [vmem:[%s10630_s3 + $0x30] sm:$0xff] }
  0xb8   :  { %v196_v29 = vpop.f32.mrf.mxu0  ;;  %v292_v30 = vadd.f32 %v291_v28, %v190_v13  ;;  %733 = vmatpush.msrb.mxu3 %v558_v25 }
  0xb9   :  { %4803 = vmatmul.msk.f32.gmra.mxu2 %vm85_vm0, %v61_v26  ;;  %v528_v31 = vmax.f32 %v5981_v27, 0.0 }
  0xba   :  { %4769 = vmatmul.msk.f32.gmra.mxu1 %vm85_vm0, %v5907_v54 }
  0xbb   :  { %4745 = vmatmul.msk.f32.gmra.mxu0 %vm85_vm0, %v61_v26  ;;  %4818 = vmatmul.msk.f32.vlgmr.msra.gmra.mxu3 %vm85_vm0, %v528_v31 }
  0xbc   :  { %v401_v32 = vpop.f32.mrf.mxu2 }
  0xbd   :  { %v473_v33 = vadd.f32 %v401_v32, %v292_v30 }
  0xbf   :  { %v5995_v35 = vadd.f32 %v5975_v24, %v473_v33  ;;  %v294_v36 = vpop.f32.mrf.mxu1 }
  0xc0   :  { %v199_v37 = vpop.f32.mrf.mxu0  ;;  %v295_v38 = vadd.f32 %v294_v36, %v193_v21 }
  0xc1   :  { %4804 = vmatmul.msk.f32.gmra.mxu2 %vm85_vm0, %v62_v34  ;;  %v529_v39 = vmax.f32 %v5995_v35, 0.0  ;;  %v4913_v35 = vld [vmem:[%s10631_s5 + $0x1a8] sm:$0xff] }
  0xc2   :  { %4770 = vmatmul.msk.f32.gmra.mxu1 %vm85_vm0, %v58_v62 }
  0xc3   :  { %4746 = vmatmul.msk.f32.gmra.mxu0 %vm85_vm0, %v62_v34  ;;  %4819 = vmatmul.msk.f32.gmra.mxu3 %vm85_vm0, %v529_v39 }
  0xc4   :  { %v404_v40 = vpop.f32.mrf.mxu2 }
  0xc5   :  { %v474_v41 = vadd.f32 %v404_v40, %v295_v38 }
  0xc7   :  { %v504_v42 = vadd.f32 %v5975_v24, %v474_v41  ;;  %v297_v43 = vpop.f32.mrf.mxu1 }
  0xc8   :  { %v202_v44 = vpop.f32.mrf.mxu0  ;;  %v298_v45 = vadd.f32 %v297_v43, %v196_v29 }
  0xc9   :  { %4805 = vmatmul.msk.f32.gmra.mxu2 %vm85_vm0, %v5706_v8  ;;  %v6007_v46 = vmax.f32 %v504_v42, 0.0 }
  0xca   :  { %4771 = vmatmul.msk.f32.gmra.mxu1 %vm85_vm0, %v59_v9 }
  0xcb   :  { %4820 = vmatmul.msk.f32.gmra.mxu3 %vm85_vm0, %v6007_v46  ;;  %4870 = vmatmul.msk.f32.vlgmr.msrb.gmra.mxu0 %vm85_vm0, %v6007_v46 }
  0xcc   :  { %v407_v48 = vpop.f32.mrf.mxu2 }
  0xcd   :  { %v475_v49 = vadd.f32 %v407_v48, %v298_v45 }
  0xcf   :  { %v505_v50 = vadd.f32 %v5975_v24, %v475_v49  ;;  %v300_v51 = vpop.f32.mrf.mxu1 }
  0xd0   :  { %v205_v52 = vpop.f32.mrf.mxu0  ;;  %v301_v53 = vadd.f32 %v300_v51, %v199_v37 }
  0xd1   :  { %4806 = vmatmul.msk.f32.gmra.mxu2 %vm85_vm0, %v5748_v19  ;;  %v6017_v54 = vmax.f32 %v505_v50, 0.0 }
  0xd2   :  { %4772 = vmatmul.msk.f32.gmra.mxu1 %vm85_vm0, %v60_v18 }
  0xd3   :  { %4821 = vmatmul.msk.f32.gmra.mxu3 %vm85_vm0, %v6017_v54  ;;  %4871 = vmatmul.msk.f32.gmra.mxu0 %vm85_vm0, %v6017_v54 }
  0xd4   :  { %v410_v56 = vpop.f32.mrf.mxu2 }
  0xd5   :  { %v476_v57 = vadd.f32 %v410_v56, %v301_v53 }
  0xd7   :  { %v506_v58 = vadd.f32 %v5975_v24, %v476_v57  ;;  %v303_v60 = vpop.f32.mrf.mxu1 }
  0xd8   :  { %v208_v19 = vpop.f32.mrf.mxu0  ;;  %v304_v62 = vadd.f32 %v303_v60, %v202_v44  ;;  %v557_v44 = vld [vmem:[%s10630_s3 + $0x28] sm:$0xff] }
  0xd9   :  { %4807 = vmatmul.msk.f32.gmra.mxu2 %vm85_vm0, %v5720_v12  ;;  %v6030_v63 = vmax.f32 %v506_v58, 0.0  ;;  %734 = vmatpush.msrb.mxu3 %v557_v44 }
  0xda   :  { %4773 = vmatmul.msk.f32.gmra.mxu1 %vm85_vm0, %v61_v26 }
  0xdb   :  { %4822 = vmatmul.msk.f32.gmra.mxu3 %vm85_vm0, %v6030_v63  ;;  %4872 = vmatmul.msk.f32.gmra.mxu0 %vm85_vm0, %v6030_v63 }
  0xdc   :  { %v413_v0 = vpop.f32.mrf.mxu2 }
  0xdd   :  { %v477_v1 = vadd.f32 %v413_v0, %v304_v62 }
  0xdf   :  { %v507_v3 = vadd.f32 %v5975_v24, %v477_v1  ;;  %v306_v4 = vpop.f32.mrf.mxu1 }
  0xe0   :  { %v211_v12 = vpop.f32.mrf.mxu0  ;;  %v307_v5 = vadd.f32 %v306_v4, %v205_v52 }
  0xe1   :  { %4808 = vmatmul.msk.f32.gmra.mxu2 %vm85_vm0, %v66_v2  ;;  %v6042_v7 = vmax.f32 %v507_v3, 0.0 }
  0xe2   :  { %4774 = vmatmul.msk.f32.gmra.mxu1 %vm85_vm0, %v62_v34 }
  0xe3   :  { %4823 = vmatmul.msk.f32.gmra.mxu3 %vm85_vm0, %v6042_v7  ;;  %4873 = vmatmul.msk.f32.gmra.mxu0 %vm85_vm0, %v6042_v7 }
  0xe4   :  { %v416_v9 = vpop.f32.mrf.mxu2 }
  0xe5   :  { %v478_v10 = vadd.f32 %v416_v9, %v307_v5  ;;  %v556_v5 = vld [vmem:[%s10630_s3 + $0x20] sm:$0xff] }
  0xe6   :  { %735 = vmatpush.msrb.mxu3 %v556_v5 }
  0xe7   :  { %v508_v13 = vadd.f32 %v5975_v24, %v478_v10  ;;  %v309_v14 = vpop.f32.mrf.mxu1 }
  0xe8   :  { %v214_v15 = vpop.f32.mrf.mxu0  ;;  %v310_v16 = vadd.f32 %v309_v14, %v208_v19 }
  0xe9   :  { %4809 = vmatmul.msk.f32.gmra.mxu2 %vm85_vm0, %v67_v11  ;;  %v6054_v18 = vmax.f32 %v508_v13, 0.0 }
  0xea   :  { %4775 = vmatmul.msk.f32.gmra.mxu1 %vm85_vm0, %v5706_v8 }
  0xeb   :  { %4824 = vmatmul.msk.f32.gmra.mxu3 %vm85_vm0, %v6054_v18  ;;  %4874 = vmatmul.msk.f32.gmra.mxu0 %vm85_vm0, %v6054_v18 }
  0xec   :  { %v419_v20 = vpop.f32.mrf.mxu2 }
  0xed   :  { %v479_v21 = vadd.f32 %v419_v20, %v310_v16 }
  0xef   :  { %v509_v22 = vadd.f32 %v5975_v24, %v479_v21  ;;  %v312_v23 = vpop.f32.mrf.mxu1 }
  0xf0   :  { %v217_v26 = vpop.f32.mrf.mxu0  ;;  %v313_v28 = vadd.f32 %v312_v23, %v211_v12 }
  0xf1   :  { %v6066_v29 = vmax.f32 %v509_v22, 0.0 }
  0xf3   :  { %4825 = vmatmul.msk.f32.gmra.mxu3 %vm85_vm0, %v6066_v29  ;;  %4875 = vmatmul.msk.f32.gmra.mxu0 %vm85_vm0, %v6066_v29 }
  0xf4   :  { %v422_v8 = vpop.f32.mrf.mxu2 }
  0xf5   :  { %v480_v30 = vadd.f32 %v422_v8, %v313_v28 }
  0xf7   :  { %v510_v32 = vadd.f32 %v5975_v24, %v480_v30  ;;  %v315_v33 = vpop.f32.mrf.mxu1 }
  0xf8   :  { %v220_v34 = vpop.f32.mrf.mxu0  ;;  %v316_v36 = vadd.f32 %v315_v33, %v214_v15 }
  0xf9   :  { %v6073_v37 = vmax.f32 %v510_v32, 0.0 }
  0xfb   :  { %4826 = vmatmul.msk.f32.gmra.mxu3 %vm85_vm0, %v6073_v37  ;;  %4876 = vmatmul.msk.f32.gmra.mxu0 %vm85_vm0, %v6073_v37 }
  0xfc   :  { %v425_v38 = vpop.f32.mrf.mxu2 }
  0xfd   :  { %v481_v40 = vadd.f32 %v425_v38, %v316_v36  ;;  %v555_v38 = vld [vmem:[%s10630_s3 + $0x18] sm:$0xff] }
  0xfe   :  { %736 = vmatpush.msrb.mxu3 %v555_v38 }
  0xff   :  { %v511_v41 = vadd.f32 %v5975_v24, %v481_v40  ;;  %v318_v42 = vpop.f32.mrf.mxu1 }
 0x100   :  { %v223_v43 = vpop.f32.mrf.mxu0  ;;  %v319_v45 = vadd.f32 %v318_v42, %v217_v26 }
 0x101   :  { %v6083_v48 = vmax.f32 %v511_v41, 0.0 }
 0x103   :  { %4827 = vmatmul.msk.f32.gmra.mxu3 %vm85_vm0, %v6083_v48  ;;  %4877 = vmatmul.msk.f32.gmra.mxu0 %vm85_vm0, %v6083_v48 }
 0x104   :  { %v428_v49 = vpop.f32.mrf.mxu2 }
 0x105   :  { %v482_v50 = vadd.f32 %v428_v49, %v319_v45 }
 0x107   :  { %v512_v51 = vadd.f32 %v5975_v24, %v482_v50  ;;  %v321_v52 = vpop.f32.mrf.mxu1 }
 0x108   :  { %v322_v53 = vadd.f32 %v321_v52, %v220_v34  ;;  %v226_v57 = vpop.f32.mrf.mxu0 }
 0x109   :  { %v6090_v56 = vmax.f32 %v512_v51, 0.0 }
 0x10b   :  { %4828 = vmatmul.msk.f32.gmra.mxu3 %vm85_vm0, %v6090_v56  ;;  %4878 = vmatmul.msk.f32.gmra.mxu0 %vm85_vm0, %v6090_v56 }
 0x10c   :  { %v431_v58 = vpop.f32.mrf.mxu2 }
 0x10d   :  { %v483_v60 = vadd.f32 %v431_v58, %v322_v53 }
 0x10f   :  { %v513_v61 = vadd.f32 %v5975_v24, %v483_v60  ;;  %v324_v19 = vpop.f32.mrf.mxu1 }
 0x110   :  { %v325_v62 = vadd.f32 %v324_v19, %v223_v43  ;;  %v229_v1 = vpop.f32.mrf.mxu0 }
 0x111   :  { %v6097_v0 = vmax.f32 %v513_v61, 0.0 }
 0x113   :  { %4829 = vmatmul.msk.f32.gmra.mxu3 %vm85_vm0, %v6097_v0  ;;  %4879 = vmatmul.msk.f32.gmra.mxu0 %vm85_vm0, %v6097_v0 }
 0x114   :  { %v434_v2 = vpop.f32.mrf.mxu2 }
 0x115   :  { %v484_v3 = vadd.f32 %v434_v2, %v325_v62 }
 0x117   :  { %v514_v4 = vadd.f32 %v5975_v24, %v484_v3  ;;  %v327_v12 = vpop.f32.mrf.mxu1  ;;  %v554_v3 = vld [vmem:[%s10630_s3 + $0x10] sm:$0xff] }
 0x118   :  { %v328_v9 = vadd.f32 %v327_v12, %v226_v57  ;;  %v232_v14 = vpop.f32.mrf.mxu0  ;;  %737 = vmatpush.msrb.mxu3 %v554_v3 }
 0x119   :  { %v6107_v10 = vmax.f32 %v514_v4, 0.0 }
 0x11b   :  { %4830 = vmatmul.msk.f32.gmra.mxu3 %vm85_vm0, %v6107_v10  ;;  %4880 = vmatmul.msk.f32.gmra.mxu0 %vm85_vm0, %v6107_v10 }
 0x11c   :  { %v437_v11 = vpop.f32.mrf.mxu2 }
 0x11d   :  { %v485_v13 = vadd.f32 %v437_v11, %v328_v9  ;;  %v553_v11 = vld [vmem:[%s10630_s3 + $0x8] sm:$0xff] }
 0x11e   :  { %738 = vmatpush.msrb.mxu3 %v553_v11 }
 0x11f   :  { %v515_v15 = vadd.f32 %v5975_v24, %v485_v13  ;;  %v330_v16 = vpop.f32.mrf.mxu1 }
 0x120   :  { %v331_v20 = vadd.f32 %v330_v16, %v229_v1  ;;  %v235_v28 = vpop.f32.mrf.mxu0 }
 0x121   :  { %v6114_v21 = vmax.f32 %v515_v15, 0.0  ;;  %v552_v15 = vld [vmem:[%s10630_s3] sm:$0xff] }
 0x122   :  { %739 = vmatpush.msrb.mxu3 %v552_v15  ;;  %v501_v15 = vadd.f32 %v5975_v24, %v5963_v17  ;;  %v4917_v17 = vld [vmem:[%s10631_s5 + $0x1c8] sm:$0xff] }
 0x123   :  { %4831 = vmatmul.msk.f32.gmra.mxu3 %vm85_vm0, %v6114_v21  ;;  %4881 = vmatmul.msk.f32.gmra.mxu0 %vm85_vm0, %v6114_v21 }
 0x124   :  { %v440_v22 = vpop.f32.mrf.mxu2 }
 0x125   :  { %v486_v23 = vadd.f32 %v440_v22, %v331_v20 }
 0x127   :  { %v516_v25 = vadd.f32 %v5975_v24, %v486_v23  ;;  %v333_v26 = vpop.f32.mrf.mxu1 }
 0x128   :  { %v334_v8 = vadd.f32 %v333_v26, %v232_v14  ;;  %v238_v42 = vpop.f32.mrf.mxu0 }
 0x129   :  { %v6121_v30 = vmax.f32 %v516_v25, 0.0 }
 0x12b   :  { %4832 = vmatmul.msk.f32.gmra.mxu3 %vm85_vm0, %v6121_v30  ;;  %4882 = vmatmul.msk.f32.gmra.mxu0 %vm85_vm0, %v6121_v30 }
 0x12c   :  { %v443_v32 = vpop.f32.mrf.mxu2 }
 0x12d   :  { %v487_v33 = vadd.f32 %v443_v32, %v334_v8  ;;  %v4923_v32 = vld [vmem:[%s10631_s5 + $0x1f8] sm:$0xff] }
 0x12e   :  { %1111 = vmatpush.msra.mxu2 %v4923_v32  ;;  %v4916_v32 = vld [vmem:[%s10631_s5 + $0x1c0] sm:$0xff] }
 0x12f   :  { %v517_v34 = vadd.f32 %v5975_v24, %v487_v33  ;;  %v336_v36 = vpop.f32.mrf.mxu1 }
 0x130   :  { %v337_v40 = vadd.f32 %v336_v36, %v235_v28  ;;  %v241_v52 = vpop.f32.mrf.mxu0 }
 0x131   :  { %v6131_v41 = vmax.f32 %v517_v34, 0.0 }
 0x133   :  { %4833 = vmatmul.msk.f32.gmra.mxu3 %vm85_vm0, %v6131_v41  ;;  %4883 = vmatmul.msk.f32.gmra.mxu0 %vm85_vm0, %v6131_v41 }
 0x134   :  { %v446_v43 = vpop.f32.mrf.mxu2 }
 0x135   :  { %v488_v44 = vadd.f32 %v446_v43, %v337_v40 }
 0x137   :  { %v518_v45 = vadd.f32 %v5975_v24, %v488_v44  ;;  %v339_v49 = vpop.f32.mrf.mxu1 }
 0x138   :  { %v340_v50 = vadd.f32 %v339_v49, %v238_v42  ;;  %v244_v4 = vpop.f32.mrf.mxu0 }
 0x139   :  { %v6138_v51 = vmax.f32 %v518_v45, 0.0 }
 0x13b   :  { %4834 = vmatmul.msk.f32.gmra.mxu3 %vm85_vm0, %v6138_v51  ;;  %4884 = vmatmul.msk.f32.gmra.mxu0 %vm85_vm0, %v6138_v51 }
 0x13c   :  { %v449_v53 = vpop.f32.mrf.mxu2 }
 0x13d   :  { %v489_v57 = vadd.f32 %v449_v53, %v340_v50  ;;  %v4922_v50 = vld [vmem:[%s10631_s5 + $0x1f0] sm:$0xff] }
 0x13e   :  { %v6144_v58 = vpop.f32.mrf.mxu3  ;;  %1040 = vmatpush.msra.mxu1 %v4922_v50 }
 0x13f   :  { %v519_v60 = vadd.f32 %v5975_v24, %v489_v57  ;;  %v342_v61 = vpop.f32.mrf.mxu1 }
 0x140   :  { %v343_v19 = vadd.f32 %v342_v61, %v241_v52  ;;  %v247_v26 = vpop.f32.mrf.mxu0  ;;  %v4921_v52 = vld [vmem:[%s10631_s5 + $0x1e8] sm:$0xff] }
 0x141   :  { %v6147_v62 = vmax.f32 %v519_v60, 0.0  ;;  %1112 = vmatpush.msra.mxu2 %v4921_v52  ;;  %v4906_v52 = vld [vmem:[%s10631_s5 + $0x170] sm:$0xff] }
 0x143   :  { %4835 = vmatmul.msk.f32.gmra.mxu3 %vm85_vm0, %v6147_v62  ;;  %4885 = vmatmul.msk.f32.gmra.mxu0 %vm85_vm0, %v6147_v62 }
 0x144   :  { %v452_v1 = vpop.f32.mrf.mxu2 }
 0x145   :  { %v490_v2 = vadd.f32 %v452_v1, %v343_v19  ;;  %v500_v19 = vadd.f32 %v5975_v24, %v5945_v6  ;;  %v4919_v6 = vld [vmem:[%s10631_s5 + $0x1d8] sm:$0xff] }
 0x146   :  { %v6156_v12 = vpop.f32.mrf.mxu3  ;;  %1113 = vmatpush.msra.mxu2 %v4919_v6  ;;  %v4899_v6 = vld [vmem:[%s10631_s5 + $0x138] sm:$0xff] }
 0x147   :  { %v520_v5 = vadd.f32 %v5975_v24, %v490_v2  ;;  %v345_v9 = vpop.f32.mrf.mxu1 }
 0x148   :  { %v346_v13 = vadd.f32 %v345_v9, %v244_v4  ;;  %1114 = vmatpush.msra.mxu2 %v4917_v17  ;;  %v4895_v17 = vld [vmem:[%s10631_s5 + $0x118] sm:$0xff] }
 0x149   :  { %v6162_v14 = vmax.f32 %v520_v5, 0.0  ;;  %v526_v5 = vmax.f32 %v500_v19, 0.0  ;;  %v4902_v19 = vld [vmem:[%s10631_s5 + $0x150] sm:$0xff] }
 0x14b   :  { %4836 = vmatmul.msk.f32.gmra.mxu3 %vm85_vm0, %v6162_v14  ;;  %4886 = vmatmul.msk.f32.gmra.mxu0 %vm85_vm0, %v6162_v14 }
 0x14c   :  { %v455_v16 = vpop.f32.mrf.mxu2 }
 0x14d   :  { %v491_v20 = vadd.f32 %v455_v16, %v346_v13 }
 0x14e   :  { %v6171_v22 = vpop.f32.mrf.mxu3 }
 0x14f   :  { %v521_v23 = vadd.f32 %v5975_v24, %v491_v20  ;;  %v348_v25 = vpop.f32.mrf.mxu1 }
 0x150   :  { %v349_v28 = vadd.f32 %v348_v25, %v247_v26  ;;  %v527_v25 = vmax.f32 %v501_v15, 0.0  ;;  %v4947_v15 = vld [vmem:[%s10631_s5 + $0x2b8] sm:$0xff] }
 0x151   :  { %v6174_v8 = vmax.f32 %v521_v23, 0.0 }
 0x153   :  { %4837 = vmatmul.msk.f32.gmra.mxu3 %vm85_vm0, %v6174_v8  ;;  %4887 = vmatmul.msk.f32.gmra.mxu0 %vm85_vm0, %v6174_v8 }
 0x154   :  { %v458_v33 = vpop.f32.mrf.mxu2 }
 0x155   :  { %v492_v34 = vadd.f32 %v458_v33, %v349_v28  ;;  %v4918_v28 = vld [vmem:[%s10631_s5 + $0x1d0] sm:$0xff] }
 0x156   :  { %v6183_v36 = vpop.f32.mrf.mxu3 }
 0x157   :  { %v522_v38 = vadd.f32 %v5975_v24, %v492_v34  ;;  %v351_v40 = vpop.f32.mrf.mxu1  ;;  %v4915_v34 = vld [vmem:[%s10631_s5 + $0x1b8] sm:$0xff] }
 0x158   :  { %v352_v43 = vadd.f32 %v351_v40, %v5880_v47  ;;  %1115 = vmatpush.msra.mxu2 %v4915_v34 }
 0x159   :  { %v548_v42 = vmax.f32 %v522_v38, 0.0  ;;  %v4912_v38 = vld [vmem:[%s10631_s5 + $0x1a0] sm:$0xff] }
 0x15a   :  { %1116 = vmatpush.msra.mxu2 %v4913_v35  ;;  %v4893_v35 = vld [vmem:[%s10631_s5 + $0x108] sm:$0xff] }
 0x15b   :  { %4838 = vmatmul.msk.f32.gmra.mxu3 %vm85_vm0, %v548_v42  ;;  %4888 = vmatmul.msk.f32.gmra.mxu0 %vm85_vm0, %v548_v42  ;;  %v4909_v42 = vld [vmem:[%s10631_s5 + $0x188] sm:$0xff] }
 0x15c   :  { %v461_v44 = vpop.f32.mrf.mxu2 }
 0x15d   :  { %v493_v45 = vadd.f32 %v461_v44, %v352_v43  ;;  %v4907_v44 = vld [vmem:[%s10631_s5 + $0x178] sm:$0xff] }
 0x15e   :  { %v6189_v49 = vpop.f32.mrf.mxu3 }
 0x15f   :  { %v523_v53 = vadd.f32 %v5975_v24, %v493_v45  ;;  %v354_v57 = vpop.f32.mrf.mxu1 }
 0x160   :  { %v355_v60 = vadd.f32 %v354_v57, %v5909_v55  ;;  %v4920_v55 = vld [vmem:[%s10631_s5 + $0x1e0] sm:$0xff] }
 0x161   :  { %v549_v47 = vmax.f32 %v523_v53, 0.0  ;;  %1041 = vmatpush.msra.mxu1 %v4920_v55  ;;  %v4905_v53 = vld [vmem:[%s10631_s5 + $0x168] sm:$0xff]  ;;  %v4904_v57 = vld [vmem:[%s10631_s5 + $0x160] sm:$0xff]  ;;  %v4898_v55 = vld [vmem:[%s10631_s5 + $0x130] sm:$0xff] }
 0x163   :  { %4839 = vmatmul.msk.f32.gmra.mxu3 %vm85_vm0, %v549_v47  ;;  %4889 = vmatmul.msk.f32.gmra.mxu0 %vm85_vm0, %v549_v47  ;;  %v4903_v47 = vld [vmem:[%s10631_s5 + $0x158] sm:$0xff] }
 0x164   :  { %v464_v61 = vpop.f32.mrf.mxu2  ;;  %1042 = vmatpush.msra.mxu1 %v4918_v28  ;;  %v4894_v28 = vld [vmem:[%s10631_s5 + $0x110] sm:$0xff] }
 0x165   :  { %v494_v1 = vadd.f32 %v464_v61, %v355_v60 }
 0x166   :  { %v6203_v2 = vpop.f32.mrf.mxu3  ;;  %1043 = vmatpush.msra.mxu1 %v4916_v32  ;;  %v4946_v32 = vld [vmem:[%s10631_s5 + $0x2b0] sm:$0xff] }
 0x167   :  { %v524_v3 = vadd.f32 %v5975_v24, %v494_v1  ;;  %v357_v4 = vpop.f32.mrf.mxu1  ;;  %v4954_v1 = vld [vmem:[%s10631_s5 + $0x2f0] sm:$0xff] }
 0x168   :  { %v358_v11 = vadd.f32 %v357_v4, %v5920_v59  ;;  %1357 = vmatpush.msra.mxu3 %v4954_v1  ;;  %v4900_v4 = vld [vmem:[%s10631_s5 + $0x140] sm:$0xff]  ;;  %v4931_v1 = vld [vmem:[%s10631_s5 + $0x238] sm:$0xff] }
 0x169   :  { %v550_v9 = vmax.f32 %v524_v3, 0.0  ;;  %v4951_v3 = vld [vmem:[%s10631_s5 + $0x2d8] sm:$0xff] }
 0x16b   :  { %4840 = vmatmul.msk.f32.vlgmr.msrb.gmra.mxu3 %vm85_vm0, %v526_v5  ;;  %4890 = vmatmul.msk.f32.gmra.mxu0 %vm85_vm0, %v550_v9  ;;  %v4952_v5 = vld [vmem:[%s10631_s5 + $0x2e0] sm:$0xff] }
 0x16c   :  { %v467_v13 = vpop.f32.mrf.mxu2  ;;  %1358 = vmatpush.msra.mxu3 %v4952_v5  ;;  %v4927_v5 = vld [vmem:[%s10631_s5 + $0x218] sm:$0xff] }
 0x16d   :  { %v495_v16 = vadd.f32 %v467_v13, %v358_v11  ;;  %v4949_v11 = vld [vmem:[%s10631_s5 + $0x2c8] sm:$0xff]  ;;  %v4950_v13 = vld [vmem:[%s10631_s5 + $0x2d0] sm:$0xff] }
 0x16e   :  { %v6217_v59 = vpop.f32.mrf.mxu3  ;;  %1359 = vmatpush.msra.mxu3 %v4950_v13  ;;  %v4926_v13 = vld [vmem:[%s10631_s5 + $0x210] sm:$0xff] }
 0x16f   :  { %v525_v20 = vadd.f32 %v5975_v24, %v495_v16  ;;  %v4896_v16 = vld [vmem:[%s10631_s5 + $0x120] sm:$0xff] }
 0x171   :  { %v551_v23 = vmax.f32 %v525_v20, 0.0  ;;  %v4897_v20 = vld [vmem:[%s10631_s5 + $0x128] sm:$0xff] }
 0x173   :  { %4841 = vmatmul.msk.f32.gmra.mxu3 %vm85_vm0, %v527_v25  ;;  %4891 = vmatmul.msk.f32.gmra.mxu0 %vm85_vm0, %v551_v23  ;;  %v4948_v23 = vld [vmem:[%s10631_s5 + $0x2c0] sm:$0xff]  ;;  %v4945_v25 = vld [vmem:[%s10631_s5 + $0x2a8] sm:$0xff] }
 0x174   :  { %1360 = vmatpush.msra.mxu3 %v4948_v23  ;;  %v6481_v23 = vld [vmem:[%s10632_s4] ss:$0 sm:$0xff] }
 0x176   :  { %v6222_v26 = vpop.f32.mrf.mxu3  ;;  %1361 = vmatpush.msra.mxu3 %v4946_v32 }
 0x17b   :  { %4842 = vmatmul.msk.f32.gmra.mxu3 %vm85_vm0, %v528_v31  ;;  %v4914_v31 = vld [vmem:[%s10631_s5 + $0x1b0] sm:$0xff] }
 0x17c   :  { %1044 = vmatpush.msra.mxu1 %v4914_v31  ;;  %v4892_v31 = vld [vmem:[%s10631_s5 + $0x100] sm:$0xff] }
 0x17e   :  { %v6233_v24 = vpop.f32.mrf.mxu3  ;;  %1045 = vmatpush.msra.mxu1 %v4912_v38  ;;  %v4944_v38 = vld [vmem:[%s10631_s5 + $0x2a0] sm:$0xff] }
 0x17f   :  { %1362 = vmatpush.msra.mxu3 %v4944_v38 }
 0x183   :  { %4843 = vmatmul.msk.f32.gmra.mxu3 %vm85_vm0, %v529_v39 }
 0x186   :  { %v6241_v33 = vpop.f32.mrf.mxu3 }
 0x18b   :  { %4844 = vmatmul.msk.f32.gmra.mxu3 %vm85_vm0, %v6007_v46 }
 0x18e   :  { %v6248_v27 = vpop.f32.mrf.mxu3 }
 0x193   :  { %4845 = vmatmul.msk.f32.gmra.mxu3 %vm85_vm0, %v6017_v54  ;;  %v4911_v54 = vld [vmem:[%s10631_s5 + $0x198] sm:$0xff] }
 0x194   :  { %1117 = vmatpush.msra.mxu2 %v4911_v54 }
 0x196   :  { %v6258_v39 = vpop.f32.mrf.mxu3  ;;  %1118 = vmatpush.msra.mxu2 %v4909_v42  ;;  %v4942_v42 = vld [vmem:[%s10631_s5 + $0x290] sm:$0xff] }
 0x197   :  { %1363 = vmatpush.msra.mxu3 %v4942_v42 }
 0x198   :  { %1119 = vmatpush.msra.mxu2 %v4907_v44  ;;  %v4940_v44 = vld [vmem:[%s10631_s5 + $0x280] sm:$0xff] }
 0x199   :  { %1364 = vmatpush.msra.mxu3 %v4940_v44 }
 0x19a   :  { %1120 = vmatpush.msra.mxu2 %v4905_v53  ;;  %v4938_v53 = vld [vmem:[%s10631_s5 + $0x270] sm:$0xff] }
 0x19b   :  { %4846 = vmatmul.msk.f32.gmra.mxu3 %vm85_vm0, %v6030_v63  ;;  %v4910_v63 = vld [vmem:[%s10631_s5 + $0x190] sm:$0xff] }
 0x19c   :  { %1046 = vmatpush.msra.mxu1 %v4910_v63  ;;  %1121 = vmatpush.msra.mxu2 %v4903_v47  ;;  %v4941_v63 = vld [vmem:[%s10631_s5 + $0x288] sm:$0xff]  ;;  %v4936_v47 = vld [vmem:[%s10631_s5 + $0x260] sm:$0xff] }
 0x19d   :  { %1365 = vmatpush.msra.mxu3 %v4938_v53 }
 0x19e   :  { %v6262_v46 = vpop.f32.mrf.mxu3 }
 0x19f   :  { %1366 = vmatpush.msra.mxu3 %v4936_v47 }
 0x1a3   :  { %4847 = vmatmul.msk.f32.gmra.mxu3 %vm85_vm0, %v6042_v7 }
 0x1a6   :  { %v6272_v40 = vpop.f32.mrf.mxu3 }
 0x1ab   :  { %4848 = vmatmul.msk.f32.gmra.mxu3 %vm85_vm0, %v6054_v18  ;;  %v4908_v18 = vld [vmem:[%s10631_s5 + $0x180] sm:$0xff] }
 0x1ac   :  { %1047 = vmatpush.msra.mxu1 %v4908_v18  ;;  %v4939_v18 = vld [vmem:[%s10631_s5 + $0x278] sm:$0xff] }
 0x1ae   :  { %v6282_v43 = vpop.f32.mrf.mxu3  ;;  %1048 = vmatpush.msra.mxu1 %v4906_v52  ;;  %v4937_v52 = vld [vmem:[%s10631_s5 + $0x268] sm:$0xff] }
 0x1b0   :  { %1049 = vmatpush.msra.mxu1 %v4904_v57  ;;  %v4935_v57 = vld [vmem:[%s10631_s5 + $0x258] sm:$0xff] }
 0x1b2   :  { %1050 = vmatpush.msra.mxu1 %v4902_v19  ;;  %v4934_v19 = vld [vmem:[%s10631_s5 + $0x250] sm:$0xff] }
 0x1b3   :  { %4849 = vmatmul.msk.f32.gmra.mxu3 %vm85_vm0, %v6066_v29  ;;  %v6300_v29 = vpop.f32.mrf.mxu0 }
 0x1b4   :  { %1051 = vmatpush.msra.mxu1 %v4900_v4  ;;  %v4929_v4 = vld [vmem:[%s10631_s5 + $0x228] sm:$0xff]  ;;  %1367 = vmatpush.msra.mxu3 %v4934_v19 }
 0x1b6   :  { %v6286_v7 = vpop.f32.mrf.mxu3  ;;  %1052 = vmatpush.msra.mxu1 %v4898_v55  ;;  %v4925_v55 = vld [vmem:[%s10631_s5 + $0x208] sm:$0xff] }
 0x1b8   :  { %1053 = vmatpush.msra.mxu1 %v4896_v16 }
 0x1ba   :  { %1054 = vmatpush.msra.mxu1 %v4894_v28 }
 0x1bb   :  { %4850 = vmatmul.msk.f32.gmra.mxu3 %vm85_vm0, %v6073_v37 }
 0x1bc   :  { %1055 = vmatpush.msra.mxu1 %v4892_v31 }
 0x1be   :  { %v6296_v45 = vpop.f32.mrf.mxu3 }
 0x1c3   :  { %4851 = vmatmul.msk.f32.gmra.mxu3 %vm85_vm0, %v6083_v48  ;;  %v6314_v48 = vpop.f32.mrf.mxu0 }
 0x1c6   :  { %v6302_v50 = vpop.f32.mrf.mxu3 }
 0x1cb   :  { %4852 = vmatmul.msk.f32.gmra.mxu3 %vm85_vm0, %v6090_v56  ;;  %v4955_v56 = vld [vmem:[%s10631_s5 + $0x2f8] sm:$0xff]  ;;  %v6332_v61 = vpop.f32.mrf.mxu0 }
 0x1cc   :  { %1428 = vmatpush.msra.mxu0 %v4955_v56  ;;  %v4933_v56 = vld [vmem:[%s10631_s5 + $0x248] sm:$0xff] }
 0x1ce   :  { %v6312_v37 = vpop.f32.mrf.mxu3 }
 0x1d3   :  { %4853 = vmatmul.msk.f32.gmra.mxu3 %vm85_vm0, %v6097_v0  ;;  %v4953_v0 = vld [vmem:[%s10631_s5 + $0x2e8] sm:$0xff]  ;;  %v6394_v34 = vpop.f32.mrf.mxu0 }
 0x1d4   :  { %1429 = vmatpush.msra.mxu0 %v4953_v0 }
 0x1d6   :  { %v6324_v60 = vpop.f32.mrf.mxu3  ;;  %1430 = vmatpush.msra.mxu0 %v4951_v3  ;;  %v4932_v3 = vld [vmem:[%s10631_s5 + $0x240] sm:$0xff] }
 0x1d7   :  { %1368 = vmatpush.msra.mxu3 %v4932_v3 }
 0x1d8   :  { %1431 = vmatpush.msra.mxu0 %v4949_v11  ;;  %v4928_v11 = vld [vmem:[%s10631_s5 + $0x220] sm:$0xff] }
 0x1da   :  { %1432 = vmatpush.msra.mxu0 %v4947_v15  ;;  %v4924_v15 = vld [vmem:[%s10631_s5 + $0x200] sm:$0xff] }
 0x1db   :  { %4854 = vmatmul.msk.f32.gmra.mxu3 %vm85_vm0, %v6107_v10  ;;  %v4901_v10 = vld [vmem:[%s10631_s5 + $0x148] sm:$0xff] }
 0x1dc   :  { %1122 = vmatpush.msra.mxu2 %v4901_v10  ;;  %1433 = vmatpush.msra.mxu0 %v4945_v25  ;;  %v4930_v10 = vld [vmem:[%s10631_s5 + $0x230] sm:$0xff] }
 0x1dd   :  { %1369 = vmatpush.msra.mxu3 %v4930_v10 }
 0x1de   :  { %v6354_v9 = vpop.f32.mrf.mxu3  ;;  %1123 = vmatpush.msra.mxu2 %v4899_v6 }
 0x1df   :  { %1370 = vmatpush.msra.mxu3 %v4928_v11 }
 0x1e0   :  { %1124 = vmatpush.msra.mxu2 %v4897_v20 }
 0x1e1   :  { %1371 = vmatpush.msra.mxu3 %v4926_v13 }
 0x1e2   :  { %1125 = vmatpush.msra.mxu2 %v4895_v17 }
 0x1e3   :  { %4855 = vmatmul.msk.f32.gmra.mxu3 %vm85_vm0, %v6114_v21  ;;  %v4943_v21 = vld [vmem:[%s10631_s5 + $0x298] sm:$0xff] }
 0x1e4   :  { %1434 = vmatpush.msra.mxu0 %v4943_v21  ;;  %1126 = vmatpush.msra.mxu2 %v4893_v35 }
 0x1e5   :  { %1372 = vmatpush.msra.mxu3 %v4924_v15 }
 0x1e6   :  { %v6408_v54 = vpop.f32.mrf.mxu3  ;;  %1435 = vmatpush.msra.mxu0 %v4941_v63 }
 0x1e8   :  { %1436 = vmatpush.msra.mxu0 %v4939_v18 }
 0x1ea   :  { %1437 = vmatpush.msra.mxu0 %v4937_v52 }
 0x1eb   :  { %4856 = vmatmul.msk.f32.gmra.mxu3 %vm85_vm0, %v6121_v30  ;;  %v851_v30 = vpop.f32.mrf.mxu0 }
 0x1ec   :  { %1438 = vmatpush.msra.mxu0 %v4935_v57 }
 0x1ee   :  { %v6439_v0 = vpop.f32.mrf.mxu3  ;;  %1439 = vmatpush.msra.mxu0 %v4933_v56 }
 0x1f0   :  { %1440 = vmatpush.msra.mxu0 %v4931_v1 }
 0x1f2   :  { %1441 = vmatpush.msra.mxu0 %v4929_v4 }
 0x1f3   :  { %4857 = vmatmul.msk.f32.gmra.mxu3 %vm85_vm0, %v6131_v41  ;;  %v854_v6 = vpop.f32.mrf.mxu0 }
 0x1f4   :  { %1442 = vmatpush.msra.mxu0 %v4927_v5  ;;  %v1004_v5 = vld [vmem:[%s10631_s5 + $0xe8] sm:$0xff] }
 0x1f6   :  { %v6467_v41 = vpop.f32.mrf.mxu3  ;;  %1443 = vmatpush.msra.mxu0 %v4925_v55 }
 0x1fb   :  { %4858 = vmatmul.msk.f32.gmra.mxu3 %vm85_vm0, %v6138_v51  ;;  %v857_v28 = vpop.f32.mrf.mxu0 }
 0x1fe   :  { %v747_v16 = vpop.f32.mrf.mxu3 }
 0x1ff   :  { %v748_v20 = vadd.f32 %v747_v16, %v6171_v22  ;;  %v1005_v16 = vld [vmem:[%s10631_s5 + $0xf0] sm:$0xff] }
 0x200   :  { %1182 = vmatpush.msrb.mxu1 %v1005_v16 }
 0x201   :  { %v907_v25 = vadd.f32 %v6332_v61, %v748_v20 }
 0x203   :  { %v933_v17 = vadd.f32 %v6481_v23, %v907_v25  ;;  %4859 = vmatmul.msk.f32.gmra.mxu3 %vm85_vm0, %v6147_v62  ;;  %v860_v61 = vpop.f32.mrf.mxu0 }
 0x205   :  { %v6487_v32 = vmax.f32 %v933_v17, 0.0 }
 0x206   :  { %v750_v51 = vpop.f32.mrf.mxu3 }
 0x207   :  { %v751_v21 = vadd.f32 %v750_v51, %v6183_v36  ;;  %1056 = vmatmul.f32.vlgmr.msra.gmra.mxu1 %v6487_v32  ;;  %1127 = vmatmul.f32.vlgmr.msra.gmra.mxu2 %v6487_v32 }
 0x209   :  { %v908_v22 = vadd.f32 %v6394_v34, %v751_v21  ;;  %v1003_v21 = vld [vmem:[%s10631_s5 + $0xe0] sm:$0xff] }
 0x20a   :  { %1183 = vmatpush.msrb.mxu1 %v1003_v21  ;;  %v991_v21 = vld [vmem:[%s10631_s5 + $0x80] sm:$0xff] }
 0x20b   :  { %v934_v31 = vadd.f32 %v6481_v23, %v908_v22  ;;  %4860 = vmatmul.msk.f32.gmra.mxu3 %vm85_vm0, %v6162_v14  ;;  %v863_v42 = vpop.f32.mrf.mxu0 }
 0x20d   :  { %v6496_v35 = vmax.f32 %v934_v31, 0.0 }
 0x20e   :  { %v753_v62 = vpop.f32.mrf.mxu3 }
 0x20f   :  { %v754_v38 = vadd.f32 %v753_v62, %v6189_v49  ;;  %1059 = vmatmul.f32.gmra.mxu1 %v6496_v35  ;;  %1130 = vmatmul.f32.gmra.mxu2 %v6496_v35 }
 0x211   :  { %v909_v36 = vadd.f32 %v851_v30, %v754_v38  ;;  %v1006_v30 = vld [vmem:[%s10631_s5 + $0xf8] sm:$0xff] }
 0x212   :  { %1253 = vmatpush.msrb.mxu2 %v1006_v30 }
 0x213   :  { %v935_v63 = vadd.f32 %v6481_v23, %v909_v36  ;;  %4861 = vmatmul.msk.f32.gmra.mxu3 %vm85_vm0, %v6174_v8 }
 0x214   :  { %1254 = vmatpush.msrb.mxu2 %v1004_v5 }
 0x215   :  { %v6504_v34 = vmax.f32 %v935_v63, 0.0  ;;  %v1001_v63 = vld [vmem:[%s10631_s5 + $0xd0] sm:$0xff] }
 0x216   :  { %v756_v14 = vpop.f32.mrf.mxu3  ;;  %1184 = vmatpush.msrb.mxu1 %v1001_v63  ;;  %v985_v63 = vld [vmem:[%s10631_s5 + $0x50] sm:$0xff] }
 0x217   :  { %v757_v18 = vadd.f32 %v756_v14, %v6203_v2  ;;  %1062 = vmatmul.f32.gmra.mxu1 %v6504_v34  ;;  %1133 = vmatmul.f32.gmra.mxu2 %v6504_v34  ;;  %v866_v2 = vpop.f32.mrf.mxu0 }
 0x218   :  { %1444 = vmatmul.f32.vlgmr.msra.gmra.mxu0 %v6504_v34 }
 0x219   :  { %v910_v49 = vadd.f32 %v854_v6, %v757_v18 }
 0x21b   :  { %v936_v44 = vadd.f32 %v6481_v23, %v910_v49  ;;  %1373 = vmatmul.f32.vlgmr.msra.gmra.mxu3 %v6504_v34 }
 0x21d   :  { %v6512_v52 = vmax.f32 %v936_v44, 0.0 }
 0x21e   :  { %v759_v8 = vpop.f32.mrf.mxu3 }
 0x21f   :  { %v760_v53 = vadd.f32 %v759_v8, %v6217_v59  ;;  %1065 = vmatmul.f32.gmra.mxu1 %v6512_v52  ;;  %1136 = vmatmul.f32.gmra.mxu2 %v6512_v52  ;;  %v869_v3 = vpop.f32.mrf.mxu0  ;;  %v998_v8 = vld [vmem:[%s10631_s5 + $0xb8] sm:$0xff] }
 0x220   :  { %1447 = vmatmul.f32.gmra.mxu0 %v6512_v52 }
 0x221   :  { %v911_v57 = vadd.f32 %v857_v28, %v760_v53 }
 0x223   :  { %v937_v47 = vadd.f32 %v6481_v23, %v911_v57  ;;  %1376 = vmatmul.f32.gmra.mxu3 %v6512_v52 }
 0x225   :  { %v6520_v56 = vmax.f32 %v937_v47, 0.0 }
 0x226   :  { %v762_v19 = vpop.f32.mrf.mxu3 }
 0x227   :  { %v763_v59 = vadd.f32 %v762_v19, %v6222_v26  ;;  %1068 = vmatmul.f32.gmra.mxu1 %v6520_v56  ;;  %1139 = vmatmul.f32.gmra.mxu2 %v6520_v56  ;;  %v872_v13 = vpop.f32.mrf.mxu0 }
 0x228   :  { %1450 = vmatmul.f32.gmra.mxu0 %v6520_v56 }
 0x229   :  { %v912_v1 = vadd.f32 %v860_v61, %v763_v59  ;;  %v996_v59 = vld [vmem:[%s10631_s5 + $0xa8] sm:$0xff] }
 0x22b   :  { %v938_v4 = vadd.f32 %v6481_v23, %v912_v1  ;;  %1379 = vmatmul.f32.gmra.mxu3 %v6520_v56 }
 0x22d   :  { %v6531_v10 = vmax.f32 %v938_v4, 0.0 }
 0x22e   :  { %v765_v11 = vpop.f32.mrf.mxu3 }
 0x22f   :  { %v766_v26 = vadd.f32 %v765_v11, %v6233_v24  ;;  %1071 = vmatmul.f32.gmra.mxu1 %v6531_v10  ;;  %1142 = vmatmul.f32.gmra.mxu2 %v6531_v10  ;;  %v1002_v24 = vld [vmem:[%s10631_s5 + $0xd8] sm:$0xff]  ;;  %v875_v22 = vpop.f32.mrf.mxu0 }
 0x230   :  { %1453 = vmatmul.f32.gmra.mxu0 %v6531_v10  ;;  %1255 = vmatpush.msrb.mxu2 %v1002_v24 }
 0x231   :  { %v913_v55 = vadd.f32 %v863_v42, %v766_v26 }
 0x233   :  { %v939_v6 = vadd.f32 %v6481_v23, %v913_v55  ;;  %1382 = vmatmul.f32.gmra.mxu3 %v6531_v10  ;;  %v994_v55 = vld [vmem:[%s10631_s5 + $0x98] sm:$0xff] }
 0x235   :  { %v6542_v15 = vmax.f32 %v939_v6, 0.0 }
 0x236   :  { %v768_v20 = vpop.f32.mrf.mxu3 }
 0x237   :  { %v769_v25 = vadd.f32 %v768_v20, %v6241_v33  ;;  %1074 = vmatmul.f32.gmra.mxu1 %v6542_v15  ;;  %1145 = vmatmul.f32.gmra.mxu2 %v6542_v15  ;;  %v1000_v33 = vld [vmem:[%s10631_s5 + $0xc8] sm:$0xff]  ;;  %v878_v14 = vpop.f32.mrf.mxu0  ;;  %v993_v20 = vld [vmem:[%s10631_s5 + $0x90] sm:$0xff] }
 0x238   :  { %1456 = vmatmul.f32.gmra.mxu0 %v6542_v15  ;;  %1256 = vmatpush.msrb.mxu2 %v1000_v33 }
 0x239   :  { %v914_v28 = vadd.f32 %v866_v2, %v769_v25 }
 0x23a   :  { %1257 = vmatpush.msrb.mxu2 %v998_v8 }
 0x23b   :  { %v940_v17 = vadd.f32 %v6481_v23, %v914_v28  ;;  %1385 = vmatmul.f32.gmra.mxu3 %v6542_v15 }
 0x23c   :  { %1258 = vmatpush.msrb.mxu2 %v996_v59  ;;  %v977_v59 = vld [vmem:[%s10631_s5 + $0x10] sm:$0xff] }
 0x23d   :  { %v6556_v51 = vmax.f32 %v940_v17, 0.0 }
 0x23e   :  { %v771_v31 = vpop.f32.mrf.mxu3  ;;  %1259 = vmatpush.msrb.mxu2 %v994_v55 }
 0x23f   :  { %v772_v61 = vadd.f32 %v771_v31, %v6248_v27  ;;  %1077 = vmatmul.f32.gmra.mxu1 %v6556_v51  ;;  %1148 = vmatmul.f32.gmra.mxu2 %v6556_v51  ;;  %v881_v47 = vpop.f32.mrf.mxu0  ;;  %v990_v31 = vld [vmem:[%s10631_s5 + $0x78] sm:$0xff] }
 0x240   :  { %1459 = vmatmul.f32.gmra.mxu0 %v6556_v51 }
 0x241   :  { %v915_v62 = vadd.f32 %v869_v3, %v772_v61 }
 0x243   :  { %v941_v38 = vadd.f32 %v6481_v23, %v915_v62  ;;  %1388 = vmatmul.f32.gmra.mxu3 %v6556_v51  ;;  %v988_v62 = vld [vmem:[%s10631_s5 + $0x68] sm:$0xff] }
 0x245   :  { %v6570_v36 = vmax.f32 %v941_v38, 0.0 }
 0x246   :  { %v774_v42 = vpop.f32.mrf.mxu3 }
 0x247   :  { %v775_v27 = vadd.f32 %v774_v42, %v6258_v39  ;;  %1080 = vmatmul.f32.gmra.mxu1 %v6570_v36  ;;  %1151 = vmatmul.f32.gmra.mxu2 %v6570_v36  ;;  %v999_v39 = vld [vmem:[%s10631_s5 + $0xc0] sm:$0xff]  ;;  %v884_v11 = vpop.f32.mrf.mxu0  ;;  %v986_v42 = vld [vmem:[%s10631_s5 + $0x58] sm:$0xff] }
 0x248   :  { %1462 = vmatmul.f32.gmra.mxu0 %v6570_v36  ;;  %1185 = vmatpush.msrb.mxu1 %v999_v39 }
 0x249   :  { %v916_v18 = vadd.f32 %v872_v13, %v775_v27 }
 0x24b   :  { %v942_v49 = vadd.f32 %v6481_v23, %v916_v18  ;;  %1391 = vmatmul.f32.gmra.mxu3 %v6570_v36  ;;  %v983_v18 = vld [vmem:[%s10631_s5 + $0x40] sm:$0xff] }
 0x24d   :  { %v6581_v44 = vmax.f32 %v942_v49, 0.0  ;;  %v984_v49 = vld [vmem:[%s10631_s5 + $0x48] sm:$0xff] }
 0x24e   :  { %v777_v53 = vpop.f32.mrf.mxu3 }
 0x24f   :  { %v778_v2 = vadd.f32 %v777_v53, %v6262_v46  ;;  %1083 = vmatmul.f32.gmra.mxu1 %v6581_v44  ;;  %1154 = vmatmul.f32.gmra.mxu2 %v6581_v44  ;;  %v997_v46 = vld [vmem:[%s10631_s5 + $0xb0] sm:$0xff]  ;;  %v887_v28 = vpop.f32.mrf.mxu0 }
 0x250   :  { %1465 = vmatmul.f32.gmra.mxu0 %v6581_v44  ;;  %1186 = vmatpush.msrb.mxu1 %v997_v46  ;;  %v981_v53 = vld [vmem:[%s10631_s5 + $0x30] sm:$0xff] }
 0x251   :  { %v917_v57 = vadd.f32 %v875_v22, %v778_v2  ;;  %v989_v22 = vld [vmem:[%s10631_s5 + $0x70] sm:$0xff]  ;;  %v982_v2 = vld [vmem:[%s10631_s5 + $0x38] sm:$0xff] }
 0x253   :  { %v943_v30 = vadd.f32 %v6481_v23, %v917_v57  ;;  %1394 = vmatmul.f32.gmra.mxu3 %v6581_v44 }
 0x255   :  { %v6595_v19 = vmax.f32 %v943_v30, 0.0 }
 0x256   :  { %v780_v1 = vpop.f32.mrf.mxu3 }
 0x257   :  { %v781_v3 = vadd.f32 %v780_v1, %v6272_v40  ;;  %1086 = vmatmul.f32.gmra.mxu1 %v6595_v19  ;;  %1157 = vmatmul.f32.gmra.mxu2 %v6595_v19  ;;  %v995_v40 = vld [vmem:[%s10631_s5 + $0xa0] sm:$0xff]  ;;  %v890_v39 = vpop.f32.mrf.mxu0  ;;  %v978_v1 = vld [vmem:[%s10631_s5 + $0x18] sm:$0xff] }
 0x258   :  { %1468 = vmatmul.f32.gmra.mxu0 %v6595_v19  ;;  %1187 = vmatpush.msrb.mxu1 %v995_v40 }
 0x259   :  { %v918_v4 = vadd.f32 %v878_v14, %v781_v3 }
 0x25a   :  { %1188 = vmatpush.msrb.mxu1 %v993_v20 }
 0x25b   :  { %v944_v5 = vadd.f32 %v6481_v23, %v918_v4  ;;  %1397 = vmatmul.f32.gmra.mxu3 %v6595_v19  ;;  %v975_v4 = vld [vmem:[%s10631_s5] sm:$0xff] }
 0x25c   :  { %1189 = vmatpush.msrb.mxu1 %v991_v21 }
 0x25d   :  { %v6609_v26 = vmax.f32 %v944_v5, 0.0 }
 0x25e   :  { %v783_v6 = vpop.f32.mrf.mxu3  ;;  %1190 = vmatpush.msrb.mxu1 %v989_v22 }
 0x25f   :  { %v784_v13 = vadd.f32 %v783_v6, %v6282_v43  ;;  %1089 = vmatmul.f32.gmra.mxu1 %v6609_v26  ;;  %1160 = vmatmul.f32.gmra.mxu2 %v6609_v26  ;;  %v992_v43 = vld [vmem:[%s10631_s5 + $0x88] sm:$0xff]  ;;  %v893_v40 = vpop.f32.mrf.mxu0 }
 0x260   :  { %1471 = vmatmul.f32.gmra.mxu0 %v6609_v26  ;;  %1260 = vmatpush.msrb.mxu2 %v992_v43 }
 0x261   :  { %v919_v16 = vadd.f32 %v881_v47, %v784_v13  ;;  %v980_v47 = vld [vmem:[%s10631_s5 + $0x28] sm:$0xff] }
 0x262   :  { %1261 = vmatpush.msrb.mxu2 %v990_v31 }
 0x263   :  { %v945_v24 = vadd.f32 %v6481_v23, %v919_v16  ;;  %1400 = vmatmul.f32.gmra.mxu3 %v6609_v26 }
 0x264   :  { %1262 = vmatpush.msrb.mxu2 %v988_v62 }
 0x265   :  { %v6626_v25 = vmax.f32 %v945_v24, 0.0 }
 0x266   :  { %v786_v17 = vpop.f32.mrf.mxu3  ;;  %1263 = vmatpush.msrb.mxu2 %v986_v42 }
 0x267   :  { %v787_v33 = vadd.f32 %v786_v17, %v6286_v7  ;;  %1092 = vmatmul.f32.gmra.mxu1 %v6626_v25  ;;  %1163 = vmatmul.f32.gmra.mxu2 %v6626_v25  ;;  %v987_v7 = vld [vmem:[%s10631_s5 + $0x60] sm:$0xff]  ;;  %v896_v43 = vpop.f32.mrf.mxu0 }
 0x268   :  { %1474 = vmatmul.f32.gmra.mxu0 %v6626_v25  ;;  %1191 = vmatpush.msrb.mxu1 %v987_v7 }
 0x269   :  { %v920_v61 = vadd.f32 %v884_v11, %v787_v33  ;;  %1264 = vmatpush.msrb.mxu2 %v984_v49  ;;  %v976_v11 = vld [vmem:[%s10631_s5 + $0x8] sm:$0xff] }
 0x26a   :  { %1192 = vmatpush.msrb.mxu1 %v985_v63 }
 0x26b   :  { %v946_v38 = vadd.f32 %v6481_v23, %v920_v61  ;;  %1403 = vmatmul.f32.gmra.mxu3 %v6626_v25  ;;  %1265 = vmatpush.msrb.mxu2 %v982_v2 }
 0x26c   :  { %1193 = vmatpush.msrb.mxu1 %v983_v18 }
 0x26d   :  { %v6658_v27 = vmax.f32 %v946_v38, 0.0  ;;  %1266 = vmatpush.msrb.mxu2 %v980_v47 }
 0x26e   :  { %v789_v14 = vpop.f32.mrf.mxu3  ;;  %1194 = vmatpush.msrb.mxu1 %v981_v53 }
 0x26f   :  { %v790_v8 = vadd.f32 %v789_v14, %v6296_v45  ;;  %1095 = vmatmul.f32.gmra.mxu1 %v6658_v27  ;;  %1166 = vmatmul.f32.gmra.mxu2 %v6658_v27  ;;  %v979_v45 = vld [vmem:[%s10631_s5 + $0x20] sm:$0xff]  ;;  %v899_v63 = vpop.f32.mrf.mxu0 }
 0x270   :  { %1477 = vmatmul.f32.gmra.mxu0 %v6658_v27  ;;  %1195 = vmatpush.msrb.mxu1 %v979_v45 }
 0x271   :  { %v921_v57 = vadd.f32 %v887_v28, %v790_v8  ;;  %1267 = vmatpush.msrb.mxu2 %v978_v1 }
 0x272   :  { %1196 = vmatpush.msrb.mxu1 %v977_v59 }
 0x273   :  { %v947_v30 = vadd.f32 %v6481_v23, %v921_v57  ;;  %1406 = vmatmul.f32.gmra.mxu3 %v6658_v27  ;;  %1268 = vmatpush.msrb.mxu2 %v976_v11 }
 0x274   :  { %1197 = vmatpush.msrb.mxu1 %v975_v4 }
 0x275   :  { %v6687_v46 = vmax.f32 %v947_v30, 0.0 }
 0x276   :  { %v792_v3 = vpop.f32.mrf.mxu3 }
 0x277   :  { %v793_v5 = vadd.f32 %v792_v3, %v6302_v50  ;;  %1098 = vmatmul.f32.gmra.mxu1 %v6687_v46  ;;  %1169 = vmatmul.f32.gmra.mxu2 %v6687_v46  ;;  %v902_v57 = vpop.f32.mrf.mxu0 }
 0x278   :  { %1480 = vmatmul.f32.gmra.mxu0 %v6687_v46 }
 0x279   :  { %v922_v55 = vadd.f32 %v890_v39, %v793_v5 }
 0x27b   :  { %v948_v6 = vadd.f32 %v6481_v23, %v922_v55  ;;  %1409 = vmatmul.f32.gmra.mxu3 %v6687_v46 }
 0x27d   :  { %v6704_v50 = vmax.f32 %v948_v6, 0.0  ;;  %v5017_v6 = vld [vmem:[%s10633_s7 + $0x5e8] sm:$0xff] }
 0x27e   :  { %v795_v13 = vpop.f32.mrf.mxu3  ;;  %1988 = vmatpush.msrb.mxu3 %v5017_v6 }
 0x27f   :  { %v796_v16 = vadd.f32 %v795_v13, %v6312_v37  ;;  %1101 = vmatmul.f32.gmra.mxu1 %v6704_v50  ;;  %1172 = vmatmul.f32.gmra.mxu2 %v6704_v50  ;;  %v742_v37 = vadd.f32 %v6439_v0, %v6144_v58  ;;  %v745_v0 = vadd.f32 %v6467_v41, %v6156_v12 }
 0x280   :  { %1483 = vmatmul.f32.gmra.mxu0 %v6704_v50 }
 0x281   :  { %v923_v24 = vadd.f32 %v893_v40, %v796_v16  ;;  %v905_v62 = vadd.f32 %v6300_v29, %v742_v37  ;;  %v906_v39 = vadd.f32 %v6314_v48, %v745_v0  ;;  %v5009_v37 = vld [vmem:[%s10633_s7 + $0x5a8] sm:$0xff]  ;;  %v5000_v0 = vld [vmem:[%s10633_s7 + $0x560] sm:$0xff] }
 0x283   :  { %v949_v20 = vadd.f32 %v6481_v23, %v923_v24  ;;  %1412 = vmatmul.f32.gmra.mxu3 %v6704_v50  ;;  %v931_v58 = vadd.f32 %v6481_v23, %v905_v62  ;;  %v932_v41 = vadd.f32 %v6481_v23, %v906_v39  ;;  %v5081_v24 = vld [vmem:[%s10633_s7 + $0x7e8] sm:$0xff] }
 0x284   :  { %v6712_v28 = vpop.f32.mrf.mxu1  ;;  %2047 = vmatpush.msrb.mxu0 %v5081_v24  ;;  %v5065_v39 = vld [vmem:[%s10633_s7 + $0x768] sm:$0xff] }
 0x285   :  { %v971_v17 = vmax.f32 %v949_v20, 0.0  ;;  %v953_v8 = vmax.f32 %v931_v58, 0.0  ;;  %v954_v59 = vmax.f32 %v932_v41, 0.0  ;;  %v5012_v20 = vld [vmem:[%s10633_s7 + $0x5c0] sm:$0xff]  ;;  %v4985_v24 = vld [vmem:[%s10633_s7 + $0x4e8] sm:$0xff] }
 0x286   :  { %v798_v21 = vpop.f32.mrf.mxu3  ;;  %v4992_v41 = vld [vmem:[%s10633_s7 + $0x520] sm:$0xff] }
 0x287   :  { %v799_v33 = vadd.f32 %v798_v21, %v6324_v60  ;;  %1104 = vmatmul.f32.gmra.mxu1 %v971_v17  ;;  %1175 = vmatmul.f32.gmra.mxu2 %v971_v17 }
 0x288   :  { %1486 = vmatmul.f32.gmra.mxu0 %v971_v17 }
 0x289   :  { %v924_v22 = vadd.f32 %v896_v43, %v799_v33  ;;  %v5072_v43 = vld [vmem:[%s10633_s7 + $0x7a0] sm:$0xff]  ;;  %v5077_v33 = vld [vmem:[%s10633_s7 + $0x7c8] sm:$0xff] }
 0x28a   :  { %v6717_v31 = vpop.f32.mrf.mxu2  ;;  %2048 = vmatpush.msrb.mxu0 %v5077_v33 }
 0x28b   :  { %v950_v61 = vadd.f32 %v6481_v23, %v924_v22  ;;  %1415 = vmatmul.f32.gmra.mxu3 %v971_v17  ;;  %v5068_v22 = vld [vmem:[%s10633_s7 + $0x780] sm:$0xff] }
 0x28c   :  { %v6720_v7 = vpop.f32.mrf.mxu1 }
 0x28d   :  { %v972_v38 = vmax.f32 %v950_v61, 0.0 }
 0x28e   :  { %v801_v42 = vpop.f32.mrf.mxu3 }
 0x28f   :  { %v802_v60 = vadd.f32 %v801_v42, %v6354_v9  ;;  %1107 = vmatmul.f32.gmra.mxu1 %v972_v38  ;;  %1178 = vmatmul.f32.gmra.mxu2 %v972_v38 }
 0x290   :  { %1489 = vmatmul.f32.gmra.mxu0 %v972_v38 }
 0x291   :  { %v925_v14 = vadd.f32 %v899_v63, %v802_v60  ;;  %v5005_v63 = vld [vmem:[%s10633_s7 + $0x588] sm:$0xff]  ;;  %v5064_v60 = vld [vmem:[%s10633_s7 + $0x760] sm:$0xff] }
 0x292   :  { %v6727_v18 = vpop.f32.mrf.mxu2 }
 0x293   :  { %1418 = vmatmul.f32.gmra.mxu3 %v972_v38  ;;  %v951_v49 = vadd.f32 %v6481_v23, %v925_v14  ;;  %v5073_v38 = vld [vmem:[%s10633_s7 + $0x7a8] sm:$0xff] }
 0x294   :  { %v6730_v29 = vpop.f32.mrf.mxu1  ;;  %2049 = vmatpush.msrb.mxu0 %v5073_v38  ;;  %v5053_v38 = vld [vmem:[%s10633_s7 + $0x708] sm:$0xff] }
 0x295   :  { %v973_v9 = vmax.f32 %v951_v49, 0.0  ;;  %v5001_v49 = vld [vmem:[%s10633_s7 + $0x568] sm:$0xff]  ;;  %v6899_v6 = vpop.f32.mrf.mxu0 }
 0x296   :  { %v804_v53 = vpop.f32.mrf.mxu3 }
 0x297   :  { %v805_v2 = vadd.f32 %v804_v53, %v6408_v54  ;;  %1198 = vmatmul.f32.vlgmr.msrb.gmra.mxu1 %v953_v8  ;;  %1269 = vmatmul.f32.vlgmr.msrb.gmra.mxu2 %v953_v8 }
 0x298   :  { %1492 = vmatmul.f32.gmra.mxu0 %v973_v9 }
 0x299   :  { %v926_v12 = vadd.f32 %v902_v57, %v805_v2  ;;  %v4997_v2 = vld [vmem:[%s10633_s7 + $0x548] sm:$0xff] }
 0x29a   :  { %v6735_v45 = vpop.f32.mrf.mxu2 }
 0x29b   :  { %1421 = vmatmul.f32.gmra.mxu3 %v973_v9  ;;  %v952_v47 = vadd.f32 %v6481_v23, %v926_v12  ;;  %v4996_v9 = vld [vmem:[%s10633_s7 + $0x540] sm:$0xff] }
 0x29c   :  { %v6738_v30 = vpop.f32.mrf.mxu1 }
 0x29d   :  { %v974_v48 = vmax.f32 %v952_v47, 0.0  ;;  %v4993_v47 = vld [vmem:[%s10633_s7 + $0x528] sm:$0xff] }
 0x29f   :  { %1201 = vmatmul.f32.gmra.mxu1 %v954_v59  ;;  %1272 = vmatmul.f32.gmra.mxu2 %v954_v59  ;;  %v5056_v59 = vld [vmem:[%s10633_s7 + $0x720] sm:$0xff] }
 0x2a0   :  { %1495 = vmatmul.f32.gmra.mxu0 %v974_v48 }
 0x2a2   :  { %v6740_v54 = vpop.f32.mrf.mxu2 }
 0x2a3   :  { %1424 = vmatmul.f32.gmra.mxu3 %v974_v48 }
 0x2a4   :  { %v6742_v1 = vpop.f32.mrf.mxu1 }
 0x2a7   :  { %1204 = vmatmul.f32.gmra.mxu1 %v6487_v32  ;;  %1275 = vmatmul.f32.gmra.mxu2 %v6487_v32  ;;  %v5080_v32 = vld [vmem:[%s10633_s7 + $0x7e0] sm:$0xff] }
 0x2a8   :  { %1929 = vmatpush.msra.mxu2 %v5080_v32  ;;  %v4988_v32 = vld [vmem:[%s10633_s7 + $0x500] sm:$0xff] }
 0x2aa   :  { %v6746_v3 = vpop.f32.mrf.mxu2 }
 0x2ac   :  { %v6748_v4 = vpop.f32.mrf.mxu1 }
 0x2af   :  { %1207 = vmatmul.f32.gmra.mxu1 %v6496_v35  ;;  %1278 = vmatmul.f32.gmra.mxu2 %v6496_v35 }
 0x2b2   :  { %v6752_v23 = vpop.f32.mrf.mxu2 }
 0x2b4   :  { %v6754_v5 = vpop.f32.mrf.mxu1 }
 0x2b7   :  { %1210 = vmatmul.f32.gmra.mxu1 %v6504_v34  ;;  %1281 = vmatmul.f32.gmra.mxu2 %v6504_v34  ;;  %v5016_v34 = vld [vmem:[%s10633_s7 + $0x5e0] sm:$0xff] }
 0x2b8   :  { %1870 = vmatpush.msra.mxu1 %v5016_v34  ;;  %v4989_v34 = vld [vmem:[%s10633_s7 + $0x508] sm:$0xff] }
 0x2ba   :  { %v6758_v11 = vpop.f32.mrf.mxu2  ;;  %1871 = vmatpush.msra.mxu1 %v5012_v20  ;;  %v4980_v20 = vld [vmem:[%s10633_s7 + $0x4c0] sm:$0xff] }
 0x2bc   :  { %v6760_v55 = vpop.f32.mrf.mxu1 }
 0x2bf   :  { %1213 = vmatmul.f32.gmra.mxu1 %v6512_v52  ;;  %1284 = vmatmul.f32.gmra.mxu2 %v6512_v52  ;;  %v5076_v52 = vld [vmem:[%s10633_s7 + $0x7c0] sm:$0xff] }
 0x2c0   :  { %1930 = vmatpush.msra.mxu2 %v5076_v52  ;;  %v4984_v52 = vld [vmem:[%s10633_s7 + $0x4e0] sm:$0xff] }
 0x2c2   :  { %v6767_v35 = vpop.f32.mrf.mxu2  ;;  %1931 = vmatpush.msra.mxu2 %v5072_v43  ;;  %v5057_v43 = vld [vmem:[%s10633_s7 + $0x728] sm:$0xff] }
 0x2c4   :  { %v6769_v40 = vpop.f32.mrf.mxu1  ;;  %1932 = vmatpush.msra.mxu2 %v5068_v22  ;;  %v4977_v22 = vld [vmem:[%s10633_s7 + $0x4a8] sm:$0xff] }
 0x2c6   :  { %1933 = vmatpush.msra.mxu2 %v5064_v60  ;;  %v5048_v60 = vld [vmem:[%s10633_s7 + $0x6e0] sm:$0xff] }
 0x2c7   :  { %1216 = vmatmul.f32.gmra.mxu1 %v6520_v56  ;;  %1287 = vmatmul.f32.gmra.mxu2 %v6520_v56  ;;  %v5013_v56 = vld [vmem:[%s10633_s7 + $0x5c8] sm:$0xff] }
 0x2c8   :  { %1989 = vmatpush.msrb.mxu3 %v5013_v56  ;;  %v4981_v56 = vld [vmem:[%s10633_s7 + $0x4c8] sm:$0xff] }
 0x2ca   :  { %v6782_v13 = vpop.f32.mrf.mxu2  ;;  %1990 = vmatpush.msrb.mxu3 %v5009_v37  ;;  %v4976_v37 = vld [vmem:[%s10633_s7 + $0x4a0] sm:$0xff] }
 0x2cc   :  { %v6784_v16 = vpop.f32.mrf.mxu1  ;;  %1991 = vmatpush.msrb.mxu3 %v5005_v63  ;;  %v4972_v63 = vld [vmem:[%s10633_s7 + $0x480] sm:$0xff] }
 0x2ce   :  { %1992 = vmatpush.msrb.mxu3 %v5001_v49  ;;  %v4968_v49 = vld [vmem:[%s10633_s7 + $0x460] sm:$0xff] }
 0x2cf   :  { %1219 = vmatmul.f32.gmra.mxu1 %v6531_v10  ;;  %1290 = vmatmul.f32.gmra.mxu2 %v6531_v10  ;;  %v5008_v10 = vld [vmem:[%s10633_s7 + $0x5a0] sm:$0xff] }
 0x2d0   :  { %1872 = vmatpush.msra.mxu1 %v5008_v10  ;;  %1993 = vmatpush.msrb.mxu3 %v4997_v2  ;;  %v6962_v2 = vpop.f32.mrf.mxu0 }
 0x2d2   :  { %v6800_v17 = vpop.f32.mrf.mxu2  ;;  %1994 = vmatpush.msrb.mxu3 %v4993_v47  ;;  %v5040_v47 = vld [vmem:[%s10633_s7 + $0x6a0] sm:$0xff] }
 0x2d4   :  { %v6802_v21 = vpop.f32.mrf.mxu1  ;;  %1995 = vmatpush.msrb.mxu3 %v4989_v34  ;;  %v5036_v34 = vld [vmem:[%s10633_s7 + $0x680] sm:$0xff] }
 0x2d6   :  { %1996 = vmatpush.msrb.mxu3 %v4985_v24  ;;  %v5037_v24 = vld [vmem:[%s10633_s7 + $0x688] sm:$0xff] }
 0x2d7   :  { %1222 = vmatmul.f32.gmra.mxu1 %v6542_v15  ;;  %1293 = vmatmul.f32.gmra.mxu2 %v6542_v15  ;;  %v5004_v15 = vld [vmem:[%s10633_s7 + $0x580] sm:$0xff] }
 0x2d8   :  { %1873 = vmatpush.msra.mxu1 %v5004_v15  ;;  %1997 = vmatpush.msrb.mxu3 %v4981_v56 }
 0x2da   :  { %v6818_v61 = vpop.f32.mrf.mxu2  ;;  %1874 = vmatpush.msra.mxu1 %v5000_v0  ;;  %1998 = vmatpush.msrb.mxu3 %v4977_v22  ;;  %v5049_v0 = vld [vmem:[%s10633_s7 + $0x6e8] sm:$0xff] }
 0x2db   :  { %v5033_v22 = vld [vmem:[%s10633_s7 + $0x668] sm:$0xff] }
 0x2dc   :  { %v6820_v62 = vpop.f32.mrf.mxu1  ;;  %1875 = vmatpush.msra.mxu1 %v4996_v9  ;;  %v5045_v9 = vld [vmem:[%s10633_s7 + $0x6c8] sm:$0xff] }
 0x2de   :  { %1876 = vmatpush.msra.mxu1 %v4992_v41  ;;  %v4964_v41 = vld [vmem:[%s10633_s7 + $0x440] sm:$0xff] }
 0x2df   :  { %1225 = vmatmul.f32.gmra.mxu1 %v6556_v51  ;;  %1296 = vmatmul.f32.gmra.mxu2 %v6556_v51  ;;  %v5069_v51 = vld [vmem:[%s10633_s7 + $0x788] sm:$0xff] }
 0x2e0   :  { %2050 = vmatpush.msrb.mxu0 %v5069_v51  ;;  %1877 = vmatpush.msra.mxu1 %v4988_v32  ;;  %v4973_v51 = vld [vmem:[%s10633_s7 + $0x488] sm:$0xff]  ;;  %v4960_v32 = vld [vmem:[%s10633_s7 + $0x420] sm:$0xff] }
 0x2e1   :  { %1999 = vmatpush.msrb.mxu3 %v4973_v51  ;;  %v1451_v51 = vpop.f32.mrf.mxu0 }
 0x2e2   :  { %v6833_v42 = vpop.f32.mrf.mxu2  ;;  %2051 = vmatpush.msrb.mxu0 %v5065_v39  ;;  %1878 = vmatpush.msra.mxu1 %v4984_v52  ;;  %v4969_v39 = vld [vmem:[%s10633_s7 + $0x468] sm:$0xff] }
 0x2e3   :  { %2000 = vmatpush.msrb.mxu3 %v4969_v39  ;;  %v4961_v52 = vld [vmem:[%s10633_s7 + $0x428] sm:$0xff] }
 0x2e4   :  { %v6838_v58 = vpop.f32.mrf.mxu1  ;;  %1879 = vmatpush.msra.mxu1 %v4980_v20  ;;  %v5021_v39 = vld [vmem:[%s10633_s7 + $0x608] sm:$0xff] }
 0x2e6   :  { %1880 = vmatpush.msra.mxu1 %v4976_v37  ;;  %v4957_v37 = vld [vmem:[%s10633_s7 + $0x408] sm:$0xff] }
 0x2e7   :  { %1228 = vmatmul.f32.gmra.mxu1 %v6570_v36  ;;  %1299 = vmatmul.f32.gmra.mxu2 %v6570_v36  ;;  %v5060_v36 = vld [vmem:[%s10633_s7 + $0x740] sm:$0xff] }
 0x2e8   :  { %1934 = vmatpush.msra.mxu2 %v5060_v36  ;;  %1881 = vmatpush.msra.mxu1 %v4972_v63  ;;  %v5044_v36 = vld [vmem:[%s10633_s7 + $0x6c0] sm:$0xff]  ;;  %v5029_v63 = vld [vmem:[%s10633_s7 + $0x648] sm:$0xff] }
 0x2ea   :  { %v6848_v14 = vpop.f32.mrf.mxu2  ;;  %1935 = vmatpush.msra.mxu2 %v5056_v59  ;;  %1882 = vmatpush.msra.mxu1 %v4968_v49  ;;  %v5041_v59 = vld [vmem:[%s10633_s7 + $0x6a8] sm:$0xff]  ;;  %v5020_v49 = vld [vmem:[%s10633_s7 + $0x600] sm:$0xff] }
 0x2ec   :  { %v6856_v8 = vpop.f32.mrf.mxu1  ;;  %1883 = vmatpush.msra.mxu1 %v4964_v41 }
 0x2ee   :  { %1884 = vmatpush.msra.mxu1 %v4960_v32 }
 0x2ef   :  { %1231 = vmatmul.f32.gmra.mxu1 %v6581_v44  ;;  %1302 = vmatmul.f32.gmra.mxu2 %v6581_v44  ;;  %v6875_v44 = vpop.f32.mrf.mxu3 }
 0x2f2   :  { %v6866_v53 = vpop.f32.mrf.mxu2 }
 0x2f4   :  { %v6871_v57 = vpop.f32.mrf.mxu1 }
 0x2f7   :  { %1234 = vmatmul.f32.gmra.mxu1 %v6595_v19  ;;  %1305 = vmatmul.f32.gmra.mxu2 %v6595_v19  ;;  %v5061_v19 = vld [vmem:[%s10633_s7 + $0x748] sm:$0xff]  ;;  %v6918_v33 = vpop.f32.mrf.mxu3 }
 0x2f8   :  { %2052 = vmatpush.msrb.mxu0 %v5061_v19 }
 0x2fa   :  { %v6877_v12 = vpop.f32.mrf.mxu2  ;;  %2053 = vmatpush.msrb.mxu0 %v5057_v43  ;;  %v4956_v43 = vld [vmem:[%s10633_s7 + $0x400] sm:$0xff] }
 0x2fb   :  { %1885 = vmatpush.msra.mxu1 %v4956_v43 }
 0x2fc   :  { %v6891_v48 = vpop.f32.mrf.mxu1  ;;  %2054 = vmatpush.msrb.mxu0 %v5053_v38  ;;  %v5028_v38 = vld [vmem:[%s10633_s7 + $0x640] sm:$0xff] }
 0x2fe   :  { %2055 = vmatpush.msrb.mxu0 %v5049_v0 }
 0x2ff   :  { %1237 = vmatmul.f32.gmra.mxu1 %v6609_v26  ;;  %1308 = vmatmul.f32.gmra.mxu2 %v6609_v26  ;;  %v5052_v26 = vld [vmem:[%s10633_s7 + $0x700] sm:$0xff]  ;;  %v1380_v20 = vpop.f32.mrf.mxu3 }
 0x300   :  { %1936 = vmatpush.msra.mxu2 %v5052_v26  ;;  %2056 = vmatpush.msrb.mxu0 %v5045_v9  ;;  %v5032_v26 = vld [vmem:[%s10633_s7 + $0x660] sm:$0xff] }
 0x302   :  { %v6920_v10 = vpop.f32.mrf.mxu2  ;;  %1937 = vmatpush.msra.mxu2 %v5048_v60  ;;  %2057 = vmatpush.msrb.mxu0 %v5041_v59  ;;  %v5024_v60 = vld [vmem:[%s10633_s7 + $0x620] sm:$0xff] }
 0x304   :  { %v6934_v15 = vpop.f32.mrf.mxu1  ;;  %1938 = vmatpush.msra.mxu2 %v5044_v36  ;;  %2058 = vmatpush.msrb.mxu0 %v5037_v24 }
 0x305   :  { %10651 = vst [vmem:[#allocation2_spill] sm:$0xff] %v6934_v15 }
 0x306   :  { %1939 = vmatpush.msra.mxu2 %v5040_v47  ;;  %2059 = vmatpush.msrb.mxu0 %v5033_v22  ;;  %v1454_v47 = vpop.f32.mrf.mxu0 }
 0x307   :  { %1240 = vmatmul.f32.gmra.mxu1 %v6626_v25  ;;  %1311 = vmatmul.f32.gmra.mxu2 %v6626_v25  ;;  %v4965_v25 = vld [vmem:[%s10633_s7 + $0x448] sm:$0xff]  ;;  %v1383_v9 = vpop.f32.mrf.mxu3 }
 0x308   :  { %2001 = vmatpush.msrb.mxu3 %v4965_v25  ;;  %1940 = vmatpush.msra.mxu2 %v5036_v34  ;;  %v1535_v34 = vld [vmem:[%s10634_s6] sm:$0x3] }
 0x309   :  { %2060 = vmatpush.msrb.mxu0 %v5029_v63  ;;  %v7042_v43 = vperm.slane %v1535_v34, 0 }
 0x30a   :  { %v6976_v19 = vpop.f32.mrf.mxu2  ;;  %2002 = vmatpush.msrb.mxu3 %v4961_v52  ;;  %1941 = vmatpush.msra.mxu2 %v5032_v26 }
 0x30b   :  { %10652 = vst [vmem:[#allocation3_spill] sm:$0xff] %v6976_v19 }
 0x30c   :  { %v6990_v56 = vpop.f32.mrf.mxu1  ;;  %2003 = vmatpush.msrb.mxu3 %v4957_v37  ;;  %1942 = vmatpush.msra.mxu2 %v5028_v38  ;;  %10655 = vst [vmem:[#allocation6_spill] sm:$0xff] %v7042_v43 }
 0x30d   :  { %10653 = vst [vmem:[#allocation4_spill] sm:$0xff] %v6990_v56 }
 0x30e   :  { %1943 = vmatpush.msra.mxu2 %v5024_v60  ;;  %v1457_v24 = vpop.f32.mrf.mxu0 }
 0x30f   :  { %1243 = vmatmul.f32.gmra.mxu1 %v6658_v27  ;;  %1314 = vmatmul.f32.gmra.mxu2 %v6658_v27  ;;  %v5025_v27 = vld [vmem:[%s10633_s7 + $0x628] sm:$0xff]  ;;  %v1386_v59 = vpop.f32.mrf.mxu3 }
 0x310   :  { %2061 = vmatpush.msrb.mxu0 %v5025_v27  ;;  %1944 = vmatpush.msra.mxu2 %v5020_v49  ;;  %v7048_v27 = vperm.slane %v1535_v34, 1 }
 0x312   :  { %v7015_v0 = vpop.f32.mrf.mxu2  ;;  %2062 = vmatpush.msrb.mxu0 %v5021_v39  ;;  %10656 = vst [vmem:[#allocation7_spill] sm:$0xff] %v7048_v27 }
 0x313   :  { %10654 = vst [vmem:[#allocation5_spill] sm:$0xff] %v7015_v0 }
 0x314   :  { %v7023_v36 = vpop.f32.mrf.mxu1 }
 0x317   :  { %1246 = vmatmul.f32.gmra.mxu1 %v6687_v46  ;;  %1317 = vmatmul.f32.gmra.mxu2 %v6687_v46  ;;  %v1389_v22 = vpop.f32.mrf.mxu3 }
 0x31a   :  { %v7030_v41 = vpop.f32.mrf.mxu2 }
 0x31c   :  { %v7032_v25 = vpop.f32.mrf.mxu1 }
 0x31f   :  { %1249 = vmatmul.f32.gmra.mxu1 %v6704_v50  ;;  %1320 = vmatmul.f32.gmra.mxu2 %v6704_v50 }
 0x322   :  { %v7036_v32 = vpop.f32.mrf.mxu2 }
 0x324   :  { %v1205_v52 = vpop.f32.mrf.mxu1 }
 0x325   :  { %v1206_v46 = vadd.f32 %v1205_v52, %v6730_v29  ;;  %v1460_v52 = vpop.f32.mrf.mxu0 }
 0x327   :  { %v1503_v26 = vadd.f32 %v1380_v20, %v1206_v46 }
 0x329   :  { %v1545_v37 = vadd.f32 %v7042_v43, %v1503_v26 }
 0x32a   :  { %v1276_v38 = vpop.f32.mrf.mxu2 }
 0x32b   :  { %v7045_v63 = vmax.f32 %v1545_v37, 0.0  ;;  %v1277_v50 = vadd.f32 %v1276_v38, %v6735_v45 }
 0x32c   :  { %v1208_v60 = vpop.f32.mrf.mxu1 }
 0x32d   :  { %v1504_v49 = vadd.f32 %v1451_v51, %v1277_v50  ;;  %v1209_v39 = vadd.f32 %v1208_v60, %v6738_v30  ;;  %1886 = vmatmul.f32.vlgmr.msra.gmra.mxu1 %v7045_v63  ;;  %2004 = vmatmul.f32.vlgmr.msrb.gmra.mxu3 %v7045_v63  ;;  %v1392_v30 = vpop.f32.mrf.mxu3 }
 0x32f   :  { %v1546_v29 = vadd.f32 %v7048_v27, %v1504_v49  ;;  %v1505_v20 = vadd.f32 %v1383_v9, %v1209_v39  ;;  %v1463_v39 = vpop.f32.mrf.mxu0 }
 0x331   :  { %v7054_v46 = vmax.f32 %v1546_v29, 0.0  ;;  %v1547_v26 = vadd.f32 %v7042_v43, %v1505_v20 }
 0x332   :  { %v1279_v37 = vpop.f32.mrf.mxu2 }
 0x333   :  { %v7057_v45 = vmax.f32 %v1547_v26, 0.0  ;;  %v1280_v34 = vadd.f32 %v1279_v37, %v6740_v54  ;;  %1945 = vmatmul.f32.vlgmr.msra.gmra.mxu2 %v7054_v46  ;;  %2063 = vmatmul.f32.vlgmr.msrb.gmra.mxu0 %v7054_v46 }
 0x334   :  { %v1211_v51 = vpop.f32.mrf.mxu1 }
 0x335   :  { %v1506_v38 = vadd.f32 %v1454_v47, %v1280_v34  ;;  %v1212_v50 = vadd.f32 %v1211_v51, %v6742_v1  ;;  %1889 = vmatmul.f32.gmra.mxu1 %v7057_v45  ;;  %2007 = vmatmul.f32.gmra.mxu3 %v7057_v45 }
 0x337   :  { %v1548_v9 = vadd.f32 %v7048_v27, %v1506_v38  ;;  %v1507_v60 = vadd.f32 %v1386_v59, %v1212_v50  ;;  %v1395_v59 = vpop.f32.mrf.mxu3 }
 0x339   :  { %v7066_v49 = vmax.f32 %v1548_v9, 0.0  ;;  %v1549_v54 = vadd.f32 %v7042_v43, %v1507_v60 }
 0x33a   :  { %v1282_v29 = vpop.f32.mrf.mxu2 }
 0x33b   :  { %v7069_v20 = vmax.f32 %v1549_v54, 0.0  ;;  %v1283_v26 = vadd.f32 %v1282_v29, %v6746_v3  ;;  %1948 = vmatmul.f32.gmra.mxu2 %v7066_v49  ;;  %2066 = vmatmul.f32.gmra.mxu0 %v7066_v49 }
 0x33c   :  { %v1214_v1 = vpop.f32.mrf.mxu1 }
 0x33d   :  { %v1508_v47 = vadd.f32 %v1457_v24, %v1283_v26  ;;  %v1215_v37 = vadd.f32 %v1214_v1, %v6748_v4  ;;  %1892 = vmatmul.f32.gmra.mxu1 %v7069_v20  ;;  %2010 = vmatmul.f32.gmra.mxu3 %v7069_v20  ;;  %v1466_v4 = vpop.f32.mrf.mxu0 }
 0x33f   :  { %v1550_v34 = vadd.f32 %v7048_v27, %v1508_v47  ;;  %v1509_v51 = vadd.f32 %v1389_v22, %v1215_v37  ;;  %v1398_v1 = vpop.f32.mrf.mxu3 }
 0x341   :  { %v7078_v38 = vmax.f32 %v1550_v34, 0.0  ;;  %v1551_v3 = vadd.f32 %v7042_v43, %v1509_v51 }
 0x342   :  { %v1285_v50 = vpop.f32.mrf.mxu2 }
 0x343   :  { %v7081_v9 = vmax.f32 %v1551_v3, 0.0  ;;  %v1286_v60 = vadd.f32 %v1285_v50, %v6752_v23  ;;  %1951 = vmatmul.f32.gmra.mxu2 %v7078_v38  ;;  %2069 = vmatmul.f32.gmra.mxu0 %v7078_v38 }
 0x344   :  { %v1217_v24 = vpop.f32.mrf.mxu1 }
 0x345   :  { %v1510_v54 = vadd.f32 %v1460_v52, %v1286_v60  ;;  %v1218_v29 = vadd.f32 %v1217_v24, %v6754_v5  ;;  %1895 = vmatmul.f32.gmra.mxu1 %v7081_v9  ;;  %2013 = vmatmul.f32.gmra.mxu3 %v7081_v9 }
 0x347   :  { %v1552_v22 = vadd.f32 %v7048_v27, %v1510_v54  ;;  %v1511_v26 = vadd.f32 %v1392_v30, %v1218_v29  ;;  %v1469_v30 = vpop.f32.mrf.mxu0  ;;  %v1401_v54 = vpop.f32.mrf.mxu3 }
 0x349   :  { %v7090_v47 = vmax.f32 %v1552_v22, 0.0  ;;  %v1553_v23 = vadd.f32 %v7042_v43, %v1511_v26 }
 0x34a   :  { %v1288_v37 = vpop.f32.mrf.mxu2 }
 0x34b   :  { %v7093_v34 = vmax.f32 %v1553_v23, 0.0  ;;  %v1289_v51 = vadd.f32 %v1288_v37, %v6758_v11  ;;  %1954 = vmatmul.f32.gmra.mxu2 %v7090_v47  ;;  %2072 = vmatmul.f32.gmra.mxu0 %v7090_v47 }
 0x34c   :  { %v1220_v5 = vpop.f32.mrf.mxu1 }
 0x34d   :  { %v1512_v52 = vadd.f32 %v1463_v39, %v1289_v51  ;;  %v1221_v3 = vadd.f32 %v1220_v5, %v6760_v55  ;;  %1898 = vmatmul.f32.gmra.mxu1 %v7093_v34  ;;  %2016 = vmatmul.f32.gmra.mxu3 %v7093_v34  ;;  %v5082_v55 = vld [vmem:[%s10633_s7 + $0x7f0] sm:$0xff] }
 0x34e   :  { %2165 = vmatpush.msrb.mxu2 %v5082_v55 }
 0x34f   :  { %v1554_v50 = vadd.f32 %v7048_v27, %v1512_v52  ;;  %v1513_v60 = vadd.f32 %v1395_v59, %v1221_v3  ;;  %v1472_v51 = vpop.f32.mrf.mxu0 }
 0x351   :  { %v7102_v24 = vmax.f32 %v1554_v50, 0.0  ;;  %v1555_v11 = vadd.f32 %v7042_v43, %v1513_v60 }
 0x352   :  { %v1291_v29 = vpop.f32.mrf.mxu2 }
 0x353   :  { %v7105_v22 = vmax.f32 %v1555_v11, 0.0  ;;  %v1292_v39 = vadd.f32 %v1291_v29, %v6767_v35  ;;  %1957 = vmatmul.f32.gmra.mxu2 %v7102_v24  ;;  %2075 = vmatmul.f32.gmra.mxu0 %v7102_v24  ;;  %v1404_v11 = vpop.f32.mrf.mxu3 }
 0x354   :  { %v1223_v26 = vpop.f32.mrf.mxu1 }
 0x355   :  { %v1514_v59 = vadd.f32 %v1466_v4, %v1292_v39  ;;  %v1224_v23 = vadd.f32 %v1223_v26, %v6769_v40  ;;  %1901 = vmatmul.f32.gmra.mxu1 %v7105_v22  ;;  %2019 = vmatmul.f32.gmra.mxu3 %v7105_v22  ;;  %v5018_v40 = vld [vmem:[%s10633_s7 + $0x5f0] sm:$0xff] }
 0x356   :  { %v5078_v4 = vld [vmem:[%s10633_s7 + $0x7d0] sm:$0xff]  ;;  %2106 = vmatpush.msrb.mxu1 %v5018_v40  ;;  %v5083_v40 = vld [vmem:[%s10633_s7 + $0x7f8] sm:$0xff] }
 0x357   :  { %v1556_v37 = vadd.f32 %v7048_v27, %v1514_v59  ;;  %v1515_v35 = vadd.f32 %v1398_v1, %v1224_v23  ;;  %v5019_v1 = vld [vmem:[%s10633_s7 + $0x5f8] sm:$0xff]  ;;  %2166 = vmatpush.msrb.mxu2 %v5078_v4  ;;  %v5014_v59 = vld [vmem:[%s10633_s7 + $0x5d0] sm:$0xff]  ;;  %2283 = vmatpush.msra.mxu0 %v5083_v40 }
 0x358   :  { %2224 = vmatpush.msra.mxu3 %v5019_v1  ;;  %v5015_v23 = vld [vmem:[%s10633_s7 + $0x5d8] sm:$0xff]  ;;  %2107 = vmatpush.msrb.mxu1 %v5014_v59  ;;  %v5002_v59 = vld [vmem:[%s10633_s7 + $0x570] sm:$0xff] }
 0x359   :  { %v7117_v5 = vmax.f32 %v1556_v37, 0.0  ;;  %v1557_v52 = vadd.f32 %v7042_v43, %v1515_v35  ;;  %v5011_v4 = vld [vmem:[%s10633_s7 + $0x5b8] sm:$0xff] }
 0x35a   :  { %v1294_v3 = vpop.f32.mrf.mxu2  ;;  %2225 = vmatpush.msra.mxu3 %v5015_v23  ;;  %v5075_v23 = vld [vmem:[%s10633_s7 + $0x7b8] sm:$0xff] }
 0x35b   :  { %v7120_v50 = vmax.f32 %v1557_v52, 0.0  ;;  %v1295_v60 = vadd.f32 %v1294_v3, %v6782_v13  ;;  %1960 = vmatmul.f32.gmra.mxu2 %v7117_v5  ;;  %2078 = vmatmul.f32.gmra.mxu0 %v7117_v5 }
 0x35c   :  { %v1226_v29 = vpop.f32.mrf.mxu1  ;;  %2226 = vmatpush.msra.mxu3 %v5011_v4 }
 0x35d   :  { %v1516_v13 = vadd.f32 %v1469_v30, %v1295_v60  ;;  %v1227_v39 = vadd.f32 %v1226_v29, %v6784_v16  ;;  %1904 = vmatmul.f32.gmra.mxu1 %v7120_v50  ;;  %2022 = vmatmul.f32.gmra.mxu3 %v7120_v50  ;;  %v1475_v30 = vpop.f32.mrf.mxu0  ;;  %v5074_v60 = vld [vmem:[%s10633_s7 + $0x7b0] sm:$0xff] }
 0x35e   :  { %2167 = vmatpush.msrb.mxu2 %v5074_v60 }
 0x35f   :  { %v1558_v55 = vadd.f32 %v7048_v27, %v1516_v13  ;;  %v1517_v26 = vadd.f32 %v1401_v54, %v1227_v39  ;;  %v5010_v54 = vld [vmem:[%s10633_s7 + $0x5b0] sm:$0xff]  ;;  %v5007_v39 = vld [vmem:[%s10633_s7 + $0x598] sm:$0xff] }
 0x360   :  { %v5006_v13 = vld [vmem:[%s10633_s7 + $0x590] sm:$0xff]  ;;  %2108 = vmatpush.msrb.mxu1 %v5010_v54  ;;  %2227 = vmatpush.msra.mxu3 %v5007_v39  ;;  %v5071_v39 = vld [vmem:[%s10633_s7 + $0x798] sm:$0xff] }
 0x361   :  { %v7144_v37 = vmax.f32 %v1558_v55, 0.0  ;;  %v1559_v16 = vadd.f32 %v7042_v43, %v1517_v26  ;;  %v1407_v55 = vpop.f32.mrf.mxu3  ;;  %v5070_v54 = vld [vmem:[%s10633_s7 + $0x790] sm:$0xff] }
 0x362   :  { %v1297_v35 = vpop.f32.mrf.mxu2  ;;  %2109 = vmatpush.msrb.mxu1 %v5006_v13  ;;  %2168 = vmatpush.msrb.mxu2 %v5070_v54  ;;  %v4991_v54 = vld [vmem:[%s10633_s7 + $0x518] sm:$0xff] }
 0x363   :  { %v7150_v52 = vmax.f32 %v1559_v16, 0.0  ;;  %v1298_v3 = vadd.f32 %v1297_v35, %v6800_v17  ;;  %1963 = vmatmul.f32.gmra.mxu2 %v7144_v37  ;;  %2081 = vmatmul.f32.gmra.mxu0 %v7144_v37 }
 0x364   :  { %v1229_v1 = vpop.f32.mrf.mxu1  ;;  %2110 = vmatpush.msrb.mxu1 %v5002_v59  ;;  %v4990_v59 = vld [vmem:[%s10633_s7 + $0x510] sm:$0xff] }
 0x365   :  { %v1518_v17 = vadd.f32 %v1472_v51, %v1298_v3  ;;  %v1230_v29 = vadd.f32 %v1229_v1, %v6802_v21  ;;  %1907 = vmatmul.f32.gmra.mxu1 %v7150_v52  ;;  %2025 = vmatmul.f32.gmra.mxu3 %v7150_v52  ;;  %v5079_v51 = vld [vmem:[%s10633_s7 + $0x7d8] sm:$0xff]  ;;  %v4998_v3 = vld [vmem:[%s10633_s7 + $0x550] sm:$0xff] }
 0x366   :  { %2284 = vmatpush.msra.mxu0 %v5079_v51  ;;  %v4999_v1 = vld [vmem:[%s10633_s7 + $0x558] sm:$0xff]  ;;  %2111 = vmatpush.msrb.mxu1 %v4998_v3 }
 0x367   :  { %v1560_v21 = vadd.f32 %v7048_v27, %v1518_v17  ;;  %v1519_v26 = vadd.f32 %v1404_v11, %v1230_v29  ;;  %v5003_v11 = vld [vmem:[%s10633_s7 + $0x578] sm:$0xff]  ;;  %v4994_v17 = vld [vmem:[%s10633_s7 + $0x530] sm:$0xff]  ;;  %v1478_v29 = vpop.f32.mrf.mxu0 }
 0x368   :  { %2285 = vmatpush.msra.mxu0 %v5075_v23  ;;  %2228 = vmatpush.msra.mxu3 %v5003_v11  ;;  %v4986_v11 = vld [vmem:[%s10633_s7 + $0x4f0] sm:$0xff] }
 0x369   :  { %v7183_v16 = vmax.f32 %v1560_v21, 0.0  ;;  %v1561_v35 = vadd.f32 %v7042_v43, %v1519_v26  ;;  %v4995_v26 = vld [vmem:[%s10633_s7 + $0x538] sm:$0xff]  ;;  %2112 = vmatpush.msrb.mxu1 %v4994_v17  ;;  %v1410_v3 = vpop.f32.mrf.mxu3 }
 0x36a   :  { %v1300_v60 = vpop.f32.mrf.mxu2  ;;  %2229 = vmatpush.msra.mxu3 %v4999_v1  ;;  %2286 = vmatpush.msra.mxu0 %v5071_v39  ;;  %v5063_v1 = vld [vmem:[%s10633_s7 + $0x758] sm:$0xff]  ;;  %v4982_v39 = vld [vmem:[%s10633_s7 + $0x4d0] sm:$0xff] }
 0x36b   :  { %v7195_v40 = vmax.f32 %v1561_v35, 0.0  ;;  %v1301_v4 = vadd.f32 %v1300_v60, %v6818_v61  ;;  %1966 = vmatmul.f32.gmra.mxu2 %v7183_v16  ;;  %2084 = vmatmul.f32.gmra.mxu0 %v7183_v16  ;;  %v5066_v61 = vld [vmem:[%s10633_s7 + $0x770] sm:$0xff] }
 0x36c   :  { %v1232_v13 = vpop.f32.mrf.mxu1  ;;  %2169 = vmatpush.msrb.mxu2 %v5066_v61  ;;  %2230 = vmatpush.msra.mxu3 %v4995_v26  ;;  %v4983_v26 = vld [vmem:[%s10633_s7 + $0x4d8] sm:$0xff] }
 0x36d   :  { %v1520_v51 = vadd.f32 %v1475_v30, %v1301_v4  ;;  %v1233_v21 = vadd.f32 %v1232_v13, %v6820_v62  ;;  %1910 = vmatmul.f32.gmra.mxu1 %v7195_v40  ;;  %2028 = vmatmul.f32.gmra.mxu3 %v7195_v40  ;;  %v5067_v30 = vld [vmem:[%s10633_s7 + $0x778] sm:$0xff]  ;;  %v5062_v62 = vld [vmem:[%s10633_s7 + $0x750] sm:$0xff] }
 0x36e   :  { %2113 = vmatpush.msrb.mxu1 %v4990_v59  ;;  %2287 = vmatpush.msra.mxu0 %v5067_v30 }
 0x36f   :  { %v1562_v23 = vadd.f32 %v7048_v27, %v1520_v51  ;;  %v1521_v35 = vadd.f32 %v1407_v55, %v1233_v21  ;;  %2170 = vmatpush.msrb.mxu2 %v5062_v62  ;;  %v4987_v55 = vld [vmem:[%s10633_s7 + $0x4f8] sm:$0xff]  ;;  %2231 = vmatpush.msra.mxu3 %v4991_v54  ;;  %v5058_v51 = vld [vmem:[%s10633_s7 + $0x730] sm:$0xff] }
 0x370   :  { %2114 = vmatpush.msrb.mxu1 %v4986_v11  ;;  %2288 = vmatpush.msra.mxu0 %v5063_v1  ;;  %v4978_v62 = vld [vmem:[%s10633_s7 + $0x4b0] sm:$0xff] }
 0x371   :  { %v7234_v60 = vmax.f32 %v1562_v23, 0.0  ;;  %v1563_v4 = vadd.f32 %v7042_v43, %v1521_v35  ;;  %2232 = vmatpush.msra.mxu3 %v4987_v55  ;;  %v5054_v23 = vld [vmem:[%s10633_s7 + $0x710] sm:$0xff]  ;;  %v1481_v35 = vpop.f32.mrf.mxu0  ;;  %2171 = vmatpush.msrb.mxu2 %v5058_v51 }
 0x372   :  { %v1303_v17 = vpop.f32.mrf.mxu2  ;;  %2115 = vmatpush.msrb.mxu1 %v4982_v39  ;;  %v5050_v55 = vld [vmem:[%s10633_s7 + $0x6f0] sm:$0xff]  ;;  %v1413_v39 = vpop.f32.mrf.mxu3 }
 0x373   :  { %v7243_v13 = vmax.f32 %v1563_v4, 0.0  ;;  %v1304_v61 = vadd.f32 %v1303_v17, %v6833_v42  ;;  %1969 = vmatmul.f32.gmra.mxu2 %v7234_v60  ;;  %2087 = vmatmul.f32.gmra.mxu0 %v7234_v60  ;;  %v5059_v42 = vld [vmem:[%s10633_s7 + $0x738] sm:$0xff]  ;;  %v4974_v4 = vld [vmem:[%s10633_s7 + $0x490] sm:$0xff] }
 0x374   :  { %v1235_v21 = vpop.f32.mrf.mxu1  ;;  %2233 = vmatpush.msra.mxu3 %v4983_v26  ;;  %2289 = vmatpush.msra.mxu0 %v5059_v42  ;;  %v4970_v42 = vld [vmem:[%s10633_s7 + $0x470] sm:$0xff] }
 0x375   :  { %v1522_v59 = vadd.f32 %v1478_v29, %v1304_v61  ;;  %v1236_v30 = vadd.f32 %v1235_v21, %v6838_v58  ;;  %1913 = vmatmul.f32.gmra.mxu1 %v7243_v13  ;;  %2031 = vmatmul.f32.gmra.mxu3 %v7243_v13  ;;  %v4979_v29 = vld [vmem:[%s10633_s7 + $0x4b8] sm:$0xff] }
 0x376   :  { %v5055_v58 = vld [vmem:[%s10633_s7 + $0x718] sm:$0xff]  ;;  %2116 = vmatpush.msrb.mxu1 %v4978_v62  ;;  %2172 = vmatpush.msrb.mxu2 %v5054_v23 }
 0x377   :  { %v1564_v54 = vadd.f32 %v7048_v27, %v1522_v59  ;;  %v1523_v11 = vadd.f32 %v1410_v3, %v1236_v30  ;;  %2234 = vmatpush.msra.mxu3 %v4979_v29  ;;  %2290 = vmatpush.msra.mxu0 %v5055_v58  ;;  %v4975_v3 = vld [vmem:[%s10633_s7 + $0x498] sm:$0xff]  ;;  %v5046_v59 = vld [vmem:[%s10633_s7 + $0x6d0] sm:$0xff] }
 0x378   :  { %v5051_v61 = vld [vmem:[%s10633_s7 + $0x6f8] sm:$0xff]  ;;  %2117 = vmatpush.msrb.mxu1 %v4974_v4  ;;  %2173 = vmatpush.msrb.mxu2 %v5050_v55  ;;  %v4966_v58 = vld [vmem:[%s10633_s7 + $0x450] sm:$0xff] }
 0x379   :  { %v7282_v1 = vmax.f32 %v1564_v54, 0.0  ;;  %v1565_v17 = vadd.f32 %v7042_v43, %v1523_v11  ;;  %2235 = vmatpush.msra.mxu3 %v4975_v3  ;;  %2291 = vmatpush.msra.mxu0 %v5051_v61  ;;  %v4971_v62 = vld [vmem:[%s10633_s7 + $0x478] sm:$0xff]  ;;  %v5042_v54 = vld [vmem:[%s10633_s7 + $0x6b0] sm:$0xff]  ;;  %v1484_v3 = vpop.f32.mrf.mxu0 }
 0x37a   :  { %v1306_v51 = vpop.f32.mrf.mxu2  ;;  %2118 = vmatpush.msrb.mxu1 %v4970_v42  ;;  %2174 = vmatpush.msrb.mxu2 %v5046_v59  ;;  %v4962_v55 = vld [vmem:[%s10633_s7 + $0x430] sm:$0xff] }
 0x37b   :  { %v7291_v21 = vmax.f32 %v1565_v17, 0.0  ;;  %v1307_v26 = vadd.f32 %v1306_v51, %v6848_v14  ;;  %1972 = vmatmul.f32.gmra.mxu2 %v7282_v1  ;;  %2090 = vmatmul.f32.gmra.mxu0 %v7282_v1  ;;  %v5047_v14 = vld [vmem:[%s10633_s7 + $0x6d8] sm:$0xff]  ;;  %v5038_v17 = vld [vmem:[%s10633_s7 + $0x690] sm:$0xff] }
 0x37c   :  { %v1238_v30 = vpop.f32.mrf.mxu1  ;;  %2236 = vmatpush.msra.mxu3 %v4971_v62  ;;  %2292 = vmatpush.msra.mxu0 %v5047_v14  ;;  %v4958_v62 = vld [vmem:[%s10633_s7 + $0x410] sm:$0xff] }
 0x37d   :  { %v1524_v23 = vadd.f32 %v1481_v35, %v1307_v26  ;;  %v1239_v29 = vadd.f32 %v1238_v30, %v6856_v8  ;;  %1916 = vmatmul.f32.gmra.mxu1 %v7291_v21  ;;  %2034 = vmatmul.f32.gmra.mxu3 %v7291_v21  ;;  %v4967_v35 = vld [vmem:[%s10633_s7 + $0x458] sm:$0xff]  ;;  %v5034_v14 = vld [vmem:[%s10633_s7 + $0x670] sm:$0xff] }
 0x37e   :  { %v5043_v8 = vld [vmem:[%s10633_s7 + $0x6b8] sm:$0xff]  ;;  %2119 = vmatpush.msrb.mxu1 %v4966_v58  ;;  %2175 = vmatpush.msrb.mxu2 %v5042_v54 }
 0x37f   :  { %v1566_v11 = vadd.f32 %v7048_v27, %v1524_v23  ;;  %v1525_v4 = vadd.f32 %v1413_v39, %v1239_v29  ;;  %2237 = vmatpush.msra.mxu3 %v4967_v35  ;;  %2293 = vmatpush.msra.mxu0 %v5043_v8  ;;  %v4963_v39 = vld [vmem:[%s10633_s7 + $0x438] sm:$0xff]  ;;  %v1416_v23 = vpop.f32.mrf.mxu3  ;;  %v5030_v8 = vld [vmem:[%s10633_s7 + $0x650] sm:$0xff] }
 0x380   :  { %v5039_v26 = vld [vmem:[%s10633_s7 + $0x698] sm:$0xff]  ;;  %2120 = vmatpush.msrb.mxu1 %v4962_v55  ;;  %2176 = vmatpush.msrb.mxu2 %v5038_v17 }
 0x381   :  { %v7330_v61 = vmax.f32 %v1566_v11, 0.0  ;;  %v1567_v51 = vadd.f32 %v7042_v43, %v1525_v4  ;;  %2238 = vmatpush.msra.mxu3 %v4963_v39  ;;  %2294 = vmatpush.msra.mxu0 %v5039_v26  ;;  %v5035_v58 = vld [vmem:[%s10633_s7 + $0x678] sm:$0xff]  ;;  %v5022_v39 = vld [vmem:[%s10633_s7 + $0x610] sm:$0xff]  ;;  %v1487_v26 = vpop.f32.mrf.mxu0 }
 0x382   :  { %v1309_v42 = vpop.f32.mrf.mxu2  ;;  %2121 = vmatpush.msrb.mxu1 %v4958_v62  ;;  %2177 = vmatpush.msrb.mxu2 %v5034_v14  ;;  %v5031_v11 = vld [vmem:[%s10633_s7 + $0x658] sm:$0xff] }
 0x383   :  { %v7339_v59 = vmax.f32 %v1567_v51, 0.0  ;;  %v1310_v30 = vadd.f32 %v1309_v42, %v6866_v53  ;;  %1975 = vmatmul.f32.gmra.mxu2 %v7330_v61  ;;  %2093 = vmatmul.f32.gmra.mxu0 %v7330_v61  ;;  %v4959_v53 = vld [vmem:[%s10633_s7 + $0x418] sm:$0xff] }
 0x384   :  { %v1241_v29 = vpop.f32.mrf.mxu1  ;;  %2239 = vmatpush.msra.mxu3 %v4959_v53  ;;  %2295 = vmatpush.msra.mxu0 %v5035_v58  ;;  %v5027_v51 = vld [vmem:[%s10633_s7 + $0x638] sm:$0xff] }
 0x385   :  { %v1526_v54 = vadd.f32 %v1484_v3, %v1310_v30  ;;  %v1242_v35 = vadd.f32 %v1241_v29, %v6871_v57  ;;  %1919 = vmatmul.f32.gmra.mxu1 %v7339_v59  ;;  %2037 = vmatmul.f32.gmra.mxu3 %v7339_v59  ;;  %v5026_v57 = vld [vmem:[%s10633_s7 + $0x630] sm:$0xff]  ;;  %v5023_v14 = vld [vmem:[%s10633_s7 + $0x618] sm:$0xff] }
 0x386   :  { %2178 = vmatpush.msrb.mxu2 %v5030_v8  ;;  %2296 = vmatpush.msra.mxu0 %v5031_v11 }
 0x387   :  { %v1568_v4 = vadd.f32 %v7048_v27, %v1526_v54  ;;  %v1527_v55 = vadd.f32 %v1416_v23, %v1242_v35  ;;  %v1419_v58 = vpop.f32.mrf.mxu3 }
 0x388   :  { %2179 = vmatpush.msrb.mxu2 %v5026_v57  ;;  %2297 = vmatpush.msra.mxu0 %v5027_v51 }
 0x389   :  { %v7369_v17 = vmax.f32 %v1568_v4, 0.0  ;;  %v1569_v3 = vadd.f32 %v7042_v43, %v1527_v55 }
 0x38a   :  { %v1312_v42 = vpop.f32.mrf.mxu2  ;;  %2180 = vmatpush.msrb.mxu2 %v5022_v39  ;;  %2298 = vmatpush.msra.mxu0 %v5023_v14 }
 0x38b   :  { %v7378_v30 = vmax.f32 %v1569_v3, 0.0  ;;  %v1313_v62 = vadd.f32 %v1312_v42, %v6877_v12  ;;  %1978 = vmatmul.f32.gmra.mxu2 %v7369_v17  ;;  %2096 = vmatmul.f32.gmra.mxu0 %v7369_v17 }
 0x38c   :  { %v1244_v23 = vpop.f32.mrf.mxu1 }
 0x38d   :  { %10657 = vst [vmem:[#allocation8_spill] sm:$0xff] %v7378_v30  ;;  %v1528_v29 = vadd.f32 %v1487_v26, %v1313_v62  ;;  %v1245_v53 = vadd.f32 %v1244_v23, %v6891_v48  ;;  %1922 = vmatmul.f32.gmra.mxu1 %v7378_v30  ;;  %2040 = vmatmul.f32.gmra.mxu3 %v7378_v30  ;;  %v1490_v48 = vpop.f32.mrf.mxu0 }
 0x38f   :  { %v1570_v12 = vadd.f32 %v7048_v27, %v1528_v29  ;;  %v1529_v54 = vadd.f32 %v1419_v58, %v1245_v53  ;;  %v7411_v26 = vpop.f32.mrf.mxu3 }
 0x390   :  { %10663 = vst [vmem:[#allocation14_spill] sm:$0xff] %v7411_v26 }
 0x391   :  { %v7390_v35 = vmax.f32 %v1570_v12, 0.0  ;;  %v1571_v8 = vadd.f32 %v7042_v43, %v1529_v54 }
 0x392   :  { %v1315_v11 = vpop.f32.mrf.mxu2 }
 0x393   :  { %10658 = vst [vmem:[#allocation9_spill] sm:$0xff] %v7390_v35  ;;  %v7393_v4 = vmax.f32 %v1571_v8, 0.0  ;;  %v1316_v55 = vadd.f32 %v1315_v11, %v6920_v10  ;;  %1981 = vmatmul.f32.gmra.mxu2 %v7390_v35  ;;  %2099 = vmatmul.f32.gmra.mxu0 %v7390_v35 }
 0x394   :  { %v7401_v51 = vpop.f32.mrf.mxu1 }
 0x395   :  { %10659 = vst [vmem:[#allocation10_spill] sm:$0xff] %v7393_v4  ;;  %v1530_v57 = vadd.f32 %v1490_v48, %v1316_v55  ;;  %1925 = vmatmul.f32.gmra.mxu1 %v7393_v4  ;;  %2043 = vmatmul.f32.gmra.mxu3 %v7393_v4  ;;  %v7409_v10 = vpop.f32.mrf.mxu0 }
 0x396   :  { %10660 = vst [vmem:[#allocation11_spill] sm:$0xff] %v7401_v51 }
 0x397   :  { %v1572_v3 = vadd.f32 %v7048_v27, %v1530_v57  ;;  %10662 = vst [vmem:[#allocation13_spill] sm:$0xff] %v7409_v10  ;;  %v7423_v23 = vpop.f32.mrf.mxu3  ;;  %v1674_v10 = vld [vmem:[%s10633_s7 + $0x1e8] sm:$0xff] }
 0x398   :  { %10667 = vst [vmem:[#allocation18_spill] sm:$0xff] %v7423_v23  ;;  %v1673_v23 = vld [vmem:[%s10633_s7 + $0x1e0] sm:$0xff]  ;;  %2460 = vmatpush.msrb.mxu3 %v1674_v10  ;;  %v1670_v10 = vld [vmem:[%s10633_s7 + $0x1c8] sm:$0xff] }
 0x399   :  { %v7403_v39 = vmax.f32 %v1572_v3, 0.0  ;;  %2342 = vmatpush.msra.mxu1 %v1673_v23 }
 0x39a   :  { %v7417_v62 = vpop.f32.mrf.mxu2  ;;  %2461 = vmatpush.msrb.mxu3 %v1670_v10  ;;  %v1662_v10 = vld [vmem:[%s10633_s7 + $0x188] sm:$0xff] }
 0x39b   :  { %10661 = vst [vmem:[#allocation12_spill] sm:$0xff] %v7403_v39  ;;  %1984 = vmatmul.f32.gmra.mxu2 %v7403_v39  ;;  %2102 = vmatmul.f32.gmra.mxu0 %v7403_v39 }
 0x39c   :  { %v7413_v42 = vpop.f32.mrf.mxu1  ;;  %10665 = vst [vmem:[#allocation16_spill] sm:$0xff] %v7417_v62 }
 0x39d   :  { %2122 = vmatmul.f32.vlgmr.msrb.gmra.mxu1 %v7045_v63  ;;  %2240 = vmatmul.f32.vlgmr.msra.gmra.mxu3 %v7045_v63  ;;  %10664 = vst [vmem:[#allocation15_spill] sm:$0xff] %v7413_v42  ;;  %v7421_v14 = vpop.f32.mrf.mxu0 }
 0x39e   :  { %10666 = vst [vmem:[#allocation17_spill] sm:$0xff] %v7421_v14 }
 0x3a2   :  { %v7429_v53 = vpop.f32.mrf.mxu2 }
 0x3a3   :  { %2181 = vmatmul.f32.vlgmr.msrb.gmra.mxu2 %v7054_v46  ;;  %2299 = vmatmul.f32.vlgmr.msra.gmra.mxu0 %v7054_v46  ;;  %10668 = vst [vmem:[#allocation19_spill] sm:$0xff] %v7429_v53 }
 0x3a5   :  { %2125 = vmatmul.f32.gmra.mxu1 %v7057_v45  ;;  %2243 = vmatmul.f32.gmra.mxu3 %v7057_v45 }
 0x3aa   :  { %v1887_v29 = vpop.f32.mrf.mxu1 }
 0x3ab   :  { %2184 = vmatmul.f32.gmra.mxu2 %v7066_v49  ;;  %2302 = vmatmul.f32.gmra.mxu0 %v7066_v49 }
 0x3ad   :  { %2128 = vmatmul.f32.gmra.mxu1 %v7069_v20  ;;  %2246 = vmatmul.f32.gmra.mxu3 %v7069_v20 }
 0x3b0   :  { %v7431_v58 = vpop.f32.mrf.mxu3  ;;  %v7433_v12 = vpop.f32.mrf.mxu0 }
 0x3b2   :  { %v1890_v54 = vpop.f32.mrf.mxu1 }
 0x3b3   :  { %2187 = vmatmul.f32.gmra.mxu2 %v7078_v38  ;;  %2305 = vmatmul.f32.gmra.mxu0 %v7078_v38 }
 0x3b5   :  { %2131 = vmatmul.f32.gmra.mxu1 %v7081_v9  ;;  %2249 = vmatmul.f32.gmra.mxu3 %v7081_v9 }
 0x3b6   :  { %v1946_v8 = vpop.f32.mrf.mxu2 }
 0x3b7   :  { %v7439_v11 = vadd.f32 %v1946_v8, %v1887_v29  ;;  %v1737_v29 = vld [vmem:[%s10633_s7 + $0x3e0] sm:$0xff] }
 0x3b8   :  { %v7441_v55 = vpop.f32.mrf.mxu3  ;;  %v7443_v48 = vpop.f32.mrf.mxu0  ;;  %2401 = vmatpush.msra.mxu2 %v1737_v29 }
 0x3ba   :  { %v1893_v57 = vpop.f32.mrf.mxu1 }
 0x3bb   :  { %2190 = vmatmul.f32.gmra.mxu2 %v7090_v47  ;;  %2308 = vmatmul.f32.gmra.mxu0 %v7090_v47 }
 0x3bd   :  { %2134 = vmatmul.f32.gmra.mxu1 %v7093_v34  ;;  %2252 = vmatmul.f32.gmra.mxu3 %v7093_v34 }
 0x3be   :  { %v1949_v3 = vpop.f32.mrf.mxu2 }
 0x3bf   :  { %v7449_v14 = vadd.f32 %v1949_v3, %v1890_v54  ;;  %v1733_v54 = vld [vmem:[%s10633_s7 + $0x3c0] sm:$0xff] }
 0x3c0   :  { %v7454_v8 = vpop.f32.mrf.mxu3  ;;  %v7456_v53 = vpop.f32.mrf.mxu0  ;;  %2402 = vmatpush.msra.mxu2 %v1733_v54  ;;  %v1669_v54 = vld [vmem:[%s10633_s7 + $0x1c0] sm:$0xff] }
 0x3c1   :  { %2343 = vmatpush.msra.mxu1 %v1669_v54  ;;  %v1665_v54 = vld [vmem:[%s10633_s7 + $0x1a0] sm:$0xff] }
 0x3c2   :  { %v1896_v0 = vpop.f32.mrf.mxu1 }
 0x3c3   :  { %2193 = vmatmul.f32.gmra.mxu2 %v7102_v24  ;;  %2311 = vmatmul.f32.gmra.mxu0 %v7102_v24 }
 0x3c4   :  { %2344 = vmatpush.msra.mxu1 %v1665_v54  ;;  %v1657_v54 = vld [vmem:[%s10633_s7 + $0x160] sm:$0xff] }
 0x3c5   :  { %2137 = vmatmul.f32.gmra.mxu1 %v7105_v22  ;;  %2255 = vmatmul.f32.gmra.mxu3 %v7105_v22 }
 0x3c6   :  { %v1952_v3 = vpop.f32.mrf.mxu2 }
 0x3c7   :  { %v7468_v29 = vadd.f32 %v1952_v3, %v1893_v57  ;;  %v1729_v57 = vld [vmem:[%s10633_s7 + $0x3a0] sm:$0xff]  ;;  %v1738_v3 = vld [vmem:[%s10633_s7 + $0x3e8] sm:$0xff] }
 0x3c8   :  { %v7473_v42 = vpop.f32.mrf.mxu3  ;;  %v7475_v56 = vpop.f32.mrf.mxu0  ;;  %2403 = vmatpush.msra.mxu2 %v1729_v57  ;;  %2519 = vmatpush.msrb.mxu0 %v1738_v3  ;;  %v1666_v57 = vld [vmem:[%s10633_s7 + $0x1a8] sm:$0xff]  ;;  %v1661_v3 = vld [vmem:[%s10633_s7 + $0x180] sm:$0xff] }
 0x3c9   :  { %10669 = vst [vmem:[#allocation20_spill] sm:$0xff] %v7468_v29  ;;  %2462 = vmatpush.msrb.mxu3 %v1666_v57  ;;  %v1658_v57 = vld [vmem:[%s10633_s7 + $0x168] sm:$0xff]  ;;  %2345 = vmatpush.msra.mxu1 %v1661_v3  ;;  %v1649_v3 = vld [vmem:[%s10633_s7 + $0x120] sm:$0xff] }
 0x3ca   :  { %10670 = vst [vmem:[#allocation21_spill] sm:$0xff] %v7473_v42  ;;  %v1899_v23 = vpop.f32.mrf.mxu1  ;;  %v1713_v29 = vld [vmem:[%s10633_s7 + $0x320] sm:$0xff] }
 0x3cb   :  { %10671 = vst [vmem:[#allocation22_spill] sm:$0xff] %v7475_v56  ;;  %2196 = vmatmul.f32.gmra.mxu2 %v7117_v5  ;;  %2314 = vmatmul.f32.gmra.mxu0 %v7117_v5 }
 0x3cc   :  { %2463 = vmatpush.msrb.mxu3 %v1662_v10  ;;  %2346 = vmatpush.msra.mxu1 %v1657_v54  ;;  %v1721_v10 = vld [vmem:[%s10633_s7 + $0x360] sm:$0xff]  ;;  %v1650_v54 = vld [vmem:[%s10633_s7 + $0x128] sm:$0xff] }
 0x3cd   :  { %2140 = vmatmul.f32.gmra.mxu1 %v7120_v50  ;;  %2258 = vmatmul.f32.gmra.mxu3 %v7120_v50 }
 0x3ce   :  { %v1955_v62 = vpop.f32.mrf.mxu2  ;;  %2464 = vmatpush.msrb.mxu3 %v1658_v57  ;;  %v1726_v57 = vld [vmem:[%s10633_s7 + $0x388] sm:$0xff] }
 0x3cf   :  { %v7493_v19 = vadd.f32 %v1955_v62, %v1896_v0  ;;  %v1725_v0 = vld [vmem:[%s10633_s7 + $0x380] sm:$0xff]  ;;  %v1734_v62 = vld [vmem:[%s10633_s7 + $0x3c8] sm:$0xff] }
 0x3d0   :  { %v7495_v26 = vpop.f32.mrf.mxu3  ;;  %v7497_v51 = vpop.f32.mrf.mxu0  ;;  %2404 = vmatpush.msra.mxu2 %v1725_v0  ;;  %2520 = vmatpush.msrb.mxu0 %v1734_v62  ;;  %v1730_v0 = vld [vmem:[%s10633_s7 + $0x3a8] sm:$0xff]  ;;  %v1653_v62 = vld [vmem:[%s10633_s7 + $0x140] sm:$0xff] }
 0x3d1   :  { %10672 = vst [vmem:[#allocation23_spill] sm:$0xff] %v7493_v19  ;;  %2347 = vmatpush.msra.mxu1 %v1653_v62  ;;  %v1646_v62 = vld [vmem:[%s10633_s7 + $0x108] sm:$0xff] }
 0x3d2   :  { %10673 = vst [vmem:[#allocation24_spill] sm:$0xff] %v7495_v26  ;;  %v1902_v15 = vpop.f32.mrf.mxu1  ;;  %2521 = vmatpush.msrb.mxu0 %v1730_v0  ;;  %v1645_v0 = vld [vmem:[%s10633_s7 + $0x100] sm:$0xff]  ;;  %2405 = vmatpush.msra.mxu2 %v1721_v10 }
 0x3d3   :  { %10674 = vst [vmem:[#allocation25_spill] sm:$0xff] %v7497_v51  ;;  %2199 = vmatmul.f32.gmra.mxu2 %v7144_v37  ;;  %2317 = vmatmul.f32.gmra.mxu0 %v7144_v37 }
 0x3d4   :  { %2348 = vmatpush.msra.mxu1 %v1649_v3  ;;  %2522 = vmatpush.msrb.mxu0 %v1726_v57  ;;  %v1641_v3 = vld [vmem:[%s10633_s7 + $0xe0] sm:$0xff]  ;;  %v1638_v57 = vld [vmem:[%s10633_s7 + $0xc8] sm:$0xff] }
 0x3d5   :  { %2143 = vmatmul.f32.gmra.mxu1 %v7150_v52  ;;  %2261 = vmatmul.f32.gmra.mxu3 %v7150_v52 }
 0x3d6   :  { %v1958_v51 = vpop.f32.mrf.mxu2  ;;  %2349 = vmatpush.msra.mxu1 %v1645_v0  ;;  %v1714_v0 = vld [vmem:[%s10633_s7 + $0x328] sm:$0xff] }
 0x3d7   :  { %v7527_v26 = vadd.f32 %v1958_v51, %v1899_v23  ;;  %v1654_v51 = vld [vmem:[%s10633_s7 + $0x148] sm:$0xff] }
 0x3d8   :  { %v7529_v19 = vpop.f32.mrf.mxu3  ;;  %v7531_v56 = vpop.f32.mrf.mxu0  ;;  %2465 = vmatpush.msrb.mxu3 %v1654_v51  ;;  %v1722_v51 = vld [vmem:[%s10633_s7 + $0x368] sm:$0xff]  ;;  %2350 = vmatpush.msra.mxu1 %v1641_v3 }
 0x3d9   :  { %10675 = vst [vmem:[#allocation26_spill] sm:$0xff] %v7527_v26  ;;  %2523 = vmatpush.msrb.mxu0 %v1722_v51  ;;  %v1634_v51 = vld [vmem:[%s10633_s7 + $0xa8] sm:$0xff] }
 0x3da   :  { %10676 = vst [vmem:[#allocation27_spill] sm:$0xff] %v7529_v19  ;;  %v1905_v23 = vpop.f32.mrf.mxu1  ;;  %v1717_v19 = vld [vmem:[%s10633_s7 + $0x340] sm:$0xff]  ;;  %2466 = vmatpush.msrb.mxu3 %v1650_v54 }
 0x3db   :  { %10677 = vst [vmem:[#allocation28_spill] sm:$0xff] %v7531_v56  ;;  %2202 = vmatmul.f32.gmra.mxu2 %v7183_v16  ;;  %2320 = vmatmul.f32.gmra.mxu0 %v7183_v16 }
 0x3dc   :  { %2406 = vmatpush.msra.mxu2 %v1717_v19  ;;  %2467 = vmatpush.msrb.mxu3 %v1646_v62  ;;  %v1637_v19 = vld [vmem:[%s10633_s7 + $0xc0] sm:$0xff] }
 0x3dd   :  { %2146 = vmatmul.f32.gmra.mxu1 %v7195_v40  ;;  %2264 = vmatmul.f32.gmra.mxu3 %v7195_v40  ;;  %v1633_v62 = vld [vmem:[%s10633_s7 + $0xa0] sm:$0xff] }
 0x3de   :  { %v1961_v56 = vpop.f32.mrf.mxu2  ;;  %2407 = vmatpush.msra.mxu2 %v1713_v29  ;;  %v1709_v29 = vld [vmem:[%s10633_s7 + $0x300] sm:$0xff]  ;;  %2351 = vmatpush.msra.mxu1 %v1637_v19  ;;  %v1630_v19 = vld [vmem:[%s10633_s7 + $0x88] sm:$0xff] }
 0x3df   :  { %v7570_v26 = vadd.f32 %v1961_v56, %v1902_v15  ;;  %v1642_v15 = vld [vmem:[%s10633_s7 + $0xe8] sm:$0xff] }
 0x3e0   :  { %v7575_v10 = vpop.f32.mrf.mxu3  ;;  %v7577_v42 = vpop.f32.mrf.mxu0  ;;  %v1718_v56 = vld [vmem:[%s10633_s7 + $0x348] sm:$0xff]  ;;  %2468 = vmatpush.msrb.mxu3 %v1642_v15  ;;  %2408 = vmatpush.msra.mxu2 %v1709_v29 }
 0x3e1   :  { %10678 = vst [vmem:[#allocation29_spill] sm:$0xff] %v7570_v26  ;;  %2524 = vmatpush.msrb.mxu0 %v1718_v56  ;;  %v1710_v15 = vld [vmem:[%s10633_s7 + $0x308] sm:$0xff]  ;;  %v1705_v56 = vld [vmem:[%s10633_s7 + $0x2e0] sm:$0xff]  ;;  %2352 = vmatpush.msra.mxu1 %v1633_v62 }
 0x3e2   :  { %10679 = vst [vmem:[#allocation30_spill] sm:$0xff] %v7575_v10  ;;  %v1908_v54 = vpop.f32.mrf.mxu1  ;;  %2469 = vmatpush.msrb.mxu3 %v1638_v57  ;;  %v1629_v10 = vld [vmem:[%s10633_s7 + $0x80] sm:$0xff]  ;;  %2409 = vmatpush.msra.mxu2 %v1705_v56  ;;  %v1622_v56 = vld [vmem:[%s10633_s7 + $0x48] sm:$0xff] }
 0x3e3   :  { %10680 = vst [vmem:[#allocation31_spill] sm:$0xff] %v7577_v42  ;;  %2205 = vmatmul.f32.gmra.mxu2 %v7234_v60  ;;  %2323 = vmatmul.f32.gmra.mxu0 %v7234_v60  ;;  %v1701_v62 = vld [vmem:[%s10633_s7 + $0x2c0] sm:$0xff] }
 0x3e4   :  { %2525 = vmatpush.msrb.mxu0 %v1714_v0  ;;  %2470 = vmatpush.msrb.mxu3 %v1634_v51  ;;  %v1625_v0 = vld [vmem:[%s10633_s7 + $0x60] sm:$0xff]  ;;  %v1626_v51 = vld [vmem:[%s10633_s7 + $0x68] sm:$0xff] }
 0x3e5   :  { %2149 = vmatmul.f32.gmra.mxu1 %v7243_v13  ;;  %2267 = vmatmul.f32.gmra.mxu3 %v7243_v13 }
 0x3e6   :  { %v1964_v3 = vpop.f32.mrf.mxu2  ;;  %2526 = vmatpush.msrb.mxu0 %v1710_v15  ;;  %2353 = vmatpush.msra.mxu1 %v1629_v10  ;;  %v1621_v10 = vld [vmem:[%s10633_s7 + $0x40] sm:$0xff] }
 0x3e7   :  { %v7616_v42 = vadd.f32 %v1964_v3, %v1905_v23  ;;  %v1706_v23 = vld [vmem:[%s10633_s7 + $0x2e8] sm:$0xff]  ;;  %2471 = vmatpush.msrb.mxu3 %v1630_v19  ;;  %v1697_v15 = vld [vmem:[%s10633_s7 + $0x2a0] sm:$0xff]  ;;  %2410 = vmatpush.msra.mxu2 %v1701_v62 }
 0x3e8   :  { %v7624_v57 = vpop.f32.mrf.mxu3  ;;  %v7626_v26 = vpop.f32.mrf.mxu0  ;;  %2527 = vmatpush.msrb.mxu0 %v1706_v23  ;;  %2354 = vmatpush.msra.mxu1 %v1625_v0  ;;  %v1702_v3 = vld [vmem:[%s10633_s7 + $0x2c8] sm:$0xff]  ;;  %v1617_v0 = vld [vmem:[%s10633_s7 + $0x20] sm:$0xff] }
 0x3e9   :  { %10681 = vst [vmem:[#allocation32_spill] sm:$0xff] %v7616_v42  ;;  %2472 = vmatpush.msrb.mxu3 %v1626_v51  ;;  %v1698_v23 = vld [vmem:[%s10633_s7 + $0x2a8] sm:$0xff]  ;;  %2411 = vmatpush.msra.mxu2 %v1697_v15  ;;  %v1689_v15 = vld [vmem:[%s10633_s7 + $0x260] sm:$0xff] }
 0x3ea   :  { %10682 = vst [vmem:[#allocation33_spill] sm:$0xff] %v7624_v57  ;;  %v1911_v29 = vpop.f32.mrf.mxu1  ;;  %2528 = vmatpush.msrb.mxu0 %v1702_v3  ;;  %2355 = vmatpush.msra.mxu1 %v1621_v10  ;;  %v1693_v57 = vld [vmem:[%s10633_s7 + $0x280] sm:$0xff]  ;;  %v1618_v62 = vld [vmem:[%s10633_s7 + $0x28] sm:$0xff] }
 0x3eb   :  { %10683 = vst [vmem:[#allocation34_spill] sm:$0xff] %v7626_v26  ;;  %2208 = vmatmul.f32.gmra.mxu2 %v7282_v1  ;;  %2326 = vmatmul.f32.gmra.mxu0 %v7282_v1  ;;  %v1613_v3 = vld [vmem:[%s10633_s7] sm:$0xff] }
 0x3ec   :  { %2473 = vmatpush.msrb.mxu3 %v1622_v56  ;;  %2529 = vmatpush.msrb.mxu0 %v1698_v23  ;;  %v1614_v56 = vld [vmem:[%s10633_s7 + $0x8] sm:$0xff] }
 0x3ed   :  { %2152 = vmatmul.f32.gmra.mxu1 %v7291_v21  ;;  %2270 = vmatmul.f32.gmra.mxu3 %v7291_v21 }
 0x3ee   :  { %v1967_v19 = vpop.f32.mrf.mxu2  ;;  %2356 = vmatpush.msra.mxu1 %v1617_v0  ;;  %2412 = vmatpush.msra.mxu2 %v1693_v57  ;;  %v1685_v57 = vld [vmem:[%s10633_s7 + $0x240] sm:$0xff]  ;;  %v1686_v0 = vld [vmem:[%s10633_s7 + $0x248] sm:$0xff] }
 0x3ef   :  { %v7662_v26 = vadd.f32 %v1967_v19, %v1908_v54  ;;  %v1694_v54 = vld [vmem:[%s10633_s7 + $0x288] sm:$0xff]  ;;  %2474 = vmatpush.msrb.mxu3 %v1618_v62 }
 0x3f0   :  { %v7670_v51 = vpop.f32.mrf.mxu3  ;;  %v7672_v42 = vpop.f32.mrf.mxu0  ;;  %2530 = vmatpush.msrb.mxu0 %v1694_v54  ;;  %2357 = vmatpush.msra.mxu1 %v1613_v3  ;;  %v1690_v19 = vld [vmem:[%s10633_s7 + $0x268] sm:$0xff]  ;;  %v1681_v54 = vld [vmem:[%s10633_s7 + $0x220] sm:$0xff] }
 0x3f1   :  { %10684 = vst [vmem:[#allocation35_spill] sm:$0xff] %v7672_v42  ;;  %2413 = vmatpush.msra.mxu2 %v1689_v15  ;;  %2475 = vmatpush.msrb.mxu3 %v1614_v56  ;;  %v1682_v15 = vld [vmem:[%s10633_s7 + $0x228] sm:$0xff] }
 0x3f2   :  { %v1914_v10 = vpop.f32.mrf.mxu1  ;;  %2531 = vmatpush.msrb.mxu0 %v1690_v19  ;;  %v1678_v19 = vld [vmem:[%s10633_s7 + $0x208] sm:$0xff] }
 0x3f3   :  { %2211 = vmatmul.f32.gmra.mxu2 %v7330_v61  ;;  %2329 = vmatmul.f32.gmra.mxu0 %v7330_v61 }
 0x3f4   :  { %2414 = vmatpush.msra.mxu2 %v1685_v57  ;;  %2532 = vmatpush.msrb.mxu0 %v1686_v0 }
 0x3f5   :  { %2155 = vmatmul.f32.gmra.mxu1 %v7339_v59  ;;  %2273 = vmatmul.f32.gmra.mxu3 %v7339_v59 }
 0x3f6   :  { %v1970_v23 = vpop.f32.mrf.mxu2  ;;  %2415 = vmatpush.msra.mxu2 %v1681_v54  ;;  %2533 = vmatpush.msrb.mxu0 %v1682_v15  ;;  %v1271_v15 = vadd.f32 %v7030_v41, %v6717_v31 }
 0x3f7   :  { %v7699_v62 = vadd.f32 %v1970_v23, %v1911_v29  ;;  %v1677_v29 = vld [vmem:[%s10633_s7 + $0x200] sm:$0xff]  ;;  %v1200_v23 = vadd.f32 %v7023_v36, %v6712_v28 }
 0x3f8   :  { %v7704_v3 = vpop.f32.mrf.mxu3  ;;  %v7706_v42 = vpop.f32.mrf.mxu0  ;;  %2416 = vmatpush.msra.mxu2 %v1677_v29  ;;  %2534 = vmatpush.msrb.mxu0 %v1678_v19 }
 0x3f9   :  { %10685 = vst [vmem:[#allocation36_spill] sm:$0xff] %v7699_v62  ;;  %v1499_v62 = vadd.f32 %v6875_v44, %v1200_v23 }
 0x3fa   :  { %10686 = vst [vmem:[#allocation37_spill] sm:$0xff] %v7704_v3  ;;  %v1917_v56 = vpop.f32.mrf.mxu1 }
 0x3fb   :  { %10687 = vst [vmem:[#allocation38_spill] sm:$0xff] %v7706_v42  ;;  %2214 = vmatmul.f32.gmra.mxu2 %v7369_v17  ;;  %2332 = vmatmul.f32.gmra.mxu0 %v7369_v17  ;;  %v1541_v36 = vadd.f32 %v7042_v43, %v1499_v62 }
 0x3fd   :  { %2158 = vmatmul.f32.gmra.mxu1 %v7378_v30  ;;  %2276 = vmatmul.f32.gmra.mxu3 %v7378_v30  ;;  %v7746_v31 = vmax.f32 %v1541_v36, 0.0 }
 0x3fe   :  { %v1973_v57 = vpop.f32.mrf.mxu2 }
 0x3ff   :  { %v7723_v0 = vadd.f32 %v1973_v57, %v1914_v10  ;;  %v1203_v10 = vadd.f32 %v7032_v25, %v6720_v7  ;;  %v1500_v57 = vadd.f32 %v6899_v6, %v1271_v15  ;;  %v1274_v7 = vadd.f32 %v7036_v32, %v6727_v18 }
 0x400   :  { %v7725_v54 = vpop.f32.mrf.mxu3  ;;  %v7727_v42 = vpop.f32.mrf.mxu0 }
 0x401   :  { %v1501_v41 = vadd.f32 %v6918_v33, %v1203_v10  ;;  %v1542_v62 = vadd.f32 %v7048_v27, %v1500_v57  ;;  %v1502_v36 = vadd.f32 %v6962_v2, %v1274_v7 }
 0x402   :  { %v1920_v3 = vpop.f32.mrf.mxu1 }
 0x403   :  { %2217 = vmatmul.f32.gmra.mxu2 %v7390_v35  ;;  %2335 = vmatmul.f32.gmra.mxu0 %v7390_v35  ;;  %v1543_v6 = vadd.f32 %v7042_v43, %v1501_v41  ;;  %v1544_v18 = vadd.f32 %v7048_v27, %v1502_v36 }
 0x405   :  { %2161 = vmatmul.f32.gmra.mxu1 %v7393_v4  ;;  %2279 = vmatmul.f32.gmra.mxu3 %v7393_v4  ;;  %v7766_v57 = vmax.f32 %v1543_v6, 0.0  ;;  %v7779_v2 = vmax.f32 %v1544_v18, 0.0 }
 0x406   :  { %v1976_v28 = vpop.f32.mrf.mxu2 }
 0x407   :  { %v7739_v29 = vadd.f32 %v1976_v28, %v1917_v56  ;;  %v7763_v28 = vmax.f32 %v1542_v62, 0.0 }
 0x408   :  { %v7741_v44 = vpop.f32.mrf.mxu3  ;;  %v7743_v19 = vpop.f32.mrf.mxu0 }
 0x40a   :  { %v1923_v23 = vpop.f32.mrf.mxu1 }
 0x40b   :  { %2220 = vmatmul.f32.gmra.mxu2 %v7403_v39  ;;  %2338 = vmatmul.f32.gmra.mxu0 %v7403_v39 }
 0x40d   :  { %2358 = vmatmul.f32.vlgmr.msra.gmra.mxu1 %v7746_v31  ;;  %2476 = vmatmul.f32.vlgmr.msrb.gmra.mxu3 %v7746_v31 }
 0x40e   :  { %v1979_v25 = vpop.f32.mrf.mxu2 }
 0x40f   :  { %v7757_v56 = vadd.f32 %v1979_v25, %v1920_v3 }
 0x410   :  { %v7759_v15 = vpop.f32.mrf.mxu3  ;;  %v7761_v33 = vpop.f32.mrf.mxu0 }
 0x412   :  { %v1926_v10 = vpop.f32.mrf.mxu1 }
 0x413   :  { %2417 = vmatmul.f32.vlgmr.msra.gmra.mxu2 %v7763_v28  ;;  %2535 = vmatmul.f32.vlgmr.msrb.gmra.mxu0 %v7763_v28 }
 0x415   :  { %2361 = vmatmul.f32.gmra.mxu1 %v7766_v57  ;;  %2479 = vmatmul.f32.gmra.mxu3 %v7766_v57 }
 0x416   :  { %v1982_v32 = vpop.f32.mrf.mxu2 }
 0x417   :  { %v7773_v3 = vadd.f32 %v1982_v32, %v1923_v23 }
 0x418   :  { %v7775_v41 = vpop.f32.mrf.mxu3  ;;  %v7777_v62 = vpop.f32.mrf.mxu0 }
 0x41a   :  { %v2123_v7 = vpop.f32.mrf.mxu1 }
 0x41b   :  { %2420 = vmatmul.f32.gmra.mxu2 %v7779_v2  ;;  %2538 = vmatmul.f32.gmra.mxu0 %v7779_v2 }
 0x41d   :  { %2364 = vmatmul.f32.gmra.mxu1 %v7045_v63  ;;  %2482 = vmatmul.f32.gmra.mxu3 %v7045_v63 }
 0x41e   :  { %v1985_v25 = vpop.f32.mrf.mxu2 }
 0x41f   :  { %v7785_v6 = vadd.f32 %v1985_v25, %v1926_v10 }
 0x420   :  { %v7787_v23 = vpop.f32.mrf.mxu3  ;;  %v7789_v36 = vpop.f32.mrf.mxu0 }
 0x421   :  { %10688 = vst [vmem:[#allocation39_spill] sm:$0xff] %v7785_v6  ;;  %v1715_v6 = vld [vmem:[%s10633_s7 + $0x330] sm:$0xff] }
 0x422   :  { %10689 = vst [vmem:[#allocation40_spill] sm:$0xff] %v7787_v23  ;;  %v2126_v32 = vpop.f32.mrf.mxu1 }
 0x423   :  { %10690 = vst [vmem:[#allocation41_spill] sm:$0xff] %v7789_v36  ;;  %2423 = vmatmul.f32.gmra.mxu2 %v7054_v46  ;;  %2541 = vmatmul.f32.gmra.mxu0 %v7054_v46 }
 0x425   :  { %2367 = vmatmul.f32.gmra.mxu1 %v7057_v45  ;;  %2485 = vmatmul.f32.gmra.mxu3 %v7057_v45 }
 0x426   :  { %v2182_v18 = vpop.f32.mrf.mxu2 }
 0x427   :  { %v7795_v27 = vadd.f32 %v2182_v18, %v2123_v7  ;;  %v1739_v7 = vld [vmem:[%s10633_s7 + $0x3f0] sm:$0xff] }
 0x428   :  { %v7797_v39 = vpop.f32.mrf.mxu3  ;;  %v7799_v10 = vpop.f32.mrf.mxu0  ;;  %2637 = vmatpush.msrb.mxu2 %v1739_v7 }
 0x429   :  { %10691 = vst [vmem:[#allocation42_spill] sm:$0xff] %v7795_v27 }
 0x42a   :  { %10692 = vst [vmem:[#allocation43_spill] sm:$0xff] %v7797_v39  ;;  %v2129_v25 = vpop.f32.mrf.mxu1 }
 0x42b   :  { %10693 = vst [vmem:[#allocation44_spill] sm:$0xff] %v7799_v10  ;;  %2426 = vmatmul.f32.gmra.mxu2 %v7066_v49  ;;  %2544 = vmatmul.f32.gmra.mxu0 %v7066_v49  ;;  %v1675_v10 = vld [vmem:[%s10633_s7 + $0x1f0] sm:$0xff] }
 0x42c   :  { %2578 = vmatpush.msrb.mxu1 %v1675_v10 }
 0x42d   :  { %2370 = vmatmul.f32.gmra.mxu1 %v7069_v20  ;;  %2488 = vmatmul.f32.gmra.mxu3 %v7069_v20 }
 0x42e   :  { %v2185_v43 = vpop.f32.mrf.mxu2 }
 0x42f   :  { %v7805_v4 = vadd.f32 %v2185_v43, %v2126_v32  ;;  %v1735_v43 = vld [vmem:[%s10633_s7 + $0x3d0] sm:$0xff] }
 0x430   :  { %v7810_v18 = vpop.f32.mrf.mxu3  ;;  %v7812_v35 = vpop.f32.mrf.mxu0  ;;  %2638 = vmatpush.msrb.mxu2 %v1735_v43  ;;  %v1671_v43 = vld [vmem:[%s10633_s7 + $0x1d0] sm:$0xff] }
 0x431   :  { %10694 = vst [vmem:[#allocation45_spill] sm:$0xff] %v7805_v4  ;;  %2579 = vmatpush.msrb.mxu1 %v1671_v43  ;;  %v1667_v43 = vld [vmem:[%s10633_s7 + $0x1b0] sm:$0xff] }
 0x432   :  { %10695 = vst [vmem:[#allocation46_spill] sm:$0xff] %v7810_v18  ;;  %v2132_v30 = vpop.f32.mrf.mxu1 }
 0x433   :  { %10696 = vst [vmem:[#allocation47_spill] sm:$0xff] %v7812_v35  ;;  %2429 = vmatmul.f32.gmra.mxu2 %v7078_v38  ;;  %2547 = vmatmul.f32.gmra.mxu0 %v7078_v38  ;;  %v1676_v35 = vld [vmem:[%s10633_s7 + $0x1f8] sm:$0xff] }
 0x434   :  { %2696 = vmatpush.msra.mxu3 %v1676_v35  ;;  %v1672_v35 = vld [vmem:[%s10633_s7 + $0x1d8] sm:$0xff]  ;;  %2580 = vmatpush.msrb.mxu1 %v1667_v43  ;;  %v1659_v43 = vld [vmem:[%s10633_s7 + $0x170] sm:$0xff] }
 0x435   :  { %2373 = vmatmul.f32.gmra.mxu1 %v7081_v9  ;;  %2491 = vmatmul.f32.gmra.mxu3 %v7081_v9 }
 0x436   :  { %v2188_v32 = vpop.f32.mrf.mxu2  ;;  %2697 = vmatpush.msra.mxu3 %v1672_v35  ;;  %v1664_v35 = vld [vmem:[%s10633_s7 + $0x198] sm:$0xff] }
 0x437   :  { %v7824_v7 = vadd.f32 %v2188_v32, %v2129_v25  ;;  %v1731_v25 = vld [vmem:[%s10633_s7 + $0x3b0] sm:$0xff]  ;;  %v1740_v32 = vld [vmem:[%s10633_s7 + $0x3f8] sm:$0xff] }
 0x438   :  { %v7829_v18 = vpop.f32.mrf.mxu3  ;;  %v7831_v4 = vpop.f32.mrf.mxu0  ;;  %2639 = vmatpush.msrb.mxu2 %v1731_v25  ;;  %2755 = vmatpush.msra.mxu0 %v1740_v32  ;;  %v1668_v25 = vld [vmem:[%s10633_s7 + $0x1b8] sm:$0xff]  ;;  %v1663_v32 = vld [vmem:[%s10633_s7 + $0x190] sm:$0xff] }
 0x439   :  { %10697 = vst [vmem:[#allocation48_spill] sm:$0xff] %v7824_v7  ;;  %2698 = vmatpush.msra.mxu3 %v1668_v25  ;;  %v1660_v25 = vld [vmem:[%s10633_s7 + $0x178] sm:$0xff]  ;;  %2581 = vmatpush.msrb.mxu1 %v1663_v32  ;;  %v1651_v32 = vld [vmem:[%s10633_s7 + $0x130] sm:$0xff] }
 0x43a   :  { %10698 = vst [vmem:[#allocation49_spill] sm:$0xff] %v7829_v18  ;;  %v2135_v10 = vpop.f32.mrf.mxu1 }
 0x43b   :  { %10699 = vst [vmem:[#allocation50_spill] sm:$0xff] %v7831_v4  ;;  %2432 = vmatmul.f32.gmra.mxu2 %v7090_v47  ;;  %2550 = vmatmul.f32.gmra.mxu0 %v7090_v47 }
 0x43c   :  { %2699 = vmatpush.msra.mxu3 %v1664_v35  ;;  %2582 = vmatpush.msrb.mxu1 %v1659_v43  ;;  %v1723_v35 = vld [vmem:[%s10633_s7 + $0x370] sm:$0xff]  ;;  %v1652_v43 = vld [vmem:[%s10633_s7 + $0x138] sm:$0xff] }
 0x43d   :  { %2376 = vmatmul.f32.gmra.mxu1 %v7093_v34  ;;  %2494 = vmatmul.f32.gmra.mxu3 %v7093_v34 }
 0x43e   :  { %v2191_v4 = vpop.f32.mrf.mxu2  ;;  %2700 = vmatpush.msra.mxu3 %v1660_v25  ;;  %v1728_v25 = vld [vmem:[%s10633_s7 + $0x398] sm:$0xff] }
 0x43f   :  { %v7849_v18 = vadd.f32 %v2191_v4, %v2132_v30  ;;  %v1727_v30 = vld [vmem:[%s10633_s7 + $0x390] sm:$0xff]  ;;  %v1736_v4 = vld [vmem:[%s10633_s7 + $0x3d8] sm:$0xff] }
 0x440   :  { %v7851_v7 = vpop.f32.mrf.mxu3  ;;  %v7853_v39 = vpop.f32.mrf.mxu0  ;;  %2640 = vmatpush.msrb.mxu2 %v1727_v30  ;;  %2756 = vmatpush.msra.mxu0 %v1736_v4  ;;  %v1732_v30 = vld [vmem:[%s10633_s7 + $0x3b8] sm:$0xff]  ;;  %v1655_v4 = vld [vmem:[%s10633_s7 + $0x150] sm:$0xff] }
 0x441   :  { %10700 = vst [vmem:[#allocation51_spill] sm:$0xff] %v7849_v18  ;;  %2583 = vmatpush.msrb.mxu1 %v1655_v4  ;;  %v1648_v4 = vld [vmem:[%s10633_s7 + $0x118] sm:$0xff] }
 0x442   :  { %10701 = vst [vmem:[#allocation52_spill] sm:$0xff] %v7851_v7  ;;  %v2138_v27 = vpop.f32.mrf.mxu1  ;;  %2757 = vmatpush.msra.mxu0 %v1732_v30  ;;  %v1647_v30 = vld [vmem:[%s10633_s7 + $0x110] sm:$0xff]  ;;  %2641 = vmatpush.msrb.mxu2 %v1723_v35 }
 0x443   :  { %10702 = vst [vmem:[#allocation53_spill] sm:$0xff] %v7853_v39  ;;  %2435 = vmatmul.f32.gmra.mxu2 %v7102_v24  ;;  %2553 = vmatmul.f32.gmra.mxu0 %v7102_v24 }
 0x444   :  { %2584 = vmatpush.msrb.mxu1 %v1651_v32  ;;  %2758 = vmatpush.msra.mxu0 %v1728_v25  ;;  %v1643_v32 = vld [vmem:[%s10633_s7 + $0xf0] sm:$0xff]  ;;  %v1640_v25 = vld [vmem:[%s10633_s7 + $0xd8] sm:$0xff] }
 0x445   :  { %2379 = vmatmul.f32.gmra.mxu1 %v7105_v22  ;;  %2497 = vmatmul.f32.gmra.mxu3 %v7105_v22 }
 0x446   :  { %v2194_v39 = vpop.f32.mrf.mxu2  ;;  %2585 = vmatpush.msrb.mxu1 %v1647_v30  ;;  %v1716_v30 = vld [vmem:[%s10633_s7 + $0x338] sm:$0xff] }
 0x447   :  { %v7883_v7 = vadd.f32 %v2194_v39, %v2135_v10  ;;  %v1656_v39 = vld [vmem:[%s10633_s7 + $0x158] sm:$0xff] }
 0x448   :  { %v7885_v18 = vpop.f32.mrf.mxu3  ;;  %v7887_v36 = vpop.f32.mrf.mxu0  ;;  %2701 = vmatpush.msra.mxu3 %v1656_v39  ;;  %v1724_v39 = vld [vmem:[%s10633_s7 + $0x378] sm:$0xff]  ;;  %2586 = vmatpush.msrb.mxu1 %v1643_v32 }
 0x449   :  { %10703 = vst [vmem:[#allocation54_spill] sm:$0xff] %v7883_v7  ;;  %2759 = vmatpush.msra.mxu0 %v1724_v39  ;;  %v1636_v39 = vld [vmem:[%s10633_s7 + $0xb8] sm:$0xff] }
 0x44a   :  { %10704 = vst [vmem:[#allocation55_spill] sm:$0xff] %v7885_v18  ;;  %v2141_v10 = vpop.f32.mrf.mxu1  ;;  %v1719_v18 = vld [vmem:[%s10633_s7 + $0x350] sm:$0xff]  ;;  %2702 = vmatpush.msra.mxu3 %v1652_v43 }
 0x44b   :  { %10705 = vst [vmem:[#allocation56_spill] sm:$0xff] %v7887_v36  ;;  %2438 = vmatmul.f32.gmra.mxu2 %v7117_v5  ;;  %2556 = vmatmul.f32.gmra.mxu0 %v7117_v5 }
 0x44c   :  { %2642 = vmatpush.msrb.mxu2 %v1719_v18  ;;  %2703 = vmatpush.msra.mxu3 %v1648_v4  ;;  %v1639_v18 = vld [vmem:[%s10633_s7 + $0xd0] sm:$0xff] }
 0x44d   :  { %2382 = vmatmul.f32.gmra.mxu1 %v7120_v50  ;;  %2500 = vmatmul.f32.gmra.mxu3 %v7120_v50  ;;  %v1635_v4 = vld [vmem:[%s10633_s7 + $0xb0] sm:$0xff] }
 0x44e   :  { %v2197_v36 = vpop.f32.mrf.mxu2  ;;  %2643 = vmatpush.msrb.mxu2 %v1715_v6  ;;  %v1711_v6 = vld [vmem:[%s10633_s7 + $0x310] sm:$0xff]  ;;  %2587 = vmatpush.msrb.mxu1 %v1639_v18  ;;  %v1632_v18 = vld [vmem:[%s10633_s7 + $0x98] sm:$0xff] }
 0x44f   :  { %v7926_v7 = vadd.f32 %v2197_v36, %v2138_v27  ;;  %v1644_v27 = vld [vmem:[%s10633_s7 + $0xf8] sm:$0xff] }
 0x450   :  { %v7931_v35 = vpop.f32.mrf.mxu3  ;;  %v7933_v23 = vpop.f32.mrf.mxu0  ;;  %v1720_v36 = vld [vmem:[%s10633_s7 + $0x358] sm:$0xff]  ;;  %2704 = vmatpush.msra.mxu3 %v1644_v27  ;;  %2644 = vmatpush.msrb.mxu2 %v1711_v6 }
 0x451   :  { %10706 = vst [vmem:[#allocation57_spill] sm:$0xff] %v7926_v7  ;;  %2760 = vmatpush.msra.mxu0 %v1720_v36  ;;  %v1712_v27 = vld [vmem:[%s10633_s7 + $0x318] sm:$0xff]  ;;  %v1707_v36 = vld [vmem:[%s10633_s7 + $0x2f0] sm:$0xff]  ;;  %2588 = vmatpush.msrb.mxu1 %v1635_v4 }
 0x452   :  { %10707 = vst [vmem:[#allocation58_spill] sm:$0xff] %v7931_v35  ;;  %v2144_v43 = vpop.f32.mrf.mxu1  ;;  %2705 = vmatpush.msra.mxu3 %v1640_v25  ;;  %v1631_v35 = vld [vmem:[%s10633_s7 + $0x90] sm:$0xff]  ;;  %2645 = vmatpush.msrb.mxu2 %v1707_v36  ;;  %v1624_v36 = vld [vmem:[%s10633_s7 + $0x58] sm:$0xff] }
 0x453   :  { %10708 = vst [vmem:[#allocation59_spill] sm:$0xff] %v7933_v23  ;;  %2441 = vmatmul.f32.gmra.mxu2 %v7144_v37  ;;  %2559 = vmatmul.f32.gmra.mxu0 %v7144_v37  ;;  %v1703_v4 = vld [vmem:[%s10633_s7 + $0x2d0] sm:$0xff] }
 0x454   :  { %2761 = vmatpush.msra.mxu0 %v1716_v30  ;;  %2706 = vmatpush.msra.mxu3 %v1636_v39  ;;  %v1627_v30 = vld [vmem:[%s10633_s7 + $0x70] sm:$0xff]  ;;  %v1628_v39 = vld [vmem:[%s10633_s7 + $0x78] sm:$0xff] }
 0x455   :  { %2385 = vmatmul.f32.gmra.mxu1 %v7150_v52  ;;  %2503 = vmatmul.f32.gmra.mxu3 %v7150_v52 }
 0x456   :  { %v2200_v32 = vpop.f32.mrf.mxu2  ;;  %2762 = vmatpush.msra.mxu0 %v1712_v27  ;;  %2589 = vmatpush.msrb.mxu1 %v1631_v35  ;;  %v1623_v35 = vld [vmem:[%s10633_s7 + $0x50] sm:$0xff] }
 0x457   :  { %v7972_v23 = vadd.f32 %v2200_v32, %v2141_v10  ;;  %v1708_v10 = vld [vmem:[%s10633_s7 + $0x2f8] sm:$0xff]  ;;  %2707 = vmatpush.msra.mxu3 %v1632_v18  ;;  %v1699_v27 = vld [vmem:[%s10633_s7 + $0x2b0] sm:$0xff]  ;;  %2646 = vmatpush.msrb.mxu2 %v1703_v4 }
 0x458   :  { %v7980_v25 = vpop.f32.mrf.mxu3  ;;  %v7982_v7 = vpop.f32.mrf.mxu0  ;;  %2763 = vmatpush.msra.mxu0 %v1708_v10  ;;  %2590 = vmatpush.msrb.mxu1 %v1627_v30  ;;  %v1704_v32 = vld [vmem:[%s10633_s7 + $0x2d8] sm:$0xff]  ;;  %v1619_v30 = vld [vmem:[%s10633_s7 + $0x30] sm:$0xff] }
 0x459   :  { %10709 = vst [vmem:[#allocation60_spill] sm:$0xff] %v7972_v23  ;;  %2708 = vmatpush.msra.mxu3 %v1628_v39  ;;  %v1700_v10 = vld [vmem:[%s10633_s7 + $0x2b8] sm:$0xff]  ;;  %2647 = vmatpush.msrb.mxu2 %v1699_v27  ;;  %v1691_v27 = vld [vmem:[%s10633_s7 + $0x270] sm:$0xff] }
 0x45a   :  { %10710 = vst [vmem:[#allocation61_spill] sm:$0xff] %v7980_v25  ;;  %v2147_v6 = vpop.f32.mrf.mxu1  ;;  %2764 = vmatpush.msra.mxu0 %v1704_v32  ;;  %2591 = vmatpush.msrb.mxu1 %v1623_v35  ;;  %v1695_v25 = vld [vmem:[%s10633_s7 + $0x290] sm:$0xff]  ;;  %v1620_v4 = vld [vmem:[%s10633_s7 + $0x38] sm:$0xff] }
 0x45b   :  { %10711 = vst [vmem:[#allocation62_spill] sm:$0xff] %v7982_v7  ;;  %2444 = vmatmul.f32.gmra.mxu2 %v7183_v16  ;;  %2562 = vmatmul.f32.gmra.mxu0 %v7183_v16  ;;  %v1615_v32 = vld [vmem:[%s10633_s7 + $0x10] sm:$0xff] }
 0x45c   :  { %2709 = vmatpush.msra.mxu3 %v1624_v36  ;;  %2765 = vmatpush.msra.mxu0 %v1700_v10  ;;  %v1616_v36 = vld [vmem:[%s10633_s7 + $0x18] sm:$0xff] }
 0x45d   :  { %2388 = vmatmul.f32.gmra.mxu1 %v7195_v40  ;;  %2506 = vmatmul.f32.gmra.mxu3 %v7195_v40 }
 0x45e   :  { %v2203_v18 = vpop.f32.mrf.mxu2  ;;  %2592 = vmatpush.msrb.mxu1 %v1619_v30  ;;  %2648 = vmatpush.msrb.mxu2 %v1695_v25  ;;  %v1687_v25 = vld [vmem:[%s10633_s7 + $0x250] sm:$0xff]  ;;  %v1688_v30 = vld [vmem:[%s10633_s7 + $0x258] sm:$0xff] }
 0x45f   :  { %v8018_v7 = vadd.f32 %v2203_v18, %v2144_v43  ;;  %v1696_v43 = vld [vmem:[%s10633_s7 + $0x298] sm:$0xff]  ;;  %2710 = vmatpush.msra.mxu3 %v1620_v4 }
 0x460   :  { %v8026_v39 = vpop.f32.mrf.mxu3  ;;  %v8028_v23 = vpop.f32.mrf.mxu0  ;;  %2766 = vmatpush.msra.mxu0 %v1696_v43  ;;  %2593 = vmatpush.msrb.mxu1 %v1615_v32  ;;  %v1692_v18 = vld [vmem:[%s10633_s7 + $0x278] sm:$0xff]  ;;  %v1683_v43 = vld [vmem:[%s10633_s7 + $0x230] sm:$0xff] }
 0x461   :  { %10712 = vst [vmem:[#allocation63_spill] sm:$0xff] %v8028_v23  ;;  %2649 = vmatpush.msrb.mxu2 %v1691_v27  ;;  %2711 = vmatpush.msra.mxu3 %v1616_v36  ;;  %v1684_v27 = vld [vmem:[%s10633_s7 + $0x238] sm:$0xff] }
 0x462   :  { %v2150_v35 = vpop.f32.mrf.mxu1  ;;  %2767 = vmatpush.msra.mxu0 %v1692_v18  ;;  %v1680_v18 = vld [vmem:[%s10633_s7 + $0x218] sm:$0xff] }
 0x463   :  { %2447 = vmatmul.f32.gmra.mxu2 %v7234_v60  ;;  %2565 = vmatmul.f32.gmra.mxu0 %v7234_v60 }
 0x464   :  { %2650 = vmatpush.msrb.mxu2 %v1687_v25  ;;  %2768 = vmatpush.msra.mxu0 %v1688_v30 }
 0x465   :  { %2391 = vmatmul.f32.gmra.mxu1 %v7243_v13  ;;  %2509 = vmatmul.f32.gmra.mxu3 %v7243_v13 }
 0x466   :  { %v2206_v10 = vpop.f32.mrf.mxu2  ;;  %2651 = vmatpush.msrb.mxu2 %v1683_v43  ;;  %2769 = vmatpush.msra.mxu0 %v1684_v27 }
 0x467   :  { %v8055_v4 = vadd.f32 %v2206_v10, %v2147_v6  ;;  %v1679_v6 = vld [vmem:[%s10633_s7 + $0x210] sm:$0xff] }
 0x468   :  { %v8060_v32 = vpop.f32.mrf.mxu3  ;;  %v8062_v23 = vpop.f32.mrf.mxu0  ;;  %2652 = vmatpush.msrb.mxu2 %v1679_v6  ;;  %2770 = vmatpush.msra.mxu0 %v1680_v18 }
 0x469   :  { %10713 = vst [vmem:[#allocation64_spill] sm:$0xff] %v8060_v32 }
 0x46a   :  { %10714 = vst [vmem:[#allocation65_spill] sm:$0xff] %v8062_v23  ;;  %v2153_v36 = vpop.f32.mrf.mxu1 }
 0x46b   :  { %2450 = vmatmul.f32.gmra.mxu2 %v7282_v1  ;;  %2568 = vmatmul.f32.gmra.mxu0 %v7282_v1 }
 0x46d   :  { %2394 = vmatmul.f32.gmra.mxu1 %v7291_v21  ;;  %2512 = vmatmul.f32.gmra.mxu3 %v7291_v21 }
 0x46e   :  { %v2209_v25 = vpop.f32.mrf.mxu2 }
 0x46f   :  { %v8077_v10 = vadd.f32 %v2209_v25, %v2150_v35 }
 0x470   :  { %v8079_v30 = vpop.f32.mrf.mxu3  ;;  %v8081_v43 = vpop.f32.mrf.mxu0 }
 0x471   :  { %10715 = vst [vmem:[#allocation66_spill] sm:$0xff] %v8079_v30 }
 0x472   :  { %10716 = vst [vmem:[#allocation67_spill] sm:$0xff] %v8081_v43  ;;  %v2156_v23 = vpop.f32.mrf.mxu1 }
 0x473   :  { %2453 = vmatmul.f32.gmra.mxu2 %v7330_v61  ;;  %2571 = vmatmul.f32.gmra.mxu0 %v7330_v61 }
 0x475   :  { %2397 = vmatmul.f32.gmra.mxu1 %v7339_v59  ;;  %2515 = vmatmul.f32.gmra.mxu3 %v7339_v59 }
 0x476   :  { %v2212_v27 = vpop.f32.mrf.mxu2 }
 0x477   :  { %v8087_v6 = vadd.f32 %v2212_v27, %v2153_v36 }
 0x478   :  { %v8089_v32 = vpop.f32.mrf.mxu3  ;;  %v8091_v35 = vpop.f32.mrf.mxu0 }
 0x479   :  { %10717 = vst [vmem:[#allocation68_spill] sm:$0xff] %v8089_v32 }
 0x47a   :  { %10718 = vst [vmem:[#allocation69_spill] sm:$0xff] %v8091_v35  ;;  %v2159_v18 = vpop.f32.mrf.mxu1 }
 0x47b   :  { %2456 = vmatmul.f32.gmra.mxu2 %v7369_v17  ;;  %2574 = vmatmul.f32.gmra.mxu0 %v7369_v17 }
 0x47d   :  { %2594 = vmatmul.f32.vlgmr.msrb.gmra.mxu1 %v7746_v31  ;;  %2712 = vmatmul.f32.vlgmr.msra.gmra.mxu3 %v7746_v31 }
 0x47e   :  { %v2215_v25 = vpop.f32.mrf.mxu2 }
 0x47f   :  { %v8097_v43 = vadd.f32 %v2215_v25, %v2156_v23 }
 0x480   :  { %v8099_v30 = vpop.f32.mrf.mxu3  ;;  %v8101_v36 = vpop.f32.mrf.mxu0 }
 0x481   :  { %10719 = vst [vmem:[#allocation70_spill] sm:$0xff] %v8101_v36 }
 0x482   :  { %v2162_v27 = vpop.f32.mrf.mxu1 }
 0x483   :  { %2653 = vmatmul.f32.vlgmr.msrb.gmra.mxu2 %v7763_v28  ;;  %2771 = vmatmul.f32.vlgmr.msra.gmra.mxu0 %v7763_v28 }
 0x485   :  { %2597 = vmatmul.f32.gmra.mxu1 %v7766_v57  ;;  %2715 = vmatmul.f32.gmra.mxu3 %v7766_v57  ;;  %v2065_v57 = vadd.f32 %v7433_v12, %v7431_v58  ;;  %v2068_v58 = vadd.f32 %v7443_v48, %v7441_v55  ;;  %v5208_v48 = vld [vmem:[%s10633_s7 + $0xbe0] sm:$0xff] }
 0x486   :  { %v2218_v35 = vpop.f32.mrf.mxu2  ;;  %3002 = vmatpush.msra.mxu2 %v5208_v48 }
 0x487   :  { %v8107_v32 = vadd.f32 %v2218_v35, %v2159_v18 }
 0x488   :  { %v8109_v31 = vpop.f32.mrf.mxu3  ;;  %v8111_v23 = vpop.f32.mrf.mxu0 }
 0x489   :  { %10720 = vst [vmem:[#allocation71_spill] sm:$0xff] %v8107_v32 }
 0x48a   :  { %10721 = vst [vmem:[#allocation72_spill] sm:$0xff] %v8109_v31  ;;  %v2359_v25 = vpop.f32.mrf.mxu1 }
 0x48b   :  { %10722 = vst [vmem:[#allocation73_spill] sm:$0xff] %v8111_v23  ;;  %2656 = vmatmul.f32.gmra.mxu2 %v7779_v2  ;;  %2774 = vmatmul.f32.gmra.mxu0 %v7779_v2  ;;  %v2360_v2 = vadd.f32 %v2359_v25, %v7439_v11  ;;  %v2071_v11 = vadd.f32 %v7456_v53, %v7454_v8  ;;  %v5144_v53 = vld [vmem:[%s10633_s7 + $0x9e0] sm:$0xff]  ;;  %v10724_v8 = vld [vmem:[#allocation20_spill] sm:$0xff] }
 0x48c   :  { %2943 = vmatpush.msra.mxu1 %v5144_v53  ;;  %v5200_v53 = vld [vmem:[%s10633_s7 + $0xba0] sm:$0xff] }
 0x48d   :  { %2600 = vmatmul.f32.gmra.mxu1 %v7045_v63  ;;  %2718 = vmatmul.f32.gmra.mxu3 %v7045_v63 }
 0x48e   :  { %v2221_v28 = vpop.f32.mrf.mxu2 }
 0x48f   :  { %v8119_v36 = vadd.f32 %v2221_v28, %v2162_v27 }
 0x490   :  { %v2477_v35 = vpop.f32.mrf.mxu3  ;;  %v2536_v18 = vpop.f32.mrf.mxu0 }
 0x491   :  { %v2478_v31 = vadd.f32 %v2477_v35, %v2065_v57 }
 0x492   :  { %v2362_v32 = vpop.f32.mrf.mxu1 }
 0x493   :  { %v8121_v23 = vadd.f32 %v2536_v18, %v2478_v31  ;;  %2659 = vmatmul.f32.gmra.mxu2 %v7054_v46  ;;  %2777 = vmatmul.f32.gmra.mxu0 %v7054_v46  ;;  %v2363_v46 = vadd.f32 %v2362_v32, %v7449_v14 }
 0x495   :  { %2603 = vmatmul.f32.gmra.mxu1 %v7057_v45  ;;  %2721 = vmatmul.f32.gmra.mxu3 %v7057_v45 }
 0x496   :  { %v2418_v63 = vpop.f32.mrf.mxu2 }
 0x497   :  { %v8130_v12 = vadd.f32 %v2418_v63, %v2360_v2  ;;  %v5204_v63 = vld [vmem:[%s10633_s7 + $0xbc0] sm:$0xff] }
 0x498   :  { %v2480_v27 = vpop.f32.mrf.mxu3  ;;  %v2539_v28 = vpop.f32.mrf.mxu0  ;;  %3003 = vmatpush.msra.mxu2 %v5204_v63 }
 0x499   :  { %v2481_v31 = vadd.f32 %v2480_v27, %v2068_v58  ;;  %v10725_v27 = vld [vmem:[#allocation21_spill] sm:$0xff] }
 0x49a   :  { %v2365_v57 = vpop.f32.mrf.mxu1  ;;  %3004 = vmatpush.msra.mxu2 %v5200_v53  ;;  %v5136_v53 = vld [vmem:[%s10633_s7 + $0x9a0] sm:$0xff] }
 0x49b   :  { %v8132_v35 = vadd.f32 %v2539_v28, %v2481_v31  ;;  %2662 = vmatmul.f32.gmra.mxu2 %v7066_v49  ;;  %2780 = vmatmul.f32.gmra.mxu0 %v7066_v49  ;;  %v2366_v32 = vadd.f32 %v2365_v57, %v10724_v8  ;;  %v10726_v28 = vld [vmem:[#allocation22_spill] sm:$0xff]  ;;  %v5209_v8 = vld [vmem:[%s10633_s7 + $0xbe8] sm:$0xff] }
 0x49c   :  { %v2074_v31 = vadd.f32 %v10726_v28, %v10725_v27  ;;  %3120 = vmatpush.msrb.mxu0 %v5209_v8  ;;  %v10730_v28 = vld [vmem:[#allocation24_spill] sm:$0xff]  ;;  %v5196_v8 = vld [vmem:[%s10633_s7 + $0xb80] sm:$0xff] }
 0x49d   :  { %2606 = vmatmul.f32.gmra.mxu1 %v7069_v20  ;;  %2724 = vmatmul.f32.gmra.mxu3 %v7069_v20 }
 0x49e   :  { %v2421_v45 = vpop.f32.mrf.mxu2  ;;  %3005 = vmatpush.msra.mxu2 %v5196_v8  ;;  %v5201_v8 = vld [vmem:[%s10633_s7 + $0xba8] sm:$0xff] }
 0x49f   :  { %v8141_v55 = vadd.f32 %v2421_v45, %v2363_v46  ;;  %v5145_v45 = vld [vmem:[%s10633_s7 + $0x9e8] sm:$0xff] }
 0x4a0   :  { %v2483_v25 = vpop.f32.mrf.mxu3  ;;  %v2542_v18 = vpop.f32.mrf.mxu0  ;;  %3061 = vmatpush.msrb.mxu3 %v5145_v45 }
 0x4a1   :  { %v2484_v49 = vadd.f32 %v2483_v25, %v2071_v11 }
 0x4a2   :  { %v2368_v2 = vpop.f32.mrf.mxu1 }
 0x4a3   :  { %v8146_v14 = vadd.f32 %v2542_v18, %v2484_v49  ;;  %2665 = vmatmul.f32.gmra.mxu2 %v7078_v38  ;;  %2783 = vmatmul.f32.gmra.mxu0 %v7078_v38  ;;  %v5140_v49 = vld [vmem:[%s10633_s7 + $0x9c0] sm:$0xff] }
 0x4a4   :  { %2944 = vmatpush.msra.mxu1 %v5140_v49 }
 0x4a5   :  { %10723 = vst [vmem:[#allocation74_spill] sm:$0xff] %v8146_v14  ;;  %2609 = vmatmul.f32.gmra.mxu1 %v7081_v9  ;;  %2727 = vmatmul.f32.gmra.mxu3 %v7081_v9 }
 0x4a6   :  { %v2424_v58 = vpop.f32.mrf.mxu2  ;;  %2945 = vmatpush.msra.mxu1 %v5136_v53  ;;  %v10736_v53 = vld [vmem:[#allocation28_spill] sm:$0xff] }
 0x4a7   :  { %v8161_v46 = vadd.f32 %v2424_v58, %v2366_v32  ;;  %v10729_v32 = vld [vmem:[#allocation23_spill] sm:$0xff] }
 0x4a8   :  { %v2486_v57 = vpop.f32.mrf.mxu3  ;;  %v2545_v11 = vpop.f32.mrf.mxu0  ;;  %v2369_v63 = vadd.f32 %v2368_v2, %v10729_v32  ;;  %v5141_v58 = vld [vmem:[%s10633_s7 + $0x9c8] sm:$0xff] }
 0x4a9   :  { %10727 = vst [vmem:[#allocation20_spill] sm:$0xff] %v8161_v46  ;;  %v2487_v48 = vadd.f32 %v2486_v57, %v2074_v31  ;;  %3062 = vmatpush.msrb.mxu3 %v5141_v58  ;;  %v10731_v31 = vld [vmem:[#allocation25_spill] sm:$0xff]  ;;  %v5137_v32 = vld [vmem:[%s10633_s7 + $0x9a8] sm:$0xff]  ;;  %v5132_v58 = vld [vmem:[%s10633_s7 + $0x980] sm:$0xff] }
 0x4aa   :  { %v2371_v25 = vpop.f32.mrf.mxu1  ;;  %v2077_v45 = vadd.f32 %v10731_v31, %v10730_v28  ;;  %v10734_v28 = vld [vmem:[#allocation26_spill] sm:$0xff]  ;;  %2946 = vmatpush.msra.mxu1 %v5132_v58 }
 0x4ab   :  { %v8166_v18 = vadd.f32 %v2545_v11, %v2487_v48  ;;  %2668 = vmatmul.f32.gmra.mxu2 %v7090_v47  ;;  %2786 = vmatmul.f32.gmra.mxu0 %v7090_v47  ;;  %v2372_v31 = vadd.f32 %v2371_v25, %v10734_v28 }
 0x4ac   :  { %3063 = vmatpush.msrb.mxu3 %v5137_v32 }
 0x4ad   :  { %10728 = vst [vmem:[#allocation21_spill] sm:$0xff] %v8166_v18  ;;  %2612 = vmatmul.f32.gmra.mxu1 %v7093_v34  ;;  %2730 = vmatmul.f32.gmra.mxu3 %v7093_v34  ;;  %v5184_v18 = vld [vmem:[%s10633_s7 + $0xb20] sm:$0xff] }
 0x4ae   :  { %v2427_v27 = vpop.f32.mrf.mxu2 }
 0x4af   :  { %v8187_v57 = vadd.f32 %v2427_v27, %v2369_v63  ;;  %v5205_v63 = vld [vmem:[%s10633_s7 + $0xbc8] sm:$0xff] }
 0x4b0   :  { %v2489_v11 = vpop.f32.mrf.mxu3  ;;  %v2548_v48 = vpop.f32.mrf.mxu0  ;;  %v5133_v27 = vld [vmem:[%s10633_s7 + $0x988] sm:$0xff]  ;;  %3121 = vmatpush.msrb.mxu0 %v5205_v63 }
 0x4b1   :  { %10732 = vst [vmem:[#allocation22_spill] sm:$0xff] %v8187_v57  ;;  %v2490_v49 = vadd.f32 %v2489_v11, %v2077_v45  ;;  %v5128_v11 = vld [vmem:[%s10633_s7 + $0x960] sm:$0xff]  ;;  %3064 = vmatpush.msrb.mxu3 %v5133_v27 }
 0x4b2   :  { %v2374_v2 = vpop.f32.mrf.mxu1  ;;  %2947 = vmatpush.msra.mxu1 %v5128_v11  ;;  %v5124_v57 = vld [vmem:[%s10633_s7 + $0x940] sm:$0xff]  ;;  %3122 = vmatpush.msrb.mxu0 %v5201_v8  ;;  %v5193_v8 = vld [vmem:[%s10633_s7 + $0xb68] sm:$0xff] }
 0x4b3   :  { %v8195_v46 = vadd.f32 %v2548_v48, %v2490_v49  ;;  %2671 = vmatmul.f32.gmra.mxu2 %v7102_v24  ;;  %2789 = vmatmul.f32.gmra.mxu0 %v7102_v24  ;;  %v5129_v48 = vld [vmem:[%s10633_s7 + $0x968] sm:$0xff]  ;;  %v5120_v27 = vld [vmem:[%s10633_s7 + $0x920] sm:$0xff] }
 0x4b4   :  { %v10735_v49 = vld [vmem:[#allocation27_spill] sm:$0xff]  ;;  %3065 = vmatpush.msrb.mxu3 %v5129_v48  ;;  %v5192_v11 = vld [vmem:[%s10633_s7 + $0xb60] sm:$0xff]  ;;  %2948 = vmatpush.msra.mxu1 %v5124_v57 }
 0x4b5   :  { %10733 = vst [vmem:[#allocation23_spill] sm:$0xff] %v8195_v46  ;;  %2615 = vmatmul.f32.gmra.mxu1 %v7105_v22  ;;  %2733 = vmatmul.f32.gmra.mxu3 %v7105_v22  ;;  %v2080_v32 = vadd.f32 %v10736_v53, %v10735_v49  ;;  %v5121_v48 = vld [vmem:[%s10633_s7 + $0x928] sm:$0xff]  ;;  %v10739_v53 = vld [vmem:[#allocation29_spill] sm:$0xff] }
 0x4b6   :  { %v2430_v45 = vpop.f32.mrf.mxu2  ;;  %v5197_v49 = vld [vmem:[%s10633_s7 + $0xb88] sm:$0xff]  ;;  %2949 = vmatpush.msra.mxu1 %v5120_v27  ;;  %3006 = vmatpush.msra.mxu2 %v5192_v11  ;;  %v5112_v27 = vld [vmem:[%s10633_s7 + $0x8e0] sm:$0xff] }
 0x4b7   :  { %v8222_v46 = vadd.f32 %v2430_v45, %v2372_v31  ;;  %v5125_v31 = vld [vmem:[%s10633_s7 + $0x948] sm:$0xff]  ;;  %3123 = vmatpush.msrb.mxu0 %v5197_v49 }
 0x4b8   :  { %v2492_v25 = vpop.f32.mrf.mxu3  ;;  %v2551_v28 = vpop.f32.mrf.mxu0  ;;  %3066 = vmatpush.msrb.mxu3 %v5125_v31  ;;  %v10741_v31 = vld [vmem:[#allocation31_spill] sm:$0xff] }
 0x4b9   :  { %10737 = vst [vmem:[#allocation24_spill] sm:$0xff] %v8222_v46  ;;  %v2493_v63 = vadd.f32 %v2492_v25, %v2080_v32  ;;  %v2375_v32 = vadd.f32 %v2374_v2, %v10739_v53  ;;  %v5116_v25 = vld [vmem:[%s10633_s7 + $0x900] sm:$0xff]  ;;  %3124 = vmatpush.msrb.mxu0 %v5193_v8  ;;  %v5189_v49 = vld [vmem:[%s10633_s7 + $0xb48] sm:$0xff] }
 0x4ba   :  { %v2377_v45 = vpop.f32.mrf.mxu1  ;;  %v5188_v2 = vld [vmem:[%s10633_s7 + $0xb40] sm:$0xff]  ;;  %3067 = vmatpush.msrb.mxu3 %v5121_v48  ;;  %2950 = vmatpush.msra.mxu1 %v5116_v25  ;;  %v5113_v48 = vld [vmem:[%s10633_s7 + $0x8e8] sm:$0xff] }
 0x4bb   :  { %v8233_v58 = vadd.f32 %v2551_v28, %v2493_v63  ;;  %2674 = vmatmul.f32.gmra.mxu2 %v7117_v5  ;;  %2792 = vmatmul.f32.gmra.mxu0 %v7117_v5  ;;  %v5117_v28 = vld [vmem:[%s10633_s7 + $0x908] sm:$0xff]  ;;  %v10740_v63 = vld [vmem:[#allocation30_spill] sm:$0xff] }
 0x4bc   :  { %v2083_v53 = vadd.f32 %v10741_v31, %v10740_v63  ;;  %3007 = vmatpush.msra.mxu2 %v5188_v2  ;;  %3068 = vmatpush.msrb.mxu3 %v5117_v28  ;;  %v5109_v28 = vld [vmem:[%s10633_s7 + $0x8c8] sm:$0xff]  ;;  %v5104_v2 = vld [vmem:[%s10633_s7 + $0x8a0] sm:$0xff] }
 0x4bd   :  { %10738 = vst [vmem:[#allocation25_spill] sm:$0xff] %v8233_v58  ;;  %2618 = vmatmul.f32.gmra.mxu1 %v7120_v50  ;;  %2736 = vmatmul.f32.gmra.mxu3 %v7120_v50  ;;  %v5105_v63 = vld [vmem:[%s10633_s7 + $0x8a8] sm:$0xff] }
 0x4be   :  { %v2433_v57 = vpop.f32.mrf.mxu2  ;;  %2951 = vmatpush.msra.mxu1 %v5112_v27  ;;  %3008 = vmatpush.msra.mxu2 %v5184_v18  ;;  %v5185_v18 = vld [vmem:[%s10633_s7 + $0xb28] sm:$0xff]  ;;  %v10745_v27 = vld [vmem:[#allocation33_spill] sm:$0xff] }
 0x4bf   :  { %v8266_v58 = vadd.f32 %v2433_v57, %v2375_v32  ;;  %v5108_v57 = vld [vmem:[%s10633_s7 + $0x8c0] sm:$0xff]  ;;  %3069 = vmatpush.msrb.mxu3 %v5113_v48  ;;  %3125 = vmatpush.msrb.mxu0 %v5189_v49 }
 0x4c0   :  { %v2495_v11 = vpop.f32.mrf.mxu3  ;;  %v2554_v46 = vpop.f32.mrf.mxu0  ;;  %2952 = vmatpush.msra.mxu1 %v5108_v57  ;;  %v5100_v57 = vld [vmem:[%s10633_s7 + $0x880] sm:$0xff] }
 0x4c1   :  { %10742 = vst [vmem:[#allocation26_spill] sm:$0xff] %v8266_v58  ;;  %v2496_v14 = vadd.f32 %v2495_v11, %v2083_v53  ;;  %3070 = vmatpush.msrb.mxu3 %v5109_v28  ;;  %v5181_v53 = vld [vmem:[%s10633_s7 + $0xb08] sm:$0xff]  ;;  %v10746_v11 = vld [vmem:[#allocation34_spill] sm:$0xff]  ;;  %3126 = vmatpush.msrb.mxu0 %v5185_v18 }
 0x4c2   :  { %v2380_v32 = vpop.f32.mrf.mxu1  ;;  %v2086_v48 = vadd.f32 %v10746_v11, %v10745_v27  ;;  %v5101_v28 = vld [vmem:[%s10633_s7 + $0x888] sm:$0xff]  ;;  %2953 = vmatpush.msra.mxu1 %v5104_v2  ;;  %v5172_v2 = vld [vmem:[%s10633_s7 + $0xac0] sm:$0xff] }
 0x4c3   :  { %v8280_v25 = vadd.f32 %v2554_v46, %v2496_v14  ;;  %2677 = vmatmul.f32.gmra.mxu2 %v7144_v37  ;;  %2795 = vmatmul.f32.gmra.mxu0 %v7144_v37  ;;  %v5180_v14 = vld [vmem:[%s10633_s7 + $0xb00] sm:$0xff]  ;;  %v10744_v46 = vld [vmem:[#allocation32_spill] sm:$0xff]  ;;  %v5177_v18 = vld [vmem:[%s10633_s7 + $0xae8] sm:$0xff] }
 0x4c4   :  { %v2378_v8 = vadd.f32 %v2377_v45, %v10744_v46  ;;  %v5176_v45 = vld [vmem:[%s10633_s7 + $0xae0] sm:$0xff]  ;;  %3009 = vmatpush.msra.mxu2 %v5180_v14  ;;  %3071 = vmatpush.msrb.mxu3 %v5105_v63  ;;  %v5097_v63 = vld [vmem:[%s10633_s7 + $0x868] sm:$0xff] }
 0x4c5   :  { %10743 = vst [vmem:[#allocation27_spill] sm:$0xff] %v8280_v25  ;;  %2621 = vmatmul.f32.gmra.mxu1 %v7150_v52  ;;  %2739 = vmatmul.f32.gmra.mxu3 %v7150_v52  ;;  %v5096_v14 = vld [vmem:[%s10633_s7 + $0x860] sm:$0xff]  ;;  %v5093_v27 = vld [vmem:[%s10633_s7 + $0x848] sm:$0xff] }
 0x4c6   :  { %v2436_v31 = vpop.f32.mrf.mxu2  ;;  %3127 = vmatpush.msrb.mxu0 %v5181_v53  ;;  %3010 = vmatpush.msra.mxu2 %v5176_v45  ;;  %v5173_v53 = vld [vmem:[%s10633_s7 + $0xac8] sm:$0xff]  ;;  %v5168_v45 = vld [vmem:[%s10633_s7 + $0xaa0] sm:$0xff] }
 0x4c7   :  { %v8313_v49 = vadd.f32 %v2436_v31, %v2378_v8  ;;  %2954 = vmatpush.msra.mxu1 %v5100_v57  ;;  %3072 = vmatpush.msrb.mxu3 %v5101_v28 }
 0x4c8   :  { %v2498_v46 = vpop.f32.mrf.mxu3  ;;  %v2557_v25 = vpop.f32.mrf.mxu0  ;;  %3128 = vmatpush.msrb.mxu0 %v5177_v18  ;;  %3011 = vmatpush.msra.mxu2 %v5172_v2  ;;  %v5089_v18 = vld [vmem:[%s10633_s7 + $0x828] sm:$0xff] }
 0x4c9   :  { %v2499_v58 = vadd.f32 %v2498_v46, %v2086_v48  ;;  %2955 = vmatpush.msra.mxu1 %v5096_v14  ;;  %3073 = vmatpush.msrb.mxu3 %v5097_v63  ;;  %v5169_v48 = vld [vmem:[%s10633_s7 + $0xaa8] sm:$0xff]  ;;  %v5164_v46 = vld [vmem:[%s10633_s7 + $0xa80] sm:$0xff] }
 0x4ca   :  { %v2383_v8 = vpop.f32.mrf.mxu1  ;;  %3129 = vmatpush.msrb.mxu0 %v5173_v53  ;;  %3012 = vmatpush.msra.mxu2 %v5168_v45  ;;  %v5084_v53 = vld [vmem:[%s10633_s7 + $0x800] sm:$0xff] }
 0x4cb   :  { %v8327_v31 = vadd.f32 %v2557_v25, %v2499_v58  ;;  %2680 = vmatmul.f32.gmra.mxu2 %v7183_v16  ;;  %2798 = vmatmul.f32.gmra.mxu0 %v7183_v16  ;;  %v5092_v58 = vld [vmem:[%s10633_s7 + $0x840] sm:$0xff]  ;;  %v2381_v25 = vadd.f32 %v2380_v32, %v7662_v26  ;;  %v10748_v32 = vld [vmem:[#allocation35_spill] sm:$0xff] }
 0x4cc   :  { %v5088_v26 = vld [vmem:[%s10633_s7 + $0x820] sm:$0xff]  ;;  %v2089_v57 = vadd.f32 %v10748_v32, %v7670_v51  ;;  %2956 = vmatpush.msra.mxu1 %v5092_v58  ;;  %3074 = vmatpush.msrb.mxu3 %v5093_v27  ;;  %v5165_v51 = vld [vmem:[%s10633_s7 + $0xa88] sm:$0xff] }
 0x4cd   :  { %10747 = vst [vmem:[#allocation28_spill] sm:$0xff] %v8327_v31  ;;  %2624 = vmatmul.f32.gmra.mxu1 %v7195_v40  ;;  %2742 = vmatmul.f32.gmra.mxu3 %v7195_v40  ;;  %v5160_v45 = vld [vmem:[%s10633_s7 + $0xa60] sm:$0xff]  ;;  %v5085_v27 = vld [vmem:[%s10633_s7 + $0x808] sm:$0xff] }
 0x4ce   :  { %v2439_v11 = vpop.f32.mrf.mxu2  ;;  %3130 = vmatpush.msrb.mxu0 %v5169_v48  ;;  %2957 = vmatpush.msra.mxu1 %v5088_v26  ;;  %v10750_v48 = vld [vmem:[#allocation36_spill] sm:$0xff]  ;;  %v5156_v32 = vld [vmem:[%s10633_s7 + $0xa40] sm:$0xff] }
 0x4cf   :  { %v8360_v28 = vadd.f32 %v2439_v11, %v2381_v25  ;;  %3013 = vmatpush.msra.mxu2 %v5164_v46  ;;  %3075 = vmatpush.msrb.mxu3 %v5089_v18  ;;  %v5161_v11 = vld [vmem:[%s10633_s7 + $0xa68] sm:$0xff]  ;;  %v2384_v26 = vadd.f32 %v2383_v8, %v10750_v48  ;;  %v10751_v18 = vld [vmem:[#allocation37_spill] sm:$0xff]  ;;  %v5152_v8 = vld [vmem:[%s10633_s7 + $0xa20] sm:$0xff] }
 0x4d0   :  { %v2501_v14 = vpop.f32.mrf.mxu3  ;;  %v2560_v2 = vpop.f32.mrf.mxu0  ;;  %3131 = vmatpush.msrb.mxu0 %v5165_v51  ;;  %2958 = vmatpush.msra.mxu1 %v5084_v53  ;;  %v5157_v46 = vld [vmem:[%s10633_s7 + $0xa48] sm:$0xff] }
 0x4d1   :  { %v2502_v63 = vadd.f32 %v2501_v14, %v2089_v57  ;;  %3014 = vmatpush.msra.mxu2 %v5160_v45  ;;  %3076 = vmatpush.msrb.mxu3 %v5085_v27  ;;  %v10752_v14 = vld [vmem:[#allocation38_spill] sm:$0xff]  ;;  %v5153_v45 = vld [vmem:[%s10633_s7 + $0xa28] sm:$0xff] }
 0x4d2   :  { %v2386_v58 = vpop.f32.mrf.mxu1  ;;  %3132 = vmatpush.msrb.mxu0 %v5161_v11  ;;  %v5148_v27 = vld [vmem:[%s10633_s7 + $0xa00] sm:$0xff] }
 0x4d3   :  { %v8374_v25 = vadd.f32 %v2560_v2, %v2502_v63  ;;  %2683 = vmatmul.f32.gmra.mxu2 %v7234_v60  ;;  %2801 = vmatmul.f32.gmra.mxu0 %v7234_v60  ;;  %v2092_v2 = vadd.f32 %v10752_v14, %v10751_v18  ;;  %v2095_v18 = vadd.f32 %v7727_v42, %v7725_v54 }
 0x4d4   :  { %3015 = vmatpush.msra.mxu2 %v5156_v32  ;;  %3133 = vmatpush.msrb.mxu0 %v5157_v46  ;;  %v5149_v32 = vld [vmem:[%s10633_s7 + $0xa08] sm:$0xff]  ;;  %v2098_v42 = vadd.f32 %v7743_v19, %v7741_v44  ;;  %v2101_v44 = vadd.f32 %v7761_v33, %v7759_v15  ;;  %v2104_v15 = vadd.f32 %v7777_v62, %v7775_v41  ;;  %v10762_v41 = vld [vmem:[#allocation40_spill] sm:$0xff]  ;;  %v10763_v62 = vld [vmem:[#allocation41_spill] sm:$0xff] }
 0x4d5   :  { %10749 = vst [vmem:[#allocation29_spill] sm:$0xff] %v8374_v25  ;;  %2627 = vmatmul.f32.gmra.mxu1 %v7243_v13  ;;  %2745 = vmatmul.f32.gmra.mxu3 %v7243_v13 }
 0x4d6   :  { %v2442_v57 = vpop.f32.mrf.mxu2  ;;  %3016 = vmatpush.msra.mxu2 %v5152_v8  ;;  %3134 = vmatpush.msrb.mxu0 %v5153_v45 }
 0x4d7   :  { %v8398_v63 = vadd.f32 %v2442_v57, %v2384_v26  ;;  %v2387_v57 = vadd.f32 %v2386_v58, %v7723_v0 }
 0x4d8   :  { %v2504_v51 = vpop.f32.mrf.mxu3  ;;  %v2563_v53 = vpop.f32.mrf.mxu0  ;;  %3017 = vmatpush.msra.mxu2 %v5148_v27  ;;  %3135 = vmatpush.msrb.mxu0 %v5149_v32 }
 0x4d9   :  { %v2505_v48 = vadd.f32 %v2504_v51, %v2092_v2 }
 0x4da   :  { %v2389_v26 = vpop.f32.mrf.mxu1 }
 0x4db   :  { %v8409_v11 = vadd.f32 %v2563_v53, %v2505_v48  ;;  %2686 = vmatmul.f32.gmra.mxu2 %v7282_v1  ;;  %2804 = vmatmul.f32.gmra.mxu0 %v7282_v1  ;;  %v2390_v0 = vadd.f32 %v2389_v26, %v7739_v29 }
 0x4dd   :  { %10753 = vst [vmem:[#allocation30_spill] sm:$0xff] %v8409_v11  ;;  %2630 = vmatmul.f32.gmra.mxu1 %v7291_v21  ;;  %2748 = vmatmul.f32.gmra.mxu3 %v7291_v21 }
 0x4de   :  { %v2445_v46 = vpop.f32.mrf.mxu2 }
 0x4df   :  { %v8421_v14 = vadd.f32 %v2445_v46, %v2387_v57 }
 0x4e0   :  { %v2507_v2 = vpop.f32.mrf.mxu3  ;;  %v2566_v8 = vpop.f32.mrf.mxu0 }
 0x4e1   :  { %v2508_v51 = vadd.f32 %v2507_v2, %v2095_v18 }
 0x4e2   :  { %v2392_v53 = vpop.f32.mrf.mxu1 }
 0x4e3   :  { %v8423_v48 = vadd.f32 %v2566_v8, %v2508_v51  ;;  %2689 = vmatmul.f32.gmra.mxu2 %v7330_v61  ;;  %2807 = vmatmul.f32.gmra.mxu0 %v7330_v61  ;;  %v2393_v29 = vadd.f32 %v2392_v53, %v7757_v56 }
 0x4e5   :  { %10754 = vst [vmem:[#allocation31_spill] sm:$0xff] %v8423_v48  ;;  %2633 = vmatmul.f32.gmra.mxu1 %v7339_v59  ;;  %2751 = vmatmul.f32.gmra.mxu3 %v7339_v59 }
 0x4e6   :  { %v2448_v58 = vpop.f32.mrf.mxu2 }
 0x4e7   :  { %v8432_v54 = vadd.f32 %v2448_v58, %v2390_v0 }
 0x4e8   :  { %v2510_v45 = vpop.f32.mrf.mxu3  ;;  %v2569_v27 = vpop.f32.mrf.mxu0 }
 0x4e9   :  { %10755 = vst [vmem:[#allocation32_spill] sm:$0xff] %v8432_v54  ;;  %v2511_v32 = vadd.f32 %v2510_v45, %v2098_v42  ;;  %v5126_v54 = vld [vmem:[%s10633_s7 + $0x950] sm:$0xff] }
 0x4ea   :  { %v2395_v57 = vpop.f32.mrf.mxu1 }
 0x4eb   :  { %v8434_v46 = vadd.f32 %v2569_v27, %v2511_v32  ;;  %2692 = vmatmul.f32.gmra.mxu2 %v7369_v17  ;;  %2810 = vmatmul.f32.gmra.mxu0 %v7369_v17  ;;  %v2396_v56 = vadd.f32 %v2395_v57, %v7773_v3  ;;  %v10761_v3 = vld [vmem:[#allocation39_spill] sm:$0xff] }
 0x4ed   :  { %10756 = vst [vmem:[#allocation33_spill] sm:$0xff] %v8434_v46  ;;  %2959 = vmatmul.f32.vlgmr.msra.gmra.mxu1 %v7069_v20  ;;  %3077 = vmatmul.f32.vlgmr.msrb.gmra.mxu3 %v7069_v20  ;;  %v5139_v46 = vld [vmem:[%s10633_s7 + $0x9b8] sm:$0xff] }
 0x4ee   :  { %v2451_v26 = vpop.f32.mrf.mxu2 }
 0x4ef   :  { %v8443_v19 = vadd.f32 %v2451_v26, %v2393_v29  ;;  %v2301_v26 = vadd.f32 %v10763_v62, %v10762_v41 }
 0x4f0   :  { %v2513_v18 = vpop.f32.mrf.mxu3  ;;  %v2572_v2 = vpop.f32.mrf.mxu0 }
 0x4f1   :  { %10757 = vst [vmem:[#allocation34_spill] sm:$0xff] %v8443_v19  ;;  %v2514_v8 = vadd.f32 %v2513_v18, %v2101_v44 }
 0x4f2   :  { %v2398_v51 = vpop.f32.mrf.mxu1 }
 0x4f3   :  { %v8445_v0 = vadd.f32 %v2572_v2, %v2514_v8  ;;  %3018 = vmatmul.f32.vlgmr.msra.gmra.mxu2 %v7078_v38  ;;  %3136 = vmatmul.f32.vlgmr.msrb.gmra.mxu0 %v7078_v38  ;;  %v2399_v57 = vadd.f32 %v2398_v51, %v10761_v3  ;;  %v10766_v51 = vld [vmem:[#allocation42_spill] sm:$0xff] }
 0x4f5   :  { %10758 = vst [vmem:[#allocation35_spill] sm:$0xff] %v8445_v0  ;;  %2962 = vmatmul.f32.gmra.mxu1 %v7081_v9  ;;  %3080 = vmatmul.f32.gmra.mxu3 %v7081_v9 }
 0x4f6   :  { %v2454_v53 = vpop.f32.mrf.mxu2 }
 0x4f7   :  { %v8454_v33 = vadd.f32 %v2454_v53, %v2396_v56 }
 0x4f8   :  { %v2516_v58 = vpop.f32.mrf.mxu3  ;;  %v2575_v42 = vpop.f32.mrf.mxu0 }
 0x4f9   :  { %10759 = vst [vmem:[#allocation36_spill] sm:$0xff] %v8454_v33  ;;  %v2517_v45 = vadd.f32 %v2516_v58, %v2104_v15 }
 0x4fa   :  { %v2595_v27 = vpop.f32.mrf.mxu1 }
 0x4fb   :  { %v8456_v32 = vadd.f32 %v2575_v42, %v2517_v45  ;;  %3021 = vmatmul.f32.gmra.mxu2 %v7090_v47  ;;  %3139 = vmatmul.f32.gmra.mxu0 %v7090_v47  ;;  %v2596_v15 = vadd.f32 %v2595_v27, %v10766_v51  ;;  %v10767_v42 = vld [vmem:[#allocation43_spill] sm:$0xff]  ;;  %v10768_v45 = vld [vmem:[#allocation44_spill] sm:$0xff]  ;;  %v10771_v27 = vld [vmem:[#allocation45_spill] sm:$0xff] }
 0x4fc   :  { %v2304_v3 = vadd.f32 %v10768_v45, %v10767_v42  ;;  %v10772_v51 = vld [vmem:[#allocation46_spill] sm:$0xff]  ;;  %v5210_v45 = vld [vmem:[%s10633_s7 + $0xbf0] sm:$0xff] }
 0x4fd   :  { %10760 = vst [vmem:[#allocation37_spill] sm:$0xff] %v8456_v32  ;;  %2965 = vmatmul.f32.gmra.mxu1 %v7093_v34  ;;  %3083 = vmatmul.f32.gmra.mxu3 %v7093_v34 }
 0x4fe   :  { %v2457_v29 = vpop.f32.mrf.mxu2  ;;  %3238 = vmatpush.msrb.mxu2 %v5210_v45  ;;  %v10777_v45 = vld [vmem:[#allocation50_spill] sm:$0xff] }
 0x4ff   :  { %v8465_v44 = vadd.f32 %v2457_v29, %v2399_v57 }
 0x500   :  { %v2713_v18 = vpop.f32.mrf.mxu3  ;;  %v2772_v2 = vpop.f32.mrf.mxu0 }
 0x501   :  { %10764 = vst [vmem:[#allocation38_spill] sm:$0xff] %v8465_v44  ;;  %v2714_v8 = vadd.f32 %v2713_v18, %v2301_v26 }
 0x502   :  { %v2598_v56 = vpop.f32.mrf.mxu1 }
 0x503   :  { %v8467_v53 = vadd.f32 %v2772_v2, %v2714_v8  ;;  %3024 = vmatmul.f32.gmra.mxu2 %v7102_v24  ;;  %3142 = vmatmul.f32.gmra.mxu0 %v7102_v24  ;;  %v2599_v2 = vadd.f32 %v2598_v56, %v10771_v27  ;;  %v5146_v27 = vld [vmem:[%s10633_s7 + $0x9f0] sm:$0xff] }
 0x504   :  { %3179 = vmatpush.msrb.mxu1 %v5146_v27 }
 0x505   :  { %10765 = vst [vmem:[#allocation39_spill] sm:$0xff] %v8467_v53  ;;  %2968 = vmatmul.f32.gmra.mxu1 %v7105_v22  ;;  %3086 = vmatmul.f32.gmra.mxu3 %v7105_v22 }
 0x506   :  { %v2654_v58 = vpop.f32.mrf.mxu2 }
 0x507   :  { %v8476_v57 = vadd.f32 %v2654_v58, %v2596_v15  ;;  %v10773_v15 = vld [vmem:[#allocation47_spill] sm:$0xff] }
 0x508   :  { %v2716_v29 = vpop.f32.mrf.mxu3  ;;  %v2775_v41 = vpop.f32.mrf.mxu0  ;;  %v2307_v58 = vadd.f32 %v10773_v15, %v10772_v51  ;;  %v5206_v51 = vld [vmem:[%s10633_s7 + $0xbd0] sm:$0xff] }
 0x509   :  { %10769 = vst [vmem:[#allocation40_spill] sm:$0xff] %v8476_v57  ;;  %v2717_v62 = vadd.f32 %v2716_v29, %v2304_v3  ;;  %3239 = vmatpush.msrb.mxu2 %v5206_v51  ;;  %v5202_v51 = vld [vmem:[%s10633_s7 + $0xbb0] sm:$0xff] }
 0x50a   :  { %v2601_v26 = vpop.f32.mrf.mxu1 }
 0x50b   :  { %v8478_v18 = vadd.f32 %v2775_v41, %v2717_v62  ;;  %3027 = vmatmul.f32.gmra.mxu2 %v7117_v5  ;;  %3145 = vmatmul.f32.gmra.mxu0 %v7117_v5 }
 0x50c   :  { %3240 = vmatpush.msrb.mxu2 %v5202_v51 }
 0x50d   :  { %10770 = vst [vmem:[#allocation41_spill] sm:$0xff] %v8478_v18  ;;  %2971 = vmatmul.f32.gmra.mxu1 %v7120_v50  ;;  %3089 = vmatmul.f32.gmra.mxu3 %v7120_v50 }
 0x50e   :  { %v2657_v8 = vpop.f32.mrf.mxu2 }
 0x50f   :  { %v8487_v42 = vadd.f32 %v2657_v8, %v2599_v2  ;;  %v10775_v2 = vld [vmem:[#allocation48_spill] sm:$0xff] }
 0x510   :  { %v2719_v3 = vpop.f32.mrf.mxu3  ;;  %v2778_v29 = vpop.f32.mrf.mxu0  ;;  %v2602_v8 = vadd.f32 %v2601_v26, %v10775_v2 }
 0x511   :  { %10774 = vst [vmem:[#allocation42_spill] sm:$0xff] %v8487_v42  ;;  %v2720_v41 = vadd.f32 %v2719_v3, %v2307_v58  ;;  %v10776_v58 = vld [vmem:[#allocation49_spill] sm:$0xff] }
 0x512   :  { %v2604_v62 = vpop.f32.mrf.mxu1  ;;  %v2310_v3 = vadd.f32 %v10777_v45, %v10776_v58  ;;  %v10778_v58 = vld [vmem:[#allocation51_spill] sm:$0xff]  ;;  %v10814_v42 = vld [vmem:[#allocation13_spill] sm:$0xff] }
 0x513   :  { %v8492_v56 = vadd.f32 %v2778_v29, %v2720_v41  ;;  %3030 = vmatmul.f32.gmra.mxu2 %v7144_v37  ;;  %3148 = vmatmul.f32.gmra.mxu0 %v7144_v37  ;;  %v5147_v41 = vld [vmem:[%s10633_s7 + $0x9f8] sm:$0xff]  ;;  %v2605_v45 = vadd.f32 %v2604_v62, %v10778_v58  ;;  %v5138_v58 = vld [vmem:[%s10633_s7 + $0x9b0] sm:$0xff] }
 0x514   :  { %3297 = vmatpush.msra.mxu3 %v5147_v41 }
 0x515   :  { %2974 = vmatmul.f32.gmra.mxu1 %v7150_v52  ;;  %3092 = vmatmul.f32.gmra.mxu3 %v7150_v52 }
 0x516   :  { %v2660_v15 = vpop.f32.mrf.mxu2 }
 0x517   :  { %v8507_v29 = vadd.f32 %v2660_v15, %v2602_v8  ;;  %v5142_v8 = vld [vmem:[%s10633_s7 + $0x9d0] sm:$0xff]  ;;  %v5211_v15 = vld [vmem:[%s10633_s7 + $0xbf8] sm:$0xff] }
 0x518   :  { %v2722_v26 = vpop.f32.mrf.mxu3  ;;  %v2781_v27 = vpop.f32.mrf.mxu0  ;;  %3180 = vmatpush.msrb.mxu1 %v5142_v8  ;;  %3356 = vmatpush.msra.mxu0 %v5211_v15  ;;  %v5198_v15 = vld [vmem:[%s10633_s7 + $0xb90] sm:$0xff] }
 0x519   :  { %v2723_v2 = vadd.f32 %v2722_v26, %v2310_v3  ;;  %v5143_v3 = vld [vmem:[%s10633_s7 + $0x9d8] sm:$0xff]  ;;  %v10779_v26 = vld [vmem:[#allocation52_spill] sm:$0xff]  ;;  %3241 = vmatpush.msrb.mxu2 %v5198_v15 }
 0x51a   :  { %v2607_v32 = vpop.f32.mrf.mxu1  ;;  %3298 = vmatpush.msra.mxu3 %v5143_v3  ;;  %3181 = vmatpush.msrb.mxu1 %v5138_v58  ;;  %v5134_v3 = vld [vmem:[%s10633_s7 + $0x990] sm:$0xff]  ;;  %v5203_v15 = vld [vmem:[%s10633_s7 + $0xbb8] sm:$0xff] }
 0x51b   :  { %v8512_v44 = vadd.f32 %v2781_v27, %v2723_v2  ;;  %3033 = vmatmul.f32.gmra.mxu2 %v7183_v16  ;;  %3151 = vmatmul.f32.gmra.mxu0 %v7183_v16  ;;  %v10780_v27 = vld [vmem:[#allocation53_spill] sm:$0xff] }
 0x51c   :  { %v2313_v2 = vadd.f32 %v10780_v27, %v10779_v26  ;;  %3299 = vmatpush.msra.mxu3 %v5139_v46  ;;  %v5130_v46 = vld [vmem:[%s10633_s7 + $0x970] sm:$0xff]  ;;  %3182 = vmatpush.msrb.mxu1 %v5134_v3 }
 0x51d   :  { %2977 = vmatmul.f32.gmra.mxu1 %v7195_v40  ;;  %3095 = vmatmul.f32.gmra.mxu3 %v7195_v40 }
 0x51e   :  { %v2663_v41 = vpop.f32.mrf.mxu2  ;;  %3183 = vmatpush.msrb.mxu1 %v5130_v46  ;;  %v5194_v46 = vld [vmem:[%s10633_s7 + $0xb70] sm:$0xff] }
 0x51f   :  { %v8533_v0 = vadd.f32 %v2663_v41, %v2605_v45  ;;  %v5207_v45 = vld [vmem:[%s10633_s7 + $0xbd8] sm:$0xff]  ;;  %v10782_v41 = vld [vmem:[#allocation54_spill] sm:$0xff]  ;;  %3242 = vmatpush.msrb.mxu2 %v5194_v46 }
 0x520   :  { %v2725_v8 = vpop.f32.mrf.mxu3  ;;  %v2784_v51 = vpop.f32.mrf.mxu0  ;;  %v2608_v26 = vadd.f32 %v2607_v32, %v10782_v41  ;;  %3357 = vmatpush.msra.mxu0 %v5207_v45  ;;  %3184 = vmatpush.msrb.mxu1 %v5126_v54 }
 0x521   :  { %v2726_v33 = vadd.f32 %v2725_v8, %v2313_v2  ;;  %v5131_v2 = vld [vmem:[%s10633_s7 + $0x978] sm:$0xff]  ;;  %v10783_v8 = vld [vmem:[#allocation55_spill] sm:$0xff] }
 0x522   :  { %v2610_v62 = vpop.f32.mrf.mxu1  ;;  %3358 = vmatpush.msra.mxu0 %v5203_v15  ;;  %v5195_v15 = vld [vmem:[%s10633_s7 + $0xb78] sm:$0xff] }
 0x523   :  { %v8541_v19 = vadd.f32 %v2784_v51, %v2726_v33  ;;  %3036 = vmatmul.f32.gmra.mxu2 %v7234_v60  ;;  %3154 = vmatmul.f32.gmra.mxu0 %v7234_v60  ;;  %v5135_v33 = vld [vmem:[%s10633_s7 + $0x998] sm:$0xff]  ;;  %v10784_v51 = vld [vmem:[#allocation56_spill] sm:$0xff] }
 0x524   :  { %v2316_v58 = vadd.f32 %v10784_v51, %v10783_v8  ;;  %3300 = vmatpush.msra.mxu3 %v5135_v33  ;;  %v5122_v33 = vld [vmem:[%s10633_s7 + $0x930] sm:$0xff]  ;;  %v5199_v8 = vld [vmem:[%s10633_s7 + $0xb98] sm:$0xff] }
 0x525   :  { %10781 = vst [vmem:[#allocation43_spill] sm:$0xff] %v8541_v19  ;;  %2980 = vmatmul.f32.gmra.mxu1 %v7243_v13  ;;  %3098 = vmatmul.f32.gmra.mxu3 %v7243_v13  ;;  %v10787_v51 = vld [vmem:[#allocation57_spill] sm:$0xff] }
 0x526   :  { %v2666_v27 = vpop.f32.mrf.mxu2  ;;  %3301 = vmatpush.msra.mxu3 %v5131_v2  ;;  %v5123_v2 = vld [vmem:[%s10633_s7 + $0x938] sm:$0xff]  ;;  %3185 = vmatpush.msrb.mxu1 %v5122_v33  ;;  %v5114_v33 = vld [vmem:[%s10633_s7 + $0x8f0] sm:$0xff] }
 0x527   :  { %v8568_v48 = vadd.f32 %v2666_v27, %v2608_v26  ;;  %v5127_v26 = vld [vmem:[%s10633_s7 + $0x958] sm:$0xff]  ;;  %3359 = vmatpush.msra.mxu0 %v5199_v8 }
 0x528   :  { %v2728_v32 = vpop.f32.mrf.mxu3  ;;  %v2787_v41 = vpop.f32.mrf.mxu0  ;;  %3302 = vmatpush.msra.mxu3 %v5127_v26  ;;  %v10789_v26 = vld [vmem:[#allocation59_spill] sm:$0xff]  ;;  %v5191_v8 = vld [vmem:[%s10633_s7 + $0xb58] sm:$0xff] }
 0x529   :  { %10785 = vst [vmem:[#allocation44_spill] sm:$0xff] %v8568_v48  ;;  %v2729_v45 = vadd.f32 %v2728_v32, %v2316_v58  ;;  %v2611_v58 = vadd.f32 %v2610_v62, %v10787_v51  ;;  %v5118_v32 = vld [vmem:[%s10633_s7 + $0x910] sm:$0xff]  ;;  %3360 = vmatpush.msra.mxu0 %v5195_v15 }
 0x52a   :  { %v2613_v27 = vpop.f32.mrf.mxu1  ;;  %v5190_v62 = vld [vmem:[%s10633_s7 + $0xb50] sm:$0xff]  ;;  %3303 = vmatpush.msra.mxu3 %v5123_v2  ;;  %3186 = vmatpush.msrb.mxu1 %v5118_v32  ;;  %v5115_v2 = vld [vmem:[%s10633_s7 + $0x8f8] sm:$0xff] }
 0x52b   :  { %v8579_v3 = vadd.f32 %v2787_v41, %v2729_v45  ;;  %3039 = vmatmul.f32.gmra.mxu2 %v7282_v1  ;;  %3157 = vmatmul.f32.gmra.mxu0 %v7282_v1  ;;  %v5119_v41 = vld [vmem:[%s10633_s7 + $0x918] sm:$0xff]  ;;  %v10788_v45 = vld [vmem:[#allocation58_spill] sm:$0xff] }
 0x52c   :  { %v2319_v51 = vadd.f32 %v10789_v26, %v10788_v45  ;;  %3243 = vmatpush.msrb.mxu2 %v5190_v62  ;;  %3304 = vmatpush.msra.mxu3 %v5119_v41  ;;  %v5111_v41 = vld [vmem:[%s10633_s7 + $0x8d8] sm:$0xff]  ;;  %v5106_v62 = vld [vmem:[%s10633_s7 + $0x8b0] sm:$0xff] }
 0x52d   :  { %10786 = vst [vmem:[#allocation45_spill] sm:$0xff] %v8579_v3  ;;  %2983 = vmatmul.f32.gmra.mxu1 %v7291_v21  ;;  %3101 = vmatmul.f32.gmra.mxu3 %v7291_v21  ;;  %v5186_v3 = vld [vmem:[%s10633_s7 + $0xb30] sm:$0xff]  ;;  %v5107_v45 = vld [vmem:[%s10633_s7 + $0x8b8] sm:$0xff] }
 0x52e   :  { %v2669_v54 = vpop.f32.mrf.mxu2  ;;  %3187 = vmatpush.msrb.mxu1 %v5114_v33  ;;  %3244 = vmatpush.msrb.mxu2 %v5186_v3  ;;  %v5187_v3 = vld [vmem:[%s10633_s7 + $0xb38] sm:$0xff] }
 0x52f   :  { %v8612_v11 = vadd.f32 %v2669_v54, %v2611_v58  ;;  %v5110_v54 = vld [vmem:[%s10633_s7 + $0x8d0] sm:$0xff]  ;;  %3305 = vmatpush.msra.mxu3 %v5115_v2  ;;  %3361 = vmatpush.msra.mxu0 %v5191_v8  ;;  %v10793_v33 = vld [vmem:[#allocation61_spill] sm:$0xff] }
 0x530   :  { %v2731_v46 = vpop.f32.mrf.mxu3  ;;  %v2790_v25 = vpop.f32.mrf.mxu0  ;;  %3188 = vmatpush.msrb.mxu1 %v5110_v54  ;;  %v5102_v54 = vld [vmem:[%s10633_s7 + $0x890] sm:$0xff] }
 0x531   :  { %10790 = vst [vmem:[#allocation46_spill] sm:$0xff] %v8612_v11  ;;  %v2732_v48 = vadd.f32 %v2731_v46, %v2319_v51  ;;  %3306 = vmatpush.msra.mxu3 %v5111_v41  ;;  %v5183_v51 = vld [vmem:[%s10633_s7 + $0xb18] sm:$0xff]  ;;  %v10794_v46 = vld [vmem:[#allocation62_spill] sm:$0xff]  ;;  %3362 = vmatpush.msra.mxu0 %v5187_v3 }
 0x532   :  { %v2616_v58 = vpop.f32.mrf.mxu1  ;;  %v2322_v2 = vadd.f32 %v10794_v46, %v10793_v33  ;;  %v5103_v41 = vld [vmem:[%s10633_s7 + $0x898] sm:$0xff]  ;;  %3189 = vmatpush.msrb.mxu1 %v5106_v62  ;;  %v5174_v62 = vld [vmem:[%s10633_s7 + $0xad0] sm:$0xff] }
 0x533   :  { %v8626_v32 = vadd.f32 %v2790_v25, %v2732_v48  ;;  %3042 = vmatmul.f32.gmra.mxu2 %v7330_v61  ;;  %3160 = vmatmul.f32.gmra.mxu0 %v7330_v61  ;;  %v5182_v25 = vld [vmem:[%s10633_s7 + $0xb10] sm:$0xff]  ;;  %v5179_v3 = vld [vmem:[%s10633_s7 + $0xaf8] sm:$0xff] }
 0x534   :  { %v10792_v48 = vld [vmem:[#allocation60_spill] sm:$0xff]  ;;  %3245 = vmatpush.msrb.mxu2 %v5182_v25  ;;  %3307 = vmatpush.msra.mxu3 %v5107_v45  ;;  %v5099_v45 = vld [vmem:[%s10633_s7 + $0x878] sm:$0xff] }
 0x535   :  { %10791 = vst [vmem:[#allocation47_spill] sm:$0xff] %v8626_v32  ;;  %v2614_v15 = vadd.f32 %v2613_v27, %v10792_v48  ;;  %2986 = vmatmul.f32.gmra.mxu1 %v7339_v59  ;;  %3104 = vmatmul.f32.gmra.mxu3 %v7339_v59  ;;  %v5178_v27 = vld [vmem:[%s10633_s7 + $0xaf0] sm:$0xff]  ;;  %v5095_v46 = vld [vmem:[%s10633_s7 + $0x858] sm:$0xff] }
 0x536   :  { %v2672_v26 = vpop.f32.mrf.mxu2  ;;  %3363 = vmatpush.msra.mxu0 %v5183_v51  ;;  %3246 = vmatpush.msrb.mxu2 %v5178_v27  ;;  %v5098_v25 = vld [vmem:[%s10633_s7 + $0x870] sm:$0xff]  ;;  %v5175_v51 = vld [vmem:[%s10633_s7 + $0xad8] sm:$0xff] }
 0x537   :  { %v8659_v8 = vadd.f32 %v2672_v26, %v2614_v15  ;;  %3190 = vmatpush.msrb.mxu1 %v5102_v54  ;;  %3308 = vmatpush.msra.mxu3 %v5103_v41  ;;  %v10797_v27 = vld [vmem:[#allocation8_spill] sm:$0xff]  ;;  %v5171_v54 = vld [vmem:[%s10633_s7 + $0xab8] sm:$0xff]  ;;  %v10799_v41 = vld [vmem:[#allocation11_spill] sm:$0xff] }
 0x538   :  { %v2734_v48 = vpop.f32.mrf.mxu3  ;;  %v2793_v32 = vpop.f32.mrf.mxu0  ;;  %3364 = vmatpush.msra.mxu0 %v5179_v3  ;;  %v5170_v33 = vld [vmem:[%s10633_s7 + $0xab0] sm:$0xff]  ;;  %3247 = vmatpush.msrb.mxu2 %v5174_v62  ;;  %v10800_v3 = vld [vmem:[#allocation63_spill] sm:$0xff] }
 0x539   :  { %10795 = vst [vmem:[#allocation48_spill] sm:$0xff] %v8659_v8  ;;  %v2735_v11 = vadd.f32 %v2734_v48, %v2322_v2  ;;  %3191 = vmatpush.msrb.mxu1 %v5098_v25  ;;  %3309 = vmatpush.msra.mxu3 %v5099_v45  ;;  %v2325_v25 = vadd.f32 %v10800_v3, %v8026_v39  ;;  %v5166_v62 = vld [vmem:[%s10633_s7 + $0xa90] sm:$0xff]  ;;  %v5091_v45 = vld [vmem:[%s10633_s7 + $0x838] sm:$0xff] }
 0x53a   :  { %v2619_v15 = vpop.f32.mrf.mxu1  ;;  %3365 = vmatpush.msra.mxu0 %v5175_v51  ;;  %3248 = vmatpush.msrb.mxu2 %v5170_v33  ;;  %v5167_v39 = vld [vmem:[%s10633_s7 + $0xa98] sm:$0xff]  ;;  %v5086_v51 = vld [vmem:[%s10633_s7 + $0x810] sm:$0xff] }
 0x53b   :  { %v8673_v26 = vadd.f32 %v2793_v32, %v2735_v11  ;;  %3045 = vmatmul.f32.gmra.mxu2 %v7369_v17  ;;  %3163 = vmatmul.f32.gmra.mxu0 %v7369_v17  ;;  %v5094_v11 = vld [vmem:[%s10633_s7 + $0x850] sm:$0xff]  ;;  %v2617_v32 = vadd.f32 %v2616_v58, %v8018_v7  ;;  %v10798_v58 = vld [vmem:[#allocation2_spill] sm:$0xff]  ;;  %v10804_v33 = vld [vmem:[#allocation9_spill] sm:$0xff]  ;;  %v2620_v3 = vadd.f32 %v2619_v15, %v8055_v4 }
 0x53c   :  { %v5090_v7 = vld [vmem:[%s10633_s7 + $0x830] sm:$0xff]  ;;  %v1248_v48 = vadd.f32 %v10799_v41, %v10798_v58  ;;  %3192 = vmatpush.msrb.mxu1 %v5094_v11  ;;  %3310 = vmatpush.msra.mxu3 %v5095_v46  ;;  %v5087_v46 = vld [vmem:[%s10633_s7 + $0x818] sm:$0xff] }
 0x53d   :  { %10796 = vst [vmem:[#allocation49_spill] sm:$0xff] %v8673_v26  ;;  %2989 = vmatmul.f32.gmra.mxu1 %v10797_v27  ;;  %3107 = vmatmul.f32.gmra.mxu3 %v10797_v27  ;;  %v10811_v15 = vld [vmem:[#allocation64_spill] sm:$0xff] }
 0x53e   :  { %v2675_v2 = vpop.f32.mrf.mxu2  ;;  %3366 = vmatpush.msra.mxu0 %v5171_v54  ;;  %3193 = vmatpush.msrb.mxu1 %v5090_v7  ;;  %v5163_v54 = vld [vmem:[%s10633_s7 + $0xa78] sm:$0xff]  ;;  %v10806_v7 = vld [vmem:[#allocation16_spill] sm:$0xff] }
 0x53f   :  { %v8708_v26 = vadd.f32 %v2675_v2, %v2617_v32  ;;  %3249 = vmatpush.msrb.mxu2 %v5166_v62  ;;  %3311 = vmatpush.msra.mxu3 %v5091_v45  ;;  %v10802_v32 = vld [vmem:[#allocation14_spill] sm:$0xff]  ;;  %v5158_v62 = vld [vmem:[%s10633_s7 + $0xa50] sm:$0xff] }
 0x540   :  { %v2737_v8 = vpop.f32.mrf.mxu3  ;;  %v2796_v31 = vpop.f32.mrf.mxu0  ;;  %v1531_v2 = vadd.f32 %v10802_v32, %v1248_v48  ;;  %3367 = vmatpush.msra.mxu0 %v5167_v39  ;;  %3194 = vmatpush.msrb.mxu1 %v5086_v51  ;;  %v10808_v39 = vld [vmem:[#allocation6_spill] sm:$0xff]  ;;  %v10809_v32 = vld [vmem:[#allocation4_spill] sm:$0xff] }
 0x541   :  { %10801 = vst [vmem:[#allocation50_spill] sm:$0xff] %v8708_v26  ;;  %v2738_v58 = vadd.f32 %v2737_v8, %v2325_v25  ;;  %v5162_v8 = vld [vmem:[%s10633_s7 + $0xa70] sm:$0xff]  ;;  %v10807_v25 = vld [vmem:[#allocation10_spill] sm:$0xff]  ;;  %3312 = vmatpush.msra.mxu3 %v5087_v46 }
 0x542   :  { %v2622_v11 = vpop.f32.mrf.mxu1  ;;  %3250 = vmatpush.msrb.mxu2 %v5162_v8  ;;  %v1573_v51 = vadd.f32 %v10808_v39, %v1531_v2  ;;  %3368 = vmatpush.msra.mxu0 %v5163_v54  ;;  %v5154_v8 = vld [vmem:[%s10633_s7 + $0xa30] sm:$0xff]  ;;  %v5155_v2 = vld [vmem:[%s10633_s7 + $0xa38] sm:$0xff] }
 0x543   :  { %v8723_v41 = vadd.f32 %v2796_v31, %v2738_v58  ;;  %3048 = vmatmul.f32.gmra.mxu2 %v10804_v33  ;;  %3166 = vmatmul.f32.gmra.mxu0 %v10804_v33  ;;  %v10805_v31 = vld [vmem:[#allocation3_spill] sm:$0xff]  ;;  %v5159_v58 = vld [vmem:[%s10633_s7 + $0xa58] sm:$0xff] }
 0x544   :  { %v1319_v48 = vadd.f32 %v10806_v7, %v10805_v31  ;;  %v10810_v31 = vld [vmem:[#allocation15_spill] sm:$0xff]  ;;  %v10812_v7 = vld [vmem:[#allocation65_spill] sm:$0xff]  ;;  %3251 = vmatpush.msrb.mxu2 %v5158_v62  ;;  %3369 = vmatpush.msra.mxu0 %v5159_v58  ;;  %v10817_v62 = vld [vmem:[#allocation12_spill] sm:$0xff] }
 0x545   :  { %10803 = vst [vmem:[#allocation51_spill] sm:$0xff] %v8723_v41  ;;  %2992 = vmatmul.f32.gmra.mxu1 %v10807_v25  ;;  %3110 = vmatmul.f32.gmra.mxu3 %v10807_v25  ;;  %v1251_v4 = vadd.f32 %v10810_v31, %v10809_v32  ;;  %v2328_v41 = vadd.f32 %v10812_v7, %v10811_v15  ;;  %v10815_v32 = vld [vmem:[#allocation18_spill] sm:$0xff]  ;;  %v10819_v58 = vld [vmem:[#allocation5_spill] sm:$0xff]  ;;  %v10820_v7 = vld [vmem:[#allocation19_spill] sm:$0xff] }
 0x546   :  { %v2678_v45 = vpop.f32.mrf.mxu2  ;;  %v1532_v18 = vadd.f32 %v10814_v42, %v1319_v48  ;;  %3252 = vmatpush.msrb.mxu2 %v5154_v8  ;;  %v5151_v42 = vld [vmem:[%s10633_s7 + $0xa18] sm:$0xff]  ;;  %3370 = vmatpush.msra.mxu0 %v5155_v2  ;;  %v2623_v8 = vadd.f32 %v2622_v11, %v8077_v10 }
 0x547   :  { %v8752_v26 = vadd.f32 %v2678_v45, %v2620_v3  ;;  %v5150_v3 = vld [vmem:[%s10633_s7 + $0xa10] sm:$0xff]  ;;  %v8764_v45 = vmax.f32 %v1573_v51, 0.0  ;;  %v1533_v31 = vadd.f32 %v10815_v32, %v1251_v4  ;;  %v1322_v51 = vadd.f32 %v10820_v7, %v10819_v58  ;;  %v10821_v4 = vld [vmem:[#allocation66_spill] sm:$0xff]  ;;  %v10823_v58 = vld [vmem:[#allocation17_spill] sm:$0xff] }
 0x548   :  { %v2740_v46 = vpop.f32.mrf.mxu3  ;;  %v2799_v19 = vpop.f32.mrf.mxu0  ;;  %3253 = vmatpush.msrb.mxu2 %v5150_v3  ;;  %3371 = vmatpush.msra.mxu0 %v5151_v42 }
 0x549   :  { %10813 = vst [vmem:[#allocation52_spill] sm:$0xff] %v8752_v26  ;;  %v2741_v57 = vadd.f32 %v2740_v46, %v2328_v41  ;;  %v10818_v41 = vld [vmem:[#allocation7_spill] sm:$0xff]  ;;  %v1534_v7 = vadd.f32 %v10823_v58, %v1322_v51  ;;  %v10825_v51 = vld [vmem:[#allocation69_spill] sm:$0xff] }
 0x54a   :  { %v2625_v54 = vpop.f32.mrf.mxu1  ;;  %v1574_v48 = vadd.f32 %v10818_v41, %v1532_v18  ;;  %v10822_v46 = vld [vmem:[#allocation67_spill] sm:$0xff] }
 0x54b   :  { %v8767_v15 = vadd.f32 %v2799_v19, %v2741_v57  ;;  %3051 = vmatmul.f32.gmra.mxu2 %v10817_v62  ;;  %3169 = vmatmul.f32.gmra.mxu0 %v10817_v62  ;;  %v1575_v57 = vadd.f32 %v10808_v39, %v1533_v31  ;;  %v2331_v32 = vadd.f32 %v10822_v46, %v10821_v4 }
 0x54c   :  { %v1576_v39 = vadd.f32 %v10818_v41, %v1534_v7  ;;  %v2626_v31 = vadd.f32 %v2625_v54, %v8087_v6  ;;  %v10828_v41 = vld [vmem:[#allocation70_spill] sm:$0xff] }
 0x54d   :  { %10816 = vst [vmem:[#allocation53_spill] sm:$0xff] %v8767_v15  ;;  %2995 = vmatmul.f32.gmra.mxu1 %v8764_v45  ;;  %3113 = vmatmul.f32.gmra.mxu3 %v8764_v45  ;;  %v8785_v15 = vmax.f32 %v1574_v48, 0.0  ;;  %v8788_v26 = vmax.f32 %v1575_v57, 0.0  ;;  %v10824_v48 = vld [vmem:[#allocation68_spill] sm:$0xff]  ;;  %v2337_v58 = vadd.f32 %v10828_v41, %v8099_v30 }
 0x54e   :  { %v2681_v19 = vpop.f32.mrf.mxu2  ;;  %v8802_v46 = vmax.f32 %v1576_v39, 0.0  ;;  %v10832_v30 = vld [vmem:[#allocation72_spill] sm:$0xff] }
 0x54f   :  { %v8783_v2 = vadd.f32 %v2681_v19, %v2623_v8  ;;  %v2334_v8 = vadd.f32 %v10825_v51, %v10824_v48  ;;  %v10833_v51 = vld [vmem:[#allocation73_spill] sm:$0xff] }
 0x550   :  { %v2743_v3 = vpop.f32.mrf.mxu3  ;;  %v2802_v18 = vpop.f32.mrf.mxu0 }
 0x551   :  { %v2744_v10 = vadd.f32 %v2743_v3, %v2331_v32 }
 0x552   :  { %v2628_v11 = vpop.f32.mrf.mxu1 }
 0x553   :  { %v8790_v53 = vadd.f32 %v2802_v18, %v2744_v10  ;;  %3054 = vmatmul.f32.gmra.mxu2 %v8785_v15  ;;  %3172 = vmatmul.f32.gmra.mxu0 %v8785_v15  ;;  %v2629_v6 = vadd.f32 %v2628_v11, %v8097_v43  ;;  %v10831_v43 = vld [vmem:[#allocation71_spill] sm:$0xff] }
 0x555   :  { %2998 = vmatmul.f32.gmra.mxu1 %v8788_v26  ;;  %3116 = vmatmul.f32.gmra.mxu3 %v8788_v26 }
 0x556   :  { %v2684_v42 = vpop.f32.mrf.mxu2 }
 0x557   :  { %v8800_v19 = vadd.f32 %v2684_v42, %v2626_v31 }
 0x558   :  { %v2746_v57 = vpop.f32.mrf.mxu3  ;;  %v2805_v4 = vpop.f32.mrf.mxu0 }
 0x559   :  { %10826 = vst [vmem:[#allocation54_spill] sm:$0xff] %v8800_v19  ;;  %v2747_v32 = vadd.f32 %v2746_v57, %v2334_v8  ;;  %v2340_v8 = vadd.f32 %v10833_v51, %v10832_v30 }
 0x55a   :  { %v2631_v3 = vpop.f32.mrf.mxu1 }
 0x55b   :  { %v8804_v18 = vadd.f32 %v2805_v4, %v2747_v32  ;;  %3057 = vmatmul.f32.gmra.mxu2 %v8802_v46  ;;  %3175 = vmatmul.f32.gmra.mxu0 %v8802_v46  ;;  %v2632_v11 = vadd.f32 %v2631_v3, %v10831_v43  ;;  %v5224_v43 = vld [vmem:[%s10635_s9 + $0x260] sm:$0xff] }
 0x55d   :  { %10827 = vst [vmem:[#allocation55_spill] sm:$0xff] %v8804_v18  ;;  %3195 = vmatmul.f32.vlgmr.msrb.gmra.mxu1 %v7069_v20  ;;  %3313 = vmatmul.f32.vlgmr.msra.gmra.mxu3 %v7069_v20  ;;  %v5294_v18 = vld [vmem:[%s10635_s9 + $0x490] sm:$0xff] }
 0x55e   :  { %v2687_v54 = vpop.f32.mrf.mxu2 }
 0x55f   :  { %v8813_v7 = vadd.f32 %v2687_v54, %v2629_v6 }
 0x560   :  { %v2749_v10 = vpop.f32.mrf.mxu3  ;;  %v2808_v39 = vpop.f32.mrf.mxu0 }
 0x561   :  { %10829 = vst [vmem:[#allocation56_spill] sm:$0xff] %v8813_v7  ;;  %v2750_v31 = vadd.f32 %v2749_v10, %v2337_v58  ;;  %v5227_v58 = vld [vmem:[%s10635_s9 + $0x278] sm:$0xff]  ;;  %v5276_v7 = vld [vmem:[%s10635_s9 + $0x400] sm:$0xff] }
 0x562   :  { %v2634_v42 = vpop.f32.mrf.mxu1  ;;  %3722 = vmatpush.msra.mxu1 %v5227_v58 }
 0x563   :  { %v8815_v48 = vadd.f32 %v2808_v39, %v2750_v31  ;;  %3254 = vmatmul.f32.vlgmr.msrb.gmra.mxu2 %v7078_v38  ;;  %3372 = vmatmul.f32.vlgmr.msra.gmra.mxu0 %v7078_v38  ;;  %v2635_v38 = vadd.f32 %v2634_v42, %v8119_v36 }
 0x565   :  { %10830 = vst [vmem:[#allocation57_spill] sm:$0xff] %v8815_v48  ;;  %3198 = vmatmul.f32.gmra.mxu1 %v7081_v9  ;;  %3316 = vmatmul.f32.gmra.mxu3 %v7081_v9  ;;  %v5280_v48 = vld [vmem:[%s10635_s9 + $0x420] sm:$0xff] }
 0x566   :  { %v2690_v20 = vpop.f32.mrf.mxu2 }
 0x567   :  { %v8824_v57 = vadd.f32 %v2690_v20, %v2632_v11  ;;  %v5223_v20 = vld [vmem:[%s10635_s9 + $0x258] sm:$0xff] }
 0x568   :  { %v2752_v4 = vpop.f32.mrf.mxu3  ;;  %v2811_v32 = vpop.f32.mrf.mxu0 }
 0x569   :  { %10834 = vst [vmem:[#allocation58_spill] sm:$0xff] %v8824_v57  ;;  %v2753_v6 = vadd.f32 %v2752_v4, %v2340_v8 }
 0x56a   :  { %v2960_v54 = vpop.f32.mrf.mxu1 }
 0x56b   :  { %v8826_v41 = vadd.f32 %v2811_v32, %v2753_v6  ;;  %3257 = vmatmul.f32.gmra.mxu2 %v7090_v47  ;;  %3375 = vmatmul.f32.gmra.mxu0 %v7090_v47  ;;  %v5226_v47 = vld [vmem:[%s10635_s9 + $0x270] sm:$0xff]  ;;  %v5241_v6 = vld [vmem:[%s10635_s9 + $0x2e8] sm:$0xff] }
 0x56c   :  { %3723 = vmatpush.msra.mxu1 %v5226_v47  ;;  %v5222_v32 = vld [vmem:[%s10635_s9 + $0x250] sm:$0xff] }
 0x56d   :  { %10835 = vst [vmem:[#allocation59_spill] sm:$0xff] %v8826_v41  ;;  %3201 = vmatmul.f32.gmra.mxu1 %v7093_v34  ;;  %3319 = vmatmul.f32.gmra.mxu3 %v7093_v34  ;;  %v5225_v34 = vld [vmem:[%s10635_s9 + $0x268] sm:$0xff]  ;;  %v5302_v41 = vld [vmem:[%s10635_s9 + $0x4d0] sm:$0xff] }
 0x56e   :  { %v2693_v9 = vpop.f32.mrf.mxu2  ;;  %3724 = vmatpush.msra.mxu1 %v5225_v34 }
 0x56f   :  { %v8833_v3 = vadd.f32 %v2693_v9, %v2635_v38  ;;  %v5240_v9 = vld [vmem:[%s10635_s9 + $0x2e0] sm:$0xff] }
 0x570   :  { %v3078_v10 = vpop.f32.mrf.mxu3  ;;  %v3137_v39 = vpop.f32.mrf.mxu0  ;;  %3725 = vmatpush.msra.mxu1 %v5224_v43 }
 0x571   :  { %10836 = vst [vmem:[#allocation60_spill] sm:$0xff] %v8833_v3  ;;  %v3138_v31 = vadd.f32 %v3137_v39, %v3078_v10  ;;  %v5219_v39 = vld [vmem:[%s10635_s9 + $0x238] sm:$0xff]  ;;  %v5284_v3 = vld [vmem:[%s10635_s9 + $0x440] sm:$0xff] }
 0x572   :  { %v2963_v36 = vpop.f32.mrf.mxu1  ;;  %3726 = vmatpush.msra.mxu1 %v5223_v20 }
 0x573   :  { %v8842_v42 = vadd.f32 %v3138_v31, %v8121_v23  ;;  %3260 = vmatmul.f32.gmra.mxu2 %v7102_v24  ;;  %3378 = vmatmul.f32.gmra.mxu0 %v7102_v24  ;;  %v5243_v23 = vld [vmem:[%s10635_s9 + $0x2f8] sm:$0xff] }
 0x574   :  { %3745 = vmatpush.msra.mxu2 %v5243_v23  ;;  %3727 = vmatpush.msra.mxu1 %v5222_v32  ;;  %v5237_v23 = vld [vmem:[%s10635_s9 + $0x2c8] sm:$0xff] }
 0x575   :  { %3204 = vmatmul.f32.gmra.mxu1 %v7105_v22  ;;  %3322 = vmatmul.f32.gmra.mxu3 %v7105_v22  ;;  %v5242_v22 = vld [vmem:[%s10635_s9 + $0x2f0] sm:$0xff] }
 0x576   :  { %v3019_v11 = vpop.f32.mrf.mxu2  ;;  %3746 = vmatpush.msra.mxu2 %v5242_v22  ;;  %v5236_v22 = vld [vmem:[%s10635_s9 + $0x2c0] sm:$0xff] }
 0x577   :  { %v3020_v24 = vadd.f32 %v3019_v11, %v2960_v54 }
 0x578   :  { %v3081_v30 = vpop.f32.mrf.mxu3  ;;  %v3140_v51 = vpop.f32.mrf.mxu0  ;;  %3747 = vmatpush.msra.mxu2 %v5241_v6 }
 0x579   :  { %v8864_v8 = vadd.f32 %v3020_v24, %v8130_v12  ;;  %v3141_v4 = vadd.f32 %v3140_v51, %v3081_v30  ;;  %v5221_v12 = vld [vmem:[%s10635_s9 + $0x248] sm:$0xff]  ;;  %v10837_v24 = vld [vmem:[#allocation74_spill] sm:$0xff] }
 0x57a   :  { %v8872_v54 = vpop.f32.mrf.mxu1  ;;  %3728 = vmatpush.msra.mxu1 %v5221_v12  ;;  %3748 = vmatpush.msra.mxu2 %v5240_v9  ;;  %v5216_v30 = vld [vmem:[%s10635_s9 + $0x220] sm:$0xff]  ;;  %v5214_v9 = vld [vmem:[%s10635_s9 + $0x210] sm:$0xff] }
 0x57b   :  { %v8875_v38 = vadd.f32 %v3141_v4, %v8132_v35  ;;  %3263 = vmatmul.f32.gmra.mxu2 %v7117_v5  ;;  %3381 = vmatmul.f32.gmra.mxu0 %v7117_v5  ;;  %v5220_v35 = vld [vmem:[%s10635_s9 + $0x240] sm:$0xff]  ;;  %v5239_v5 = vld [vmem:[%s10635_s9 + $0x2d8] sm:$0xff] }
 0x57c   :  { %3729 = vmatpush.msra.mxu1 %v5220_v35  ;;  %3749 = vmatpush.msra.mxu2 %v5239_v5  ;;  %v5215_v4 = vld [vmem:[%s10635_s9 + $0x218] sm:$0xff]  ;;  %v5233_v35 = vld [vmem:[%s10635_s9 + $0x2a8] sm:$0xff] }
 0x57d   :  { %3207 = vmatmul.f32.gmra.mxu1 %v7120_v50  ;;  %3325 = vmatmul.f32.gmra.mxu3 %v7120_v50  ;;  %v5238_v50 = vld [vmem:[%s10635_s9 + $0x2d0] sm:$0xff] }
 0x57e   :  { %v3022_v58 = vpop.f32.mrf.mxu2  ;;  %3730 = vmatpush.msra.mxu1 %v5219_v39  ;;  %3750 = vmatpush.msra.mxu2 %v5238_v50  ;;  %v5213_v39 = vld [vmem:[%s10635_s9 + $0x208] sm:$0xff]  ;;  %v5232_v50 = vld [vmem:[%s10635_s9 + $0x2a0] sm:$0xff] }
 0x57f   :  { %v3023_v10 = vadd.f32 %v3022_v58, %v2963_v36  ;;  %v5218_v36 = vld [vmem:[%s10635_s9 + $0x230] sm:$0xff]  ;;  %v10838_v58 = vld [vmem:[#allocation21_spill] sm:$0xff] }
 0x580   :  { %v3084_v31 = vpop.f32.mrf.mxu3  ;;  %v3143_v47 = vpop.f32.mrf.mxu0  ;;  %3731 = vmatpush.msra.mxu1 %v5218_v36  ;;  %3751 = vmatpush.msra.mxu2 %v5237_v23 }
 0x581   :  { %v8900_v34 = vadd.f32 %v3023_v10, %v8141_v55  ;;  %v3144_v43 = vadd.f32 %v3143_v47, %v3084_v31  ;;  %v5217_v55 = vld [vmem:[%s10635_s9 + $0x228] sm:$0xff]  ;;  %v5212_v31 = vld [vmem:[%s10635_s9 + $0x200] sm:$0xff] }
 0x582   :  { %v8908_v11 = vpop.f32.mrf.mxu1  ;;  %3732 = vmatpush.msra.mxu1 %v5217_v55  ;;  %3752 = vmatpush.msra.mxu2 %v5236_v22  ;;  %v5229_v55 = vld [vmem:[%s10635_s9 + $0x288] sm:$0xff] }
 0x583   :  { %v8911_v20 = vadd.f32 %v3144_v43, %v10837_v24  ;;  %3266 = vmatmul.f32.gmra.mxu2 %v7144_v37  ;;  %3384 = vmatmul.f32.gmra.mxu0 %v7144_v37  ;;  %v5235_v37 = vld [vmem:[%s10635_s9 + $0x2b8] sm:$0xff]  ;;  %v3607_v24 = vld [vmem:[%s10635_s9 + $0x70] sm:$0xff] }
 0x584   :  { %3733 = vmatpush.msra.mxu1 %v5216_v30  ;;  %3753 = vmatpush.msra.mxu2 %v5235_v37  ;;  %v3608_v43 = vld [vmem:[%s10635_s9 + $0x78] sm:$0xff]  ;;  %v3606_v30 = vld [vmem:[%s10635_s9 + $0x68] sm:$0xff]  ;;  %v5228_v37 = vld [vmem:[%s10635_s9 + $0x280] sm:$0xff] }
 0x585   :  { %3210 = vmatmul.f32.gmra.mxu1 %v7150_v52  ;;  %3328 = vmatmul.f32.gmra.mxu3 %v7150_v52  ;;  %v5234_v52 = vld [vmem:[%s10635_s9 + $0x2b0] sm:$0xff] }
 0x586   :  { %v8929_v51 = vpop.f32.mrf.mxu2  ;;  %3734 = vmatpush.msra.mxu1 %v5215_v4  ;;  %3754 = vmatpush.msra.mxu2 %v5234_v52  ;;  %v3605_v4 = vld [vmem:[%s10635_s9 + $0x60] sm:$0xff]  ;;  %v3624_v52 = vld [vmem:[%s10635_s9 + $0xf8] sm:$0xff] }
 0x588   :  { %v3087_v32 = vpop.f32.mrf.mxu3  ;;  %v3146_v6 = vpop.f32.mrf.mxu0  ;;  %3735 = vmatpush.msra.mxu1 %v5214_v9  ;;  %3755 = vmatpush.msra.mxu2 %v5233_v35 }
 0x589   :  { %v3147_v12 = vadd.f32 %v3146_v6, %v3087_v32  ;;  %v3623_v6 = vld [vmem:[%s10635_s9 + $0xf0] sm:$0xff] }
 0x58a   :  { %v2972_v5 = vpop.f32.mrf.mxu1  ;;  %3736 = vmatpush.msra.mxu1 %v5213_v39  ;;  %3756 = vmatpush.msra.mxu2 %v5232_v50  ;;  %v10839_v39 = vld [vmem:[#allocation24_spill] sm:$0xff] }
 0x58b   :  { %v8944_v10 = vadd.f32 %v3147_v12, %v10838_v58  ;;  %3269 = vmatmul.f32.gmra.mxu2 %v7183_v16  ;;  %3387 = vmatmul.f32.gmra.mxu0 %v7183_v16  ;;  %v5231_v16 = vld [vmem:[%s10635_s9 + $0x298] sm:$0xff]  ;;  %v3622_v58 = vld [vmem:[%s10635_s9 + $0xe8] sm:$0xff] }
 0x58c   :  { %3737 = vmatpush.msra.mxu1 %v5212_v31  ;;  %3757 = vmatpush.msra.mxu2 %v5231_v16  ;;  %v3621_v16 = vld [vmem:[%s10635_s9 + $0xe0] sm:$0xff] }
 0x58d   :  { %3213 = vmatmul.f32.gmra.mxu1 %v7195_v40  ;;  %3331 = vmatmul.f32.gmra.mxu3 %v7195_v40  ;;  %v5230_v40 = vld [vmem:[%s10635_s9 + $0x290] sm:$0xff] }
 0x58e   :  { %v8962_v47 = vpop.f32.mrf.mxu2  ;;  %3814 = vmatpush.msrb.mxu1 %v3608_v43  ;;  %3758 = vmatpush.msra.mxu2 %v5230_v40  ;;  %v5275_v43 = vld [vmem:[%s10635_s9 + $0x3f8] sm:$0xff]  ;;  %v3601_v40 = vld [vmem:[%s10635_s9 + $0x40] sm:$0xff] }
 0x58f   :  { %3791 = vmatpush.msrb.mxu0 %v5275_v43  ;;  %v5258_v43 = vld [vmem:[%s10635_s9 + $0x370] sm:$0xff] }
 0x590   :  { %v8970_v36 = vpop.f32.mrf.mxu3  ;;  %v8972_v23 = vpop.f32.mrf.mxu0  ;;  %3815 = vmatpush.msrb.mxu1 %v3607_v24  ;;  %3759 = vmatpush.msra.mxu2 %v5229_v55  ;;  %v3620_v24 = vld [vmem:[%s10635_s9 + $0xd8] sm:$0xff] }
 0x592   :  { %v2975_v22 = vpop.f32.mrf.mxu1  ;;  %3816 = vmatpush.msrb.mxu1 %v3606_v30  ;;  %3760 = vmatpush.msra.mxu2 %v5228_v37  ;;  %v3600_v30 = vld [vmem:[%s10635_s9 + $0x38] sm:$0xff]  ;;  %v3619_v37 = vld [vmem:[%s10635_s9 + $0xd0] sm:$0xff] }
 0x593   :  { %3272 = vmatmul.f32.gmra.mxu2 %v7234_v60  ;;  %3390 = vmatmul.f32.gmra.mxu0 %v7234_v60  ;;  %v3604_v60 = vld [vmem:[%s10635_s9 + $0x58] sm:$0xff] }
 0x594   :  { %3817 = vmatpush.msrb.mxu1 %v3605_v4  ;;  %3837 = vmatpush.msrb.mxu2 %v3624_v52 }
 0x595   :  { %3216 = vmatmul.f32.gmra.mxu1 %v7243_v13  ;;  %3334 = vmatmul.f32.gmra.mxu3 %v7243_v13  ;;  %v3603_v13 = vld [vmem:[%s10635_s9 + $0x50] sm:$0xff] }
 0x596   :  { %v3031_v32 = vpop.f32.mrf.mxu2  ;;  %3818 = vmatpush.msrb.mxu1 %v3604_v60  ;;  %3838 = vmatpush.msrb.mxu2 %v3623_v6  ;;  %v3599_v60 = vld [vmem:[%s10635_s9 + $0x30] sm:$0xff]  ;;  %v10840_v6 = vld [vmem:[#allocation26_spill] sm:$0xff] }
 0x597   :  { %v3032_v12 = vadd.f32 %v3031_v32, %v2972_v5  ;;  %v3602_v5 = vld [vmem:[%s10635_s9 + $0x48] sm:$0xff] }
 0x598   :  { %v9002_v9 = vpop.f32.mrf.mxu3  ;;  %v9004_v35 = vpop.f32.mrf.mxu0  ;;  %3819 = vmatpush.msrb.mxu1 %v3603_v13  ;;  %3839 = vmatpush.msrb.mxu2 %v3622_v58  ;;  %v5259_v13 = vld [vmem:[%s10635_s9 + $0x378] sm:$0xff] }
 0x599   :  { %v9013_v50 = vadd.f32 %v3032_v12, %v10839_v39  ;;  %v5272_v39 = vld [vmem:[%s10635_s9 + $0x3e0] sm:$0xff]  ;;  %3768 = vmatpush.msrb.mxu3 %v5259_v13  ;;  %v3595_v13 = vld [vmem:[%s10635_s9 + $0x10] sm:$0xff] }
 0x59a   :  { %v2978_v31 = vpop.f32.mrf.mxu1  ;;  %3820 = vmatpush.msrb.mxu1 %v3602_v5  ;;  %3840 = vmatpush.msrb.mxu2 %v3621_v16  ;;  %v3598_v5 = vld [vmem:[%s10635_s9 + $0x28] sm:$0xff]  ;;  %v3617_v16 = vld [vmem:[%s10635_s9 + $0xc0] sm:$0xff] }
 0x59b   :  { %3275 = vmatmul.f32.gmra.mxu2 %v7282_v1  ;;  %3393 = vmatmul.f32.gmra.mxu0 %v7282_v1  ;;  %v5274_v1 = vld [vmem:[%s10635_s9 + $0x3f0] sm:$0xff] }
 0x59c   :  { %3821 = vmatpush.msrb.mxu1 %v3601_v40  ;;  %3841 = vmatpush.msrb.mxu2 %v3620_v24  ;;  %v3597_v40 = vld [vmem:[%s10635_s9 + $0x20] sm:$0xff] }
 0x59d   :  { %3219 = vmatmul.f32.gmra.mxu1 %v7291_v21  ;;  %3337 = vmatmul.f32.gmra.mxu3 %v7291_v21  ;;  %v5273_v21 = vld [vmem:[%s10635_s9 + $0x3e8] sm:$0xff] }
 0x59e   :  { %v3034_v55 = vpop.f32.mrf.mxu2  ;;  %3792 = vmatpush.msrb.mxu0 %v5274_v1  ;;  %3822 = vmatpush.msrb.mxu1 %v3600_v30  ;;  %v3616_v1 = vld [vmem:[%s10635_s9 + $0xb8] sm:$0xff]  ;;  %v5270_v30 = vld [vmem:[%s10635_s9 + $0x3d0] sm:$0xff] }
 0x59f   :  { %v3035_v4 = vadd.f32 %v3034_v55, %v2975_v22  ;;  %3842 = vmatpush.msrb.mxu2 %v3619_v37  ;;  %v3618_v22 = vld [vmem:[%s10635_s9 + $0xc8] sm:$0xff]  ;;  %3769 = vmatpush.msrb.mxu3 %v5258_v43  ;;  %v3596_v37 = vld [vmem:[%s10635_s9 + $0x18] sm:$0xff] }
 0x5a0   :  { %v9046_v52 = vpop.f32.mrf.mxu3  ;;  %v9048_v32 = vpop.f32.mrf.mxu0  ;;  %3793 = vmatpush.msrb.mxu0 %v5273_v21  ;;  %3823 = vmatpush.msrb.mxu1 %v3599_v60  ;;  %v5257_v55 = vld [vmem:[%s10635_s9 + $0x368] sm:$0xff] }
 0x5a1   :  { %v9054_v12 = vadd.f32 %v3035_v4, %v10840_v6  ;;  %3843 = vmatpush.msrb.mxu2 %v3618_v22  ;;  %3770 = vmatpush.msrb.mxu3 %v5257_v55  ;;  %v5256_v6 = vld [vmem:[%s10635_s9 + $0x360] sm:$0xff] }
 0x5a2   :  { %v2981_v58 = vpop.f32.mrf.mxu1  ;;  %3794 = vmatpush.msrb.mxu0 %v5272_v39  ;;  %3824 = vmatpush.msrb.mxu1 %v3598_v5  ;;  %v3614_v39 = vld [vmem:[%s10635_s9 + $0xa8] sm:$0xff]  ;;  %v5255_v5 = vld [vmem:[%s10635_s9 + $0x358] sm:$0xff] }
 0x5a3   :  { %3278 = vmatmul.f32.gmra.mxu2 %v7330_v61  ;;  %3396 = vmatmul.f32.gmra.mxu0 %v7330_v61  ;;  %v5271_v61 = vld [vmem:[%s10635_s9 + $0x3d8] sm:$0xff] }
 0x5a4   :  { %3844 = vmatpush.msrb.mxu2 %v3617_v16  ;;  %3795 = vmatpush.msrb.mxu0 %v5271_v61  ;;  %v3594_v16 = vld [vmem:[%s10635_s9 + $0x8] sm:$0xff]  ;;  %v3613_v61 = vld [vmem:[%s10635_s9 + $0xa0] sm:$0xff] }
 0x5a5   :  { %3222 = vmatmul.f32.gmra.mxu1 %v7339_v59  ;;  %3340 = vmatmul.f32.gmra.mxu3 %v7339_v59 }
 0x5a6   :  { %v3037_v24 = vpop.f32.mrf.mxu2  ;;  %3825 = vmatpush.msrb.mxu1 %v3597_v40  ;;  %3845 = vmatpush.msrb.mxu2 %v3616_v1  ;;  %v5254_v40 = vld [vmem:[%s10635_s9 + $0x350] sm:$0xff]  ;;  %v3593_v1 = vld [vmem:[%s10635_s9] sm:$0xff] }
 0x5a7   :  { %v3038_v59 = vadd.f32 %v3037_v24, %v2978_v31  ;;  %v3615_v31 = vld [vmem:[%s10635_s9 + $0xb0] sm:$0xff]  ;;  %3796 = vmatpush.msrb.mxu0 %v5270_v30  ;;  %3771 = vmatpush.msrb.mxu3 %v5256_v6  ;;  %v5267_v24 = vld [vmem:[%s10635_s9 + $0x3b8] sm:$0xff] }
 0x5a8   :  { %v9096_v4 = vpop.f32.mrf.mxu3  ;;  %v9098_v21 = vpop.f32.mrf.mxu0  ;;  %3826 = vmatpush.msrb.mxu1 %v3596_v37  ;;  %3846 = vmatpush.msrb.mxu2 %v3615_v31  ;;  %v5253_v37 = vld [vmem:[%s10635_s9 + $0x348] sm:$0xff]  ;;  %v3611_v6 = vld [vmem:[%s10635_s9 + $0x90] sm:$0xff] }
 0x5a9   :  { %v9101_v60 = vadd.f32 %v3038_v59, %v8313_v49  ;;  %v5269_v49 = vld [vmem:[%s10635_s9 + $0x3c8] sm:$0xff]  ;;  %3772 = vmatpush.msrb.mxu3 %v5255_v5  ;;  %v5251_v5 = vld [vmem:[%s10635_s9 + $0x338] sm:$0xff] }
 0x5aa   :  { %v2984_v22 = vpop.f32.mrf.mxu1  ;;  %3797 = vmatpush.msrb.mxu0 %v5269_v49  ;;  %3827 = vmatpush.msrb.mxu1 %v3595_v13  ;;  %v5252_v49 = vld [vmem:[%s10635_s9 + $0x340] sm:$0xff]  ;;  %v3610_v13 = vld [vmem:[%s10635_s9 + $0x88] sm:$0xff] }
 0x5ab   :  { %3281 = vmatmul.f32.gmra.mxu2 %v7369_v17  ;;  %3399 = vmatmul.f32.gmra.mxu0 %v7369_v17  ;;  %v5268_v17 = vld [vmem:[%s10635_s9 + $0x3c0] sm:$0xff] }
 0x5ac   :  { %3847 = vmatpush.msrb.mxu2 %v3614_v39  ;;  %3798 = vmatpush.msrb.mxu0 %v5268_v17 }
 0x5ad   :  { %3225 = vmatmul.f32.gmra.mxu1 %v10797_v27  ;;  %3343 = vmatmul.f32.gmra.mxu3 %v10797_v27 }
 0x5ae   :  { %v3040_v43 = vpop.f32.mrf.mxu2  ;;  %3828 = vmatpush.msrb.mxu1 %v3594_v16  ;;  %3848 = vmatpush.msrb.mxu2 %v3613_v61  ;;  %v3609_v16 = vld [vmem:[%s10635_s9 + $0x80] sm:$0xff] }
 0x5af   :  { %v3041_v27 = vadd.f32 %v3040_v43, %v2981_v58  ;;  %3773 = vmatpush.msrb.mxu3 %v5254_v40  ;;  %v3612_v58 = vld [vmem:[%s10635_s9 + $0x98] sm:$0xff]  ;;  %3799 = vmatpush.msrb.mxu0 %v5267_v24 }
 0x5b0   :  { %v9143_v55 = vpop.f32.mrf.mxu3  ;;  %v9145_v59 = vpop.f32.mrf.mxu0  ;;  %3829 = vmatpush.msrb.mxu1 %v3593_v1  ;;  %3849 = vmatpush.msrb.mxu2 %v3612_v58  ;;  %v5262_v1 = vld [vmem:[%s10635_s9 + $0x390] sm:$0xff]  ;;  %v5248_v58 = vld [vmem:[%s10635_s9 + $0x320] sm:$0xff] }
 0x5b1   :  { %v9148_v30 = vadd.f32 %v3041_v27, %v8360_v28  ;;  %v5266_v28 = vld [vmem:[%s10635_s9 + $0x3b0] sm:$0xff]  ;;  %3774 = vmatpush.msrb.mxu3 %v5253_v37  ;;  %v5263_v27 = vld [vmem:[%s10635_s9 + $0x398] sm:$0xff] }
 0x5b2   :  { %v2987_v31 = vpop.f32.mrf.mxu1  ;;  %3800 = vmatpush.msrb.mxu0 %v5266_v28  ;;  %3850 = vmatpush.msrb.mxu2 %v3611_v6  ;;  %v3026_v28 = vadd.f32 %v8929_v51, %v8872_v54  ;;  %v3656_v54 = vld [vmem:[%s10635_s9 + $0x1f8] sm:$0xff]  ;;  %v5246_v51 = vld [vmem:[%s10635_s9 + $0x310] sm:$0xff] }
 0x5b3   :  { %3284 = vmatmul.f32.gmra.mxu2 %v10804_v33  ;;  %3402 = vmatmul.f32.gmra.mxu0 %v10804_v33  ;;  %v5265_v33 = vld [vmem:[%s10635_s9 + $0x3a8] sm:$0xff] }
 0x5b4   :  { %3775 = vmatpush.msrb.mxu3 %v5252_v49  ;;  %3801 = vmatpush.msrb.mxu0 %v5265_v33  ;;  %v5247_v49 = vld [vmem:[%s10635_s9 + $0x318] sm:$0xff] }
 0x5b5   :  { %3228 = vmatmul.f32.gmra.mxu1 %v10807_v25  ;;  %3346 = vmatmul.f32.gmra.mxu3 %v10807_v25  ;;  %v5264_v25 = vld [vmem:[%s10635_s9 + $0x3a0] sm:$0xff] }
 0x5b6   :  { %v3043_v39 = vpop.f32.mrf.mxu2  ;;  %3851 = vmatpush.msrb.mxu2 %v3610_v13  ;;  %3776 = vmatpush.msrb.mxu3 %v5251_v5  ;;  %v10841_v5 = vld [vmem:[#allocation20_spill] sm:$0xff] }
 0x5b7   :  { %v3044_v17 = vadd.f32 %v3043_v39, %v2984_v22  ;;  %v5250_v22 = vld [vmem:[%s10635_s9 + $0x330] sm:$0xff]  ;;  %3802 = vmatpush.msrb.mxu0 %v5264_v25  ;;  %v5245_v25 = vld [vmem:[%s10635_s9 + $0x308] sm:$0xff] }
 0x5b8   :  { %v9184_v43 = vpop.f32.mrf.mxu3  ;;  %v9186_v61 = vpop.f32.mrf.mxu0  ;;  %3852 = vmatpush.msrb.mxu2 %v3609_v16  ;;  %3777 = vmatpush.msrb.mxu3 %v5250_v22  ;;  %v9250_v16 = vld [vmem:[%s10636_s8] sm:$0xf] }
 0x5b9   :  { %v9189_v40 = vadd.f32 %v3044_v17, %v8398_v63  ;;  %v5249_v63 = vld [vmem:[%s10635_s9 + $0x328] sm:$0xff]  ;;  %3803 = vmatpush.msrb.mxu0 %v5263_v27  ;;  %v3423_v17 = vadd.f32 %v3026_v28, %v10841_v5  ;;  %v9253_v22 = vperm.slane %v9250_v16, 0  ;;  %v5244_v27 = vld [vmem:[%s10635_s9 + $0x300] sm:$0xff]  ;;  %v5291_v5 = vld [vmem:[%s10635_s9 + $0x478] sm:$0xff]  ;;  %v9541_v19 = vperm.slane %v9250_v16, 3 }
 0x5ba   :  { %v9197_v24 = vpop.f32.mrf.mxu1  ;;  %3778 = vmatpush.msrb.mxu3 %v5249_v63 }
 0x5bb   :  { %3287 = vmatmul.f32.gmra.mxu2 %v10817_v62  ;;  %3405 = vmatmul.f32.gmra.mxu0 %v10817_v62  ;;  %v5261_v62 = vld [vmem:[%s10635_s9 + $0x388] sm:$0xff] }
 0x5bc   :  { %3804 = vmatpush.msrb.mxu0 %v5262_v1  ;;  %3779 = vmatpush.msrb.mxu3 %v5248_v58  ;;  %v3640_v1 = vld [vmem:[%s10635_s9 + $0x178] sm:$0xff]  ;;  %v3489_v58 = vadd.f32 %v9253_v22, %v3423_v17  ;;  %v3638_v17 = vld [vmem:[%s10635_s9 + $0x168] sm:$0xff] }
 0x5bd   :  { %3231 = vmatmul.f32.gmra.mxu1 %v8764_v45  ;;  %3349 = vmatmul.f32.gmra.mxu3 %v8764_v45  ;;  %v5260_v45 = vld [vmem:[%s10635_s9 + $0x380] sm:$0xff] }
 0x5be   :  { %v3046_v37 = vpop.f32.mrf.mxu2  ;;  %3805 = vmatpush.msrb.mxu0 %v5261_v62  ;;  %3780 = vmatpush.msrb.mxu3 %v5247_v49  ;;  %v3653_v62 = vld [vmem:[%s10635_s9 + $0x1e0] sm:$0xff]  ;;  %v3652_v49 = vld [vmem:[%s10635_s9 + $0x1d8] sm:$0xff] }
 0x5bf   :  { %v3047_v6 = vadd.f32 %v3046_v37, %v2987_v31 }
 0x5c0   :  { %v9223_v33 = vpop.f32.mrf.mxu3  ;;  %v9225_v13 = vpop.f32.mrf.mxu0  ;;  %3806 = vmatpush.msrb.mxu0 %v5260_v45  ;;  %3781 = vmatpush.msrb.mxu3 %v5246_v51  ;;  %v3545_v45 = vmax.f32 %v3489_v58, 0.0 }
 0x5c1   :  { %v9228_v39 = vadd.f32 %v3047_v6, %v8421_v14  ;;  %v3655_v14 = vld [vmem:[%s10635_s9 + $0x1f0] sm:$0xff] }
 0x5c2   :  { %v9236_v31 = vpop.f32.mrf.mxu1  ;;  %3883 = vmatpush.msra.mxu0 %v3656_v54  ;;  %3782 = vmatpush.msrb.mxu3 %v5245_v25  ;;  %v3639_v6 = vld [vmem:[%s10635_s9 + $0x170] sm:$0xff]  ;;  %v10842_v54 = vld [vmem:[#allocation22_spill] sm:$0xff] }
 0x5c3   :  { %3290 = vmatmul.f32.gmra.mxu2 %v8785_v15  ;;  %3408 = vmatmul.f32.gmra.mxu0 %v8785_v15  ;;  %v3654_v15 = vld [vmem:[%s10635_s9 + $0x1e8] sm:$0xff] }
 0x5c4   :  { %3884 = vmatpush.msra.mxu0 %v3655_v14  ;;  %3783 = vmatpush.msrb.mxu3 %v5244_v27  ;;  %v3651_v14 = vld [vmem:[%s10635_s9 + $0x1d0] sm:$0xff] }
 0x5c5   :  { %3234 = vmatmul.f32.gmra.mxu1 %v8788_v26  ;;  %3352 = vmatmul.f32.gmra.mxu3 %v8788_v26  ;;  %v3029_v26 = vadd.f32 %v8962_v47, %v8908_v11  ;;  %v9287_v47 = vperm.slane %v9250_v16, 1 }
 0x5c6   :  { %v9263_v63 = vpop.f32.mrf.mxu2  ;;  %3885 = vmatpush.msra.mxu0 %v3654_v15  ;;  %3860 = vmatpush.msra.mxu3 %v3640_v1  ;;  %v3637_v15 = vld [vmem:[%s10635_s9 + $0x160] sm:$0xff]  ;;  %v3650_v1 = vld [vmem:[%s10635_s9 + $0x1c8] sm:$0xff] }
 0x5c7   :  { %v3427_v51 = vadd.f32 %v3029_v26, %v10842_v54  ;;  %v3490_v25 = vadd.f32 %v9287_v47, %v8911_v20  ;;  %v5289_v20 = vld [vmem:[%s10635_s9 + $0x468] sm:$0xff]  ;;  %v3636_v26 = vld [vmem:[%s10635_s9 + $0x158] sm:$0xff]  ;;  %v5288_v54 = vld [vmem:[%s10635_s9 + $0x460] sm:$0xff] }
 0x5c8   :  { %v9274_v37 = vpop.f32.mrf.mxu3  ;;  %v9276_v28 = vpop.f32.mrf.mxu0  ;;  %3886 = vmatpush.msra.mxu0 %v3653_v62  ;;  %3861 = vmatpush.msra.mxu3 %v3639_v6 }
 0x5c9   :  { %v3493_v58 = vadd.f32 %v9253_v22, %v3427_v51  ;;  %v5307_v51 = vld [vmem:[%s10635_s9 + $0x4f8] sm:$0xff] }
 0x5ca   :  { %v9284_v11 = vpop.f32.mrf.mxu1  ;;  %3887 = vmatpush.msra.mxu0 %v3652_v49  ;;  %3862 = vmatpush.msra.mxu3 %v3638_v17  ;;  %v3649_v49 = vld [vmem:[%s10635_s9 + $0x1c0] sm:$0xff]  ;;  %v3635_v17 = vld [vmem:[%s10635_s9 + $0x150] sm:$0xff] }
 0x5cb   :  { %3293 = vmatmul.f32.gmra.mxu2 %v8802_v46  ;;  %3411 = vmatmul.f32.gmra.mxu0 %v8802_v46  ;;  %v5290_v46 = vld [vmem:[%s10635_s9 + $0x470] sm:$0xff] }
 0x5cc   :  { %3888 = vmatpush.msra.mxu0 %v3651_v14  ;;  %3863 = vmatpush.msra.mxu3 %v3637_v15  ;;  %v3549_v14 = vmax.f32 %v3493_v58, 0.0  ;;  %v3648_v15 = vld [vmem:[%s10635_s9 + $0x1b8] sm:$0xff]  ;;  %v5305_v58 = vld [vmem:[%s10635_s9 + $0x4e8] sm:$0xff] }
 0x5cd   :  { %3738 = vmatmul.f32.vlgmr.msra.gmra.mxu1 %v3545_v45  ;;  %v3546_v45 = vmax.f32 %v3490_v25, 0.0  ;;  %v5287_v25 = vld [vmem:[%s10635_s9 + $0x458] sm:$0xff] }
 0x5ce   :  { %3971 = vmatpush.msra.mxu1 %v5291_v5  ;;  %v9309_v27 = vpop.f32.mrf.mxu2  ;;  %3889 = vmatpush.msra.mxu0 %v3650_v1  ;;  %v3634_v1 = vld [vmem:[%s10635_s9 + $0x148] sm:$0xff] }
 0x5cf   :  { %3864 = vmatpush.msra.mxu3 %v3636_v26  ;;  %v3494_v26 = vadd.f32 %v9287_v47, %v8944_v10  ;;  %v5285_v10 = vld [vmem:[%s10635_s9 + $0x448] sm:$0xff] }
 0x5d0   :  { %3972 = vmatpush.msra.mxu1 %v5290_v46  ;;  %v9321_v62 = vpop.f32.mrf.mxu3  ;;  %v9323_v6 = vpop.f32.mrf.mxu0  ;;  %v5306_v46 = vld [vmem:[%s10635_s9 + $0x4f0] sm:$0xff]  ;;  %3890 = vmatpush.msra.mxu0 %v3649_v49 }
 0x5d1   :  { %3865 = vmatpush.msra.mxu3 %v3635_v17  ;;  %v5304_v17 = vld [vmem:[%s10635_s9 + $0x4e0] sm:$0xff] }
 0x5d2   :  { %3973 = vmatpush.msra.mxu1 %v5289_v20  ;;  %v9334_v5 = vpop.f32.mrf.mxu1  ;;  %v5286_v20 = vld [vmem:[%s10635_s9 + $0x450] sm:$0xff]  ;;  %3891 = vmatpush.msra.mxu0 %v3648_v15  ;;  %v5303_v15 = vld [vmem:[%s10635_s9 + $0x4d8] sm:$0xff] }
 0x5d3   :  { %3761 = vmatmul.f32.vlgmr.msra.gmra.mxu2 %v3546_v45  ;;  %v3647_v45 = vld [vmem:[%s10635_s9 + $0x1b0] sm:$0xff]  ;;  %3866 = vmatpush.msra.mxu3 %v3634_v1 }
 0x5d4   :  { %3974 = vmatpush.msra.mxu1 %v5288_v54  ;;  %3994 = vmatpush.msra.mxu2 %v5307_v51  ;;  %v3633_v54 = vld [vmem:[%s10635_s9 + $0x140] sm:$0xff]  ;;  %v3481_v51 = vadd.f32 %v9253_v22, %v8864_v8  ;;  %v3646_v8 = vld [vmem:[%s10635_s9 + $0x1a8] sm:$0xff] }
 0x5d5   :  { %3741 = vmatmul.f32.gmra.mxu1 %v3549_v14  ;;  %3892 = vmatpush.msra.mxu0 %v3647_v45  ;;  %v3645_v45 = vld [vmem:[%s10635_s9 + $0x1a0] sm:$0xff] }
 0x5d6   :  { %3975 = vmatpush.msra.mxu1 %v5287_v25  ;;  %3995 = vmatpush.msra.mxu2 %v5306_v46  ;;  %v9359_v49 = vpop.f32.mrf.mxu2  ;;  %v3550_v46 = vmax.f32 %v3494_v26, 0.0  ;;  %v5283_v26 = vld [vmem:[%s10635_s9 + $0x438] sm:$0xff] }
 0x5d7   :  { %3867 = vmatpush.msra.mxu3 %v3633_v54  ;;  %3893 = vmatpush.msra.mxu0 %v3646_v8  ;;  %v3631_v54 = vld [vmem:[%s10635_s9 + $0x130] sm:$0xff]  ;;  %v3644_v8 = vld [vmem:[%s10635_s9 + $0x198] sm:$0xff] }
 0x5d8   :  { %3976 = vmatpush.msra.mxu1 %v5286_v20  ;;  %3996 = vmatpush.msra.mxu2 %v5305_v58  ;;  %v9375_v14 = vpop.f32.mrf.mxu3  ;;  %v9377_v25 = vpop.f32.mrf.mxu0  ;;  %v3632_v20 = vld [vmem:[%s10635_s9 + $0x138] sm:$0xff]  ;;  %v3537_v58 = vmax.f32 %v3481_v51, 0.0  ;;  %v3482_v51 = vadd.f32 %v9287_v47, %v8842_v42  ;;  %v3630_v42 = vld [vmem:[%s10635_s9 + $0x128] sm:$0xff] }
 0x5d9   :  { %3868 = vmatpush.msra.mxu3 %v3632_v20  ;;  %3894 = vmatpush.msra.mxu0 %v3645_v45 }
 0x5da   :  { %3977 = vmatpush.msra.mxu1 %v5285_v10  ;;  %3997 = vmatpush.msra.mxu2 %v5304_v17  ;;  %v9388_v1 = vpop.f32.mrf.mxu1  ;;  %v5282_v10 = vld [vmem:[%s10635_s9 + $0x430] sm:$0xff]  ;;  %v3538_v57 = vmax.f32 %v3482_v51, 0.0 }
 0x5db   :  { %3764 = vmatmul.f32.gmra.mxu2 %v3550_v46  ;;  %v5281_v46 = vld [vmem:[%s10635_s9 + $0x428] sm:$0xff]  ;;  %3869 = vmatpush.msra.mxu3 %v3631_v54  ;;  %v3629_v54 = vld [vmem:[%s10635_s9 + $0x120] sm:$0xff] }
 0x5dc   :  { %3978 = vmatpush.msra.mxu1 %v5284_v3  ;;  %3998 = vmatpush.msra.mxu2 %v5303_v15  ;;  %v5301_v3 = vld [vmem:[%s10635_s9 + $0x4c8] sm:$0xff]  ;;  %v5300_v15 = vld [vmem:[%s10635_s9 + $0x4c0] sm:$0xff] }
 0x5dd   :  { %3830 = vmatmul.f32.vlgmr.msrb.gmra.mxu1 %v3537_v58  ;;  %3895 = vmatpush.msra.mxu0 %v3644_v8  ;;  %v3642_v8 = vld [vmem:[%s10635_s9 + $0x188] sm:$0xff] }
 0x5de   :  { %3979 = vmatpush.msra.mxu1 %v5283_v26  ;;  %3999 = vmatpush.msra.mxu2 %v5302_v41  ;;  %v9413_v17 = vpop.f32.mrf.mxu2  ;;  %v3485_v41 = vadd.f32 %v9253_v22, %v8900_v34  ;;  %v3643_v26 = vld [vmem:[%s10635_s9 + $0x190] sm:$0xff]  ;;  %v5299_v34 = vld [vmem:[%s10635_s9 + $0x4b8] sm:$0xff] }
 0x5df   :  { %3870 = vmatpush.msra.mxu3 %v3630_v42  ;;  %3896 = vmatpush.msra.mxu0 %v3643_v26  ;;  %v5278_v42 = vld [vmem:[%s10635_s9 + $0x410] sm:$0xff]  ;;  %v3641_v26 = vld [vmem:[%s10635_s9 + $0x180] sm:$0xff] }
 0x5e0   :  { %3980 = vmatpush.msra.mxu1 %v5282_v10  ;;  %4000 = vmatpush.msra.mxu2 %v5301_v3  ;;  %v9429_v20 = vpop.f32.mrf.mxu3  ;;  %v9431_v58 = vpop.f32.mrf.mxu0  ;;  %v3541_v51 = vmax.f32 %v3485_v41, 0.0  ;;  %v5279_v10 = vld [vmem:[%s10635_s9 + $0x418] sm:$0xff]  ;;  %v5298_v3 = vld [vmem:[%s10635_s9 + $0x4b0] sm:$0xff] }
 0x5e1   :  { %3871 = vmatpush.msra.mxu3 %v3629_v54  ;;  %3897 = vmatpush.msra.mxu0 %v3642_v8  ;;  %v5295_v8 = vld [vmem:[%s10635_s9 + $0x498] sm:$0xff] }
 0x5e2   :  { %3981 = vmatpush.msra.mxu1 %v5281_v46  ;;  %4001 = vmatpush.msra.mxu2 %v5300_v15  ;;  %v9442_v45 = vpop.f32.mrf.mxu1  ;;  %v5297_v46 = vld [vmem:[%s10635_s9 + $0x4a8] sm:$0xff]  ;;  %v3150_v15 = vadd.f32 %v8972_v23, %v8970_v36  ;;  %v5296_v36 = vld [vmem:[%s10635_s9 + $0x4a0] sm:$0xff]  ;;  %v3497_v23 = vadd.f32 %v9253_v22, %v9013_v50 }
 0x5e3   :  { %3853 = vmatmul.f32.vlgmr.msrb.gmra.mxu2 %v3538_v57  ;;  %v3628_v57 = vld [vmem:[%s10635_s9 + $0x118] sm:$0xff]  ;;  %3898 = vmatpush.msra.mxu0 %v3641_v26  ;;  %v10843_v50 = vld [vmem:[#allocation23_spill] sm:$0xff] }
 0x5e4   :  { %3982 = vmatpush.msra.mxu1 %v5280_v48  ;;  %4002 = vmatpush.msra.mxu2 %v5299_v34  ;;  %v3486_v48 = vadd.f32 %v9287_v47, %v8875_v38  ;;  %v3627_v34 = vld [vmem:[%s10635_s9 + $0x110] sm:$0xff]  ;;  %v5277_v38 = vld [vmem:[%s10635_s9 + $0x408] sm:$0xff]  ;;  %v3553_v26 = vmax.f32 %v3497_v23, 0.0  ;;  %v3153_v23 = vadd.f32 %v9004_v35, %v9002_v9 }
 0x5e5   :  { %3833 = vmatmul.f32.gmra.mxu1 %v3541_v51  ;;  %3872 = vmatpush.msra.mxu3 %v3628_v57  ;;  %v3432_v57 = vadd.f32 %v3150_v15, %v10843_v50  ;;  %v5354_v15 = vld [vmem:[%s10635_s9 + $0x670] sm:$0xff]  ;;  %v5371_v50 = vld [vmem:[%s10635_s9 + $0x6f8] sm:$0xff] }
 0x5e6   :  { %3983 = vmatpush.msra.mxu1 %v5279_v10  ;;  %4003 = vmatpush.msra.mxu2 %v5298_v3  ;;  %v9469_v41 = vpop.f32.mrf.mxu2  ;;  %v3626_v10 = vld [vmem:[%s10635_s9 + $0x108] sm:$0xff]  ;;  %v3542_v3 = vmax.f32 %v3486_v48, 0.0  ;;  %v3625_v48 = vld [vmem:[%s10635_s9 + $0x100] sm:$0xff] }
 0x5e7   :  { %3873 = vmatpush.msra.mxu3 %v3627_v34  ;;  %v5293_v34 = vld [vmem:[%s10635_s9 + $0x488] sm:$0xff] }
 0x5e8   :  { %3984 = vmatpush.msra.mxu1 %v5278_v42  ;;  %4004 = vmatpush.msra.mxu2 %v5297_v46  ;;  %v9485_v54 = vpop.f32.mrf.mxu3  ;;  %v9487_v51 = vpop.f32.mrf.mxu0  ;;  %v5355_v46 = vld [vmem:[%s10635_s9 + $0x678] sm:$0xff] }
 0x5e9   :  { %3874 = vmatpush.msra.mxu3 %v3626_v10  ;;  %v5292_v10 = vld [vmem:[%s10635_s9 + $0x480] sm:$0xff] }
 0x5ea   :  { %3985 = vmatpush.msra.mxu1 %v5277_v38  ;;  %4005 = vmatpush.msra.mxu2 %v5296_v36  ;;  %v3202_v42 = vpop.f32.mrf.mxu1  ;;  %v3498_v38 = vadd.f32 %v9287_v47, %v3432_v57  ;;  %v3501_v57 = vadd.f32 %v9253_v22, %v9054_v12 }
 0x5eb   :  { %3856 = vmatmul.f32.gmra.mxu2 %v3542_v3  ;;  %3875 = vmatpush.msra.mxu3 %v3625_v48  ;;  %v5351_v48 = vld [vmem:[%s10635_s9 + $0x658] sm:$0xff] }
 0x5ec   :  { %3986 = vmatpush.msra.mxu1 %v5276_v7  ;;  %4006 = vmatpush.msra.mxu2 %v5295_v8  ;;  %v5353_v7 = vld [vmem:[%s10635_s9 + $0x668] sm:$0xff]  ;;  %v3554_v35 = vmax.f32 %v3498_v38, 0.0  ;;  %v3557_v38 = vmax.f32 %v3501_v57, 0.0 }
 0x5ed   :  { %3987 = vmatmul.f32.vlgmr.msra.gmra.mxu1 %v3553_v26  ;;  %v5370_v26 = vld [vmem:[%s10635_s9 + $0x6f0] sm:$0xff] }
 0x5ee   :  { %4130 = vmatpush.msrb.mxu1 %v5355_v46  ;;  %4007 = vmatpush.msra.mxu2 %v5294_v18  ;;  %v9515_v36 = vpop.f32.mrf.mxu2  ;;  %v5352_v18 = vld [vmem:[%s10635_s9 + $0x660] sm:$0xff] }
 0x5f0   :  { %4131 = vmatpush.msrb.mxu1 %v5354_v15  ;;  %4008 = vmatpush.msra.mxu2 %v5293_v34  ;;  %v3320_v3 = vpop.f32.mrf.mxu3  ;;  %v3379_v8 = vpop.f32.mrf.mxu0  ;;  %v10844_v15 = vld [vmem:[#allocation25_spill] sm:$0xff] }
 0x5f1   :  { %v3380_v9 = vadd.f32 %v3379_v8, %v3320_v3  ;;  %v3436_v34 = vadd.f32 %v3153_v23, %v10844_v15  ;;  %v5368_v8 = vld [vmem:[%s10635_s9 + $0x6e0] sm:$0xff]  ;;  %v9565_v15 = vperm.slane %v9250_v16, 2 }
 0x5f2   :  { %4132 = vmatpush.msrb.mxu1 %v5353_v7  ;;  %4009 = vmatpush.msra.mxu2 %v5292_v10  ;;  %v3205_v46 = vpop.f32.mrf.mxu1  ;;  %v5350_v7 = vld [vmem:[%s10635_s9 + $0x650] sm:$0xff]  ;;  %v5369_v10 = vld [vmem:[%s10635_s9 + $0x6e8] sm:$0xff] }
 0x5f3   :  { %v3426_v12 = vadd.f32 %v3380_v9, %v8492_v56  ;;  %4010 = vmatmul.f32.vlgmr.msra.gmra.mxu2 %v3554_v35  ;;  %v5349_v56 = vld [vmem:[%s10635_s9 + $0x648] sm:$0xff]  ;;  %v3502_v57 = vadd.f32 %v9287_v47, %v3436_v34  ;;  %v5367_v34 = vld [vmem:[%s10635_s9 + $0x6d8] sm:$0xff] }
 0x5f4   :  { %4133 = vmatpush.msrb.mxu1 %v5352_v18  ;;  %4153 = vmatpush.msrb.mxu2 %v5371_v50 }
 0x5f5   :  { %v3492_v3 = vadd.f32 %v9541_v19, %v3426_v12  ;;  %3990 = vmatmul.f32.gmra.mxu1 %v3557_v38 }
 0x5f6   :  { %4134 = vmatpush.msrb.mxu1 %v5351_v48  ;;  %4154 = vmatpush.msrb.mxu2 %v5370_v26  ;;  %v3261_v23 = vpop.f32.mrf.mxu2  ;;  %v5339_v48 = vld [vmem:[%s10635_s9 + $0x5f8] sm:$0xff]  ;;  %v5348_v26 = vld [vmem:[%s10635_s9 + $0x640] sm:$0xff] }
 0x5f7   :  { %v3548_v18 = vmax.f32 %v3492_v3, 0.0  ;;  %v3262_v50 = vadd.f32 %v3261_v23, %v3202_v42  ;;  %v5347_v3 = vld [vmem:[%s10635_s9 + $0x638] sm:$0xff]  ;;  %v5366_v23 = vld [vmem:[%s10635_s9 + $0x6d0] sm:$0xff] }
 0x5f8   :  { %4135 = vmatpush.msrb.mxu1 %v5350_v7  ;;  %4155 = vmatpush.msrb.mxu2 %v5369_v10  ;;  %v3323_v9 = vpop.f32.mrf.mxu3  ;;  %v3382_v35 = vpop.f32.mrf.mxu0  ;;  %v5338_v7 = vld [vmem:[%s10635_s9 + $0x5f0] sm:$0xff] }
 0x5f9   :  { %v3425_v12 = vadd.f32 %v3262_v50, %v8507_v29  ;;  %v3383_v42 = vadd.f32 %v3382_v35, %v3323_v9  ;;  %3807 = vmatmul.f32.vlgmr.msrb.gmra.mxu0 %v3548_v18  ;;  %v3558_v29 = vmax.f32 %v3502_v57, 0.0  ;;  %v5365_v18 = vld [vmem:[%s10635_s9 + $0x6c8] sm:$0xff]  ;;  %v3374_v57 = vadd.f32 %v9431_v58, %v9429_v20  ;;  %v5323_v35 = vld [vmem:[%s10635_s9 + $0x578] sm:$0xff]  ;;  %v5364_v20 = vld [vmem:[%s10635_s9 + $0x6c0] sm:$0xff] }
 0x5fa   :  { %4136 = vmatpush.msrb.mxu1 %v5349_v56  ;;  %4156 = vmatpush.msrb.mxu2 %v5368_v8  ;;  %v9571_v38 = vpop.f32.mrf.mxu1  ;;  %v5337_v56 = vld [vmem:[%s10635_s9 + $0x5e8] sm:$0xff] }
 0x5fb   :  { %v3491_v10 = vadd.f32 %v9565_v15, %v3425_v12  ;;  %v3430_v16 = vadd.f32 %v3383_v42, %v8512_v44  ;;  %4040 = vmatpush.msrb.mxu0 %v5339_v48  ;;  %4013 = vmatmul.f32.gmra.mxu2 %v3558_v29  ;;  %v5346_v44 = vld [vmem:[%s10635_s9 + $0x630] sm:$0xff]  ;;  %v5336_v48 = vld [vmem:[%s10635_s9 + $0x5e0] sm:$0xff]  ;;  %v5345_v12 = vld [vmem:[%s10635_s9 + $0x628] sm:$0xff] }
 0x5fc   :  { %4137 = vmatpush.msrb.mxu1 %v5348_v26  ;;  %4157 = vmatpush.msrb.mxu2 %v5367_v34  ;;  %v5322_v42 = vld [vmem:[%s10635_s9 + $0x570] sm:$0xff] }
 0x5fd   :  { %v3547_v8 = vmax.f32 %v3491_v10, 0.0  ;;  %4041 = vmatpush.msrb.mxu0 %v5338_v7  ;;  %v3496_v50 = vadd.f32 %v9541_v19, %v3430_v16  ;;  %v5344_v7 = vld [vmem:[%s10635_s9 + $0x620] sm:$0xff]  ;;  %v10845_v10 = vld [vmem:[#allocation39_spill] sm:$0xff] }
 0x5fe   :  { %4138 = vmatpush.msrb.mxu1 %v5347_v3  ;;  %4158 = vmatpush.msrb.mxu2 %v5366_v23  ;;  %v3264_v9 = vpop.f32.mrf.mxu2  ;;  %v3418_v16 = vadd.f32 %v3374_v57, %v10845_v10  ;;  %v5321_v3 = vld [vmem:[%s10635_s9 + $0x568] sm:$0xff]  ;;  %v5334_v23 = vld [vmem:[%s10635_s9 + $0x5d0] sm:$0xff] }
 0x5ff   :  { %4042 = vmatpush.msrb.mxu0 %v5337_v56  ;;  %v3265_v26 = vadd.f32 %v3264_v9, %v3205_v46  ;;  %3784 = vmatmul.f32.vlgmr.msrb.gmra.mxu3 %v3547_v8  ;;  %v3552_v58 = vmax.f32 %v3496_v50, 0.0  ;;  %v5335_v46 = vld [vmem:[%s10635_s9 + $0x5d8] sm:$0xff]  ;;  %v3256_v50 = vadd.f32 %v9469_v41, %v9388_v1  ;;  %v5333_v57 = vld [vmem:[%s10635_s9 + $0x5c8] sm:$0xff]  ;;  %v5342_v9 = vld [vmem:[%s10635_s9 + $0x610] sm:$0xff]  ;;  %v3377_v41 = vadd.f32 %v9487_v51, %v9485_v54 }
 0x600   :  { %4139 = vmatpush.msrb.mxu1 %v5346_v44  ;;  %4159 = vmatpush.msrb.mxu2 %v5365_v18  ;;  %v5343_v56 = vld [vmem:[%s10635_s9 + $0x618] sm:$0xff]  ;;  %v5362_v44 = vld [vmem:[%s10635_s9 + $0x6b0] sm:$0xff]  ;;  %v5320_v18 = vld [vmem:[%s10635_s9 + $0x560] sm:$0xff]  ;;  %v3156_v51 = vadd.f32 %v9048_v32, %v9046_v52 }
 0x601   :  { %v3429_v34 = vadd.f32 %v3265_v26, %v8533_v0  ;;  %4017 = vmatpush.msrb.mxu3 %v5323_v35  ;;  %4043 = vmatpush.msrb.mxu0 %v5336_v48  ;;  %v5363_v0 = vld [vmem:[%s10635_s9 + $0x6b8] sm:$0xff]  ;;  %v3484_v48 = vadd.f32 %v9541_v19, %v3418_v16  ;;  %v5361_v1 = vld [vmem:[%s10635_s9 + $0x6a8] sm:$0xff]  ;;  %v5360_v54 = vld [vmem:[%s10635_s9 + $0x6a0] sm:$0xff] }
 0x602   :  { %4140 = vmatpush.msrb.mxu1 %v5345_v12  ;;  %4160 = vmatpush.msrb.mxu2 %v5364_v20  ;;  %v9619_v29 = vpop.f32.mrf.mxu1  ;;  %v5319_v12 = vld [vmem:[%s10635_s9 + $0x558] sm:$0xff]  ;;  %v5332_v20 = vld [vmem:[%s10635_s9 + $0x5c0] sm:$0xff] }
 0x603   :  { %3810 = vmatmul.f32.gmra.mxu0 %v3552_v58  ;;  %4018 = vmatpush.msrb.mxu3 %v5322_v42  ;;  %v3495_v8 = vadd.f32 %v9565_v15, %v3429_v34  ;;  %v5341_v58 = vld [vmem:[%s10635_s9 + $0x608] sm:$0xff]  ;;  %v3505_v42 = vadd.f32 %v9253_v22, %v9101_v60  ;;  %v10846_v34 = vld [vmem:[#allocation40_spill] sm:$0xff]  ;;  %v3540_v10 = vmax.f32 %v3484_v48, 0.0  ;;  %v5331_v16 = vld [vmem:[%s10635_s9 + $0x5b8] sm:$0xff] }
 0x604   :  { %4044 = vmatpush.msrb.mxu0 %v5335_v46  ;;  %4141 = vmatpush.msrb.mxu1 %v5344_v7  ;;  %v3417_v46 = vadd.f32 %v3256_v50, %v10846_v34  ;;  %v5318_v7 = vld [vmem:[%s10635_s9 + $0x550] sm:$0xff]  ;;  %v5340_v52 = vld [vmem:[%s10635_s9 + $0x600] sm:$0xff]  ;;  %v10847_v32 = vld [vmem:[#allocation41_spill] sm:$0xff] }
 0x605   :  { %4161 = vmatpush.msrb.mxu2 %v5363_v0  ;;  %4019 = vmatpush.msrb.mxu3 %v5321_v3  ;;  %v3551_v35 = vmax.f32 %v3495_v8, 0.0  ;;  %v3422_v60 = vadd.f32 %v3377_v41, %v10847_v32  ;;  %v5359_v3 = vld [vmem:[%s10635_s9 + $0x698] sm:$0xff]  ;;  %v10848_v8 = vld [vmem:[#allocation27_spill] sm:$0xff]  ;;  %v3259_v41 = vadd.f32 %v9515_v36, %v9442_v45  ;;  %v5328_v45 = vld [vmem:[%s10635_s9 + $0x5a0] sm:$0xff] }
 0x606   :  { %4045 = vmatpush.msrb.mxu0 %v5334_v23  ;;  %4142 = vmatpush.msrb.mxu1 %v5343_v56  ;;  %v9649_v26 = vpop.f32.mrf.mxu2  ;;  %v5317_v23 = vld [vmem:[%s10635_s9 + $0x548] sm:$0xff]  ;;  %v5330_v56 = vld [vmem:[%s10635_s9 + $0x5b0] sm:$0xff]  ;;  %v3483_v50 = vadd.f32 %v9565_v15, %v3417_v46  ;;  %v5315_v34 = vld [vmem:[%s10635_s9 + $0x538] sm:$0xff] }
 0x607   :  { %4162 = vmatpush.msrb.mxu2 %v5362_v44  ;;  %4020 = vmatpush.msrb.mxu3 %v5320_v18  ;;  %v3440_v44 = vadd.f32 %v3156_v51, %v10848_v8  ;;  %v3561_v18 = vmax.f32 %v3505_v42, 0.0  ;;  %v5329_v48 = vld [vmem:[%s10635_s9 + $0x5a8] sm:$0xff]  ;;  %v3488_v51 = vadd.f32 %v9541_v19, %v3422_v60  ;;  %v10849_v32 = vld [vmem:[#allocation42_spill] sm:$0xff]  ;;  %v3509_v8 = vadd.f32 %v9253_v22, %v9148_v30  ;;  %v5326_v30 = vld [vmem:[%s10635_s9 + $0x590] sm:$0xff] }
 0x608   :  { %4046 = vmatpush.msrb.mxu0 %v5333_v57  ;;  %4143 = vmatpush.msrb.mxu1 %v5342_v9  ;;  %v5419_v57 = vld [vmem:[%s10635_s9 + $0x878] sm:$0xff]  ;;  %v5358_v9 = vld [vmem:[%s10635_s9 + $0x690] sm:$0xff]  ;;  %v3539_v42 = vmax.f32 %v3483_v50, 0.0  ;;  %v5417_v46 = vld [vmem:[%s10635_s9 + $0x868] sm:$0xff]  ;;  %v3421_v60 = vadd.f32 %v3259_v41, %v10849_v32 }
 0x609   :  { %4163 = vmatpush.msrb.mxu2 %v5361_v1  ;;  %3787 = vmatmul.f32.gmra.mxu3 %v3551_v35  ;;  %v5316_v35 = vld [vmem:[%s10635_s9 + $0x540] sm:$0xff]  ;;  %v3506_v36 = vadd.f32 %v9287_v47, %v3440_v44  ;;  %v5435_v44 = vld [vmem:[%s10635_s9 + $0x8f8] sm:$0xff]  ;;  %v10850_v50 = vld [vmem:[#allocation43_spill] sm:$0xff]  ;;  %v3565_v41 = vmax.f32 %v3509_v8, 0.0 }
 0x60a   :  { %4021 = vmatpush.msrb.mxu3 %v5319_v12  ;;  %4047 = vmatpush.msrb.mxu0 %v5332_v20  ;;  %v9679_v0 = vpop.f32.mrf.mxu1  ;;  %v3326_v12 = vpop.f32.mrf.mxu3  ;;  %v5413_v32 = vld [vmem:[%s10635_s9 + $0x848] sm:$0xff]  ;;  %v10852_v8 = vld [vmem:[#allocation44_spill] sm:$0xff] }
 0x60b   :  { %4144 = vmatpush.msrb.mxu1 %v5341_v58  ;;  %4164 = vmatpush.msrb.mxu2 %v5360_v54  ;;  %v3385_v20 = vpop.f32.mrf.mxu0  ;;  %v5418_v58 = vld [vmem:[%s10635_s9 + $0x870] sm:$0xff]  ;;  %v5357_v54 = vld [vmem:[%s10635_s9 + $0x688] sm:$0xff] }
 0x60c   :  { %3899 = vmatmul.f32.vlgmr.msra.gmra.mxu0 %v3540_v10  ;;  %4022 = vmatpush.msrb.mxu3 %v5318_v7  ;;  %v3386_v7 = vadd.f32 %v3385_v20, %v3326_v12  ;;  %v5356_v10 = vld [vmem:[%s10635_s9 + $0x680] sm:$0xff]  ;;  %v5415_v12 = vld [vmem:[%s10635_s9 + $0x858] sm:$0xff]  ;;  %v5434_v20 = vld [vmem:[%s10635_s9 + $0x8f0] sm:$0xff] }
 0x60d   :  { %4048 = vmatpush.msrb.mxu0 %v5331_v16  ;;  %4145 = vmatpush.msrb.mxu1 %v5340_v52  ;;  %v3159_v52 = vadd.f32 %v9098_v21, %v9096_v4  ;;  %v5416_v4 = vld [vmem:[%s10635_s9 + $0x860] sm:$0xff]  ;;  %v3562_v21 = vmax.f32 %v3506_v36, 0.0 }
 0x60e   :  { %4165 = vmatpush.msrb.mxu2 %v5359_v3  ;;  %4023 = vmatpush.msrb.mxu3 %v5317_v23  ;;  %v9708_v1 = vpop.f32.mrf.mxu2  ;;  %v3544_v3 = vmax.f32 %v3488_v51, 0.0  ;;  %v5314_v23 = vld [vmem:[%s10635_s9 + $0x530] sm:$0xff]  ;;  %v5325_v51 = vld [vmem:[%s10635_s9 + $0x588] sm:$0xff] }
 0x60f   :  { %4049 = vmatpush.msrb.mxu0 %v5330_v56  ;;  %4146 = vmatmul.f32.vlgmr.msrb.gmra.mxu1 %v3561_v18  ;;  %v5327_v56 = vld [vmem:[%s10635_s9 + $0x598] sm:$0xff]  ;;  %v5313_v18 = vld [vmem:[%s10635_s9 + $0x528] sm:$0xff] }
 0x610   :  { %4289 = vmatpush.msra.mxu1 %v5419_v57  ;;  %4166 = vmatpush.msrb.mxu2 %v5358_v9  ;;  %v3434_v57 = vadd.f32 %v3386_v7, %v10850_v50 }
 0x611   :  { %4024 = vmatpush.msrb.mxu3 %v5316_v35  ;;  %4050 = vmatpush.msrb.mxu0 %v5329_v48  ;;  %v10851_v35 = vld [vmem:[#allocation28_spill] sm:$0xff] }
 0x612   :  { %4290 = vmatpush.msra.mxu1 %v5418_v58  ;;  %4167 = vmatpush.msrb.mxu2 %v5357_v54  ;;  %v9732_v16 = vpop.f32.mrf.mxu1  ;;  %v3444_v48 = vadd.f32 %v3159_v52, %v10851_v35  ;;  %v3487_v58 = vadd.f32 %v9565_v15, %v3421_v60  ;;  %v5312_v54 = vld [vmem:[%s10635_s9 + $0x520] sm:$0xff]  ;;  %v3329_v36 = vpop.f32.mrf.mxu3  ;;  %v3500_v7 = vadd.f32 %v9541_v19, %v3434_v57  ;;  %v5311_v52 = vld [vmem:[%s10635_s9 + $0x518] sm:$0xff]  ;;  %v5402_v35 = vld [vmem:[%s10635_s9 + $0x7f0] sm:$0xff] }
 0x613   :  { %3876 = vmatmul.f32.vlgmr.msra.gmra.mxu3 %v3539_v42  ;;  %4051 = vmatpush.msrb.mxu0 %v5328_v45  ;;  %v3268_v45 = vadd.f32 %v9649_v26, %v9571_v38  ;;  %v3388_v42 = vpop.f32.mrf.mxu0  ;;  %v5324_v38 = vld [vmem:[%s10635_s9 + $0x580] sm:$0xff] }
 0x614   :  { %4025 = vmatpush.msrb.mxu3 %v5315_v34  ;;  %4291 = vmatpush.msra.mxu1 %v5417_v46  ;;  %v5414_v34 = vld [vmem:[%s10635_s9 + $0x850] sm:$0xff]  ;;  %v5433_v46 = vld [vmem:[%s10635_s9 + $0x8e8] sm:$0xff]  ;;  %v3510_v60 = vadd.f32 %v9287_v47, %v3444_v48  ;;  %v10853_v48 = vld [vmem:[#allocation45_spill] sm:$0xff] }
 0x615   :  { %4168 = vmatpush.msrb.mxu2 %v5356_v10  ;;  %3902 = vmatmul.f32.gmra.mxu0 %v3544_v3  ;;  %v3543_v10 = vmax.f32 %v3487_v58, 0.0  ;;  %v3389_v3 = vadd.f32 %v3388_v42, %v3329_v36  ;;  %v5308_v36 = vld [vmem:[%s10635_s9 + $0x500] sm:$0xff]  ;;  %v5410_v42 = vld [vmem:[%s10635_s9 + $0x830] sm:$0xff] }
 0x616   :  { %4026 = vmatpush.msrb.mxu3 %v5314_v23  ;;  %4052 = vmatpush.msrb.mxu0 %v5327_v56  ;;  %v9758_v9 = vpop.f32.mrf.mxu2  ;;  %v5432_v23 = vld [vmem:[%s10635_s9 + $0x8e0] sm:$0xff]  ;;  %v5403_v56 = vld [vmem:[%s10635_s9 + $0x7f8] sm:$0xff]  ;;  %v3566_v57 = vmax.f32 %v3510_v60, 0.0 }
 0x617   :  { %4169 = vmatmul.f32.vlgmr.msrb.gmra.mxu2 %v3562_v21  ;;  %4292 = vmatpush.msra.mxu1 %v5416_v4  ;;  %v3433_v4 = vadd.f32 %v3268_v45, %v10852_v8  ;;  %v5310_v21 = vld [vmem:[%s10635_s9 + $0x510] sm:$0xff]  ;;  %v3271_v45 = vadd.f32 %v9708_v1, %v9619_v29  ;;  %v5387_v29 = vld [vmem:[%s10635_s9 + $0x778] sm:$0xff]  ;;  %v5400_v1 = vld [vmem:[%s10635_s9 + $0x7e0] sm:$0xff] }
 0x618   :  { %4312 = vmatpush.msra.mxu2 %v5435_v44  ;;  %4027 = vmatpush.msrb.mxu3 %v5313_v18  ;;  %v3556_v44 = vmax.f32 %v3500_v7, 0.0  ;;  %v5412_v18 = vld [vmem:[%s10635_s9 + $0x840] sm:$0xff] }
 0x619   :  { %4053 = vmatpush.msrb.mxu0 %v5326_v30  ;;  %4149 = vmatmul.f32.gmra.mxu1 %v3565_v41  ;;  %v5431_v30 = vld [vmem:[%s10635_s9 + $0x8d8] sm:$0xff]  ;;  %v3438_v41 = vadd.f32 %v3389_v3, %v10853_v48  ;;  %v3499_v58 = vadd.f32 %v9565_v15, %v3433_v4  ;;  %v5386_v3 = vld [vmem:[%s10635_s9 + $0x770] sm:$0xff]  ;;  %v5408_v8 = vld [vmem:[%s10635_s9 + $0x820] sm:$0xff] }
 0x61a   :  { %4293 = vmatpush.msra.mxu1 %v5415_v12  ;;  %4313 = vmatpush.msra.mxu2 %v5434_v20  ;;  %v9786_v26 = vpop.f32.mrf.mxu1  ;;  %v5309_v12 = vld [vmem:[%s10635_s9 + $0x508] sm:$0xff]  ;;  %v5411_v20 = vld [vmem:[%s10635_s9 + $0x838] sm:$0xff] }
 0x61b   :  { %4028 = vmatpush.msrb.mxu3 %v5312_v54  ;;  %4054 = vmatpush.msrb.mxu0 %v5325_v51  ;;  %v5430_v54 = vld [vmem:[%s10635_s9 + $0x8d0] sm:$0xff]  ;;  %v5401_v51 = vld [vmem:[%s10635_s9 + $0x7e8] sm:$0xff]  ;;  %v3504_v7 = vadd.f32 %v9541_v19, %v3438_v41 }
 0x61c   :  { %4294 = vmatpush.msra.mxu1 %v5414_v34  ;;  %4314 = vmatpush.msra.mxu2 %v5433_v46  ;;  %v5429_v46 = vld [vmem:[%s10635_s9 + $0x8c8] sm:$0xff] }
 0x61d   :  { %3879 = vmatmul.f32.gmra.mxu3 %v3543_v10  ;;  %4055 = vmatpush.msrb.mxu0 %v5324_v38  ;;  %v3555_v38 = vmax.f32 %v3499_v58, 0.0  ;;  %v5409_v10 = vld [vmem:[%s10635_s9 + $0x828] sm:$0xff]  ;;  %v3560_v4 = vmax.f32 %v3504_v7, 0.0  ;;  %v5383_v58 = vld [vmem:[%s10635_s9 + $0x758] sm:$0xff]  ;;  %v5404_v7 = vld [vmem:[%s10635_s9 + $0x800] sm:$0xff] }
 0x61e   :  { %4029 = vmatpush.msrb.mxu3 %v5311_v52  ;;  %4295 = vmatpush.msra.mxu1 %v5413_v32  ;;  %v9808_v50 = vpop.f32.mrf.mxu2  ;;  %v5428_v52 = vld [vmem:[%s10635_s9 + $0x8c0] sm:$0xff]  ;;  %v5397_v41 = vld [vmem:[%s10635_s9 + $0x7c8] sm:$0xff] }
 0x61f   :  { %4315 = vmatpush.msra.mxu2 %v5432_v23  ;;  %4199 = vmatpush.msra.mxu0 %v5403_v56  ;;  %v10854_v32 = vld [vmem:[#allocation46_spill] sm:$0xff]  ;;  %v5399_v23 = vld [vmem:[%s10635_s9 + $0x7d8] sm:$0xff] }
 0x620   :  { %4030 = vmatpush.msrb.mxu3 %v5310_v21  ;;  %4056 = vmatmul.f32.vlgmr.msrb.gmra.mxu0 %v3556_v44  ;;  %v3437_v60 = vadd.f32 %v3271_v45, %v10854_v32  ;;  %v5427_v21 = vld [vmem:[%s10635_s9 + $0x8b8] sm:$0xff]  ;;  %v5385_v44 = vld [vmem:[%s10635_s9 + $0x768] sm:$0xff]  ;;  %v5396_v45 = vld [vmem:[%s10635_s9 + $0x7c0] sm:$0xff] }
 0x621   :  { %4172 = vmatmul.f32.gmra.mxu2 %v3566_v57  ;;  %4296 = vmatpush.msra.mxu1 %v5412_v18  ;;  %v5398_v18 = vld [vmem:[%s10635_s9 + $0x7d0] sm:$0xff]  ;;  %v5407_v57 = vld [vmem:[%s10635_s9 + $0x818] sm:$0xff] }
 0x622   :  { %4316 = vmatpush.msra.mxu2 %v5431_v30  ;;  %4200 = vmatpush.msra.mxu0 %v5402_v35  ;;  %v9838_v34 = vpop.f32.mrf.mxu1  ;;  %v5426_v30 = vld [vmem:[%s10635_s9 + $0x8b0] sm:$0xff]  ;;  %v5384_v35 = vld [vmem:[%s10635_s9 + $0x760] sm:$0xff]  ;;  %v3503_v48 = vadd.f32 %v9565_v15, %v3437_v60  ;;  %v3332_v60 = vpop.f32.mrf.mxu3 }
 0x623   :  { %4031 = vmatpush.msrb.mxu3 %v5309_v12  ;;  %4297 = vmatpush.msra.mxu1 %v5411_v20  ;;  %v5406_v12 = vld [vmem:[%s10635_s9 + $0x810] sm:$0xff]  ;;  %v5425_v20 = vld [vmem:[%s10635_s9 + $0x8a8] sm:$0xff] }
 0x624   :  { %4317 = vmatpush.msra.mxu2 %v5430_v54  ;;  %4201 = vmatpush.msra.mxu0 %v5401_v51  ;;  %v3162_v51 = vadd.f32 %v9145_v59, %v9143_v55  ;;  %v3513_v55 = vadd.f32 %v9253_v22, %v9189_v40  ;;  %v5382_v59 = vld [vmem:[%s10635_s9 + $0x750] sm:$0xff]  ;;  %v5423_v40 = vld [vmem:[%s10635_s9 + $0x898] sm:$0xff] }
 0x625   :  { %4032 = vmatpush.msrb.mxu3 %v5308_v36  ;;  %4298 = vmatpush.msra.mxu1 %v5410_v42  ;;  %v3559_v36 = vmax.f32 %v3503_v48, 0.0  ;;  %v5405_v42 = vld [vmem:[%s10635_s9 + $0x808] sm:$0xff]  ;;  %v5394_v32 = vld [vmem:[%s10635_s9 + $0x7b0] sm:$0xff]  ;;  %v5379_v48 = vld [vmem:[%s10635_s9 + $0x738] sm:$0xff] }
 0x626   :  { %4318 = vmatpush.msra.mxu2 %v5429_v46  ;;  %v9863_v56 = vpop.f32.mrf.mxu2  ;;  %4202 = vmatpush.msra.mxu0 %v5400_v1  ;;  %v5424_v46 = vld [vmem:[%s10635_s9 + $0x8a0] sm:$0xff]  ;;  %v5395_v1 = vld [vmem:[%s10635_s9 + $0x7b8] sm:$0xff] }
 0x627   :  { %4176 = vmatpush.msra.mxu3 %v5387_v29  ;;  %4299 = vmatpush.msra.mxu1 %v5409_v10 }
 0x628   :  { %4033 = vmatmul.f32.vlgmr.msrb.gmra.mxu3 %v3555_v38  ;;  %4319 = vmatpush.msra.mxu2 %v5428_v52  ;;  %v10855_v38 = vld [vmem:[#allocation29_spill] sm:$0xff]  ;;  %v5381_v52 = vld [vmem:[%s10635_s9 + $0x748] sm:$0xff] }
 0x629   :  { %4177 = vmatpush.msra.mxu3 %v5386_v3  ;;  %4203 = vmatpush.msra.mxu0 %v5399_v23  ;;  %v3448_v10 = vadd.f32 %v3162_v51, %v10855_v38  ;;  %v3391_v3 = vpop.f32.mrf.mxu0  ;;  %v5422_v23 = vld [vmem:[%s10635_s9 + $0x890] sm:$0xff]  ;;  %v3165_v51 = vadd.f32 %v9186_v61, %v9184_v43  ;;  %v10856_v61 = vld [vmem:[#allocation47_spill] sm:$0xff] }
 0x62a   :  { %4059 = vmatmul.f32.gmra.mxu0 %v3560_v4  ;;  %4300 = vmatpush.msra.mxu1 %v5408_v8  ;;  %v9899_v54 = vpop.f32.mrf.mxu1  ;;  %v3569_v8 = vmax.f32 %v3513_v55, 0.0  ;;  %v5483_v4 = vld [vmem:[%s10635_s9 + $0xa78] sm:$0xff] }
 0x62b   :  { %4320 = vmatpush.msra.mxu2 %v5427_v21  ;;  %4178 = vmatpush.msra.mxu3 %v5385_v44  ;;  %v5380_v21 = vld [vmem:[%s10635_s9 + $0x740] sm:$0xff]  ;;  %v5393_v44 = vld [vmem:[%s10635_s9 + $0x7a8] sm:$0xff] }
 0x62c   :  { %4204 = vmatpush.msra.mxu0 %v5398_v18  ;;  %4301 = vmatpush.msra.mxu1 %v5407_v57  ;;  %v5421_v18 = vld [vmem:[%s10635_s9 + $0x888] sm:$0xff]  ;;  %v3514_v57 = vadd.f32 %v9287_v47, %v3448_v10  ;;  %v5498_v10 = vld [vmem:[%s10635_s9 + $0xaf0] sm:$0xff] }
 0x62d   :  { %4321 = vmatpush.msra.mxu2 %v5426_v30  ;;  %4179 = vmatpush.msra.mxu3 %v5384_v35  ;;  %v3392_v30 = vadd.f32 %v3391_v3, %v3332_v60  ;;  %v5482_v35 = vld [vmem:[%s10635_s9 + $0xa70] sm:$0xff] }
 0x62e   :  { %4205 = vmatpush.msra.mxu0 %v5397_v41  ;;  %4302 = vmatpush.msra.mxu1 %v5406_v12  ;;  %v9912_v29 = vpop.f32.mrf.mxu2  ;;  %v5392_v41 = vld [vmem:[%s10635_s9 + $0x7a0] sm:$0xff]  ;;  %v3570_v43 = vmax.f32 %v3514_v57, 0.0 }
 0x62f   :  { %4322 = vmatpush.msra.mxu2 %v5425_v20  ;;  %4180 = vmatpush.msra.mxu3 %v5383_v58  ;;  %v5420_v12 = vld [vmem:[%s10635_s9 + $0x880] sm:$0xff]  ;;  %v3442_v55 = vadd.f32 %v3392_v30, %v10856_v61  ;;  %v10859_v61 = vld [vmem:[#allocation49_spill] sm:$0xff] }
 0x630   :  { %4206 = vmatpush.msra.mxu0 %v5396_v45  ;;  %4036 = vmatmul.f32.gmra.mxu3 %v3559_v36  ;;  %v5481_v45 = vld [vmem:[%s10635_s9 + $0xa68] sm:$0xff]  ;;  %v5378_v36 = vld [vmem:[%s10635_s9 + $0x730] sm:$0xff]  ;;  %v5388_v30 = vld [vmem:[%s10635_s9 + $0x780] sm:$0xff] }
 0x631   :  { %4303 = vmatpush.msra.mxu1 %v5405_v42  ;;  %4323 = vmatpush.msra.mxu2 %v5424_v46  ;;  %v5391_v42 = vld [vmem:[%s10635_s9 + $0x798] sm:$0xff]  ;;  %v3517_v46 = vadd.f32 %v9253_v22, %v9228_v39  ;;  %v5390_v39 = vld [vmem:[%s10635_s9 + $0x790] sm:$0xff]  ;;  %v3394_v60 = vpop.f32.mrf.mxu0 }
 0x632   :  { %4181 = vmatpush.msra.mxu3 %v5382_v59  ;;  %4207 = vmatpush.msra.mxu0 %v5395_v1  ;;  %v9963_v20 = vpop.f32.mrf.mxu1  ;;  %v5480_v59 = vld [vmem:[%s10635_s9 + $0xa60] sm:$0xff]  ;;  %v5499_v1 = vld [vmem:[%s10635_s9 + $0xaf8] sm:$0xff] }
 0x633   :  { %4304 = vmatpush.msra.mxu1 %v5404_v7  ;;  %4324 = vmatpush.msra.mxu2 %v5423_v40  ;;  %v5377_v7 = vld [vmem:[%s10635_s9 + $0x728] sm:$0xff]  ;;  %v10857_v40 = vld [vmem:[#allocation30_spill] sm:$0xff]  ;;  %v3573_v3 = vmax.f32 %v3517_v46, 0.0  ;;  %v5374_v46 = vld [vmem:[%s10635_s9 + $0x710] sm:$0xff] }
 0x634   :  { %4182 = vmatpush.msra.mxu3 %v5381_v52  ;;  %4208 = vmatpush.msra.mxu0 %v5394_v32  ;;  %v3452_v38 = vadd.f32 %v3165_v51, %v10857_v40  ;;  %v3274_v52 = vadd.f32 %v9758_v9, %v9679_v0  ;;  %v3335_v32 = vpop.f32.mrf.mxu3  ;;  %v5389_v0 = vld [vmem:[%s10635_s9 + $0x788] sm:$0xff] }
 0x635   :  { %4305 = vmatmul.f32.vlgmr.msra.gmra.mxu1 %v3569_v8  ;;  %4325 = vmatpush.msra.mxu2 %v5422_v23  ;;  %v5479_v23 = vld [vmem:[%s10635_s9 + $0xa58] sm:$0xff]  ;;  %v5376_v8 = vld [vmem:[%s10635_s9 + $0x720] sm:$0xff]  ;;  %v5497_v9 = vld [vmem:[%s10635_s9 + $0xae8] sm:$0xff]  ;;  %v3395_v57 = vadd.f32 %v3394_v60, %v3335_v32 }
 0x636   :  { %4448 = vmatpush.msrb.mxu1 %v5483_v4  ;;  %4183 = vmatpush.msra.mxu3 %v5380_v21  ;;  %v9965_v58 = vpop.f32.mrf.mxu2  ;;  %v3508_v4 = vadd.f32 %v9541_v19, %v3442_v55  ;;  %v5478_v21 = vld [vmem:[%s10635_s9 + $0xa50] sm:$0xff]  ;;  %v5477_v51 = vld [vmem:[%s10635_s9 + $0xa48] sm:$0xff]  ;;  %v5372_v60 = vld [vmem:[%s10635_s9 + $0x700] sm:$0xff] }
 0x637   :  { %4209 = vmatpush.msra.mxu0 %v5393_v44  ;;  %4326 = vmatpush.msra.mxu2 %v5421_v18  ;;  %v5375_v44 = vld [vmem:[%s10635_s9 + $0x718] sm:$0xff]  ;;  %v3446_v55 = vadd.f32 %v3395_v57, %v10859_v61  ;;  %v5373_v40 = vld [vmem:[%s10635_s9 + $0x708] sm:$0xff] }
 0x638   :  { %4449 = vmatpush.msrb.mxu1 %v5482_v35  ;;  %4184 = vmatpush.msra.mxu3 %v5379_v48  ;;  %v5496_v35 = vld [vmem:[%s10635_s9 + $0xae0] sm:$0xff]  ;;  %v3518_v48 = vadd.f32 %v9287_v47, %v3452_v38  ;;  %v5475_v38 = vld [vmem:[%s10635_s9 + $0xa38] sm:$0xff]  ;;  %v5465_v32 = vld [vmem:[%s10635_s9 + $0x9e8] sm:$0xff] }
 0x639   :  { %4210 = vmatpush.msra.mxu0 %v5392_v41  ;;  %4327 = vmatpush.msra.mxu2 %v5420_v12  ;;  %v10858_v41 = vld [vmem:[#allocation48_spill] sm:$0xff]  ;;  %v10085_v57 = vpop.f32.mrf.mxu0 }
 0x63a   :  { %4450 = vmatpush.msrb.mxu1 %v5481_v45  ;;  %4185 = vmatpush.msra.mxu3 %v5378_v36  ;;  %v3441_v12 = vadd.f32 %v3274_v52, %v10858_v41  ;;  %v10031_v45 = vpop.f32.mrf.mxu1  ;;  %v3564_v36 = vmax.f32 %v3508_v4, 0.0  ;;  %v5494_v52 = vld [vmem:[%s10635_s9 + $0xad0] sm:$0xff] }
 0x63b   :  { %4211 = vmatpush.msra.mxu0 %v5391_v42  ;;  %4328 = vmatmul.f32.vlgmr.msra.gmra.mxu2 %v3570_v43  ;;  %v5467_v42 = vld [vmem:[%s10635_s9 + $0x9f8] sm:$0xff]  ;;  %v5476_v43 = vld [vmem:[%s10635_s9 + $0xa40] sm:$0xff] }
 0x63c   :  { %4451 = vmatpush.msrb.mxu1 %v5480_v59  ;;  %4471 = vmatpush.msrb.mxu2 %v5499_v1  ;;  %v3574_v59 = vmax.f32 %v3518_v48, 0.0  ;;  %v5495_v1 = vld [vmem:[%s10635_s9 + $0xad8] sm:$0xff]  ;;  %v10076_v4 = vpop.f32.mrf.mxu3  ;;  %v5450_v48 = vld [vmem:[%s10635_s9 + $0x970] sm:$0xff] }
 0x63d   :  { %4186 = vmatpush.msra.mxu3 %v5377_v7  ;;  %4212 = vmatpush.msra.mxu0 %v5390_v39  ;;  %v5466_v7 = vld [vmem:[%s10635_s9 + $0x9f0] sm:$0xff]  ;;  %v3507_v39 = vadd.f32 %v9565_v15, %v3441_v12  ;;  %v3050_v12 = vadd.f32 %v9263_v63, %v9197_v24  ;;  %v5449_v24 = vld [vmem:[%s10635_s9 + $0x968] sm:$0xff] }
 0x63e   :  { %4308 = vmatmul.f32.gmra.mxu1 %v3573_v3  ;;  %4472 = vmatpush.msrb.mxu2 %v5498_v10  ;;  %v10018_v18 = vpop.f32.mrf.mxu2  ;;  %v3277_v10 = vadd.f32 %v9808_v50, %v9732_v16  ;;  %v5474_v16 = vld [vmem:[%s10635_s9 + $0xa30] sm:$0xff]  ;;  %v5493_v3 = vld [vmem:[%s10635_s9 + $0xac8] sm:$0xff] }
 0x63f   :  { %4452 = vmatpush.msrb.mxu1 %v5479_v23  ;;  %4187 = vmatpush.msra.mxu3 %v5376_v8  ;;  %v3512_v23 = vadd.f32 %v9541_v19, %v3446_v55  ;;  %v3563_v8 = vmax.f32 %v3507_v39, 0.0  ;;  %v5462_v63 = vld [vmem:[%s10635_s9 + $0x9d0] sm:$0xff] }
 0x640   :  { %4213 = vmatpush.msra.mxu0 %v5389_v0  ;;  %4473 = vmatpush.msrb.mxu2 %v5497_v9  ;;  %v5451_v0 = vld [vmem:[%s10635_s9 + $0x978] sm:$0xff]  ;;  %v5464_v9 = vld [vmem:[%s10635_s9 + $0x9e0] sm:$0xff]  ;;  %v5490_v55 = vld [vmem:[%s10635_s9 + $0xab0] sm:$0xff] }
 0x641   :  { %4453 = vmatpush.msrb.mxu1 %v5478_v21  ;;  %4188 = vmatpush.msra.mxu3 %v5375_v44  ;;  %v10860_v21 = vld [vmem:[#allocation50_spill] sm:$0xff] }
 0x642   :  { %4214 = vmatpush.msra.mxu0 %v5388_v30  ;;  %4474 = vmatpush.msrb.mxu2 %v5496_v35  ;;  %v3445_v44 = vadd.f32 %v3277_v10, %v10860_v21  ;;  %v5473_v30 = vld [vmem:[%s10635_s9 + $0xa28] sm:$0xff]  ;;  %v5492_v35 = vld [vmem:[%s10635_s9 + $0xac0] sm:$0xff]  ;;  %v10096_v41 = vpop.f32.mrf.mxu1  ;;  %v3053_v21 = vadd.f32 %v9309_v27, %v9236_v31  ;;  %v5458_v31 = vld [vmem:[%s10635_s9 + $0x9b0] sm:$0xff] }
 0x643   :  { %4454 = vmatpush.msrb.mxu1 %v5477_v51  ;;  %4215 = vmatmul.f32.vlgmr.msra.gmra.mxu0 %v3564_v36  ;;  %v3568_v51 = vmax.f32 %v3512_v23, 0.0  ;;  %v5463_v36 = vld [vmem:[%s10635_s9 + $0x9d8] sm:$0xff]  ;;  %v5489_v10 = vld [vmem:[%s10635_s9 + $0xaa8] sm:$0xff]  ;;  %v5486_v27 = vld [vmem:[%s10635_s9 + $0xa90] sm:$0xff] }
 0x644   :  { %4358 = vmatpush.msrb.mxu0 %v5467_v42  ;;  %4189 = vmatpush.msra.mxu3 %v5374_v46  ;;  %v5472_v42 = vld [vmem:[%s10635_s9 + $0xa20] sm:$0xff]  ;;  %v5491_v46 = vld [vmem:[%s10635_s9 + $0xab8] sm:$0xff]  ;;  %v3511_v61 = vadd.f32 %v9565_v15, %v3445_v44  ;;  %v5469_v23 = vld [vmem:[%s10635_s9 + $0xa08] sm:$0xff] }
 0x645   :  { %4331 = vmatmul.f32.gmra.mxu2 %v3574_v59  ;;  %4455 = vmatpush.msrb.mxu1 %v5476_v43  ;;  %v5471_v43 = vld [vmem:[%s10635_s9 + $0xa18] sm:$0xff]  ;;  %v5448_v59 = vld [vmem:[%s10635_s9 + $0x960] sm:$0xff] }
 0x646   :  { %4475 = vmatpush.msrb.mxu2 %v5495_v1  ;;  %4359 = vmatpush.msrb.mxu0 %v5466_v7  ;;  %v10070_v50 = vpop.f32.mrf.mxu2  ;;  %v10861_v7 = vld [vmem:[#allocation32_spill] sm:$0xff]  ;;  %v5468_v44 = vld [vmem:[%s10635_s9 + $0xa00] sm:$0xff] }
 0x647   :  { %4190 = vmatpush.msra.mxu3 %v5373_v40  ;;  %4456 = vmatpush.msrb.mxu1 %v5475_v38  ;;  %v3455_v39 = vadd.f32 %v3050_v12, %v10861_v7  ;;  %v5461_v40 = vld [vmem:[%s10635_s9 + $0x9c8] sm:$0xff]  ;;  %v5470_v38 = vld [vmem:[%s10635_s9 + $0xa10] sm:$0xff] }
 0x648   :  { %4476 = vmatpush.msrb.mxu2 %v5494_v52  ;;  %4360 = vmatpush.msrb.mxu0 %v5465_v32  ;;  %v3168_v52 = vadd.f32 %v9225_v13, %v9223_v33  ;;  %v3567_v32 = vmax.f32 %v3511_v61, 0.0  ;;  %v5488_v33 = vld [vmem:[%s10635_s9 + $0xaa0] sm:$0xff] }
 0x649   :  { %4191 = vmatpush.msra.mxu3 %v5372_v60  ;;  %4457 = vmatpush.msrb.mxu1 %v5474_v16  ;;  %v5447_v60 = vld [vmem:[%s10635_s9 + $0x958] sm:$0xff]  ;;  %v5460_v16 = vld [vmem:[%s10635_s9 + $0x9c0] sm:$0xff]  ;;  %v3521_v13 = vadd.f32 %v9253_v22, %v3455_v39  ;;  %v3398_v39 = vadd.f32 %v10085_v57, %v10076_v4  ;;  %v3171_v57 = vadd.f32 %v9276_v28, %v9274_v37 }
 0x64a   :  { %4477 = vmatpush.msrb.mxu2 %v5493_v3  ;;  %4192 = vmatmul.f32.vlgmr.msra.gmra.mxu3 %v3563_v8  ;;  %v10145_v3 = vpop.f32.mrf.mxu3  ;;  %v10154_v8 = vpop.f32.mrf.mxu0  ;;  %v5484_v4 = vld [vmem:[%s10635_s9 + $0xa80] sm:$0xff] }
 0x64b   :  { %4335 = vmatpush.msrb.mxu3 %v5451_v0  ;;  %4361 = vmatpush.msrb.mxu0 %v5464_v9  ;;  %v5446_v0 = vld [vmem:[%s10635_s9 + $0x950] sm:$0xff]  ;;  %v5459_v9 = vld [vmem:[%s10635_s9 + $0x9b8] sm:$0xff] }
 0x64c   :  { %4458 = vmatpush.msrb.mxu1 %v5473_v30  ;;  %4478 = vmatpush.msrb.mxu2 %v5492_v35  ;;  %v5487_v30 = vld [vmem:[%s10635_s9 + $0xa98] sm:$0xff]  ;;  %v3739_v35 = vpop.f32.mrf.mxu1 }
 0x64d   :  { %4218 = vmatmul.f32.gmra.mxu0 %v3568_v51  ;;  %4336 = vmatpush.msrb.mxu3 %v5450_v48  ;;  %v10862_v48 = vld [vmem:[#allocation31_spill] sm:$0xff] }
 0x64e   :  { %4362 = vmatpush.msrb.mxu0 %v5463_v36  ;;  %4459 = vmatpush.msrb.mxu1 %v5472_v42  ;;  %v10125_v1 = vpop.f32.mrf.mxu2  ;;  %v3456_v12 = vadd.f32 %v3168_v52, %v10862_v48  ;;  %v5445_v51 = vld [vmem:[%s10635_s9 + $0x948] sm:$0xff]  ;;  %v3577_v42 = vmax.f32 %v3521_v13, 0.0  ;;  %v10865_v48 = vld [vmem:[#allocation33_spill] sm:$0xff] }
 0x64f   :  { %4479 = vmatpush.msrb.mxu2 %v5491_v46  ;;  %4337 = vmatpush.msrb.mxu3 %v5449_v24  ;;  %v5547_v46 = vld [vmem:[%s10635_s9 + $0xc78] sm:$0xff]  ;;  %v5444_v24 = vld [vmem:[%s10635_s9 + $0x940] sm:$0xff]  ;;  %v5545_v52 = vld [vmem:[%s10635_s9 + $0xc68] sm:$0xff] }
 0x650   :  { %4363 = vmatpush.msrb.mxu0 %v5462_v63  ;;  %4460 = vmatpush.msrb.mxu1 %v5471_v43  ;;  %v10863_v43 = vld [vmem:[#allocation34_spill] sm:$0xff]  ;;  %v3522_v7 = vadd.f32 %v9287_v47, %v3456_v12  ;;  %v3460_v12 = vadd.f32 %v3171_v57, %v10865_v48 }
 0x651   :  { %4480 = vmatpush.msrb.mxu2 %v5490_v55  ;;  %4338 = vmatpush.msrb.mxu3 %v5448_v59  ;;  %v3459_v61 = vadd.f32 %v3053_v21, %v10863_v43  ;;  %v5457_v55 = vld [vmem:[%s10635_s9 + $0x9a8] sm:$0xff]  ;;  %v5436_v48 = vld [vmem:[%s10635_s9 + $0x900] sm:$0xff] }
 0x652   :  { %4364 = vmatpush.msrb.mxu0 %v5461_v40  ;;  %4461 = vmatpush.msrb.mxu1 %v5470_v38  ;;  %v5485_v59 = vld [vmem:[%s10635_s9 + $0xa88] sm:$0xff]  ;;  %v5546_v40 = vld [vmem:[%s10635_s9 + $0xc70] sm:$0xff]  ;;  %v5443_v38 = vld [vmem:[%s10635_s9 + $0x938] sm:$0xff]  ;;  %v3578_v28 = vmax.f32 %v3522_v7, 0.0  ;;  %v10225_v13 = vpop.f32.mrf.mxu0 }
 0x653   :  { %4481 = vmatpush.msrb.mxu2 %v5489_v10  ;;  %4195 = vmatmul.f32.gmra.mxu3 %v3567_v32  ;;  %v5456_v10 = vld [vmem:[%s10635_s9 + $0x9a0] sm:$0xff]  ;;  %v5442_v32 = vld [vmem:[%s10635_s9 + $0x930] sm:$0xff]  ;;  %v3525_v37 = vadd.f32 %v9253_v22, %v3459_v61  ;;  %v5441_v21 = vld [vmem:[%s10635_s9 + $0x928] sm:$0xff] }
 0x654   :  { %4339 = vmatpush.msrb.mxu3 %v5447_v60  ;;  %4365 = vmatpush.msrb.mxu0 %v5460_v16  ;;  %v10218_v60 = vpop.f32.mrf.mxu3  ;;  %v5455_v16 = vld [vmem:[%s10635_s9 + $0x998] sm:$0xff]  ;;  %v5453_v43 = vld [vmem:[%s10635_s9 + $0x988] sm:$0xff]  ;;  %v5560_v7 = vld [vmem:[%s10635_s9 + $0xce0] sm:$0xff] }
 0x655   :  { %4462 = vmatpush.msrb.mxu1 %v5469_v23  ;;  %4482 = vmatpush.msrb.mxu2 %v5488_v33  ;;  %v10864_v23 = vld [vmem:[#allocation51_spill] sm:$0xff]  ;;  %v5439_v61 = vld [vmem:[%s10635_s9 + $0x918] sm:$0xff] }
 0x656   :  { %4340 = vmatpush.msrb.mxu3 %v5446_v0  ;;  %4366 = vmatpush.msrb.mxu0 %v5459_v9  ;;  %v3762_v36 = vpop.f32.mrf.mxu2  ;;  %v3450_v33 = vadd.f32 %v3398_v39, %v10864_v23  ;;  %v5544_v0 = vld [vmem:[%s10635_s9 + $0xc60] sm:$0xff]  ;;  %v5563_v9 = vld [vmem:[%s10635_s9 + $0xcf8] sm:$0xff]  ;;  %v3526_v39 = vadd.f32 %v9287_v47, %v3460_v12  ;;  %v5530_v23 = vld [vmem:[%s10635_s9 + $0xbf0] sm:$0xff] }
 0x657   :  { %4463 = vmatpush.msrb.mxu1 %v5468_v44  ;;  %4483 = vmatpush.msrb.mxu2 %v5487_v30  ;;  %v10186_v63 = vadd.f32 %v3762_v36, %v3739_v35  ;;  %v5454_v44 = vld [vmem:[%s10635_s9 + $0x990] sm:$0xff]  ;;  %v3742_v30 = vpop.f32.mrf.mxu1  ;;  %v3581_v36 = vmax.f32 %v3525_v37, 0.0 }
 0x658   :  { %4341 = vmatpush.msrb.mxu3 %v5445_v51  ;;  %4367 = vmatpush.msrb.mxu0 %v5458_v31  ;;  %v5562_v51 = vld [vmem:[%s10635_s9 + $0xcf0] sm:$0xff]  ;;  %v3582_v37 = vmax.f32 %v3526_v39, 0.0 }
 0x659   :  { %4464 = vmatmul.f32.vlgmr.msrb.gmra.mxu1 %v3577_v42  ;;  %4484 = vmatpush.msrb.mxu2 %v5486_v27  ;;  %v3280_v27 = vadd.f32 %v9863_v56, %v9786_v26  ;;  %v5543_v42 = vld [vmem:[%s10635_s9 + $0xc58] sm:$0xff]  ;;  %v5561_v26 = vld [vmem:[%s10635_s9 + $0xce8] sm:$0xff]  ;;  %v5542_v56 = vld [vmem:[%s10635_s9 + $0xc50] sm:$0xff] }
 0x65a   :  { %4607 = vmatpush.msra.mxu1 %v5547_v46  ;;  %4342 = vmatpush.msrb.mxu3 %v5444_v24  ;;  %v5440_v46 = vld [vmem:[%s10635_s9 + $0x920] sm:$0xff]  ;;  %v3516_v24 = vadd.f32 %v9541_v19, %v3450_v33 }
 0x65b   :  { %4368 = vmatpush.msrb.mxu0 %v5457_v55  ;;  %4485 = vmatpush.msrb.mxu2 %v5485_v59  ;;  %v3401_v55 = vadd.f32 %v10154_v8, %v10145_v3  ;;  %v5452_v59 = vld [vmem:[%s10635_s9 + $0x980] sm:$0xff]  ;;  %v5541_v3 = vld [vmem:[%s10635_s9 + $0xc48] sm:$0xff] }
 0x65c   :  { %4608 = vmatpush.msra.mxu1 %v5546_v40  ;;  %4343 = vmatpush.msrb.mxu3 %v5443_v38  ;;  %v10866_v40 = vld [vmem:[#allocation52_spill] sm:$0xff]  ;;  %v3572_v8 = vmax.f32 %v3516_v24, 0.0  ;;  %v10285_v57 = vpop.f32.mrf.mxu3  ;;  %v5556_v24 = vld [vmem:[%s10635_s9 + $0xcc0] sm:$0xff] }
 0x65d   :  { %4369 = vmatpush.msrb.mxu0 %v5456_v10  ;;  %4486 = vmatpush.msrb.mxu2 %v5484_v4  ;;  %v3449_v38 = vadd.f32 %v3280_v27, %v10866_v40  ;;  %v5531_v10 = vld [vmem:[%s10635_s9 + $0xbf8] sm:$0xff]  ;;  %v5438_v4 = vld [vmem:[%s10635_s9 + $0x910] sm:$0xff] }
 0x65e   :  { %4609 = vmatpush.msra.mxu1 %v5545_v52  ;;  %4344 = vmatpush.msrb.mxu3 %v5442_v32  ;;  %v3765_v35 = vpop.f32.mrf.mxu2  ;;  %v5540_v52 = vld [vmem:[%s10635_s9 + $0xc40] sm:$0xff]  ;;  %v10867_v32 = vld [vmem:[#allocation53_spill] sm:$0xff] }
 0x65f   :  { %4370 = vmatpush.msrb.mxu0 %v5455_v16  ;;  %4487 = vmatmul.f32.vlgmr.msrb.gmra.mxu2 %v3578_v28  ;;  %v10243_v31 = vadd.f32 %v3765_v35, %v3742_v30  ;;  %v3454_v16 = vadd.f32 %v3401_v55, %v10867_v32  ;;  %v5559_v28 = vld [vmem:[%s10635_s9 + $0xcd8] sm:$0xff]  ;;  %v3515_v33 = vadd.f32 %v9565_v15, %v3449_v38  ;;  %v5558_v30 = vld [vmem:[%s10635_s9 + $0xcd0] sm:$0xff]  ;;  %v5529_v35 = vld [vmem:[%s10635_s9 + $0xbe8] sm:$0xff] }
 0x660   :  { %4610 = vmatpush.msra.mxu1 %v5544_v0  ;;  %4630 = vmatpush.msra.mxu2 %v5563_v9  ;;  %v10298_v0 = vpop.f32.mrf.mxu0  ;;  %v5437_v9 = vld [vmem:[%s10635_s9 + $0x908] sm:$0xff]  ;;  %v5515_v27 = vld [vmem:[%s10635_s9 + $0xb78] sm:$0xff]  ;;  %v5554_v38 = vld [vmem:[%s10635_s9 + $0xcb0] sm:$0xff] }
 0x661   :  { %4345 = vmatpush.msrb.mxu3 %v5441_v21  ;;  %4371 = vmatpush.msrb.mxu0 %v5454_v44  ;;  %v5539_v21 = vld [vmem:[%s10635_s9 + $0xc38] sm:$0xff]  ;;  %v3283_v44 = vadd.f32 %v9912_v29, %v9838_v34  ;;  %v5538_v34 = vld [vmem:[%s10635_s9 + $0xc30] sm:$0xff]  ;;  %v5557_v29 = vld [vmem:[%s10635_s9 + $0xcc8] sm:$0xff]  ;;  %v3520_v12 = vadd.f32 %v9541_v19, %v3454_v16  ;;  %v3174_v16 = vadd.f32 %v9323_v6, %v9321_v62 }
 0x662   :  { %4467 = vmatmul.f32.gmra.mxu1 %v3581_v36  ;;  %4631 = vmatpush.msra.mxu2 %v5562_v51  ;;  %v3571_v51 = vmax.f32 %v3515_v33, 0.0  ;;  %v5528_v36 = vld [vmem:[%s10635_s9 + $0xbe0] sm:$0xff]  ;;  %v5553_v32 = vld [vmem:[%s10635_s9 + $0xca8] sm:$0xff] }
 0x663   :  { %4611 = vmatpush.msra.mxu1 %v5543_v42  ;;  %4346 = vmatpush.msrb.mxu3 %v5440_v46  ;;  %v3453_v42 = vadd.f32 %v3283_v44, %v8783_v2  ;;  %v5537_v46 = vld [vmem:[%s10635_s9 + $0xc28] sm:$0xff]  ;;  %v3576_v2 = vmax.f32 %v3520_v12, 0.0  ;;  %v5552_v62 = vld [vmem:[%s10635_s9 + $0xca0] sm:$0xff]  ;;  %v5523_v44 = vld [vmem:[%s10635_s9 + $0xbb8] sm:$0xff] }
 0x664   :  { %4372 = vmatpush.msrb.mxu0 %v5453_v43  ;;  %4632 = vmatpush.msra.mxu2 %v5561_v26  ;;  %v5514_v43 = vld [vmem:[%s10635_s9 + $0xb70] sm:$0xff]  ;;  %v3056_v26 = vadd.f32 %v9359_v49, %v9284_v11  ;;  %v10348_v55 = vpop.f32.mrf.mxu3  ;;  %v5513_v11 = vld [vmem:[%s10635_s9 + $0xb68] sm:$0xff] }
 0x665   :  { %4612 = vmatpush.msra.mxu1 %v5542_v56  ;;  %4347 = vmatpush.msrb.mxu3 %v5439_v61  ;;  %v5527_v56 = vld [vmem:[%s10635_s9 + $0xbd8] sm:$0xff]  ;;  %v5536_v61 = vld [vmem:[%s10635_s9 + $0xc20] sm:$0xff]  ;;  %v5526_v49 = vld [vmem:[%s10635_s9 + $0xbd0] sm:$0xff]  ;;  %v3519_v39 = vadd.f32 %v9565_v15, %v3453_v42  ;;  %v3404_v42 = vadd.f32 %v10225_v13, %v10218_v60  ;;  %v3177_v13 = vadd.f32 %v9377_v25, %v9375_v14 }
 0x666   :  { %4373 = vmatpush.msrb.mxu0 %v5452_v59  ;;  %4633 = vmatpush.msra.mxu2 %v5560_v7  ;;  %v5555_v59 = vld [vmem:[%s10635_s9 + $0xcb8] sm:$0xff]  ;;  %v5533_v33 = vld [vmem:[%s10635_s9 + $0xc08] sm:$0xff]  ;;  %v5550_v12 = vld [vmem:[%s10635_s9 + $0xc90] sm:$0xff] }
 0x667   :  { %4613 = vmatpush.msra.mxu1 %v5541_v3  ;;  %4374 = vmatmul.f32.vlgmr.msrb.gmra.mxu0 %v3572_v8  ;;  %v5535_v7 = vld [vmem:[%s10635_s9 + $0xc18] sm:$0xff]  ;;  %v5512_v3 = vld [vmem:[%s10635_s9 + $0xb60] sm:$0xff]  ;;  %v10868_v8 = vld [vmem:[#allocation36_spill] sm:$0xff] }
 0x668   :  { %4517 = vmatpush.msra.mxu0 %v5531_v10  ;;  %4348 = vmatpush.msrb.mxu3 %v5438_v4  ;;  %v10363_v40 = vpop.f32.mrf.mxu0  ;;  %v3463_v10 = vadd.f32 %v3056_v26, %v10868_v8  ;;  %v5525_v4 = vld [vmem:[%s10635_s9 + $0xbc8] sm:$0xff]  ;;  %v5506_v14 = vld [vmem:[%s10635_s9 + $0xb30] sm:$0xff]  ;;  %v5519_v25 = vld [vmem:[%s10635_s9 + $0xb98] sm:$0xff] }
 0x669   :  { %4490 = vmatmul.f32.gmra.mxu2 %v3582_v37  ;;  %4614 = vmatpush.msra.mxu1 %v5540_v52  ;;  %v5534_v52 = vld [vmem:[%s10635_s9 + $0xc10] sm:$0xff]  ;;  %v3575_v37 = vmax.f32 %v3519_v39, 0.0  ;;  %v5549_v26 = vld [vmem:[%s10635_s9 + $0xc88] sm:$0xff] }
 0x66a   :  { %4634 = vmatpush.msra.mxu2 %v5559_v28  ;;  %4518 = vmatpush.msra.mxu0 %v5530_v23  ;;  %v5511_v28 = vld [vmem:[%s10635_s9 + $0xb58] sm:$0xff]  ;;  %v5524_v23 = vld [vmem:[%s10635_s9 + $0xbc0] sm:$0xff]  ;;  %v3529_v6 = vadd.f32 %v9253_v22, %v3463_v10  ;;  %v3407_v10 = vadd.f32 %v10298_v0, %v10285_v57 }
 0x66b   :  { %4349 = vmatpush.msrb.mxu3 %v5437_v9  ;;  %4615 = vmatpush.msra.mxu1 %v5539_v21  ;;  %v3059_v9 = vadd.f32 %v9413_v17, %v9334_v5  ;;  %v5510_v21 = vld [vmem:[%s10635_s9 + $0xb50] sm:$0xff]  ;;  %v5551_v5 = vld [vmem:[%s10635_s9 + $0xc98] sm:$0xff]  ;;  %v10869_v17 = vld [vmem:[#allocation35_spill] sm:$0xff] }
 0x66c   :  { %4635 = vmatpush.msra.mxu2 %v5558_v30  ;;  %4519 = vmatpush.msra.mxu0 %v5529_v35  ;;  %v5532_v30 = vld [vmem:[%s10635_s9 + $0xc00] sm:$0xff]  ;;  %v3464_v35 = vadd.f32 %v3174_v16, %v10869_v17  ;;  %v5503_v57 = vld [vmem:[%s10635_s9 + $0xb18] sm:$0xff] }
 0x66d   :  { %4350 = vmatpush.msrb.mxu3 %v5436_v48  ;;  %4616 = vmatpush.msra.mxu1 %v5538_v34  ;;  %v5509_v48 = vld [vmem:[%s10635_s9 + $0xb48] sm:$0xff]  ;;  %v5522_v34 = vld [vmem:[%s10635_s9 + $0xbb0] sm:$0xff]  ;;  %v10872_v16 = vld [vmem:[#allocation54_spill] sm:$0xff] }
 0x66e   :  { %4636 = vmatpush.msra.mxu2 %v5557_v29  ;;  %4351 = vmatmul.f32.vlgmr.msrb.gmra.mxu3 %v3571_v51  ;;  %v10417_v29 = vpop.f32.mrf.mxu3  ;;  %v3585_v51 = vmax.f32 %v3529_v6, 0.0  ;;  %v3530_v60 = vadd.f32 %v9287_v47, %v3464_v35  ;;  %v5516_v0 = vld [vmem:[%s10635_s9 + $0xb80] sm:$0xff]  ;;  %v5594_v35 = vld [vmem:[%s10635_s9 + $0xdf0] sm:$0xff] }
 0x66f   :  { %4494 = vmatpush.msra.mxu3 %v5515_v27  ;;  %4520 = vmatpush.msra.mxu0 %v5528_v36  ;;  %v10870_v27 = vld [vmem:[#allocation38_spill] sm:$0xff] }
 0x670   :  { %4617 = vmatpush.msra.mxu1 %v5537_v46  ;;  %4637 = vmatpush.msra.mxu2 %v5556_v24  ;;  %v3467_v36 = vadd.f32 %v3059_v9, %v10870_v27  ;;  %v5508_v46 = vld [vmem:[%s10635_s9 + $0xb40] sm:$0xff]  ;;  %v5521_v24 = vld [vmem:[%s10635_s9 + $0xba8] sm:$0xff]  ;;  %v5595_v9 = vld [vmem:[%s10635_s9 + $0xdf8] sm:$0xff] }
 0x671   :  { %4377 = vmatmul.f32.gmra.mxu0 %v3576_v2  ;;  %4495 = vmatpush.msra.mxu3 %v5514_v43  ;;  %v10431_v43 = vpop.f32.mrf.mxu0  ;;  %v5507_v2 = vld [vmem:[%s10635_s9 + $0xb38] sm:$0xff] }
 0x672   :  { %4521 = vmatpush.msra.mxu0 %v5527_v56  ;;  %4618 = vmatpush.msra.mxu1 %v5536_v61  ;;  %v5520_v56 = vld [vmem:[%s10635_s9 + $0xba0] sm:$0xff] }
 0x673   :  { %4638 = vmatpush.msra.mxu2 %v5555_v59  ;;  %4496 = vmatpush.msra.mxu3 %v5513_v11  ;;  %v5548_v61 = vld [vmem:[%s10635_s9 + $0xc80] sm:$0xff]  ;;  %v3458_v59 = vadd.f32 %v3404_v42, %v8790_v53  ;;  %v3533_v11 = vadd.f32 %v9253_v22, %v3467_v36  ;;  %v5505_v53 = vld [vmem:[%s10635_s9 + $0xb28] sm:$0xff]  ;;  %v10874_v36 = vld [vmem:[#allocation56_spill] sm:$0xff] }
 0x674   :  { %4522 = vmatpush.msra.mxu0 %v5526_v49  ;;  %4619 = vmatpush.msra.mxu1 %v5535_v7  ;;  %v3586_v49 = vmax.f32 %v3530_v60, 0.0  ;;  %v10871_v7 = vld [vmem:[#allocation37_spill] sm:$0xff] }
 0x675   :  { %4639 = vmatpush.msra.mxu2 %v5554_v38  ;;  %4497 = vmatpush.msra.mxu3 %v5512_v3  ;;  %v3468_v39 = vadd.f32 %v3177_v13, %v10871_v7  ;;  %v3286_v38 = vadd.f32 %v9965_v58, %v9899_v54  ;;  %v5518_v3 = vld [vmem:[%s10635_s9 + $0xb90] sm:$0xff]  ;;  %v3524_v8 = vadd.f32 %v9541_v19, %v3458_v59  ;;  %v5504_v54 = vld [vmem:[%s10635_s9 + $0xb20] sm:$0xff]  ;;  %v5517_v58 = vld [vmem:[%s10635_s9 + $0xb88] sm:$0xff] }
 0x676   :  { %4523 = vmatpush.msra.mxu0 %v5525_v4  ;;  %4620 = vmatpush.msra.mxu1 %v5534_v52  ;;  %v3589_v4 = vmax.f32 %v3533_v11, 0.0  ;;  %v5576_v7 = vld [vmem:[%s10635_s9 + $0xd60] sm:$0xff] }
 0x677   :  { %4640 = vmatpush.msra.mxu2 %v5553_v32  ;;  %4354 = vmatmul.f32.gmra.mxu3 %v3575_v37  ;;  %v3457_v37 = vadd.f32 %v3286_v38, %v10872_v16 }
 0x678   :  { %4498 = vmatpush.msra.mxu3 %v5511_v28  ;;  %4524 = vmatpush.msra.mxu0 %v5524_v23  ;;  %v3534_v28 = vadd.f32 %v9287_v47, %v3468_v39  ;;  %v5589_v39 = vld [vmem:[%s10635_s9 + $0xdc8] sm:$0xff] }
 0x679   :  { %4621 = vmatpush.msra.mxu1 %v5533_v33  ;;  %4641 = vmatpush.msra.mxu2 %v5552_v62  ;;  %v3808_v32 = vpop.f32.mrf.mxu0  ;;  %v3831_v33 = vpop.f32.mrf.mxu1  ;;  %v10873_v62 = vld [vmem:[#allocation55_spill] sm:$0xff]  ;;  %v3523_v47 = vadd.f32 %v9565_v15, %v3457_v37  ;;  %v3410_v37 = vadd.f32 %v10363_v40, %v10348_v55  ;;  %v10875_v55 = vld [vmem:[#allocation57_spill] sm:$0xff] }
 0x67a   :  { %4499 = vmatpush.msra.mxu3 %v5510_v21  ;;  %4525 = vmatpush.msra.mxu0 %v5523_v44  ;;  %v3462_v6 = vadd.f32 %v3407_v10, %v10873_v62  ;;  %v5502_v21 = vld [vmem:[%s10635_s9 + $0xb10] sm:$0xff]  ;;  %v3590_v17 = vmax.f32 %v3534_v28, 0.0  ;;  %v5571_v28 = vld [vmem:[%s10635_s9 + $0xd38] sm:$0xff] }
 0x67b   :  { %4622 = vmatpush.msra.mxu1 %v5532_v30  ;;  %4642 = vmatpush.msra.mxu2 %v5551_v5  ;;  %v3854_v30 = vpop.f32.mrf.mxu2  ;;  %v3289_v5 = vadd.f32 %v10018_v18, %v9963_v20  ;;  %v5500_v20 = vld [vmem:[%s10635_s9 + $0xb00] sm:$0xff]  ;;  %v3579_v27 = vmax.f32 %v3523_v47, 0.0  ;;  %v5574_v10 = vld [vmem:[%s10635_s9 + $0xd50] sm:$0xff]  ;;  %v3466_v40 = vadd.f32 %v3410_v37, %v10875_v55 }
 0x67c   :  { %4500 = vmatpush.msra.mxu3 %v5509_v48  ;;  %4526 = vmatpush.msra.mxu0 %v5522_v34  ;;  %v5501_v48 = vld [vmem:[%s10635_s9 + $0xb08] sm:$0xff]  ;;  %v3528_v18 = vadd.f32 %v9541_v19, %v3462_v6  ;;  %v3292_v6 = vadd.f32 %v10070_v50, %v10031_v45  ;;  %v5568_v45 = vld [vmem:[%s10635_s9 + $0xd20] sm:$0xff] }
 0x67d   :  { %4623 = vmatmul.f32.vlgmr.msra.gmra.mxu1 %v3585_v51  ;;  %4643 = vmatpush.msra.mxu2 %v5550_v12  ;;  %v5593_v12 = vld [vmem:[%s10635_s9 + $0xde8] sm:$0xff]  ;;  %v3461_v42 = vadd.f32 %v3289_v5, %v10874_v36  ;;  %v3532_v47 = vadd.f32 %v9541_v19, %v3466_v40  ;;  %v3413_v5 = vadd.f32 %v10431_v43, %v10417_v29  ;;  %v5580_v29 = vld [vmem:[%s10635_s9 + $0xd80] sm:$0xff] }
 0x67e   :  { %4501 = vmatpush.msra.mxu3 %v5508_v46  ;;  %4527 = vmatpush.msra.mxu0 %v5521_v24  ;;  %v5579_v46 = vld [vmem:[%s10635_s9 + $0xd78] sm:$0xff]  ;;  %v5592_v24 = vld [vmem:[%s10635_s9 + $0xde0] sm:$0xff]  ;;  %v3584_v13 = vmax.f32 %v3528_v18, 0.0  ;;  %v5581_v50 = vld [vmem:[%s10635_s9 + $0xd88] sm:$0xff] }
 0x67f   :  { %4644 = vmatpush.msra.mxu2 %v5549_v26  ;;  %v3588_v43 = vmax.f32 %v3532_v47, 0.0  ;;  %v5566_v18 = vld [vmem:[%s10635_s9 + $0xd10] sm:$0xff]  ;;  %v5565_v36 = vld [vmem:[%s10635_s9 + $0xd08] sm:$0xff] }
 0x680   :  { %4502 = vmatpush.msra.mxu3 %v5507_v2  ;;  %4528 = vmatpush.msra.mxu0 %v5520_v56  ;;  %v5578_v2 = vld [vmem:[%s10635_s9 + $0xd70] sm:$0xff]  ;;  %v5591_v56 = vld [vmem:[%s10635_s9 + $0xdd8] sm:$0xff] }
 0x681   :  { %4645 = vmatpush.msra.mxu2 %v5548_v61  ;;  %v3811_v60 = vpop.f32.mrf.mxu0  ;;  %v3834_v59 = vpop.f32.mrf.mxu1 }
 0x682   :  { %4503 = vmatpush.msra.mxu3 %v5506_v14  ;;  %4529 = vmatpush.msra.mxu0 %v5519_v25  ;;  %v3785_v22 = vpop.f32.mrf.mxu3  ;;  %v5590_v14 = vld [vmem:[%s10635_s9 + $0xdd0] sm:$0xff]  ;;  %v3527_v25 = vadd.f32 %v9565_v15, %v3461_v42  ;;  %v5564_v42 = vld [vmem:[%s10635_s9 + $0xd00] sm:$0xff] }
 0x683   :  { %4646 = vmatmul.f32.vlgmr.msra.gmra.mxu2 %v3586_v49  ;;  %v3786_v52 = vadd.f32 %v3785_v22, %v10186_v63  ;;  %v3580_v63 = vmax.f32 %v3524_v8, 0.0  ;;  %v3857_v49 = vpop.f32.mrf.mxu2  ;;  %v5588_v22 = vld [vmem:[%s10635_s9 + $0xdc0] sm:$0xff] }
 0x684   :  { %4504 = vmatpush.msra.mxu3 %v5505_v53  ;;  %4530 = vmatpush.msra.mxu0 %v5518_v3  ;;  %v3583_v53 = vmax.f32 %v3527_v25, 0.0  ;;  %v5575_v3 = vld [vmem:[%s10635_s9 + $0xd58] sm:$0xff] }
 0x685   :  { %4626 = vmatmul.f32.gmra.mxu1 %v3589_v4  ;;  %v3809_v23 = vadd.f32 %v3808_v32, %v3786_v52  ;;  %v5587_v4 = vld [vmem:[%s10635_s9 + $0xdb8] sm:$0xff]  ;;  %v5573_v52 = vld [vmem:[%s10635_s9 + $0xd48] sm:$0xff]  ;;  %v5586_v32 = vld [vmem:[%s10635_s9 + $0xdb0] sm:$0xff] }
 0x686   :  { %4505 = vmatpush.msra.mxu3 %v5504_v54  ;;  %4531 = vmatpush.msra.mxu0 %v5517_v58 }
 0x687   :  { %v3832_v44 = vadd.f32 %v3831_v33, %v3809_v23  ;;  %v5584_v23 = vld [vmem:[%s10635_s9 + $0xda0] sm:$0xff]  ;;  %v5570_v33 = vld [vmem:[%s10635_s9 + $0xd30] sm:$0xff] }
 0x688   :  { %4506 = vmatpush.msra.mxu3 %v5503_v57  ;;  %4532 = vmatpush.msra.mxu0 %v5516_v0  ;;  %v5572_v57 = vld [vmem:[%s10635_s9 + $0xd40] sm:$0xff]  ;;  %v5585_v0 = vld [vmem:[%s10635_s9 + $0xda8] sm:$0xff] }
 0x689   :  { %4533 = vmatmul.f32.vlgmr.msra.gmra.mxu0 %v3580_v63  ;;  %v3855_v34 = vadd.f32 %v3854_v30, %v3832_v44  ;;  %v3900_v58 = vpop.f32.mrf.mxu0  ;;  %v5583_v63 = vld [vmem:[%s10635_s9 + $0xd98] sm:$0xff] }
 0x68a   :  { %4676 = vmatpush.msrb.mxu0 %v5595_v9  ;;  %4507 = vmatpush.msra.mxu3 %v5502_v21  ;;  %v5569_v9 = vld [vmem:[%s10635_s9 + $0xd28] sm:$0xff]  ;;  %v5582_v21 = vld [vmem:[%s10635_s9 + $0xd90] sm:$0xff] }
 0x68b   :  { %4649 = vmatmul.f32.gmra.mxu2 %v3590_v17 }
 0x68c   :  { %4677 = vmatpush.msrb.mxu0 %v5594_v35  ;;  %4508 = vmatpush.msra.mxu3 %v5501_v48  ;;  %v3788_v51 = vpop.f32.mrf.mxu3  ;;  %v10876_v35 = vld [vmem:[#allocation58_spill] sm:$0xff] }
 0x68d   :  { %v3789_v26 = vadd.f32 %v3788_v51, %v10243_v31  ;;  %v5577_v31 = vld [vmem:[%s10635_s9 + $0xd68] sm:$0xff]  ;;  %v3465_v48 = vadd.f32 %v3292_v6, %v10876_v35 }
 0x68e   :  { %4678 = vmatpush.msrb.mxu0 %v5593_v12  ;;  %4509 = vmatpush.msra.mxu3 %v5500_v20  ;;  %v10877_v12 = vld [vmem:[#allocation59_spill] sm:$0xff] }
 0x68f   :  { %4510 = vmatmul.f32.vlgmr.msra.gmra.mxu3 %v3579_v27  ;;  %v3812_v61 = vadd.f32 %v3811_v60, %v3789_v26  ;;  %v3470_v20 = vadd.f32 %v3413_v5, %v10877_v12  ;;  %v3531_v51 = vadd.f32 %v9565_v15, %v3465_v48  ;;  %v3295_v27 = vadd.f32 %v10125_v1, %v10096_v41  ;;  %v10878_v26 = vld [vmem:[#allocation60_spill] sm:$0xff] }
 0x690   :  { %4653 = vmatpush.msrb.mxu3 %v5579_v46  ;;  %4679 = vmatpush.msrb.mxu0 %v5592_v24 }
 0x691   :  { %4536 = vmatmul.f32.gmra.mxu0 %v3584_v13  ;;  %v3835_v11 = vadd.f32 %v3834_v59, %v3812_v61  ;;  %v3536_v46 = vadd.f32 %v9541_v19, %v3470_v20  ;;  %v3587_v24 = vmax.f32 %v3531_v51, 0.0  ;;  %v3469_v60 = vadd.f32 %v3295_v27, %v10878_v26 }
 0x692   :  { %4654 = vmatpush.msrb.mxu3 %v5578_v2  ;;  %4680 = vmatpush.msrb.mxu0 %v5591_v56  ;;  %v3903_v30 = vpop.f32.mrf.mxu0  ;;  %v4011_v2 = vpop.f32.mrf.mxu2 }
 0x693   :  { %v3858_v38 = vadd.f32 %v3857_v49, %v3835_v11  ;;  %v3592_v13 = vmax.f32 %v3536_v46, 0.0  ;;  %v3535_v41 = vadd.f32 %v9565_v15, %v3469_v60  ;;  %v3988_v56 = vpop.f32.mrf.mxu1 }
 0x694   :  { %4655 = vmatpush.msrb.mxu3 %v5577_v31  ;;  %4681 = vmatpush.msrb.mxu0 %v5590_v14  ;;  %v4012_v55 = vadd.f32 %v4011_v2, %v3988_v56 }
 0x695   :  { %v3591_v1 = vmax.f32 %v3535_v41, 0.0 }
 0x696   :  { %4656 = vmatpush.msrb.mxu3 %v5576_v7  ;;  %4682 = vmatpush.msrb.mxu0 %v5589_v39  ;;  %v3877_v8 = vpop.f32.mrf.mxu3 }
 0x697   :  { %4513 = vmatmul.f32.gmra.mxu3 %v3583_v53  ;;  %v3878_v54 = vadd.f32 %v3877_v8, %v3855_v34  ;;  %v5567_v34 = vld [vmem:[%s10635_s9 + $0xd18] sm:$0xff] }
 0x698   :  { %4657 = vmatpush.msrb.mxu3 %v5575_v3  ;;  %4683 = vmatpush.msrb.mxu0 %v5588_v22 }
 0x699   :  { %v10551_v16 = vadd.f32 %v3900_v58, %v3878_v54 }
 0x69a   :  { %4658 = vmatpush.msrb.mxu3 %v5574_v10  ;;  %4684 = vmatpush.msrb.mxu0 %v5587_v4  ;;  %v4014_v31 = vpop.f32.mrf.mxu2 }
 0x69b   :  { %v3991_v14 = vpop.f32.mrf.mxu1 }
 0x69c   :  { %4659 = vmatpush.msrb.mxu3 %v5573_v52  ;;  %4685 = vmatpush.msrb.mxu0 %v5586_v32  ;;  %v4015_v5 = vadd.f32 %v4014_v31, %v3991_v14 }
 0x69d   :  { %v4057_v61 = vpop.f32.mrf.mxu0 }
 0x69e   :  { %4660 = vmatpush.msrb.mxu3 %v5572_v57  ;;  %4686 = vmatpush.msrb.mxu0 %v5585_v0 }
 0x6a0   :  { %4661 = vmatpush.msrb.mxu3 %v5571_v28  ;;  %4687 = vmatpush.msrb.mxu0 %v5584_v23  ;;  %v3880_v62 = vpop.f32.mrf.mxu3 }
 0x6a1   :  { %v3881_v44 = vadd.f32 %v3880_v62, %v3858_v38 }
 0x6a2   :  { %4662 = vmatpush.msrb.mxu3 %v5570_v33  ;;  %4688 = vmatpush.msrb.mxu0 %v5583_v63  ;;  %v4170_v11 = vpop.f32.mrf.mxu2 }
 0x6a3   :  { %v10591_v17 = vadd.f32 %v3903_v30, %v3881_v44  ;;  %v4147_v49 = vpop.f32.mrf.mxu1 }
 0x6a4   :  { %4663 = vmatpush.msrb.mxu3 %v5569_v9  ;;  %4689 = vmatpush.msrb.mxu0 %v5582_v21  ;;  %v4171_v33 = vadd.f32 %v4170_v11, %v4147_v49 }
 0x6a6   :  { %4664 = vmatpush.msrb.mxu3 %v5568_v45  ;;  %4690 = vmatpush.msrb.mxu0 %v5581_v50 }
 0x6a7   :  { %v4060_v25 = vpop.f32.mrf.mxu0 }
 0x6a8   :  { %4665 = vmatpush.msrb.mxu3 %v5567_v34  ;;  %4691 = vmatpush.msrb.mxu0 %v5580_v29 }
 0x6a9   :  { %4692 = vmatmul.f32.vlgmr.msrb.gmra.mxu0 %v3588_v43 }
 0x6aa   :  { %4666 = vmatpush.msrb.mxu3 %v5566_v18  ;;  %v4173_v38 = vpop.f32.mrf.mxu2 }
 0x6ab   :  { %v4034_v59 = vpop.f32.mrf.mxu3  ;;  %v4150_v53 = vpop.f32.mrf.mxu1 }
 0x6ac   :  { %4667 = vmatpush.msrb.mxu3 %v5565_v36  ;;  %v4035_v63 = vadd.f32 %v4034_v59, %v4012_v55  ;;  %v4174_v29 = vadd.f32 %v4173_v38, %v4150_v53 }
 0x6ae   :  { %4668 = vmatpush.msrb.mxu3 %v5564_v42  ;;  %v4058_v44 = vadd.f32 %v4057_v61, %v4035_v63 }
 0x6af   :  { %4669 = vmatmul.f32.vlgmr.msrb.gmra.mxu3 %v3587_v24 }
 0x6b0   :  { %v4063_v43 = vadd.f32 %v4058_v44, %v10551_v16  ;;  %v5614_v16 = vld [vmem:[%s10637_s10] ss:$0 sm:$0xff] }
 0x6b1   :  { %4695 = vmatmul.f32.gmra.mxu0 %v3592_v13 }
 0x6b3   :  { %v4037_v19 = vpop.f32.mrf.mxu3  ;;  %v4306_v15 = vpop.f32.mrf.mxu1 }
 0x6b4   :  { %v4038_v48 = vadd.f32 %v4037_v19, %v4015_v5 }
 0x6b6   :  { %v4061_v42 = vadd.f32 %v4060_v25, %v4038_v48 }
 0x6b7   :  { %4672 = vmatmul.f32.gmra.mxu3 %v3591_v1 }
 0x6b8   :  { %v4064_v31 = vadd.f32 %v4061_v42, %v10591_v17 }
 0x6bb   :  { %v4309_v58 = vpop.f32.mrf.mxu1 }
 0x6be   :  { %v4329_v8 = vpop.f32.mrf.mxu2 }
 0x6bf   :  { %v4330_v62 = vadd.f32 %v4329_v8, %v4306_v15 }
 0x6c0   :  { %v4216_v7 = vpop.f32.mrf.mxu0 }
 0x6c8   :  { %v4332_v54 = vpop.f32.mrf.mxu2 }
 0x6c9   :  { %v4333_v20 = vadd.f32 %v4332_v54, %v4309_v58 }
 0x6ca   :  { %v4219_v3 = vpop.f32.mrf.mxu0 }
 0x6cd   :  { %v4193_v39 = vpop.f32.mrf.mxu3 }
 0x6ce   :  { %v4194_v6 = vadd.f32 %v4193_v39, %v4171_v33 }
 0x6d0   :  { %v4217_v50 = vadd.f32 %v4216_v7, %v4194_v6 }
 0x6d2   :  { %v4222_v18 = vadd.f32 %v4217_v50, %v4063_v43 }
 0x6d6   :  { %v4196_v22 = vpop.f32.mrf.mxu3  ;;  %v4465_v57 = vpop.f32.mrf.mxu1 }
 0x6d7   :  { %v4197_v51 = vadd.f32 %v4196_v22, %v4174_v29 }
 0x6d9   :  { %v4220_v1 = vadd.f32 %v4219_v3, %v4197_v51 }
 0x6db   :  { %v4223_v11 = vadd.f32 %v4220_v1, %v4064_v31 }
 0x6df   :  { %v4468_v40 = vpop.f32.mrf.mxu1 }
 0x6e2   :  { %v4488_v37 = vpop.f32.mrf.mxu2 }
 0x6e3   :  { %v4489_v30 = vadd.f32 %v4488_v37, %v4465_v57 }
 0x6e4   :  { %v4375_v10 = vpop.f32.mrf.mxu0 }
 0x6ec   :  { %v4491_v23 = vpop.f32.mrf.mxu2 }
 0x6ed   :  { %v4492_v26 = vadd.f32 %v4491_v23, %v4468_v40 }
 0x6ee   :  { %v4378_v52 = vpop.f32.mrf.mxu0 }
 0x6f1   :  { %v4352_v4 = vpop.f32.mrf.mxu3 }
 0x6f2   :  { %v4353_v47 = vadd.f32 %v4352_v4, %v4330_v62 }
 0x6f4   :  { %v4376_v12 = vadd.f32 %v4375_v10, %v4353_v47 }
 0x6f6   :  { %v4381_v60 = vadd.f32 %v4376_v12, %v4222_v18 }
 0x6fa   :  { %v4355_v32 = vpop.f32.mrf.mxu3  ;;  %v4624_v34 = vpop.f32.mrf.mxu1 }
 0x6fb   :  { %v4356_v13 = vadd.f32 %v4355_v32, %v4333_v20 }
 0x6fd   :  { %v4379_v14 = vadd.f32 %v4378_v52, %v4356_v13 }
 0x6ff   :  { %v4382_v53 = vadd.f32 %v4379_v14, %v4223_v11 }
 0x702   :  { %v4627_v25 = vpop.f32.mrf.mxu1 }
 0x706   :  { %v4534_v0 = vpop.f32.mrf.mxu0  ;;  %v4647_v45 = vpop.f32.mrf.mxu2 }
 0x707   :  { %v4648_v27 = vadd.f32 %v4647_v45, %v4624_v34 }
 0x70e   :  { %v4537_v9 = vpop.f32.mrf.mxu0  ;;  %v4650_v59 = vpop.f32.mrf.mxu2 }
 0x70f   :  { %v4651_v49 = vadd.f32 %v4650_v59, %v4627_v25 }
 0x712   :  { %v4511_v28 = vpop.f32.mrf.mxu3 }
 0x713   :  { %v4512_v35 = vadd.f32 %v4511_v28, %v4489_v30 }
 0x715   :  { %v4535_v36 = vadd.f32 %v4534_v0, %v4512_v35 }
 0x717   :  { %v4540_v2 = vadd.f32 %v4535_v36, %v4381_v60 }
 0x71a   :  { %v4514_v21 = vpop.f32.mrf.mxu3 }
 0x71b   :  { %v4515_v56 = vadd.f32 %v4514_v21, %v4492_v26 }
 0x71d   :  { %v4538_v7 = vadd.f32 %v4537_v9, %v4515_v56 }
 0x71f   :  { %v4541_v8 = vadd.f32 %v4538_v7, %v4382_v53 }
 0x726   :  { %v4693_v46 = vpop.f32.mrf.mxu0 }
 0x72e   :  { %v4696_v22 = vpop.f32.mrf.mxu0 }
 0x732   :  { %v4670_v24 = vpop.f32.mrf.mxu3 }
 0x733   :  { %v4671_v41 = vadd.f32 %v4670_v24, %v4648_v27 }
 0x735   :  { %v4694_v61 = vadd.f32 %v4693_v46, %v4671_v41 }
 0x737   :  { %v4699_v19 = vadd.f32 %v4694_v61, %v4540_v2 }
 0x739   :  { %v4705_v39 = vadd.f32 %v5614_v16, %v4699_v19 }
 0x73a   :  { %v4673_v38 = vpop.f32.mrf.mxu3 }
 0x73b   :  { %5615 = vtanh.f32 %v4705_v39  ;;  %v4674_v3 = vadd.f32 %v4673_v38, %v4651_v49 }
 0x73d   :  { %v4697_v15 = vadd.f32 %v4696_v22, %v4674_v3 }
 0x73f   :  { %v4700_v10 = vadd.f32 %v4697_v15, %v4541_v8 }
 0x741   :  { %v5616_v4 = vpop.eup %5615  ;;  %v4706_v54 = vadd.f32 %v5614_v16, %v4700_v10 }
 0x742   :  { %4710 = vst.msk [vmem:[%s10638_s11] sm:$0xff] %vm4709_vm1, %v5616_v4 }
 0x743   :  { %5617 = vtanh.f32 %v4706_v54 }
 0x749   :  { %v5618_v17 = vpop.eup %5617 }
 0x74a   :  { %4711 = vst.msk [vmem:[%s10638_s11 + $0x8] sm:$0xff] %vm4709_vm1, %v5618_v17 }

</bundles_post_ra>
